<compile_context>
chip_gen: v6e
topology: v6e:2x2x1
jax: 0.10.0
libtpu: 0.0.40
codegen_flags: <defaults>
</compile_context>

<pallas_src>
import numpy as np
import jax
import jax.numpy as jnp
from jax.experimental import pallas as pl
from jax.experimental.pallas import tpu as pltpu  # noqa: F401  (TPU backend)

BN_EPS = 1e-5
LRELU_SLOPE = 0.2
KERNEL = 4
STRIDE = 2


def _out_size(s):
    return (s - KERNEL) // STRIDE + 1


# ----------------------------------------------------------------------------
# In-kernel helpers
# ----------------------------------------------------------------------------
def _bn_lrelu(y, gamma, beta):
    """Training-mode BatchNorm2d folded into a per-channel affine, then
    LeakyReLU(0.2).  y: (M, C) conv output; gamma/beta: (1, C)."""
    inv_m = 1.0 / y.shape[0]
    mean = jnp.sum(y, axis=0, keepdims=True) * inv_m
    var = jnp.sum(y * y, axis=0, keepdims=True) * inv_m - mean * mean  # biased
    scale = gamma * jax.lax.rsqrt(var + BN_EPS)           # rsqrt -> EUP slot
    shift = beta - mean * scale
    z = y * scale + shift                                 # 2 VPU ops / element
    return jnp.maximum(z, LRELU_SLOPE * z)                # LeakyReLU(0.2)


def _make_fused_kernel(n, h1o, w1o, c1, c2):
    """Build the fused forward kernel for static shapes.

    n          batch size
    (h1o, w1o) spatial size of the block-1 output (13x13 for a 28x28 input)
    c1, c2     hidden_dim, 2*hidden_dim
    """
    h2o, w2o = _out_size(h1o), _out_size(w1o)
    h3o, w3o = _out_size(h2o), _out_size(w2o)
    assert h3o == 1 and w3o == 1, "final conv must produce a 1x1 map"
    m1 = n * h1o * w1o           # rows of the block-1 activation (n, h1, w1)
    m2 = n * h2o * w2o           # rows of the block-2 activation (n, h2, w2)

    def kernel(p1_ref, w1_ref, g1_ref, bt1_ref,
               base2_ref, w2_ref, g2_ref, bt2_ref,
               w3m_ref, b3_ref, o_ref):
        # ---- block 1: conv as im2col matmul (bias dropped: cancelled by BN) --
        y1 = jnp.dot(p1_ref[...], w1_ref[...], preferred_element_type=jnp.float32)
        a1 = _bn_lrelu(y1, g1_ref[...], bt1_ref[...])                  # (m1, c1)

        # ---- block 2: conv + BN + LeakyReLU, patches gathered in-VMEM --------
        # kernel=4/stride=2 patch extraction expressed as 16 static 0/1
        # selection matmuls:  y2 = sum_t  S_t @ a1 @ W2[t],
        # with S_t[m2, r] = (r == base2[m2] + tap_offset_t).
        r_idx = jax.lax.broadcasted_iota(jnp.int32, (m2, m1), 1)       # (m2, m1)
        base2 = base2_ref[...]                                         # (m2, 1)
        y2 = jnp.zeros((m2, c2), jnp.float32)
        for i in range(KERNEL):
            for j in range(KERNEL):
                t = i * KERNEL + j
                sel = jnp.where(r_idx == base2 + (i * w1o + j), 1.0, 0.0)
                gath = jnp.dot(sel, a1, preferred_element_type=jnp.float32)
                y2 = y2 + jnp.dot(gath, w2_ref[t],
                                  preferred_element_type=jnp.float32)
        a2 = _bn_lrelu(y2, g2_ref[...], bt2_ref[...])                  # (m2, c2)

        # ---- block 3: 4x4 conv -> single 1x1x1 logit per sample --------------
        # Conv weight pre-embedded into per-sample (m2, c2) spatial maps, so the
        # 1-output-column "matmul" is a VPU multiply + reduction (no MXU).
        for b in range(n):
            prod = a2 * w3m_ref[b]                                     # (m2, c2)
            s = jnp.sum(jnp.sum(prod, axis=1, keepdims=True),
                        axis=0, keepdims=True)                         # (1, 1)
            o_ref[b:b + 1, :] = s + b3_ref[...]

    return kernel


# ----------------------------------------------------------------------------
# Wrapper-side layout plumbing (block-1 im2col only; no FLOPs of substance)
# ----------------------------------------------------------------------------
def _im2col(x, kh, kw, stride):
    """x: (N, H, W, C) -> (N*Ho*Wo, kh*kw*C) patches, tap-major / channel-minor."""
    n, h, w, c = x.shape
    ho = (h - kh) // stride + 1
    wo = (w - kw) // stride + 1
    cols = []
    for i in range(kh):
        for j in range(kw):
            cols.append(x[:, i:i + stride * ho:stride, j:j + stride * wo:stride, :])
    p = jnp.stack(cols, axis=3)                   # (N, Ho, Wo, kh*kw, C)
    return p.reshape(n * ho * wo, kh * kw * c), ho, wo


@jax.jit
def discriminator_forward(image_nchw, params):
    """image_nchw: (N, C, H, W) float (PyTorch layout).  Returns (N, 1)."""
    (w1, g1, bt1), (w2s, g2, bt2), (w3, b3) = params
    x = jnp.transpose(image_nchw, (0, 2, 3, 1)).astype(jnp.float32)    # NHWC
    n = x.shape[0]
    c1 = w1.shape[1]
    c2 = w2s.shape[2]

    # Block-1 im2col (input-side only): everything downstream is fused into
    # one Pallas kernel and stays in VMEM.
    p1, h1o, w1o = _im2col(x, KERNEL, KERNEL, STRIDE)
    h2o, w2o = _out_size(h1o), _out_size(w1o)
    m2 = n * h2o * w2o

    # Static row-base table for the in-kernel block-2 patch selection:
    # row of a1 holding output position (n, h2, w2) at tap (0, 0).
    m2_idx = np.arange(m2)
    nb = m2_idx // (h2o * w2o)
    hb = (m2_idx // w2o) % h2o
    wb = m2_idx % w2o
    base2 = nb * (h1o * w1o) + (STRIDE * hb) * w1o + STRIDE * wb
    base2 = jnp.asarray(base2.reshape(m2, 1).astype(np.int32))

    # Block-3 conv weight embedded into per-sample (m2, c2) spatial maps.
    w3_sp = jnp.zeros((h2o, w2o, c2), jnp.float32)
    w3_sp = w3_sp.at[:KERNEL, :KERNEL, :].set(w3.reshape(KERNEL, KERNEL, c2))
    w3_sp = w3_sp.reshape(h2o * w2o, c2)
    w3maps = jnp.zeros((n, m2, c2), jnp.float32)
    for b in range(n):
        w3maps = w3maps.at[b, b * h2o * w2o:(b + 1) * h2o * w2o, :].set(w3_sp)

    kernel = _make_fused_kernel(n, h1o, w1o, c1, c2)
    out = pl.pallas_call(
        kernel,
        out_shape=jax.ShapeDtypeStruct((n, 1), jnp.float32),
    )(p1, w1, g1, bt1, base2, w2s, g2, bt2, w3maps, b3.reshape(1, 1))
    # PyTorch: disc_pred.view(N, -1); final map is (N, 1, 1, 1) -> (N, 1).
    return out


# ----------------------------------------------------------------------------
# Parameter construction (deterministic, synthetic -- no checkpoint load)
# ----------------------------------------------------------------------------
def init_discriminator_params(key, image_channel=1, hidden_dim=16):
    """Parameters stored directly in the layouts the fused kernel consumes.
    Conv biases for blocks 1/2 are omitted: a per-channel bias before
    train-mode BatchNorm is exactly cancelled by the mean subtraction."""
    c0, c1, c2 = image_channel, hidden_dim, 2 * hidden_dim
    k2 = KERNEL * KERNEL
    kw1, kw2, kw3, kb3, kg1, kb1, kg2, kb2 = jax.random.split(key, 8)
    w1 = jax.random.normal(kw1, (k2 * c0, c1), jnp.float32) / np.sqrt(k2 * c0)
    w2 = jax.random.normal(kw2, (k2 * c1, c2), jnp.float32) / np.sqrt(k2 * c1)
    w3 = jax.random.normal(kw3, (k2 * c2,), jnp.float32) / np.sqrt(k2 * c2)
    b3 = 0.01 * jax.random.normal(kb3, (1,), jnp.float32)
    g1 = 1.0 + 0.1 * jax.random.normal(kg1, (1, c1), jnp.float32)
    bt1 = 0.1 * jax.random.normal(kb1, (1, c1), jnp.float32)
    g2 = 1.0 + 0.1 * jax.random.normal(kg2, (1, c2), jnp.float32)
    bt2 = 0.1 * jax.random.normal(kb2, (1, c2), jnp.float32)
    w2s = w2.reshape(k2, c1, c2)        # per-tap layout used by the kernel
    return ((w1, g1, bt1), (w2s, g2, bt2), (w3, b3))


# ----------------------------------------------------------------------------
# Pure-JAX reference (layer-by-layer im2col conv + BN(train) + LeakyReLU)
# ----------------------------------------------------------------------------
def _reference_forward(image_nchw, params):
    (w1, g1, bt1), (w2s, g2, bt2), (w3, b3) = params
    c1 = w1.shape[1]
    c2 = w2s.shape[2]

    def bn_lrelu(y, g, b):
        mean = jnp.mean(y, axis=0, keepdims=True)
        var = jnp.mean((y - mean) ** 2, axis=0, keepdims=True)
        z = g * (y - mean) / jnp.sqrt(var + BN_EPS) + b
        return jnp.where(z >= 0, z, LRELU_SLOPE * z)

    x = jnp.transpose(image_nchw, (0, 2, 3, 1)).astype(jnp.float32)
    n = x.shape[0]
    p1, h1o, w1o = _im2col(x, KERNEL, KERNEL, STRIDE)
    a1 = bn_lrelu(p1 @ w1, g1, bt1).reshape(n, h1o, w1o, c1)
    p2, h2o, w2o = _im2col(a1, KERNEL, KERNEL, STRIDE)
    a2 = bn_lrelu(p2 @ w2s.reshape(-1, c2), g2, bt2).reshape(n, h2o, w2o, c2)
    p3, _, _ = _im2col(a2, KERNEL, KERNEL, STRIDE)
    y3 = p3 @ w3.reshape(-1, 1) + b3.reshape(1, 1)
    return y3.reshape(n, -1)


# ----------------------------------------------------------------------------
if __name__ == "__main__":
    key = jax.random.PRNGKey(0)
    key, k_img, k_par = jax.random.split(key, 3)

    # MNIST-like input (module default image_channel=1); 28 -> 13 -> 5 -> 1
    # under kernel=4, stride=2, no padding.  hidden_dim kept small.
    batch, image_channel, spatial, hidden_dim = 2, 1, 28, 16
    image = jax.random.normal(
        k_img, (batch, image_channel, spatial, spatial), jnp.float32)
    params = init_discriminator_params(
        k_par, image_channel=image_channel, hidden_dim=hidden_dim)

    pred = discriminator_forward(image, params)
    jax.block_until_ready(pred)

    assert pred.shape == (batch, 1), pred.shape
    assert bool(jnp.all(jnp.isfinite(pred)))

    ref = _reference_forward(image, params)
    assert jnp.allclose(pred, ref, atol=1e-3, rtol=1e-3), (pred, ref)

    print("KERNEL_OK")
</pallas_src>

<mosaic_0001>
module attributes {stable_mosaic.version = 11 : i64} {
  func.func @kernel(%arg0: memref<338x16xf32, #tpu.memory_space<vmem>>, %arg1: memref<16x16xf32, #tpu.memory_space<vmem>>, %arg2: memref<1x16xf32, #tpu.memory_space<vmem>>, %arg3: memref<1x16xf32, #tpu.memory_space<vmem>>, %arg4: memref<50x1xi32, #tpu.memory_space<vmem>>, %arg5: memref<16x16x32xf32, #tpu.memory_space<vmem>>, %arg6: memref<1x32xf32, #tpu.memory_space<vmem>>, %arg7: memref<1x32xf32, #tpu.memory_space<vmem>>, %arg8: memref<2x50x32xf32, #tpu.memory_space<vmem>>, %arg9: memref<1x1xf32, #tpu.memory_space<vmem>>, %arg10: memref<2x1xf32, #tpu.memory_space<vmem>>) attributes {dimension_semantics = [], scalar_prefetch = 0 : i64, scratch_operands = 0 : i64, tpu.core_type = #tpu.core_type<tc>} {
    %c0 = arith.constant 0 : index
    %c0_0 = arith.constant 0 : index
    %0 = vector.load %arg0[%c0, %c0_0] : memref<338x16xf32, #tpu.memory_space<vmem>>, vector<338x16xf32>
    %c0_1 = arith.constant 0 : index
    %c0_2 = arith.constant 0 : index
    %1 = vector.load %arg1[%c0_1, %c0_2] : memref<16x16xf32, #tpu.memory_space<vmem>>, vector<16x16xf32>
    %cst = arith.constant dense<0.000000e+00> : vector<338x16xf32>
    %2 = tpu.matmul %0, %1, %cst {dimension_numbers = #tpu.dot_dimension_numbers<[1], [0], [0], [1], [0, 0, 1, 1], [], []>} : vector<338x16xf32>, vector<16x16xf32>, vector<338x16xf32> -> vector<338x16xf32>
    %c0_3 = arith.constant 0 : index
    %c0_4 = arith.constant 0 : index
    %3 = vector.load %arg2[%c0_3, %c0_4] : memref<1x16xf32, #tpu.memory_space<vmem>>, vector<1x16xf32>
    %c0_5 = arith.constant 0 : index
    %c0_6 = arith.constant 0 : index
    %4 = vector.load %arg3[%c0_5, %c0_6] : memref<1x16xf32, #tpu.memory_space<vmem>>, vector<1x16xf32>
    %cst_7 = arith.constant dense<0.000000e+00> : vector<16xf32>
    %5 = vector.multi_reduction <add>, %2, %cst_7 [0] : vector<338x16xf32> to vector<16xf32>
    %6 = vector.shape_cast %5 : vector<16xf32> to vector<1x16xf32>
    %cst_8 = arith.constant 2.958580e-03 : f32
    %7 = vector.broadcast %cst_8 : f32 to vector<1x16xf32>
    %8 = arith.mulf %6, %7 : vector<1x16xf32>
    %9 = arith.mulf %2, %2 : vector<338x16xf32>
    %cst_9 = arith.constant dense<0.000000e+00> : vector<16xf32>
    %10 = vector.multi_reduction <add>, %9, %cst_9 [0] : vector<338x16xf32> to vector<16xf32>
    %11 = vector.shape_cast %10 : vector<16xf32> to vector<1x16xf32>
    %cst_10 = arith.constant 2.958580e-03 : f32
    %12 = vector.broadcast %cst_10 : f32 to vector<1x16xf32>
    %13 = arith.mulf %11, %12 : vector<1x16xf32>
    %14 = arith.mulf %8, %8 : vector<1x16xf32>
    %15 = arith.subf %13, %14 : vector<1x16xf32>
    %cst_11 = arith.constant 9.99999974E-6 : f32
    %16 = vector.broadcast %cst_11 : f32 to vector<1x16xf32>
    %17 = arith.addf %15, %16 : vector<1x16xf32>
    %18 = math.rsqrt %17 : vector<1x16xf32>
    %19 = arith.mulf %3, %18 : vector<1x16xf32>
    %20 = arith.mulf %8, %19 : vector<1x16xf32>
    %21 = arith.subf %4, %20 : vector<1x16xf32>
    %22 = vector.broadcast %19 : vector<1x16xf32> to vector<338x16xf32>
    %23 = arith.mulf %2, %22 : vector<338x16xf32>
    %24 = vector.broadcast %21 : vector<1x16xf32> to vector<338x16xf32>
    %25 = arith.addf %23, %24 : vector<338x16xf32>
    %cst_12 = arith.constant 2.000000e-01 : f32
    %26 = vector.broadcast %cst_12 : f32 to vector<338x16xf32>
    %27 = arith.mulf %26, %25 : vector<338x16xf32>
    %28 = arith.maximumf %25, %27 : vector<338x16xf32>
    %29 = tpu.iota {dimensions = array<i32: 1>} : vector<50x338xi32>
    %c0_13 = arith.constant 0 : index
    %c0_14 = arith.constant 0 : index
    %30 = vector.load %arg4[%c0_13, %c0_14] : memref<50x1xi32, #tpu.memory_space<vmem>>, vector<50x1xi32>
    %cst_15 = arith.constant 0.000000e+00 : f32
    %31 = vector.broadcast %cst_15 : f32 to vector<50x32xf32>
    %c0_i32 = arith.constant 0 : i32
    %32 = vector.broadcast %c0_i32 : i32 to vector<50x1xi32>
    %33 = arith.addi %30, %32 : vector<50x1xi32>
    %34 = vector.broadcast %33 : vector<50x1xi32> to vector<50x338xi32>
    %35 = arith.cmpi eq, %29, %34 : vector<50x338xi32>
    %cst_16 = arith.constant 1.000000e+00 : f32
    %cst_17 = arith.constant 0.000000e+00 : f32
    %36 = vector.broadcast %cst_16 : f32 to vector<50x338xf32>
    %37 = vector.broadcast %cst_17 : f32 to vector<50x338xf32>
    %38 = arith.select %35, %36, %37 : vector<50x338xi1>, vector<50x338xf32>
    %cst_18 = arith.constant dense<0.000000e+00> : vector<50x16xf32>
    %39 = tpu.matmul %38, %28, %cst_18 {dimension_numbers = #tpu.dot_dimension_numbers<[1], [0], [0], [1], [0, 0, 1, 1], [], []>} : vector<50x338xf32>, vector<338x16xf32>, vector<50x16xf32> -> vector<50x16xf32>
    %c0_19 = arith.constant 0 : index
    %c0_20 = arith.constant 0 : index
    %c0_21 = arith.constant 0 : index
    %40 = vector.load %arg5[%c0_19, %c0_20, %c0_21] : memref<16x16x32xf32, #tpu.memory_space<vmem>>, vector<1x16x32xf32>
    %41 = vector.shape_cast %40 : vector<1x16x32xf32> to vector<16x32xf32>
    %cst_22 = arith.constant dense<0.000000e+00> : vector<50x32xf32>
    %42 = tpu.matmul %39, %41, %cst_22 {dimension_numbers = #tpu.dot_dimension_numbers<[1], [0], [0], [1], [0, 0, 1, 1], [], []>} : vector<50x16xf32>, vector<16x32xf32>, vector<50x32xf32> -> vector<50x32xf32>
    %43 = arith.addf %31, %42 : vector<50x32xf32>
    %c1_i32 = arith.constant 1 : i32
    %44 = vector.broadcast %c1_i32 : i32 to vector<50x1xi32>
    %45 = arith.addi %30, %44 : vector<50x1xi32>
    %46 = vector.broadcast %45 : vector<50x1xi32> to vector<50x338xi32>
    %47 = arith.cmpi eq, %29, %46 : vector<50x338xi32>
    %cst_23 = arith.constant 1.000000e+00 : f32
    %cst_24 = arith.constant 0.000000e+00 : f32
    %48 = vector.broadcast %cst_23 : f32 to vector<50x338xf32>
    %49 = vector.broadcast %cst_24 : f32 to vector<50x338xf32>
    %50 = arith.select %47, %48, %49 : vector<50x338xi1>, vector<50x338xf32>
    %cst_25 = arith.constant dense<0.000000e+00> : vector<50x16xf32>
    %51 = tpu.matmul %50, %28, %cst_25 {dimension_numbers = #tpu.dot_dimension_numbers<[1], [0], [0], [1], [0, 0, 1, 1], [], []>} : vector<50x338xf32>, vector<338x16xf32>, vector<50x16xf32> -> vector<50x16xf32>
    %c1 = arith.constant 1 : index
    %c0_26 = arith.constant 0 : index
    %c0_27 = arith.constant 0 : index
    %52 = vector.load %arg5[%c1, %c0_26, %c0_27] : memref<16x16x32xf32, #tpu.memory_space<vmem>>, vector<1x16x32xf32>
    %53 = vector.shape_cast %52 : vector<1x16x32xf32> to vector<16x32xf32>
    %cst_28 = arith.constant dense<0.000000e+00> : vector<50x32xf32>
    %54 = tpu.matmul %51, %53, %cst_28 {dimension_numbers = #tpu.dot_dimension_numbers<[1], [0], [0], [1], [0, 0, 1, 1], [], []>} : vector<50x16xf32>, vector<16x32xf32>, vector<50x32xf32> -> vector<50x32xf32>
    %55 = arith.addf %43, %54 : vector<50x32xf32>
    %c2_i32 = arith.constant 2 : i32
    %56 = vector.broadcast %c2_i32 : i32 to vector<50x1xi32>
    %57 = arith.addi %30, %56 : vector<50x1xi32>
    %58 = vector.broadcast %57 : vector<50x1xi32> to vector<50x338xi32>
    %59 = arith.cmpi eq, %29, %58 : vector<50x338xi32>
    %cst_29 = arith.constant 1.000000e+00 : f32
    %cst_30 = arith.constant 0.000000e+00 : f32
    %60 = vector.broadcast %cst_29 : f32 to vector<50x338xf32>
    %61 = vector.broadcast %cst_30 : f32 to vector<50x338xf32>
    %62 = arith.select %59, %60, %61 : vector<50x338xi1>, vector<50x338xf32>
    %cst_31 = arith.constant dense<0.000000e+00> : vector<50x16xf32>
    %63 = tpu.matmul %62, %28, %cst_31 {dimension_numbers = #tpu.dot_dimension_numbers<[1], [0], [0], [1], [0, 0, 1, 1], [], []>} : vector<50x338xf32>, vector<338x16xf32>, vector<50x16xf32> -> vector<50x16xf32>
    %c2 = arith.constant 2 : index
    %c0_32 = arith.constant 0 : index
    %c0_33 = arith.constant 0 : index
    %64 = vector.load %arg5[%c2, %c0_32, %c0_33] : memref<16x16x32xf32, #tpu.memory_space<vmem>>, vector<1x16x32xf32>
    %65 = vector.shape_cast %64 : vector<1x16x32xf32> to vector<16x32xf32>
    %cst_34 = arith.constant dense<0.000000e+00> : vector<50x32xf32>
    %66 = tpu.matmul %63, %65, %cst_34 {dimension_numbers = #tpu.dot_dimension_numbers<[1], [0], [0], [1], [0, 0, 1, 1], [], []>} : vector<50x16xf32>, vector<16x32xf32>, vector<50x32xf32> -> vector<50x32xf32>
    %67 = arith.addf %55, %66 : vector<50x32xf32>
    %c3_i32 = arith.constant 3 : i32
    %68 = vector.broadcast %c3_i32 : i32 to vector<50x1xi32>
    %69 = arith.addi %30, %68 : vector<50x1xi32>
    %70 = vector.broadcast %69 : vector<50x1xi32> to vector<50x338xi32>
    %71 = arith.cmpi eq, %29, %70 : vector<50x338xi32>
    %cst_35 = arith.constant 1.000000e+00 : f32
    %cst_36 = arith.constant 0.000000e+00 : f32
    %72 = vector.broadcast %cst_35 : f32 to vector<50x338xf32>
    %73 = vector.broadcast %cst_36 : f32 to vector<50x338xf32>
    %74 = arith.select %71, %72, %73 : vector<50x338xi1>, vector<50x338xf32>
    %cst_37 = arith.constant dense<0.000000e+00> : vector<50x16xf32>
    %75 = tpu.matmul %74, %28, %cst_37 {dimension_numbers = #tpu.dot_dimension_numbers<[1], [0], [0], [1], [0, 0, 1, 1], [], []>} : vector<50x338xf32>, vector<338x16xf32>, vector<50x16xf32> -> vector<50x16xf32>
    %c3 = arith.constant 3 : index
    %c0_38 = arith.constant 0 : index
    %c0_39 = arith.constant 0 : index
    %76 = vector.load %arg5[%c3, %c0_38, %c0_39] : memref<16x16x32xf32, #tpu.memory_space<vmem>>, vector<1x16x32xf32>
    %77 = vector.shape_cast %76 : vector<1x16x32xf32> to vector<16x32xf32>
    %cst_40 = arith.constant dense<0.000000e+00> : vector<50x32xf32>
    %78 = tpu.matmul %75, %77, %cst_40 {dimension_numbers = #tpu.dot_dimension_numbers<[1], [0], [0], [1], [0, 0, 1, 1], [], []>} : vector<50x16xf32>, vector<16x32xf32>, vector<50x32xf32> -> vector<50x32xf32>
    %79 = arith.addf %67, %78 : vector<50x32xf32>
    %c13_i32 = arith.constant 13 : i32
    %80 = vector.broadcast %c13_i32 : i32 to vector<50x1xi32>
    %81 = arith.addi %30, %80 : vector<50x1xi32>
    %82 = vector.broadcast %81 : vector<50x1xi32> to vector<50x338xi32>
    %83 = arith.cmpi eq, %29, %82 : vector<50x338xi32>
    %cst_41 = arith.constant 1.000000e+00 : f32
    %cst_42 = arith.constant 0.000000e+00 : f32
    %84 = vector.broadcast %cst_41 : f32 to vector<50x338xf32>
    %85 = vector.broadcast %cst_42 : f32 to vector<50x338xf32>
    %86 = arith.select %83, %84, %85 : vector<50x338xi1>, vector<50x338xf32>
    %cst_43 = arith.constant dense<0.000000e+00> : vector<50x16xf32>
    %87 = tpu.matmul %86, %28, %cst_43 {dimension_numbers = #tpu.dot_dimension_numbers<[1], [0], [0], [1], [0, 0, 1, 1], [], []>} : vector<50x338xf32>, vector<338x16xf32>, vector<50x16xf32> -> vector<50x16xf32>
    %c4 = arith.constant 4 : index
    %c0_44 = arith.constant 0 : index
    %c0_45 = arith.constant 0 : index
    %88 = vector.load %arg5[%c4, %c0_44, %c0_45] : memref<16x16x32xf32, #tpu.memory_space<vmem>>, vector<1x16x32xf32>
    %89 = vector.shape_cast %88 : vector<1x16x32xf32> to vector<16x32xf32>
    %cst_46 = arith.constant dense<0.000000e+00> : vector<50x32xf32>
    %90 = tpu.matmul %87, %89, %cst_46 {dimension_numbers = #tpu.dot_dimension_numbers<[1], [0], [0], [1], [0, 0, 1, 1], [], []>} : vector<50x16xf32>, vector<16x32xf32>, vector<50x32xf32> -> vector<50x32xf32>
    %91 = arith.addf %79, %90 : vector<50x32xf32>
    %c14_i32 = arith.constant 14 : i32
    %92 = vector.broadcast %c14_i32 : i32 to vector<50x1xi32>
    %93 = arith.addi %30, %92 : vector<50x1xi32>
    %94 = vector.broadcast %93 : vector<50x1xi32> to vector<50x338xi32>
    %95 = arith.cmpi eq, %29, %94 : vector<50x338xi32>
    %cst_47 = arith.constant 1.000000e+00 : f32
    %cst_48 = arith.constant 0.000000e+00 : f32
    %96 = vector.broadcast %cst_47 : f32 to vector<50x338xf32>
    %97 = vector.broadcast %cst_48 : f32 to vector<50x338xf32>
    %98 = arith.select %95, %96, %97 : vector<50x338xi1>, vector<50x338xf32>
    %cst_49 = arith.constant dense<0.000000e+00> : vector<50x16xf32>
    %99 = tpu.matmul %98, %28, %cst_49 {dimension_numbers = #tpu.dot_dimension_numbers<[1], [0], [0], [1], [0, 0, 1, 1], [], []>} : vector<50x338xf32>, vector<338x16xf32>, vector<50x16xf32> -> vector<50x16xf32>
    %c5 = arith.constant 5 : index
    %c0_50 = arith.constant 0 : index
    %c0_51 = arith.constant 0 : index
    %100 = vector.load %arg5[%c5, %c0_50, %c0_51] : memref<16x16x32xf32, #tpu.memory_space<vmem>>, vector<1x16x32xf32>
    %101 = vector.shape_cast %100 : vector<1x16x32xf32> to vector<16x32xf32>
    %cst_52 = arith.constant dense<0.000000e+00> : vector<50x32xf32>
    %102 = tpu.matmul %99, %101, %cst_52 {dimension_numbers = #tpu.dot_dimension_numbers<[1], [0], [0], [1], [0, 0, 1, 1], [], []>} : vector<50x16xf32>, vector<16x32xf32>, vector<50x32xf32> -> vector<50x32xf32>
    %103 = arith.addf %91, %102 : vector<50x32xf32>
    %c15_i32 = arith.constant 15 : i32
    %104 = vector.broadcast %c15_i32 : i32 to vector<50x1xi32>
    %105 = arith.addi %30, %104 : vector<50x1xi32>
    %106 = vector.broadcast %105 : vector<50x1xi32> to vector<50x338xi32>
    %107 = arith.cmpi eq, %29, %106 : vector<50x338xi32>
    %cst_53 = arith.constant 1.000000e+00 : f32
    %cst_54 = arith.constant 0.000000e+00 : f32
    %108 = vector.broadcast %cst_53 : f32 to vector<50x338xf32>
    %109 = vector.broadcast %cst_54 : f32 to vector<50x338xf32>
    %110 = arith.select %107, %108, %109 : vector<50x338xi1>, vector<50x338xf32>
    %cst_55 = arith.constant dense<0.000000e+00> : vector<50x16xf32>
    %111 = tpu.matmul %110, %28, %cst_55 {dimension_numbers = #tpu.dot_dimension_numbers<[1], [0], [0], [1], [0, 0, 1, 1], [], []>} : vector<50x338xf32>, vector<338x16xf32>, vector<50x16xf32> -> vector<50x16xf32>
    %c6 = arith.constant 6 : index
    %c0_56 = arith.constant 0 : index
    %c0_57 = arith.constant 0 : index
    %112 = vector.load %arg5[%c6, %c0_56, %c0_57] : memref<16x16x32xf32, #tpu.memory_space<vmem>>, vector<1x16x32xf32>
    %113 = vector.shape_cast %112 : vector<1x16x32xf32> to vector<16x32xf32>
    %cst_58 = arith.constant dense<0.000000e+00> : vector<50x32xf32>
    %114 = tpu.matmul %111, %113, %cst_58 {dimension_numbers = #tpu.dot_dimension_numbers<[1], [0], [0], [1], [0, 0, 1, 1], [], []>} : vector<50x16xf32>, vector<16x32xf32>, vector<50x32xf32> -> vector<50x32xf32>
    %115 = arith.addf %103, %114 : vector<50x32xf32>
    %c16_i32 = arith.constant 16 : i32
    %116 = vector.broadcast %c16_i32 : i32 to vector<50x1xi32>
    %117 = arith.addi %30, %116 : vector<50x1xi32>
    %118 = vector.broadcast %117 : vector<50x1xi32> to vector<50x338xi32>
    %119 = arith.cmpi eq, %29, %118 : vector<50x338xi32>
    %cst_59 = arith.constant 1.000000e+00 : f32
    %cst_60 = arith.constant 0.000000e+00 : f32
    %120 = vector.broadcast %cst_59 : f32 to vector<50x338xf32>
    %121 = vector.broadcast %cst_60 : f32 to vector<50x338xf32>
    %122 = arith.select %119, %120, %121 : vector<50x338xi1>, vector<50x338xf32>
    %cst_61 = arith.constant dense<0.000000e+00> : vector<50x16xf32>
    %123 = tpu.matmul %122, %28, %cst_61 {dimension_numbers = #tpu.dot_dimension_numbers<[1], [0], [0], [1], [0, 0, 1, 1], [], []>} : vector<50x338xf32>, vector<338x16xf32>, vector<50x16xf32> -> vector<50x16xf32>
    %c7 = arith.constant 7 : index
    %c0_62 = arith.constant 0 : index
    %c0_63 = arith.constant 0 : index
    %124 = vector.load %arg5[%c7, %c0_62, %c0_63] : memref<16x16x32xf32, #tpu.memory_space<vmem>>, vector<1x16x32xf32>
    %125 = vector.shape_cast %124 : vector<1x16x32xf32> to vector<16x32xf32>
    %cst_64 = arith.constant dense<0.000000e+00> : vector<50x32xf32>
    %126 = tpu.matmul %123, %125, %cst_64 {dimension_numbers = #tpu.dot_dimension_numbers<[1], [0], [0], [1], [0, 0, 1, 1], [], []>} : vector<50x16xf32>, vector<16x32xf32>, vector<50x32xf32> -> vector<50x32xf32>
    %127 = arith.addf %115, %126 : vector<50x32xf32>
    %c26_i32 = arith.constant 26 : i32
    %128 = vector.broadcast %c26_i32 : i32 to vector<50x1xi32>
    %129 = arith.addi %30, %128 : vector<50x1xi32>
    %130 = vector.broadcast %129 : vector<50x1xi32> to vector<50x338xi32>
    %131 = arith.cmpi eq, %29, %130 : vector<50x338xi32>
    %cst_65 = arith.constant 1.000000e+00 : f32
    %cst_66 = arith.constant 0.000000e+00 : f32
    %132 = vector.broadcast %cst_65 : f32 to vector<50x338xf32>
    %133 = vector.broadcast %cst_66 : f32 to vector<50x338xf32>
    %134 = arith.select %131, %132, %133 : vector<50x338xi1>, vector<50x338xf32>
    %cst_67 = arith.constant dense<0.000000e+00> : vector<50x16xf32>
    %135 = tpu.matmul %134, %28, %cst_67 {dimension_numbers = #tpu.dot_dimension_numbers<[1], [0], [0], [1], [0, 0, 1, 1], [], []>} : vector<50x338xf32>, vector<338x16xf32>, vector<50x16xf32> -> vector<50x16xf32>
    %c8 = arith.constant 8 : index
    %c0_68 = arith.constant 0 : index
    %c0_69 = arith.constant 0 : index
    %136 = vector.load %arg5[%c8, %c0_68, %c0_69] : memref<16x16x32xf32, #tpu.memory_space<vmem>>, vector<1x16x32xf32>
    %137 = vector.shape_cast %136 : vector<1x16x32xf32> to vector<16x32xf32>
    %cst_70 = arith.constant dense<0.000000e+00> : vector<50x32xf32>
    %138 = tpu.matmul %135, %137, %cst_70 {dimension_numbers = #tpu.dot_dimension_numbers<[1], [0], [0], [1], [0, 0, 1, 1], [], []>} : vector<50x16xf32>, vector<16x32xf32>, vector<50x32xf32> -> vector<50x32xf32>
    %139 = arith.addf %127, %138 : vector<50x32xf32>
    %c27_i32 = arith.constant 27 : i32
    %140 = vector.broadcast %c27_i32 : i32 to vector<50x1xi32>
    %141 = arith.addi %30, %140 : vector<50x1xi32>
    %142 = vector.broadcast %141 : vector<50x1xi32> to vector<50x338xi32>
    %143 = arith.cmpi eq, %29, %142 : vector<50x338xi32>
    %cst_71 = arith.constant 1.000000e+00 : f32
    %cst_72 = arith.constant 0.000000e+00 : f32
    %144 = vector.broadcast %cst_71 : f32 to vector<50x338xf32>
    %145 = vector.broadcast %cst_72 : f32 to vector<50x338xf32>
    %146 = arith.select %143, %144, %145 : vector<50x338xi1>, vector<50x338xf32>
    %cst_73 = arith.constant dense<0.000000e+00> : vector<50x16xf32>
    %147 = tpu.matmul %146, %28, %cst_73 {dimension_numbers = #tpu.dot_dimension_numbers<[1], [0], [0], [1], [0, 0, 1, 1], [], []>} : vector<50x338xf32>, vector<338x16xf32>, vector<50x16xf32> -> vector<50x16xf32>
    %c9 = arith.constant 9 : index
    %c0_74 = arith.constant 0 : index
    %c0_75 = arith.constant 0 : index
    %148 = vector.load %arg5[%c9, %c0_74, %c0_75] : memref<16x16x32xf32, #tpu.memory_space<vmem>>, vector<1x16x32xf32>
    %149 = vector.shape_cast %148 : vector<1x16x32xf32> to vector<16x32xf32>
    %cst_76 = arith.constant dense<0.000000e+00> : vector<50x32xf32>
    %150 = tpu.matmul %147, %149, %cst_76 {dimension_numbers = #tpu.dot_dimension_numbers<[1], [0], [0], [1], [0, 0, 1, 1], [], []>} : vector<50x16xf32>, vector<16x32xf32>, vector<50x32xf32> -> vector<50x32xf32>
    %151 = arith.addf %139, %150 : vector<50x32xf32>
    %c28_i32 = arith.constant 28 : i32
    %152 = vector.broadcast %c28_i32 : i32 to vector<50x1xi32>
    %153 = arith.addi %30, %152 : vector<50x1xi32>
    %154 = vector.broadcast %153 : vector<50x1xi32> to vector<50x338xi32>
    %155 = arith.cmpi eq, %29, %154 : vector<50x338xi32>
    %cst_77 = arith.constant 1.000000e+00 : f32
    %cst_78 = arith.constant 0.000000e+00 : f32
    %156 = vector.broadcast %cst_77 : f32 to vector<50x338xf32>
    %157 = vector.broadcast %cst_78 : f32 to vector<50x338xf32>
    %158 = arith.select %155, %156, %157 : vector<50x338xi1>, vector<50x338xf32>
    %cst_79 = arith.constant dense<0.000000e+00> : vector<50x16xf32>
    %159 = tpu.matmul %158, %28, %cst_79 {dimension_numbers = #tpu.dot_dimension_numbers<[1], [0], [0], [1], [0, 0, 1, 1], [], []>} : vector<50x338xf32>, vector<338x16xf32>, vector<50x16xf32> -> vector<50x16xf32>
    %c10 = arith.constant 10 : index
    %c0_80 = arith.constant 0 : index
    %c0_81 = arith.constant 0 : index
    %160 = vector.load %arg5[%c10, %c0_80, %c0_81] : memref<16x16x32xf32, #tpu.memory_space<vmem>>, vector<1x16x32xf32>
    %161 = vector.shape_cast %160 : vector<1x16x32xf32> to vector<16x32xf32>
    %cst_82 = arith.constant dense<0.000000e+00> : vector<50x32xf32>
    %162 = tpu.matmul %159, %161, %cst_82 {dimension_numbers = #tpu.dot_dimension_numbers<[1], [0], [0], [1], [0, 0, 1, 1], [], []>} : vector<50x16xf32>, vector<16x32xf32>, vector<50x32xf32> -> vector<50x32xf32>
    %163 = arith.addf %151, %162 : vector<50x32xf32>
    %c29_i32 = arith.constant 29 : i32
    %164 = vector.broadcast %c29_i32 : i32 to vector<50x1xi32>
    %165 = arith.addi %30, %164 : vector<50x1xi32>
    %166 = vector.broadcast %165 : vector<50x1xi32> to vector<50x338xi32>
    %167 = arith.cmpi eq, %29, %166 : vector<50x338xi32>
    %cst_83 = arith.constant 1.000000e+00 : f32
    %cst_84 = arith.constant 0.000000e+00 : f32
    %168 = vector.broadcast %cst_83 : f32 to vector<50x338xf32>
    %169 = vector.broadcast %cst_84 : f32 to vector<50x338xf32>
    %170 = arith.select %167, %168, %169 : vector<50x338xi1>, vector<50x338xf32>
    %cst_85 = arith.constant dense<0.000000e+00> : vector<50x16xf32>
    %171 = tpu.matmul %170, %28, %cst_85 {dimension_numbers = #tpu.dot_dimension_numbers<[1], [0], [0], [1], [0, 0, 1, 1], [], []>} : vector<50x338xf32>, vector<338x16xf32>, vector<50x16xf32> -> vector<50x16xf32>
    %c11 = arith.constant 11 : index
    %c0_86 = arith.constant 0 : index
    %c0_87 = arith.constant 0 : index
    %172 = vector.load %arg5[%c11, %c0_86, %c0_87] : memref<16x16x32xf32, #tpu.memory_space<vmem>>, vector<1x16x32xf32>
    %173 = vector.shape_cast %172 : vector<1x16x32xf32> to vector<16x32xf32>
    %cst_88 = arith.constant dense<0.000000e+00> : vector<50x32xf32>
    %174 = tpu.matmul %171, %173, %cst_88 {dimension_numbers = #tpu.dot_dimension_numbers<[1], [0], [0], [1], [0, 0, 1, 1], [], []>} : vector<50x16xf32>, vector<16x32xf32>, vector<50x32xf32> -> vector<50x32xf32>
    %175 = arith.addf %163, %174 : vector<50x32xf32>
    %c39_i32 = arith.constant 39 : i32
    %176 = vector.broadcast %c39_i32 : i32 to vector<50x1xi32>
    %177 = arith.addi %30, %176 : vector<50x1xi32>
    %178 = vector.broadcast %177 : vector<50x1xi32> to vector<50x338xi32>
    %179 = arith.cmpi eq, %29, %178 : vector<50x338xi32>
    %cst_89 = arith.constant 1.000000e+00 : f32
    %cst_90 = arith.constant 0.000000e+00 : f32
    %180 = vector.broadcast %cst_89 : f32 to vector<50x338xf32>
    %181 = vector.broadcast %cst_90 : f32 to vector<50x338xf32>
    %182 = arith.select %179, %180, %181 : vector<50x338xi1>, vector<50x338xf32>
    %cst_91 = arith.constant dense<0.000000e+00> : vector<50x16xf32>
    %183 = tpu.matmul %182, %28, %cst_91 {dimension_numbers = #tpu.dot_dimension_numbers<[1], [0], [0], [1], [0, 0, 1, 1], [], []>} : vector<50x338xf32>, vector<338x16xf32>, vector<50x16xf32> -> vector<50x16xf32>
    %c12 = arith.constant 12 : index
    %c0_92 = arith.constant 0 : index
    %c0_93 = arith.constant 0 : index
    %184 = vector.load %arg5[%c12, %c0_92, %c0_93] : memref<16x16x32xf32, #tpu.memory_space<vmem>>, vector<1x16x32xf32>
    %185 = vector.shape_cast %184 : vector<1x16x32xf32> to vector<16x32xf32>
    %cst_94 = arith.constant dense<0.000000e+00> : vector<50x32xf32>
    %186 = tpu.matmul %183, %185, %cst_94 {dimension_numbers = #tpu.dot_dimension_numbers<[1], [0], [0], [1], [0, 0, 1, 1], [], []>} : vector<50x16xf32>, vector<16x32xf32>, vector<50x32xf32> -> vector<50x32xf32>
    %187 = arith.addf %175, %186 : vector<50x32xf32>
    %c40_i32 = arith.constant 40 : i32
    %188 = vector.broadcast %c40_i32 : i32 to vector<50x1xi32>
    %189 = arith.addi %30, %188 : vector<50x1xi32>
    %190 = vector.broadcast %189 : vector<50x1xi32> to vector<50x338xi32>
    %191 = arith.cmpi eq, %29, %190 : vector<50x338xi32>
    %cst_95 = arith.constant 1.000000e+00 : f32
    %cst_96 = arith.constant 0.000000e+00 : f32
    %192 = vector.broadcast %cst_95 : f32 to vector<50x338xf32>
    %193 = vector.broadcast %cst_96 : f32 to vector<50x338xf32>
    %194 = arith.select %191, %192, %193 : vector<50x338xi1>, vector<50x338xf32>
    %cst_97 = arith.constant dense<0.000000e+00> : vector<50x16xf32>
    %195 = tpu.matmul %194, %28, %cst_97 {dimension_numbers = #tpu.dot_dimension_numbers<[1], [0], [0], [1], [0, 0, 1, 1], [], []>} : vector<50x338xf32>, vector<338x16xf32>, vector<50x16xf32> -> vector<50x16xf32>
    %c13 = arith.constant 13 : index
    %c0_98 = arith.constant 0 : index
    %c0_99 = arith.constant 0 : index
    %196 = vector.load %arg5[%c13, %c0_98, %c0_99] : memref<16x16x32xf32, #tpu.memory_space<vmem>>, vector<1x16x32xf32>
    %197 = vector.shape_cast %196 : vector<1x16x32xf32> to vector<16x32xf32>
    %cst_100 = arith.constant dense<0.000000e+00> : vector<50x32xf32>
    %198 = tpu.matmul %195, %197, %cst_100 {dimension_numbers = #tpu.dot_dimension_numbers<[1], [0], [0], [1], [0, 0, 1, 1], [], []>} : vector<50x16xf32>, vector<16x32xf32>, vector<50x32xf32> -> vector<50x32xf32>
    %199 = arith.addf %187, %198 : vector<50x32xf32>
    %c41_i32 = arith.constant 41 : i32
    %200 = vector.broadcast %c41_i32 : i32 to vector<50x1xi32>
    %201 = arith.addi %30, %200 : vector<50x1xi32>
    %202 = vector.broadcast %201 : vector<50x1xi32> to vector<50x338xi32>
    %203 = arith.cmpi eq, %29, %202 : vector<50x338xi32>
    %cst_101 = arith.constant 1.000000e+00 : f32
    %cst_102 = arith.constant 0.000000e+00 : f32
    %204 = vector.broadcast %cst_101 : f32 to vector<50x338xf32>
    %205 = vector.broadcast %cst_102 : f32 to vector<50x338xf32>
    %206 = arith.select %203, %204, %205 : vector<50x338xi1>, vector<50x338xf32>
    %cst_103 = arith.constant dense<0.000000e+00> : vector<50x16xf32>
    %207 = tpu.matmul %206, %28, %cst_103 {dimension_numbers = #tpu.dot_dimension_numbers<[1], [0], [0], [1], [0, 0, 1, 1], [], []>} : vector<50x338xf32>, vector<338x16xf32>, vector<50x16xf32> -> vector<50x16xf32>
    %c14 = arith.constant 14 : index
    %c0_104 = arith.constant 0 : index
    %c0_105 = arith.constant 0 : index
    %208 = vector.load %arg5[%c14, %c0_104, %c0_105] : memref<16x16x32xf32, #tpu.memory_space<vmem>>, vector<1x16x32xf32>
    %209 = vector.shape_cast %208 : vector<1x16x32xf32> to vector<16x32xf32>
    %cst_106 = arith.constant dense<0.000000e+00> : vector<50x32xf32>
    %210 = tpu.matmul %207, %209, %cst_106 {dimension_numbers = #tpu.dot_dimension_numbers<[1], [0], [0], [1], [0, 0, 1, 1], [], []>} : vector<50x16xf32>, vector<16x32xf32>, vector<50x32xf32> -> vector<50x32xf32>
    %211 = arith.addf %199, %210 : vector<50x32xf32>
    %c42_i32 = arith.constant 42 : i32
    %212 = vector.broadcast %c42_i32 : i32 to vector<50x1xi32>
    %213 = arith.addi %30, %212 : vector<50x1xi32>
    %214 = vector.broadcast %213 : vector<50x1xi32> to vector<50x338xi32>
    %215 = arith.cmpi eq, %29, %214 : vector<50x338xi32>
    %cst_107 = arith.constant 1.000000e+00 : f32
    %cst_108 = arith.constant 0.000000e+00 : f32
    %216 = vector.broadcast %cst_107 : f32 to vector<50x338xf32>
    %217 = vector.broadcast %cst_108 : f32 to vector<50x338xf32>
    %218 = arith.select %215, %216, %217 : vector<50x338xi1>, vector<50x338xf32>
    %cst_109 = arith.constant dense<0.000000e+00> : vector<50x16xf32>
    %219 = tpu.matmul %218, %28, %cst_109 {dimension_numbers = #tpu.dot_dimension_numbers<[1], [0], [0], [1], [0, 0, 1, 1], [], []>} : vector<50x338xf32>, vector<338x16xf32>, vector<50x16xf32> -> vector<50x16xf32>
    %c15 = arith.constant 15 : index
    %c0_110 = arith.constant 0 : index
    %c0_111 = arith.constant 0 : index
    %220 = vector.load %arg5[%c15, %c0_110, %c0_111] : memref<16x16x32xf32, #tpu.memory_space<vmem>>, vector<1x16x32xf32>
    %221 = vector.shape_cast %220 : vector<1x16x32xf32> to vector<16x32xf32>
    %cst_112 = arith.constant dense<0.000000e+00> : vector<50x32xf32>
    %222 = tpu.matmul %219, %221, %cst_112 {dimension_numbers = #tpu.dot_dimension_numbers<[1], [0], [0], [1], [0, 0, 1, 1], [], []>} : vector<50x16xf32>, vector<16x32xf32>, vector<50x32xf32> -> vector<50x32xf32>
    %223 = arith.addf %211, %222 : vector<50x32xf32>
    %c0_113 = arith.constant 0 : index
    %c0_114 = arith.constant 0 : index
    %224 = vector.load %arg6[%c0_113, %c0_114] : memref<1x32xf32, #tpu.memory_space<vmem>>, vector<1x32xf32>
    %c0_115 = arith.constant 0 : index
    %c0_116 = arith.constant 0 : index
    %225 = vector.load %arg7[%c0_115, %c0_116] : memref<1x32xf32, #tpu.memory_space<vmem>>, vector<1x32xf32>
    %cst_117 = arith.constant dense<0.000000e+00> : vector<32xf32>
    %226 = vector.multi_reduction <add>, %223, %cst_117 [0] : vector<50x32xf32> to vector<32xf32>
    %227 = vector.shape_cast %226 : vector<32xf32> to vector<1x32xf32>
    %cst_118 = arith.constant 2.000000e-02 : f32
    %228 = vector.broadcast %cst_118 : f32 to vector<1x32xf32>
    %229 = arith.mulf %227, %228 : vector<1x32xf32>
    %230 = arith.mulf %223, %223 : vector<50x32xf32>
    %cst_119 = arith.constant dense<0.000000e+00> : vector<32xf32>
    %231 = vector.multi_reduction <add>, %230, %cst_119 [0] : vector<50x32xf32> to vector<32xf32>
    %232 = vector.shape_cast %231 : vector<32xf32> to vector<1x32xf32>
    %cst_120 = arith.constant 2.000000e-02 : f32
    %233 = vector.broadcast %cst_120 : f32 to vector<1x32xf32>
    %234 = arith.mulf %232, %233 : vector<1x32xf32>
    %235 = arith.mulf %229, %229 : vector<1x32xf32>
    %236 = arith.subf %234, %235 : vector<1x32xf32>
    %cst_121 = arith.constant 9.99999974E-6 : f32
    %237 = vector.broadcast %cst_121 : f32 to vector<1x32xf32>
    %238 = arith.addf %236, %237 : vector<1x32xf32>
    %239 = math.rsqrt %238 : vector<1x32xf32>
    %240 = arith.mulf %224, %239 : vector<1x32xf32>
    %241 = arith.mulf %229, %240 : vector<1x32xf32>
    %242 = arith.subf %225, %241 : vector<1x32xf32>
    %243 = vector.broadcast %240 : vector<1x32xf32> to vector<50x32xf32>
    %244 = arith.mulf %223, %243 : vector<50x32xf32>
    %245 = vector.broadcast %242 : vector<1x32xf32> to vector<50x32xf32>
    %246 = arith.addf %244, %245 : vector<50x32xf32>
    %cst_122 = arith.constant 2.000000e-01 : f32
    %247 = vector.broadcast %cst_122 : f32 to vector<50x32xf32>
    %248 = arith.mulf %247, %246 : vector<50x32xf32>
    %249 = arith.maximumf %246, %248 : vector<50x32xf32>
    %c0_123 = arith.constant 0 : index
    %c0_124 = arith.constant 0 : index
    %c0_125 = arith.constant 0 : index
    %250 = vector.load %arg8[%c0_123, %c0_124, %c0_125] : memref<2x50x32xf32, #tpu.memory_space<vmem>>, vector<1x50x32xf32>
    %251 = vector.shape_cast %250 : vector<1x50x32xf32> to vector<50x32xf32>
    %252 = arith.mulf %249, %251 : vector<50x32xf32>
    %cst_126 = arith.constant dense<0.000000e+00> : vector<50xf32>
    %253 = vector.multi_reduction <add>, %252, %cst_126 [1] : vector<50x32xf32> to vector<50xf32>
    %254 = vector.shape_cast %253 : vector<50xf32> to vector<50x1xf32>
    %cst_127 = arith.constant dense<0.000000e+00> : vector<1xf32>
    %255 = vector.multi_reduction <add>, %254, %cst_127 [0] : vector<50x1xf32> to vector<1xf32>
    %256 = vector.shape_cast %255 : vector<1xf32> to vector<1x1xf32>
    %c0_128 = arith.constant 0 : index
    %c0_129 = arith.constant 0 : index
    %257 = vector.load %arg9[%c0_128, %c0_129] : memref<1x1xf32, #tpu.memory_space<vmem>>, vector<1x1xf32>
    %258 = arith.addf %256, %257 : vector<1x1xf32>
    %c0_130 = arith.constant 0 : index
    %c0_131 = arith.constant 0 : index
    %259 = vector.load %arg10[%c0_130, %c0_131] : memref<2x1xf32, #tpu.memory_space<vmem>>, vector<1x1xf32>
    tpu.vector_store %arg10[%c0_130, %c0_131], %258 {strides = array<i32>} : memref<2x1xf32, #tpu.memory_space<vmem>>, vector<1x1xf32>,
    %c1_132 = arith.constant 1 : index
    %c0_133 = arith.constant 0 : index
    %c0_134 = arith.constant 0 : index
    %260 = vector.load %arg8[%c1_132, %c0_133, %c0_134] : memref<2x50x32xf32, #tpu.memory_space<vmem>>, vector<1x50x32xf32>
    %261 = vector.shape_cast %260 : vector<1x50x32xf32> to vector<50x32xf32>
    %262 = arith.mulf %249, %261 : vector<50x32xf32>
    %cst_135 = arith.constant dense<0.000000e+00> : vector<50xf32>
    %263 = vector.multi_reduction <add>, %262, %cst_135 [1] : vector<50x32xf32> to vector<50xf32>
    %264 = vector.shape_cast %263 : vector<50xf32> to vector<50x1xf32>
    %cst_136 = arith.constant dense<0.000000e+00> : vector<1xf32>
    %265 = vector.multi_reduction <add>, %264, %cst_136 [0] : vector<50x1xf32> to vector<1xf32>
    %266 = vector.shape_cast %265 : vector<1xf32> to vector<1x1xf32>
    %c0_137 = arith.constant 0 : index
    %c0_138 = arith.constant 0 : index
    %267 = vector.load %arg9[%c0_137, %c0_138] : memref<1x1xf32, #tpu.memory_space<vmem>>, vector<1x1xf32>
    %268 = arith.addf %266, %267 : vector<1x1xf32>
    %c1_139 = arith.constant 1 : index
    %c0_140 = arith.constant 0 : index
    %269 = vector.load %arg10[%c1_139, %c0_140] : memref<2x1xf32, #tpu.memory_space<vmem>>, vector<1x1xf32>
    tpu.vector_store %arg10[%c1_139, %c0_140], %268 {strides = array<i32>} : memref<2x1xf32, #tpu.memory_space<vmem>>, vector<1x1xf32>,
    return
  }
}

</mosaic_0001>

<bundles_post_ra>
// kernel: discriminator_forward.1
= control target key start
LH: loop header
LB: loop body
LE: loop exit
PB: predicated region body
PF: predicated region fallthrough
CT: control target
= control target key end

     0   :  { %v15360_v0 = vmov 0.0   ;;  %vm10970_vm0 = vmmov 0   ;;  %vm82_vm1 = vcmask 130048   ;;  %v10971_v4 = vmov 0   ;;  %s15349_s1 = inlined_call_operand.vmem [shape: f32[16,16], index: 1, kind: input, shape index: {}]   ;;  %s15350_s0 = inlined_call_operand.vmem [shape: f32[338,16], index: 0, kind: input, shape index: {}]   ;;  %s15351_s4 = inlined_call_operand.vmem [shape: s32[50,1], index: 4, kind: input, shape index: {}]   ;;  %s15352_s2 = inlined_call_operand.vmem [shape: f32[1,16], index: 2, kind: input, shape index: {}]   ;;  %s15353_s3 = inlined_call_operand.vmem [shape: f32[1,16], index: 3, kind: input, shape index: {}]   ;;  %s15354_s5 = inlined_call_operand.vmem [shape: f32[16,16,32], index: 5, kind: input, shape index: {}]   ;;  %s15355_s6 = inlined_call_operand.vmem [shape: f32[1,32], index: 6, kind: input, shape index: {}]   ;;  %s15356_s7 = inlined_call_operand.vmem [shape: f32[1,32], index: 7, kind: input, shape index: {}]   ;;  %s15357_s8 = inlined_call_operand.vmem [shape: f32[2,50,32], index: 8, kind: input, shape index: {}]   ;;  %s15358_s9 = inlined_call_operand.<no memory space> [shape: f32[1,1], index: 9, kind: input, shape index: {}]   ;;  %s15359_s10 = inlined_call_operand.vmem [shape: f32[2,1], index: 10, kind: output, shape index: {}]  }
   0x1   :  { %9734 = vmatprep.subr.mxu0 %v15360_v0  ;;  %v81_v1 = vld [vmem:[%s15349_s1 + $0x8] sm:$0xff]  ;;  %v80_v2 = vld [vmem:[%s15349_s1] sm:$0xff]  ;;  %9738 = vmatprep.mubr.msk.f32.mxu0 %vm10970_vm0, %v15360_v0  ;;  %v39_v6 = vld [vmem:[%s15350_s0 + $0x10] sm:$0xff]  ;;  %vm577_vm2 = vcmask 123904   ;;  %vm1009_vm5 = vcmask 1041408  }
   0x2   :  { %9735 = vmatpush3.msra.mxu0 %v81_v1  ;;  %v37_v3 = vld [vmem:[%s15350_s0] sm:$0xff]  ;;  %10963 = vset.pattern.permute.xlu0 %v10971_v4  ;;  %v38_v5 = vld [vmem:[%s15350_s0 + $0x8] sm:$0xff]  ;;  %v11063_v8 = vld [vmem:[%s15351_s4 + $0x10] sm:$0xff] }
   0x3   :  { %9736 = vmatprep.subr.mxu0 %v15360_v0  ;;  %10964 = vset.pattern.permute.xlu1 %v10971_v4  ;;  %v11057_v7 = vld [vmem:[%s15351_s4] sm:$0xff]  ;;  %v11068_v9 = vld [vmem:[%s15351_s4 + $0x8] sm:$0xff]  ;;  %v11075_v10 = vld [vmem:[%s15351_s4 + $0x18] sm:$0xff]  ;;  %v1217_v19 = vadd.s32 1, %v11063_v8  ;;  %v1753_v30 = vadd.s32 2, %v11063_v8  ;;  %v2175_v40 = vadd.s32 3, %v11063_v8 }
   0x4   :  { %9737 = vmatpush3.msra.mxu0 %v80_v2  ;;  %925 = vperm.xlu0 %10963, %v11057_v7   ;;  %v40_v11 = vld [vmem:[%s15350_s0 + $0x18] sm:$0xff]  ;;  %v11086_v12 = vld [vmem:[%s15351_s4 + $0x20] sm:$0xff]  ;;  %v11093_v13 = vld [vmem:[%s15351_s4 + $0x28] sm:$0xff]  ;;  %v1215_v16 = vadd.s32 1, %v11057_v7  ;;  %v1216_v18 = vadd.s32 1, %v11068_v9  ;;  %v1218_v21 = vadd.s32 1, %v11075_v10 }
   0x5   :  { %9739 = vmatmul.mubr.msk.f32.vlgmr.msra.gmra.mxu0 %vm82_vm1, %v37_v3  ;;  %9978 = vmatprep.subr.mxu0 %v15360_v0  ;;  %v41_v14 = vld [vmem:[%s15350_s0 + $0x20] sm:$0xff]  ;;  %v11104_v15 = vld [vmem:[%s15351_s4 + $0x30] sm:$0x3]  ;;  %v42_v17 = vld [vmem:[%s15350_s0 + $0x28] sm:$0xff]  ;;  %v1219_v22 = vadd.s32 1, %v11086_v12  ;;  %v1220_v24 = vadd.s32 1, %v11093_v13 }
   0x6   :  { %9741 = vmatprep.mubr.msk.f32.mxu0 %vm10970_vm0, %v15360_v0  ;;  %931 = vperm.xlu1 %10964, %v11063_v8   ;;  %v43_v20 = vld [vmem:[%s15350_s0 + $0x30] sm:$0xff]  ;;  %v44_v23 = vld [vmem:[%s15350_s0 + $0x38] sm:$0xff]  ;;  %v1221_v25 = vadd.s32 1, %v11104_v15  ;;  %v45_v26 = vld [vmem:[%s15350_s0 + $0x40] sm:$0xff]  ;;  %v1751_v27 = vadd.s32 2, %v11057_v7  ;;  %v1752_v28 = vadd.s32 2, %v11068_v9 }
   0x7   :  { %v46_v29 = vld [vmem:[%s15350_s0 + $0x48] sm:$0xff]  ;;  %v1754_v31 = vadd.s32 2, %v11075_v10  ;;  %v47_v32 = vld [vmem:[%s15350_s0 + $0x50] sm:$0xff]  ;;  %v1755_v33 = vadd.s32 2, %v11086_v12  ;;  %v1756_v34 = vadd.s32 2, %v11093_v13  ;;  %v48_v35 = vld [vmem:[%s15350_s0 + $0x58] sm:$0xff] }
   0x8   :  { %928 = vperm.xlu0 %10963, %v11068_v9   ;;  %v1757_v36 = vadd.s32 2, %v11104_v15  ;;  %v2173_v37 = vadd.s32 3, %v11057_v7  ;;  %v49_v38 = vld [vmem:[%s15350_s0 + $0x60] sm:$0xff]  ;;  %v2174_v39 = vadd.s32 3, %v11068_v9  ;;  %v50_v41 = vld [vmem:[%s15350_s0 + $0x68] sm:$0xff]  ;;  %v2176_v42 = vadd.s32 3, %v11075_v10 }
   0x9   :  { %9742 = vmatmul.mubr.msk.f32.gmra.mxu0 %vm82_vm1, %v38_v5  ;;  %v2177_v43 = vadd.s32 3, %v11086_v12  ;;  %v51_v44 = vld [vmem:[%s15350_s0 + $0x70] sm:$0xff]  ;;  %v2178_v45 = vadd.s32 3, %v11093_v13  ;;  %v2179_v46 = vadd.s32 3, %v11104_v15  ;;  %v52_v47 = vld [vmem:[%s15350_s0 + $0x78] sm:$0xff]  ;;  %v2595_v48 = vadd.s32 13, %v11057_v7 }
   0xa   :  { %9744 = vmatprep.mubr.msk.f32.mxu0 %vm10970_vm0, %v15360_v0  ;;  %934 = vperm.xlu1 %10964, %v11075_v10   ;;  %v2596_v49 = vadd.s32 13, %v11068_v9  ;;  %v53_v50 = vld [vmem:[%s15350_s0 + $0x80] sm:$0xff]  ;;  %v2597_v51 = vadd.s32 13, %v11063_v8  ;;  %v2598_v52 = vadd.s32 13, %v11075_v10  ;;  %v54_v53 = vld [vmem:[%s15350_s0 + $0x88] sm:$0xff]  ;;  %v2599_v54 = vadd.s32 13, %v11086_v12 }
   0xb   :  { %v2600_v55 = vadd.s32 13, %v11093_v13  ;;  %v55_v56 = vld [vmem:[%s15350_s0 + $0x90] sm:$0xff]  ;;  %v2601_v57 = vadd.s32 13, %v11104_v15  ;;  %v3017_v58 = vadd.s32 14, %v11057_v7  ;;  %v56_v59 = vld [vmem:[%s15350_s0 + $0x98] sm:$0xff]  ;;  %v3018_v60 = vadd.s32 14, %v11068_v9 }
   0xc   :  { %937 = vperm.xlu0 %10963, %v11086_v12   ;;  %v3019_v61 = vadd.s32 14, %v11063_v8  ;;  %v57_v62 = vld [vmem:[%s15350_s0 + $0xa0] sm:$0xff]  ;;  %v3020_v63 = vadd.s32 14, %v11075_v10  ;;  %v3021_v1 = vadd.s32 14, %v11086_v12  ;;  %v58_v2 = vld [vmem:[%s15350_s0 + $0xa8] sm:$0xff]  ;;  %v3022_v3 = vadd.s32 14, %v11093_v13 }
   0xd   :  { %9745 = vmatmul.mubr.msk.f32.gmra.mxu0 %vm82_vm1, %v39_v6  ;;  %v3023_v4 = vadd.s32 14, %v11104_v15  ;;  %v59_v5 = vld [vmem:[%s15350_s0 + $0xb0] sm:$0xff]  ;;  %v3439_v6 = vadd.s32 15, %v11057_v7 }
   0xe   :  { %9747 = vmatprep.mubr.msk.f32.mxu0 %vm10970_vm0, %v15360_v0  ;;  %940 = vperm.xlu1 %10964, %v11093_v13  }
  0x10   :  { %943 = vperm.xlu0 %10963, %v11104_v15  }
  0x11   :  { %9748 = vmatmul.mubr.msk.f32.gmra.mxu0 %vm82_vm1, %v40_v11  ;;  %v3440_v11 = vadd.s32 15, %v11068_v9 }
  0x12   :  { %9750 = vmatprep.mubr.msk.f32.mxu0 %vm10970_vm0, %v15360_v0  ;;  %1223 = vperm.xlu1 %10964, %v1215_v16   ;;  %v3441_v16 = vadd.s32 15, %v11063_v8 }
  0x14   :  { %1226 = vperm.xlu0 %10963, %v1216_v18   ;;  %v61_v18 = vld [vmem:[%s15350_s0 + $0xc0] sm:$0xff] }
  0x15   :  { %9751 = vmatmul.mubr.msk.f32.gmra.mxu0 %vm82_vm1, %v41_v14  ;;  %v60_v14 = vld [vmem:[%s15350_s0 + $0xb8] sm:$0xff] }
  0x16   :  { %9753 = vmatprep.mubr.msk.f32.mxu0 %vm10970_vm0, %v15360_v0  ;;  %1229 = vperm.xlu1 %10964, %v1217_v19   ;;  %v3443_v19 = vadd.s32 15, %v11086_v12 }
  0x18   :  { %1232 = vperm.xlu0 %10963, %v1218_v21   ;;  %v62_v21 = vld [vmem:[%s15350_s0 + $0xc8] sm:$0xff] }
  0x19   :  { %9754 = vmatmul.mubr.msk.f32.gmra.mxu0 %vm82_vm1, %v42_v17  ;;  %v3442_v17 = vadd.s32 15, %v11075_v10 }
  0x1a   :  { %9756 = vmatprep.mubr.msk.f32.mxu0 %vm10970_vm0, %v15360_v0  ;;  %1235 = vperm.xlu1 %10964, %v1219_v22   ;;  %v3445_v22 = vadd.s32 15, %v11104_v15 }
  0x1c   :  { %1238 = vperm.xlu0 %10963, %v1220_v24   ;;  %v63_v24 = vld [vmem:[%s15350_s0 + $0xd0] sm:$0xff] }
  0x1d   :  { %9757 = vmatmul.mubr.msk.f32.gmra.mxu0 %vm82_vm1, %v43_v20  ;;  %v3444_v20 = vadd.s32 15, %v11093_v13 }
  0x1e   :  { %9759 = vmatprep.mubr.msk.f32.mxu0 %vm10970_vm0, %v15360_v0  ;;  %1241 = vperm.xlu1 %10964, %v1221_v25   ;;  %v3862_v25 = vadd.s32 16, %v11068_v9 }
  0x20   :  { %1759 = vperm.xlu0 %10963, %v1751_v27   ;;  %v64_v27 = vld [vmem:[%s15350_s0 + $0xd8] sm:$0xff] }
  0x21   :  { %9760 = vmatmul.mubr.msk.f32.gmra.mxu0 %vm82_vm1, %v44_v23  ;;  %v3861_v23 = vadd.s32 16, %v11057_v7 }
  0x22   :  { %9762 = vmatprep.mubr.msk.f32.mxu0 %vm10970_vm0, %v15360_v0  ;;  %1762 = vperm.xlu1 %10964, %v1752_v28   ;;  %v3864_v28 = vadd.s32 16, %v11075_v10 }
  0x24   :  { %1765 = vperm.xlu0 %10963, %v1753_v30   ;;  %v65_v30 = vld [vmem:[%s15350_s0 + $0xe0] sm:$0xff] }
  0x25   :  { %9763 = vmatmul.mubr.msk.f32.gmra.mxu0 %vm82_vm1, %v45_v26  ;;  %v3863_v26 = vadd.s32 16, %v11063_v8 }
  0x26   :  { %9765 = vmatprep.mubr.msk.f32.mxu0 %vm10970_vm0, %v15360_v0  ;;  %1768 = vperm.xlu1 %10964, %v1754_v31   ;;  %v3866_v31 = vadd.s32 16, %v11093_v13 }
  0x28   :  { %1771 = vperm.xlu0 %10963, %v1755_v33   ;;  %v66_v33 = vld [vmem:[%s15350_s0 + $0xe8] sm:$0xff] }
  0x29   :  { %9766 = vmatmul.mubr.msk.f32.gmra.mxu0 %vm82_vm1, %v46_v29  ;;  %v3865_v29 = vadd.s32 16, %v11086_v12 }
  0x2a   :  { %9768 = vmatprep.mubr.msk.f32.mxu0 %vm10970_vm0, %v15360_v0  ;;  %1774 = vperm.xlu1 %10964, %v1756_v34   ;;  %v4283_v34 = vadd.s32 26, %v11057_v7 }
  0x2c   :  { %1777 = vperm.xlu0 %10963, %v1757_v36   ;;  %v67_v36 = vld [vmem:[%s15350_s0 + $0xf0] sm:$0xff] }
  0x2d   :  { %9769 = vmatmul.mubr.msk.f32.gmra.mxu0 %vm82_vm1, %v47_v32  ;;  %v3867_v32 = vadd.s32 16, %v11104_v15 }
  0x2e   :  { %9771 = vmatprep.mubr.msk.f32.mxu0 %vm10970_vm0, %v15360_v0  ;;  %2181 = vperm.xlu1 %10964, %v2173_v37   ;;  %v4285_v37 = vadd.s32 26, %v11063_v8 }
  0x30   :  { %2184 = vperm.xlu0 %10963, %v2174_v39   ;;  %v68_v39 = vld [vmem:[%s15350_s0 + $0xf8] sm:$0xff] }
  0x31   :  { %9772 = vmatmul.mubr.msk.f32.gmra.mxu0 %vm82_vm1, %v48_v35  ;;  %v4284_v35 = vadd.s32 26, %v11068_v9 }
  0x32   :  { %9774 = vmatprep.mubr.msk.f32.mxu0 %vm10970_vm0, %v15360_v0  ;;  %2187 = vperm.xlu1 %10964, %v2175_v40   ;;  %v4287_v40 = vadd.s32 26, %v11086_v12 }
  0x34   :  { %2190 = vperm.xlu0 %10963, %v2176_v42   ;;  %v69_v42 = vld [vmem:[%s15350_s0 + $0x100] sm:$0xff] }
  0x35   :  { %9775 = vmatmul.mubr.msk.f32.gmra.mxu0 %vm82_vm1, %v49_v38  ;;  %v4286_v38 = vadd.s32 26, %v11075_v10 }
  0x36   :  { %9777 = vmatprep.mubr.msk.f32.mxu0 %vm10970_vm0, %v15360_v0  ;;  %2193 = vperm.xlu1 %10964, %v2177_v43   ;;  %v4289_v43 = vadd.s32 26, %v11104_v15 }
  0x38   :  { %2196 = vperm.xlu0 %10963, %v2178_v45   ;;  %v70_v45 = vld [vmem:[%s15350_s0 + $0x108] sm:$0xff] }
  0x39   :  { %9778 = vmatmul.mubr.msk.f32.gmra.mxu0 %vm82_vm1, %v50_v41  ;;  %v4288_v41 = vadd.s32 26, %v11093_v13 }
  0x3a   :  { %9780 = vmatprep.mubr.msk.f32.mxu0 %vm10970_vm0, %v15360_v0  ;;  %2199 = vperm.xlu1 %10964, %v2179_v46   ;;  %v4706_v46 = vadd.s32 27, %v11068_v9 }
  0x3c   :  { %2603 = vperm.xlu0 %10963, %v2595_v48   ;;  %v71_v48 = vld [vmem:[%s15350_s0 + $0x110] sm:$0xff] }
  0x3d   :  { %9781 = vmatmul.mubr.msk.f32.gmra.mxu0 %vm82_vm1, %v51_v44  ;;  %v4705_v44 = vadd.s32 27, %v11057_v7 }
  0x3e   :  { %9783 = vmatprep.mubr.msk.f32.mxu0 %vm10970_vm0, %v15360_v0  ;;  %2606 = vperm.xlu1 %10964, %v2596_v49   ;;  %v4708_v49 = vadd.s32 27, %v11075_v10 }
  0x40   :  { %2609 = vperm.xlu0 %10963, %v2597_v51   ;;  %v72_v51 = vld [vmem:[%s15350_s0 + $0x118] sm:$0xff] }
  0x41   :  { %9784 = vmatmul.mubr.msk.f32.gmra.mxu0 %vm82_vm1, %v52_v47  ;;  %v4707_v47 = vadd.s32 27, %v11063_v8 }
  0x42   :  { %9786 = vmatprep.mubr.msk.f32.mxu0 %vm10970_vm0, %v15360_v0  ;;  %2612 = vperm.xlu1 %10964, %v2598_v52   ;;  %v4710_v52 = vadd.s32 27, %v11093_v13 }
  0x44   :  { %2615 = vperm.xlu0 %10963, %v2599_v54   ;;  %v73_v54 = vld [vmem:[%s15350_s0 + $0x120] sm:$0xff] }
  0x45   :  { %9787 = vmatmul.mubr.msk.f32.gmra.mxu0 %vm82_vm1, %v53_v50  ;;  %v4709_v50 = vadd.s32 27, %v11086_v12 }
  0x46   :  { %9789 = vmatprep.mubr.msk.f32.mxu0 %vm10970_vm0, %v15360_v0  ;;  %2618 = vperm.xlu1 %10964, %v2600_v55   ;;  %v5127_v55 = vadd.s32 28, %v11057_v7 }
  0x48   :  { %2621 = vperm.xlu0 %10963, %v2601_v57   ;;  %v74_v57 = vld [vmem:[%s15350_s0 + $0x128] sm:$0xff] }
  0x49   :  { %9790 = vmatmul.mubr.msk.f32.gmra.mxu0 %vm82_vm1, %v54_v53  ;;  %v4711_v53 = vadd.s32 27, %v11104_v15 }
  0x4a   :  { %9792 = vmatprep.mubr.msk.f32.mxu0 %vm10970_vm0, %v15360_v0  ;;  %3025 = vperm.xlu1 %10964, %v3017_v58   ;;  %v5129_v58 = vadd.s32 28, %v11063_v8 }
  0x4c   :  { %3028 = vperm.xlu0 %10963, %v3018_v60   ;;  %v75_v60 = vld [vmem:[%s15350_s0 + $0x130] sm:$0xff] }
  0x4d   :  { %9793 = vmatmul.mubr.msk.f32.gmra.mxu0 %vm82_vm1, %v55_v56  ;;  %v5128_v56 = vadd.s32 28, %v11068_v9 }
  0x4e   :  { %9795 = vmatprep.mubr.msk.f32.mxu0 %vm10970_vm0, %v15360_v0  ;;  %3031 = vperm.xlu1 %10964, %v3019_v61   ;;  %v5131_v61 = vadd.s32 28, %v11086_v12 }
  0x50   :  { %3034 = vperm.xlu0 %10963, %v3020_v63   ;;  %v76_v63 = vld [vmem:[%s15350_s0 + $0x138] sm:$0xff] }
  0x51   :  { %9796 = vmatmul.mubr.msk.f32.gmra.mxu0 %vm82_vm1, %v56_v59  ;;  %v5130_v59 = vadd.s32 28, %v11075_v10 }
  0x52   :  { %9798 = vmatprep.mubr.msk.f32.mxu0 %vm10970_vm0, %v15360_v0  ;;  %3037 = vperm.xlu1 %10964, %v3021_v1   ;;  %v5133_v1 = vadd.s32 28, %v11104_v15 }
  0x54   :  { %3040 = vperm.xlu0 %10963, %v3022_v3   ;;  %v77_v3 = vld [vmem:[%s15350_s0 + $0x140] sm:$0xff] }
  0x55   :  { %9799 = vmatmul.mubr.msk.f32.gmra.mxu0 %vm82_vm1, %v57_v62  ;;  %v5132_v62 = vadd.s32 28, %v11093_v13 }
  0x56   :  { %9801 = vmatprep.mubr.msk.f32.mxu0 %vm10970_vm0, %v15360_v0  ;;  %3043 = vperm.xlu1 %10964, %v3023_v4   ;;  %v5550_v4 = vadd.s32 29, %v11068_v9 }
  0x58   :  { %3447 = vperm.xlu0 %10963, %v3439_v6   ;;  %v78_v6 = vld [vmem:[%s15350_s0 + $0x148] sm:$0xff] }
  0x59   :  { %9802 = vmatmul.mubr.msk.f32.gmra.mxu0 %vm82_vm1, %v58_v2  ;;  %v5549_v2 = vadd.s32 29, %v11057_v7 }
  0x5a   :  { %9804 = vmatprep.mubr.msk.f32.mxu0 %vm10970_vm0, %v15360_v0  ;;  %3450 = vperm.xlu1 %10964, %v3440_v11   ;;  %v5552_v11 = vadd.s32 29, %v11075_v10 }
  0x5c   :  { %3453 = vperm.xlu0 %10963, %v3441_v16   ;;  %v79_v16 = vld [vmem:[%s15350_s0 + $0x150] sm:$0x3] }
  0x5d   :  { %9805 = vmatmul.mubr.msk.f32.gmra.mxu0 %vm82_vm1, %v59_v5  ;;  %v5551_v5 = vadd.s32 29, %v11063_v8 }
  0x5e   :  { %9807 = vmatprep.mubr.msk.f32.mxu0 %vm10970_vm0, %v15360_v0  ;;  %3456 = vperm.xlu1 %10964, %v3442_v17   ;;  %v5554_v17 = vadd.s32 29, %v11093_v13 }
  0x60   :  { %3459 = vperm.xlu0 %10963, %v3443_v19   ;;  %v5971_v19 = vadd.s32 39, %v11057_v7 }
  0x61   :  { %9808 = vmatmul.mubr.msk.f32.gmra.mxu0 %vm82_vm1, %v60_v14  ;;  %v5553_v14 = vadd.s32 29, %v11086_v12 }
  0x62   :  { %9810 = vmatprep.mubr.msk.f32.mxu0 %vm10970_vm0, %v15360_v0  ;;  %3462 = vperm.xlu1 %10964, %v3444_v20   ;;  %v5972_v20 = vadd.s32 39, %v11068_v9 }
  0x64   :  { %3465 = vperm.xlu0 %10963, %v3445_v22   ;;  %v5974_v22 = vadd.s32 39, %v11075_v10 }
  0x65   :  { %9811 = vmatmul.mubr.msk.f32.gmra.mxu0 %vm82_vm1, %v61_v18  ;;  %v5555_v18 = vadd.s32 29, %v11104_v15 }
  0x66   :  { %9813 = vmatprep.mubr.msk.f32.mxu0 %vm10970_vm0, %v15360_v0  ;;  %3869 = vperm.xlu1 %10964, %v3861_v23   ;;  %v5975_v23 = vadd.s32 39, %v11086_v12 }
  0x68   :  { %3872 = vperm.xlu0 %10963, %v3862_v25   ;;  %v5977_v25 = vadd.s32 39, %v11104_v15 }
  0x69   :  { %9814 = vmatmul.mubr.msk.f32.gmra.mxu0 %vm82_vm1, %v62_v21  ;;  %v5973_v21 = vadd.s32 39, %v11063_v8 }
  0x6a   :  { %9816 = vmatprep.mubr.msk.f32.mxu0 %vm10970_vm0, %v15360_v0  ;;  %3875 = vperm.xlu1 %10964, %v3863_v26   ;;  %v6393_v26 = vadd.s32 40, %v11057_v7 }
  0x6c   :  { %3878 = vperm.xlu0 %10963, %v3864_v28   ;;  %v6395_v28 = vadd.s32 40, %v11063_v8 }
  0x6d   :  { %9817 = vmatmul.mubr.msk.f32.gmra.mxu0 %vm82_vm1, %v63_v24  ;;  %v5976_v24 = vadd.s32 39, %v11093_v13 }
  0x6e   :  { %9819 = vmatprep.mubr.msk.f32.mxu0 %vm10970_vm0, %v15360_v0  ;;  %3881 = vperm.xlu1 %10964, %v3865_v29  }
  0x70   :  { %3884 = vperm.xlu0 %10963, %v3866_v31  }
  0x71   :  { %9820 = vmatmul.mubr.msk.f32.gmra.mxu0 %vm82_vm1, %v64_v27  ;;  %v6394_v27 = vadd.s32 40, %v11068_v9 }
  0x72   :  { %9822 = vmatprep.mubr.msk.f32.mxu0 %vm10970_vm0, %v15360_v0  ;;  %3887 = vperm.xlu1 %10964, %v3867_v32   ;;  %v6397_v32 = vadd.s32 40, %v11086_v12 }
  0x74   :  { %4291 = vperm.xlu0 %10963, %v4283_v34  }
  0x75   :  { %9823 = vmatmul.mubr.msk.f32.gmra.mxu0 %vm82_vm1, %v65_v30  ;;  %v6396_v30 = vadd.s32 40, %v11075_v10 }
  0x76   :  { %9825 = vmatprep.mubr.msk.f32.mxu0 %vm10970_vm0, %v15360_v0  ;;  %4294 = vperm.xlu1 %10964, %v4284_v35   ;;  %v6398_v35 = vadd.s32 40, %v11093_v13 }
  0x78   :  { %4297 = vperm.xlu0 %10963, %v4285_v37  }
  0x79   :  { %9826 = vmatmul.mubr.msk.f32.gmra.mxu0 %vm82_vm1, %v66_v33 }
  0x7a   :  { %9828 = vmatprep.mubr.msk.f32.mxu0 %vm10970_vm0, %v15360_v0  ;;  %4300 = vperm.xlu1 %10964, %v4286_v38  }
  0x7c   :  { %4303 = vperm.xlu0 %10963, %v4287_v40  }
  0x7d   :  { %9829 = vmatmul.mubr.msk.f32.gmra.mxu0 %vm82_vm1, %v67_v36  ;;  %v6399_v36 = vadd.s32 40, %v11104_v15 }
  0x7e   :  { %9831 = vmatprep.mubr.msk.f32.mxu0 %vm10970_vm0, %v15360_v0  ;;  %4306 = vperm.xlu1 %10964, %v4288_v41   ;;  %v6815_v41 = vadd.s32 41, %v11057_v7 }
  0x7f   :  { %v11426_v29 = vpop.permute.xlu0 %925 }
  0x80   :  { %4309 = vperm.xlu0 %10963, %v4289_v43  }
  0x81   :  { %9832 = vmatmul.mubr.msk.f32.gmra.mxu0 %vm82_vm1, %v68_v39  ;;  %v11429_v31 = vpop.permute.xlu1 %931 }
  0x82   :  { %9834 = vmatprep.mubr.msk.f32.mxu0 %vm10970_vm0, %v15360_v0  ;;  %4713 = vperm.xlu1 %10964, %v4705_v44   ;;  %15486 = vst [vmem:[#allocation3_spill] sm:$0xff] %v11429_v31 }
  0x83   :  { %v11438_v38 = vpop.permute.xlu0 %928 }
  0x84   :  { %4716 = vperm.xlu0 %10963, %v4706_v46   ;;  %v6817_v46 = vadd.s32 41, %v11063_v8 }
  0x85   :  { %9835 = vmatmul.mubr.msk.f32.gmra.mxu0 %vm82_vm1, %v69_v42  ;;  %v11440_v39 = vpop.permute.xlu1 %934  ;;  %v6816_v42 = vadd.s32 41, %v11068_v9 }
  0x86   :  { %9837 = vmatprep.mubr.msk.f32.mxu0 %vm10970_vm0, %v15360_v0  ;;  %4719 = vperm.xlu1 %10964, %v4707_v47   ;;  %15487 = vst [vmem:[#allocation4_spill] sm:$0xff] %v11440_v39 }
  0x88   :  { %4722 = vperm.xlu0 %10963, %v4708_v49  }
  0x89   :  { %9838 = vmatmul.mubr.msk.f32.gmra.mxu0 %vm82_vm1, %v70_v45  ;;  %v11446_v45 = vpop.permute.xlu0 %937  ;;  %v11449_v47 = vpop.permute.xlu1 %940 }
  0x8a   :  { %9840 = vmatprep.mubr.msk.f32.mxu0 %vm10970_vm0, %v15360_v0  ;;  %4725 = vperm.xlu1 %10964, %v4709_v50   ;;  %15488 = vst [vmem:[#allocation5_spill] sm:$0xff] %v11446_v45  ;;  %15489 = vst [vmem:[#allocation6_spill] sm:$0xff] %v11449_v47 }
  0x8c   :  { %4728 = vperm.xlu0 %10963, %v4710_v52   ;;  %v6820_v52 = vadd.s32 41, %v11093_v13 }
  0x8d   :  { %9841 = vmatmul.mubr.msk.f32.gmra.mxu0 %vm82_vm1, %v71_v48  ;;  %v6818_v48 = vadd.s32 41, %v11075_v10 }
  0x8e   :  { %9843 = vmatprep.mubr.msk.f32.mxu0 %vm10970_vm0, %v15360_v0  ;;  %4731 = vperm.xlu1 %10964, %v4711_v53  }
  0x90   :  { %5135 = vperm.xlu0 %10963, %v5127_v55   ;;  %v11460_v55 = vpop.permute.xlu1 %1223 }
  0x91   :  { %9844 = vmatmul.mubr.msk.f32.gmra.mxu0 %vm82_vm1, %v72_v51  ;;  %v6819_v51 = vadd.s32 41, %v11086_v12  ;;  %15491 = vst [vmem:[#allocation8_spill] sm:$0xff] %v11460_v55 }
  0x92   :  { %9846 = vmatprep.mubr.msk.f32.mxu0 %vm10970_vm0, %v15360_v0  ;;  %5138 = vperm.xlu1 %10964, %v5128_v56  }
  0x94   :  { %5141 = vperm.xlu0 %10963, %v5129_v58   ;;  %v7237_v58 = vadd.s32 42, %v11057_v7  ;;  %v7241_v7 = vadd.s32 42, %v11086_v12 }
  0x95   :  { %9847 = vmatmul.mubr.msk.f32.gmra.mxu0 %vm82_vm1, %v73_v54  ;;  %v11458_v54 = vpop.permute.xlu0 %943 }
  0x96   :  { %9849 = vmatprep.mubr.msk.f32.mxu0 %vm10970_vm0, %v15360_v0  ;;  %5144 = vperm.xlu1 %10964, %v5130_v59   ;;  %15490 = vst [vmem:[#allocation7_spill] sm:$0xff] %v11458_v54 }
  0x98   :  { %5147 = vperm.xlu0 %10963, %v5131_v61  }
  0x99   :  { %9850 = vmatmul.mubr.msk.f32.gmra.mxu0 %vm82_vm1, %v74_v57  ;;  %v6821_v57 = vadd.s32 41, %v11104_v15  ;;  %v11466_v61 = vpop.permute.xlu0 %1226 }
  0x9a   :  { %9852 = vmatprep.mubr.msk.f32.mxu0 %vm10970_vm0, %v15360_v0  ;;  %5150 = vperm.xlu1 %10964, %v5132_v62   ;;  %15492 = vst [vmem:[#allocation9_spill] sm:$0xff] %v11466_v61  ;;  %v7238_v62 = vadd.s32 42, %v11068_v9 }
  0x9c   :  { %5153 = vperm.xlu0 %10963, %v5133_v1   ;;  %v7239_v1 = vadd.s32 42, %v11063_v8  ;;  %v7243_v8 = vadd.s32 42, %v11104_v15 }
  0x9d   :  { %9853 = vmatmul.mubr.msk.f32.gmra.mxu0 %vm82_vm1, %v75_v60 }
  0x9e   :  { %9855 = vmatprep.mubr.msk.f32.mxu0 %vm10970_vm0, %v15360_v0  ;;  %5557 = vperm.xlu1 %10964, %v5549_v2  }
  0xa0   :  { %5560 = vperm.xlu0 %10963, %v5550_v4   ;;  %v7240_v4 = vadd.s32 42, %v11075_v10 }
  0xa1   :  { %9856 = vmatmul.mubr.msk.f32.gmra.mxu0 %vm82_vm1, %v76_v63  ;;  %v11469_v63 = vpop.permute.xlu1 %1229 }
  0xa2   :  { %9858 = vmatprep.mubr.msk.f32.mxu0 %vm10970_vm0, %v15360_v0  ;;  %5563 = vperm.xlu1 %10964, %v5551_v5   ;;  %15493 = vst [vmem:[#allocation10_spill] sm:$0xff] %v11469_v63 }
  0xa4   :  { %5566 = vperm.xlu0 %10963, %v5552_v11  }
  0xa5   :  { %9859 = vmatmul.mubr.msk.f32.gmra.mxu0 %vm82_vm1, %v77_v3  ;;  %v11480_v11 = vpop.permute.xlu1 %1235 }
  0xa6   :  { %9861 = vmatprep.mubr.msk.f32.mxu0 %vm10970_vm0, %v15360_v0  ;;  %5569 = vperm.xlu1 %10964, %v5553_v14   ;;  %15495 = vst [vmem:[#allocation12_spill] sm:$0xff] %v11480_v11  ;;  %v7242_v14 = vadd.s32 42, %v11093_v13 }
  0xa8   :  { %5572 = vperm.xlu0 %10963, %v5554_v17  }
  0xa9   :  { %9862 = vmatmul.mubr.msk.f32.gmra.mxu0 %vm82_vm1, %v78_v6  ;;  %v11478_v6 = vpop.permute.xlu0 %1232  ;;  %v11488_v12 = vpop.permute.xlu1 %1241 }
  0xaa   :  { %9864 = vmatprep.mubr.msk.f32.mxu0 %vm10970_vm0, %v15360_v0  ;;  %5575 = vperm.xlu1 %10964, %v5555_v18   ;;  %15494 = vst [vmem:[#allocation11_spill] sm:$0xff] %v11478_v6  ;;  %15497 = vst [vmem:[#allocation14_spill] sm:$0xff] %v11488_v12 }
  0xac   :  { %5979 = vperm.xlu0 %10963, %v5971_v19  }
  0xad   :  { %9865 = vmatmul.mubr.msk.f32.gmra.mxu0 %vm82_vm1, %v79_v16  ;;  %v11486_v10 = vpop.permute.xlu0 %1238 }
  0xae   :  { %9982 = vmatprep.mubr.msk.f32.mxu0 %vm10970_vm0, %v15360_v0  ;;  %5982 = vperm.xlu1 %10964, %v5972_v20   ;;  %15496 = vst [vmem:[#allocation13_spill] sm:$0xff] %v11486_v10 }
  0xb0   :  { %5985 = vperm.xlu0 %10963, %v5973_v21  }
  0xb2   :  { %5988 = vperm.xlu1 %10964, %v5974_v22  }
  0xb4   :  { %5991 = vperm.xlu0 %10963, %v5975_v23  }
  0xb6   :  { %5994 = vperm.xlu1 %10964, %v5976_v24  }
  0xb8   :  { %5997 = vperm.xlu0 %10963, %v5977_v25  }
  0xba   :  { %6401 = vperm.xlu1 %10964, %v6393_v26  }
  0xbc   :  { %6404 = vperm.xlu0 %10963, %v6394_v27  }
  0xbe   :  { %6407 = vperm.xlu1 %10964, %v6395_v28  }
  0xc0   :  { %6410 = vperm.xlu0 %10963, %v6396_v30  }
  0xc2   :  { %6413 = vperm.xlu1 %10964, %v6397_v32  }
  0xc4   :  { %6416 = vperm.xlu0 %10963, %v6398_v35  }
  0xc5   :  { %v11432_v33 = vpop.f32.mrf.mxu0 }
  0xc6   :  { %6419 = vperm.xlu1 %10964, %v6399_v36  }
  0xc7   :  { %v9740_v34 = vpop.f32.mrf.mxu0 }
  0xc8   :  { %6823 = vperm.xlu0 %10963, %v6815_v41  }
  0xc9   :  { %v11436_v37 = vpop.f32.mrf.mxu0 }
  0xca   :  { %6826 = vperm.xlu1 %10964, %v6816_v42  }
  0xcb   :  { %v9743_v40 = vpop.f32.mrf.mxu0 }
  0xcc   :  { %6829 = vperm.xlu0 %10963, %v6817_v46  }
  0xcd   :  { %v11444_v43 = vpop.f32.mrf.mxu0 }
  0xce   :  { %6832 = vperm.xlu1 %10964, %v6818_v48  }
  0xcf   :  { %v9746_v44 = vpop.f32.mrf.mxu0 }
  0xd0   :  { %6835 = vperm.xlu0 %10963, %v6819_v51  }
  0xd1   :  { %v11452_v49 = vpop.f32.mrf.mxu0 }
  0xd2   :  { %6838 = vperm.xlu1 %10964, %v6820_v52   ;;  %v587_v52 = vmul.f32 %v11432_v33, %v11432_v33 }
  0xd3   :  { %v9749_v50 = vpop.f32.mrf.mxu0 }
  0xd4   :  { %6841 = vperm.xlu0 %10963, %v6821_v57   ;;  %v588_v50 = vmul.f32 %v11436_v37, %v11436_v37  ;;  %v589_v57 = vmul.f32 %v11444_v43, %v11444_v43 }
  0xd5   :  { %v11456_v53 = vpop.f32.mrf.mxu0 }
  0xd6   :  { %7245 = vperm.xlu1 %10964, %v7237_v58  }
  0xd7   :  { %v9752_v56 = vpop.f32.mrf.mxu0 }
  0xd8   :  { %7248 = vperm.xlu0 %10963, %v7238_v62   ;;  %v495_v56 = vsel %vm82_vm1, %v11436_v37, 0.0  ;;  %v631_v62 = vsel %vm82_vm1, %v588_v50, 0.0 }
  0xd9   :  { %v11464_v59 = vpop.f32.mrf.mxu0 }
  0xda   :  { %7251 = vperm.xlu1 %10964, %v7239_v1   ;;  %v497_v1 = vsel %vm82_vm1, %v11444_v43, 0.0 }
  0xdb   :  { %v9755_v60 = vpop.f32.mrf.mxu0 }
  0xdc   :  { %7254 = vperm.xlu0 %10963, %v7240_v4   ;;  %v494_v60 = vsel %vm82_vm1, %v11432_v33, 0.0 }
  0xdd   :  { %v11472_v2 = vpop.f32.mrf.mxu0  ;;  %v496_v4 = vadd.f32 %v495_v56, %v494_v60 }
  0xde   :  { %7257 = vperm.xlu1 %10964, %v7241_v7  }
  0xdf   :  { %v9758_v3 = vpop.f32.mrf.mxu0 }
  0xe0   :  { %7260 = vperm.xlu0 %10963, %v7242_v14   ;;  %v590_v3 = vmul.f32 %v11452_v49, %v11452_v49  ;;  %v633_v14 = vsel %vm82_vm1, %v589_v57, 0.0 }
  0xe1   :  { %v11476_v5 = vpop.f32.mrf.mxu0 }
  0xe2   :  { %7263 = vperm.xlu1 %10964, %v7243_v8   ;;  %v499_v8 = vsel %vm82_vm1, %v11452_v49, 0.0  ;;  %v594_v60 = vmul.f32 %v11476_v5, %v11476_v5 }
  0xe3   :  { %v9761_v9 = vpop.f32.mrf.mxu0 }
  0xe4   :  { %v630_v9 = vsel %vm82_vm1, %v587_v52, 0.0 }
  0xe5   :  { %v11484_v16 = vpop.f32.mrf.mxu0 }
  0xe7   :  { %v9764_v17 = vpop.f32.mrf.mxu0 }
  0xe8   :  { %v591_v17 = vmul.f32 %v11456_v53, %v11456_v53 }
  0xe9   :  { %v11490_v18 = vpop.f32.mrf.mxu0 }
  0xeb   :  { %v9767_v19 = vpop.f32.mrf.mxu0 }
  0xec   :  { %v632_v19 = vadd.f32 %v631_v62, %v630_v9  ;;  %v507_v9 = vsel %vm82_vm1, %v11476_v5, 0.0 }
  0xed   :  { %v11492_v20 = vpop.f32.mrf.mxu0 }
  0xef   :  { %v9770_v21 = vpop.f32.mrf.mxu0 }
  0xf0   :  { %v498_v21 = vadd.f32 %v497_v1, %v496_v4 }
  0xf1   :  { %v11494_v22 = vpop.f32.mrf.mxu0 }
  0xf3   :  { %v9773_v13 = vpop.f32.mrf.mxu0 }
  0xf5   :  { %v11496_v23 = vpop.f32.mrf.mxu0 }
  0xf7   :  { %v9776_v15 = vpop.f32.mrf.mxu0 }
  0xf8   :  { %v635_v15 = vsel %vm82_vm1, %v590_v3, 0.0 }
  0xf9   :  { %v11498_v24 = vpop.f32.mrf.mxu0 }
  0xfb   :  { %v9779_v25 = vpop.f32.mrf.mxu0 }
  0xfc   :  { %v501_v25 = vsel %vm82_vm1, %v11456_v53, 0.0 }
  0xfd   :  { %v11500_v26 = vpop.f32.mrf.mxu0 }
  0xff   :  { %v9782_v27 = vpop.f32.mrf.mxu0 }
 0x100   :  { %v592_v27 = vmul.f32 %v11464_v59, %v11464_v59 }
 0x101   :  { %v11502_v28 = vpop.f32.mrf.mxu0 }
 0x102   :  { %v639_v57 = vsel %vm82_vm1, %v592_v27, 0.0 }
 0x103   :  { %v9785_v30 = vpop.f32.mrf.mxu0 }
 0x104   :  { %v634_v30 = vadd.f32 %v633_v14, %v632_v19  ;;  %v595_v14 = vmul.f32 %v11484_v16, %v11484_v16 }
 0x105   :  { %v11504_v32 = vpop.f32.mrf.mxu0 }
 0x106   :  { %v636_v50 = vadd.f32 %v635_v15, %v634_v30  ;;  %v596_v15 = vmul.f32 %v11490_v18, %v11490_v18 }
 0x107   :  { %v9788_v34 = vpop.f32.mrf.mxu0 }
 0x108   :  { %v500_v34 = vadd.f32 %v499_v8, %v498_v21  ;;  %v643_v21 = vsel %vm82_vm1, %v594_v60, 0.0 }
 0x109   :  { %v11506_v35 = vpop.f32.mrf.mxu0 }
 0x10a   :  { %v502_v52 = vadd.f32 %v501_v25, %v500_v34  ;;  %v645_v34 = vsel %vm82_vm1, %v595_v14, 0.0  ;;  %v599_v14 = vmul.f32 %v11496_v23, %v11496_v23 }
 0x10b   :  { %v9791_v36 = vpop.f32.mrf.mxu0 }
 0x10d   :  { %v11508_v40 = vpop.f32.mrf.mxu0 }
 0x10f   :  { %v9794_v41 = vpop.f32.mrf.mxu0 }
 0x110   :  { %v637_v41 = vsel %vm82_vm1, %v591_v17, 0.0 }
 0x111   :  { %v11510_v42 = vpop.f32.mrf.mxu0  ;;  %v638_v62 = vadd.f32 %v637_v41, %v636_v50  ;;  %v511_v41 = vsel %vm82_vm1, %v11490_v18, 0.0 }
 0x113   :  { %v9797_v44 = vpop.f32.mrf.mxu0  ;;  %v640_v8 = vadd.f32 %v639_v57, %v638_v62  ;;  %v513_v57 = vsel %vm82_vm1, %v11492_v20, 0.0 }
 0x114   :  { %v503_v44 = vsel %vm82_vm1, %v11464_v59, 0.0 }
 0x115   :  { %v11512_v46 = vpop.f32.mrf.mxu0  ;;  %v504_v1 = vadd.f32 %v503_v44, %v502_v52  ;;  %v597_v44 = vmul.f32 %v11492_v20, %v11492_v20 }
 0x117   :  { %v9800_v48 = vpop.f32.mrf.mxu0 }
 0x118   :  { %v593_v48 = vmul.f32 %v11472_v2, %v11472_v2 }
 0x119   :  { %v11516_v51 = vpop.f32.mrf.mxu0 }
 0x11a   :  { %v641_v4 = vsel %vm82_vm1, %v593_v48, 0.0  ;;  %v535_v0 = vsel %vm82_vm1, %v11516_v51, 0.0 }
 0x11b   :  { %v9803_v58 = vpop.f32.mrf.mxu0  ;;  %v642_v25 = vadd.f32 %v641_v4, %v640_v8  ;;  %v649_v4 = vsel %vm82_vm1, %v597_v44, 0.0  ;;  %v519_v44 = vsel %vm82_vm1, %v11498_v24, 0.0 }
 0x11c   :  { %v505_v58 = vsel %vm82_vm1, %v11472_v2, 0.0 }
 0x11d   :  { %v11531_v7 = vpop.f32.mrf.mxu0  ;;  %v506_v17 = vadd.f32 %v505_v58, %v504_v1  ;;  %v644_v48 = vadd.f32 %v643_v21, %v642_v25  ;;  %v598_v58 = vmul.f32 %v11494_v22, %v11494_v22 }
 0x11f   :  { %v9806_v13 = vpop.f32.mrf.mxu0  ;;  %v508_v27 = vadd.f32 %v507_v9, %v506_v17  ;;  %v646_v60 = vadd.f32 %v645_v34, %v644_v48  ;;  %v515_v9 = vsel %vm82_vm1, %v11494_v22, 0.0  ;;  %v651_v21 = vsel %vm82_vm1, %v598_v58, 0.0 }
 0x120   :  { %v509_v13 = vsel %vm82_vm1, %v11484_v16, 0.0  ;;  %v601_v48 = vmul.f32 %v11500_v26, %v11500_v26  ;;  %v521_v58 = vsel %vm82_vm1, %v11500_v26, 0.0 }
 0x121   :  { %v11544_v36 = vpop.f32.mrf.mxu0  ;;  %v510_v50 = vadd.f32 %v509_v13, %v508_v27  ;;  %v517_v13 = vsel %vm82_vm1, %v11496_v23, 0.0 }
 0x122   :  { %v539_v12 = vsel %vm82_vm1, %v11544_v36, 0.0 }
 0x123   :  { %v9809_v56 = vpop.f32.mrf.mxu0  ;;  %v512_v62 = vadd.f32 %v511_v41, %v510_v50  ;;  %v653_v41 = vsel %vm82_vm1, %v599_v14, 0.0  ;;  %v657_v14 = vsel %vm82_vm1, %v601_v48, 0.0 }
 0x124   :  { %v647_v56 = vsel %vm82_vm1, %v596_v15, 0.0  ;;  %v600_v15 = vmul.f32 %v11498_v24, %v11498_v24 }
 0x125   :  { %v11556_v3 = vpop.f32.mrf.mxu0  ;;  %v648_v8 = vadd.f32 %v647_v56, %v646_v60  ;;  %v514_v17 = vadd.f32 %v513_v57, %v512_v62  ;;  %v602_v60 = vmul.f32 %v11502_v28, %v11502_v28 }
 0x126   :  { %v655_v57 = vsel %vm82_vm1, %v600_v15, 0.0 }
 0x127   :  { %v9812_v19 = vpop.f32.mrf.mxu0  ;;  %v650_v25 = vadd.f32 %v649_v4, %v648_v8  ;;  %v516_v27 = vadd.f32 %v515_v9, %v514_v17  ;;  %v523_v8 = vsel %vm82_vm1, %v11502_v28, 0.0  ;;  %v603_v17 = vmul.f32 %v11504_v32, %v11504_v32 }
 0x128   :  { %v659_v15 = vsel %vm82_vm1, %v602_v60, 0.0 }
 0x129   :  { %v11568_v30 = vpop.f32.mrf.mxu0  ;;  %v652_v50 = vadd.f32 %v651_v21, %v650_v25  ;;  %v525_v25 = vsel %vm82_vm1, %v11504_v32, 0.0 }
 0x12a   :  { %v543_v10 = vsel %vm82_vm1, %v11568_v30, 0.0 }
 0x12b   :  { %v9815_v52 = vpop.f32.mrf.mxu0  ;;  %v654_v62 = vadd.f32 %v653_v41, %v652_v50  ;;  %v661_v50 = vsel %vm82_vm1, %v603_v17, 0.0 }
 0x12c   :  { %v518_v52 = vadd.f32 %v517_v13, %v516_v27  ;;  %v604_v27 = vmul.f32 %v11506_v35, %v11506_v35 }
 0x12d   :  { %v11580_v1 = vpop.f32.mrf.mxu0 }
 0x12e   :  { %v520_v4 = vadd.f32 %v519_v44, %v518_v52  ;;  %v527_v52 = vsel %vm82_vm1, %v11506_v35, 0.0 }
 0x12f   :  { %v9818_v19 = vpop.f32.mrf.mxu0 }
 0x130   :  { %v656_v19 = vadd.f32 %v655_v57, %v654_v62  ;;  %v522_v21 = vadd.f32 %v521_v58, %v520_v4  ;;  %v663_v62 = vsel %vm82_vm1, %v604_v27, 0.0  ;;  %v529_v4 = vsel %vm82_vm1, %v11508_v40, 0.0 }
 0x131   :  { %v11592_v34 = vpop.f32.mrf.mxu0 }
 0x132   :  { %v658_v41 = vadd.f32 %v657_v14, %v656_v19  ;;  %v524_v44 = vadd.f32 %v523_v8, %v522_v21  ;;  %v606_v14 = vmul.f32 %v11510_v42, %v11510_v42  ;;  %v547_v11 = vsel %vm82_vm1, %v11592_v34, 0.0 }
 0x133   :  { %v9821_v56 = vpop.f32.mrf.mxu0 }
 0x134   :  { %v605_v56 = vmul.f32 %v11508_v40, %v11508_v40  ;;  %v660_v57 = vadd.f32 %v659_v15, %v658_v41  ;;  %v526_v58 = vadd.f32 %v525_v25, %v524_v44  ;;  %v607_v15 = vmul.f32 %v11512_v46, %v11512_v46 }
 0x135   :  { %v11604_v9 = vpop.f32.mrf.mxu0  ;;  %v667_v44 = vsel %vm82_vm1, %v606_v14, 0.0 }
 0x136   :  { %v662_v8 = vadd.f32 %v661_v50, %v660_v57  ;;  %v528_v19 = vadd.f32 %v527_v52, %v526_v58  ;;  %v665_v21 = vsel %vm82_vm1, %v605_v56, 0.0  ;;  %v608_v50 = vmul.f32 %v11516_v51, %v11516_v51 }
 0x137   :  { %v9824_v13 = vpop.f32.mrf.mxu0  ;;  %v669_v58 = vsel %vm82_vm1, %v607_v15, 0.0 }
 0x138   :  { %v531_v13 = vsel %vm82_vm1, %v11510_v42, 0.0  ;;  %v664_v25 = vadd.f32 %v663_v62, %v662_v8  ;;  %v530_v27 = vadd.f32 %v529_v4, %v528_v19  ;;  %v609_v62 = vmul.f32 %v11531_v7, %v11531_v7 }
 0x139   :  { %v11616_v48 = vpop.f32.mrf.mxu0  ;;  %v671_v19 = vsel %vm82_vm1, %v608_v50, 0.0 }
 0x13a   :  { %v666_v52 = vadd.f32 %v665_v21, %v664_v25  ;;  %v532_v57 = vadd.f32 %v531_v13, %v530_v27  ;;  %v610_v21 = vmul.f32 %v11544_v36, %v11544_v36  ;;  %v673_v27 = vsel %vm82_vm1, %v609_v62, 0.0 }
 0x13b   :  { %v9827_v60 = vpop.f32.mrf.mxu0  ;;  %v551_v6 = vsel %vm82_vm1, %v11616_v48, 0.0 }
 0x13c   :  { %v533_v60 = vsel %vm82_vm1, %v11512_v46, 0.0  ;;  %v668_v4 = vadd.f32 %v667_v44, %v666_v52  ;;  %v611_v44 = vmul.f32 %v11556_v3, %v11556_v3 }
 0x13d   :  { %v11628_v17 = vpop.f32.mrf.mxu0  ;;  %v534_v14 = vadd.f32 %v533_v60, %v532_v57  ;;  %v675_v57 = vsel %vm82_vm1, %v610_v21, 0.0 }
 0x13e   :  { %v670_v13 = vadd.f32 %v669_v58, %v668_v4 }
 0x13f   :  { %v9830_v41 = vpop.f32.mrf.mxu0  ;;  %v536_v25 = vadd.f32 %v535_v0, %v534_v14  ;;  %v612_v0 = vmul.f32 %v11568_v30, %v11568_v30  ;;  %v677_v14 = vsel %vm82_vm1, %v611_v44, 0.0 }
 0x140   :  { %v537_v41 = vsel %vm82_vm1, %v11531_v7, 0.0  ;;  %v672_v60 = vadd.f32 %v671_v19, %v670_v13  ;;  %v613_v19 = vmul.f32 %v11580_v1, %v11580_v1 }
 0x141   :  { %v11640_v56 = vpop.f32.mrf.mxu0  ;;  %v538_v50 = vadd.f32 %v537_v41, %v536_v25  ;;  %v679_v25 = vsel %vm82_vm1, %v612_v0, 0.0 }
 0x142   :  { %v674_v58 = vadd.f32 %v673_v27, %v672_v60  ;;  %v555_v63 = vsel %vm82_vm1, %v11640_v56, 0.0 }
 0x143   :  { %v9833_v8 = vpop.f32.mrf.mxu0  ;;  %v540_v4 = vadd.f32 %v539_v12, %v538_v50  ;;  %v614_v12 = vmul.f32 %v11592_v34, %v11592_v34  ;;  %v681_v50 = vsel %vm82_vm1, %v613_v19, 0.0 }
 0x144   :  { %v541_v8 = vsel %vm82_vm1, %v11556_v3, 0.0  ;;  %v676_v41 = vadd.f32 %v675_v57, %v674_v58  ;;  %v615_v57 = vmul.f32 %v11604_v9, %v11604_v9 }
 0x145   :  { %v11652_v15 = vpop.f32.mrf.mxu0  ;;  %v542_v21 = vadd.f32 %v541_v8, %v540_v4  ;;  %v683_v4 = vsel %vm82_vm1, %v614_v12, 0.0 }
 0x146   :  { %15498 = vst [vmem:[#allocation15_spill] sm:$0xff] %v11652_v15  ;;  %v678_v27 = vadd.f32 %v677_v14, %v676_v41 }
 0x147   :  { %v9836_v52 = vpop.f32.mrf.mxu0  ;;  %v544_v60 = vadd.f32 %v543_v10, %v542_v21  ;;  %v616_v10 = vmul.f32 %v11616_v48, %v11616_v48  ;;  %v685_v21 = vsel %vm82_vm1, %v615_v57, 0.0 }
 0x148   :  { %v545_v52 = vsel %vm82_vm1, %v11580_v1, 0.0  ;;  %v680_v8 = vadd.f32 %v679_v25, %v678_v27  ;;  %v617_v25 = vmul.f32 %v11628_v17, %v11628_v17 }
 0x149   :  { %v11664_v62 = vpop.f32.mrf.mxu0  ;;  %v546_v0 = vadd.f32 %v545_v52, %v544_v60  ;;  %v687_v60 = vsel %vm82_vm1, %v616_v10, 0.0 }
 0x14a   :  { %15499 = vst [vmem:[#allocation16_spill] sm:$0xff] %v11664_v62  ;;  %v682_v14 = vadd.f32 %v681_v50, %v680_v8  ;;  %v559_v61 = vsel %vm82_vm1, %v11664_v62, 0.0 }
 0x14b   :  { %v9839_v13 = vpop.f32.mrf.mxu0  ;;  %v548_v41 = vadd.f32 %v547_v11, %v546_v0  ;;  %v618_v11 = vmul.f32 %v11640_v56, %v11640_v56  ;;  %v689_v0 = vsel %vm82_vm1, %v617_v25, 0.0 }
 0x14c   :  { %v549_v13 = vsel %vm82_vm1, %v11604_v9, 0.0  ;;  %v684_v52 = vadd.f32 %v683_v4, %v682_v14  ;;  %v619_v4 = vmul.f32 %v11652_v15, %v11652_v15 }
 0x14d   :  { %v11676_v44 = vpop.f32.mrf.mxu0  ;;  %v550_v12 = vadd.f32 %v549_v13, %v548_v41  ;;  %v691_v41 = vsel %vm82_vm1, %v618_v11, 0.0 }
 0x14e   :  { %15500 = vst [vmem:[#allocation17_spill] sm:$0xff] %v11676_v44  ;;  %v686_v50 = vadd.f32 %v685_v21, %v684_v52 }
 0x14f   :  { %v9842_v58 = vpop.f32.mrf.mxu0  ;;  %v552_v8 = vadd.f32 %v551_v6, %v550_v12  ;;  %v620_v6 = vmul.f32 %v11664_v62, %v11664_v62  ;;  %v693_v12 = vsel %vm82_vm1, %v619_v4, 0.0 }
 0x150   :  { %v553_v58 = vsel %vm82_vm1, %v11628_v17, 0.0  ;;  %v688_v13 = vadd.f32 %v687_v60, %v686_v50  ;;  %v621_v60 = vmul.f32 %v11676_v44, %v11676_v44 }
 0x151   :  { %v11688_v19 = vpop.f32.mrf.mxu0  ;;  %v554_v10 = vadd.f32 %v553_v58, %v552_v8  ;;  %v695_v8 = vsel %vm82_vm1, %v620_v6, 0.0 }
 0x152   :  { %15501 = vst [vmem:[#allocation18_spill] sm:$0xff] %v11688_v19  ;;  %v690_v21 = vadd.f32 %v689_v0, %v688_v13  ;;  %v563_v55 = vsel %vm82_vm1, %v11688_v19, 0.0 }
 0x153   :  { %v9845_v27 = vpop.f32.mrf.mxu0  ;;  %v556_v52 = vadd.f32 %v555_v63, %v554_v10  ;;  %v622_v63 = vmul.f32 %v11688_v19, %v11688_v19  ;;  %v697_v10 = vsel %vm82_vm1, %v621_v60, 0.0 }
 0x154   :  { %v557_v27 = vsel %vm82_vm1, %v11652_v15, 0.0  ;;  %v692_v58 = vadd.f32 %v691_v41, %v690_v21 }
 0x155   :  { %v11700_v57 = vpop.f32.mrf.mxu0  ;;  %v558_v11 = vadd.f32 %v557_v27, %v556_v52  ;;  %v699_v52 = vsel %vm82_vm1, %v622_v63, 0.0 }
 0x156   :  { %15502 = vst [vmem:[#allocation19_spill] sm:$0xff] %v11700_v57  ;;  %v694_v0 = vadd.f32 %v693_v12, %v692_v58  ;;  %v623_v41 = vmul.f32 %v11700_v57, %v11700_v57 }
 0x157   :  { %v9848_v14 = vpop.f32.mrf.mxu0  ;;  %v560_v13 = vadd.f32 %v559_v61, %v558_v11 }
 0x158   :  { %v561_v14 = vsel %vm82_vm1, %v11676_v44, 0.0  ;;  %v696_v27 = vadd.f32 %v695_v8, %v694_v0  ;;  %v701_v11 = vsel %vm82_vm1, %v623_v41, 0.0 }
 0x159   :  { %v11712_v25 = vpop.f32.mrf.mxu0  ;;  %v562_v6 = vadd.f32 %v561_v14, %v560_v13 }
 0x15a   :  { %v624_v61 = vmul.f32 %v11712_v25, %v11712_v25  ;;  %v698_v12 = vadd.f32 %v697_v10, %v696_v27  ;;  %v567_v54 = vsel %vm82_vm1, %v11712_v25, 0.0 }
 0x15b   :  { %v9851_v50 = vpop.f32.mrf.mxu0  ;;  %v564_v58 = vadd.f32 %v563_v55, %v562_v6 }
 0x15c   :  { %v565_v50 = vsel %vm82_vm1, %v11700_v57, 0.0  ;;  %v700_v14 = vadd.f32 %v699_v52, %v698_v12  ;;  %v703_v13 = vsel %vm82_vm1, %v624_v61, 0.0 }
 0x15d   :  { %v11724_v4 = vpop.f32.mrf.mxu0  ;;  %v566_v63 = vadd.f32 %v565_v50, %v564_v58  ;;  %v730_v50 = vlaneseq }
 0x15e   :  { %v625_v8 = vmul.f32 %v11724_v4, %v11724_v4  ;;  %v702_v10 = vadd.f32 %v701_v11, %v700_v14 }
 0x15f   :  { %v9854_v21 = vpop.f32.mrf.mxu0  ;;  %v568_v27 = vadd.f32 %v567_v54, %v566_v63  ;;  %v11758_v54 = vand.u32 127, %v730_v50 }
 0x160   :  { %v569_v21 = vsel %vm82_vm1, %v11724_v4, 0.0  ;;  %v705_v6 = vsel %vm82_vm1, %v625_v8, 0.0  ;;  %v704_v61 = vadd.f32 %v703_v13, %v702_v10 }
 0x161   :  { %v11736_v60 = vpop.f32.mrf.mxu0  ;;  %v570_v12 = vadd.f32 %v569_v21, %v568_v27  ;;  %15503 = vst [vmem:[#allocation20_spill] sm:$0xff] %v11758_v54  ;;  %vm945_vm4 = vcmp.eq.s32.totalorder %v11758_v54, %v11426_v29  ;;  %vm948_vm7 = vcmp.eq.s32.totalorder %v11758_v54, %v11438_v38 }
 0x162   :  { %v626_v55 = vmul.f32 %v11736_v60, %v11736_v60  ;;  %v571_v47 = vsel %vm82_vm1, %v11736_v60, 0.0  ;;  %v706_v14 = vadd.f32 %v705_v6, %v704_v61 }
 0x163   :  { %v9857_v0 = vpop.f32.mrf.mxu0  ;;  %v572_v63 = vadd.f32 %v571_v47, %v570_v12  ;;  %v11771_v47 = vadd.s32 128, %v11758_v54 }
 0x164   :  { %v707_v0 = vsel %vm82_vm1, %v626_v55, 0.0 }
 0x165   :  { %v11748_v41 = vpop.f32.mrf.mxu0  ;;  %v708_v21 = vadd.f32 %v707_v0, %v706_v14  ;;  %15504 = vst [vmem:[#allocation21_spill] sm:$0xff] %v11771_v47  ;;  %vm946_vm3 = vcmp.eq.s32.totalorder %v11771_v47, %v11426_v29  ;;  %v15381_v14 = vmov 1.0  }
 0x166   :  { %v627_v52 = vmul.f32 %v11748_v41, %v11748_v41  ;;  %v573_v11 = vsel %vm82_vm1, %v11748_v41, 0.0  ;;  %7908 = vmatprep.mubr.msk.f32.mxu1 %vm946_vm3, %v15381_v14 }
 0x167   :  { %v9860_v58 = vpop.f32.mrf.mxu0  ;;  %v574_v10 = vadd.f32 %v573_v11, %v572_v63 }
 0x168   :  { %v709_v45 = vsel %vm82_vm1, %v627_v52, 0.0 }
 0x169   :  { %v11760_v8 = vpop.f32.mrf.mxu0  ;;  %v710_v58 = vadd.f32 %v709_v45, %v708_v21 }
 0x16a   :  { %v575_v15 = vsel %vm82_vm1, %v11760_v8, 0.0  ;;  %v628_v13 = vmul.f32 %v11760_v8, %v11760_v8 }
 0x16b   :  { %v9863_v55 = vpop.f32.mrf.mxu0  ;;  %v576_v39 = vadd.f32 %v575_v15, %v574_v10 }
 0x16c   :  { %v711_v27 = vsel %vm82_vm1, %v628_v13, 0.0 }
 0x16d   :  { %v11768_v6 = vpop.f32.mrf.mxu0  ;;  %v712_v12 = vadd.f32 %v711_v27, %v710_v58 }
 0x16e   :  { %v578_v52 = vsel %vm577_vm2, %v11768_v6, 0.0  ;;  %v629_v61 = vmul.f32 %v11768_v6, %v11768_v6 }
 0x16f   :  { %v579_v62 = vadd.f32 %v578_v52, %v576_v39  ;;  %v9866_v0 = vpop.f32.mrf.mxu0 }
 0x170   :  { %v713_v11 = vsel %vm577_vm2, %v629_v61, 0.0 }
 0x171   :  { %v580_v45 = vrot.slane %v579_v62, 4  ;;  %v714_v15 = vadd.f32 %v713_v11, %v712_v12  ;;  %v731_v11 = vshrl.u32 %v730_v50, 7 }
 0x173   :  { %v581_v63 = vadd.f32 %v580_v45, %v579_v62  ;;  %v715_v13 = vrot.slane %v714_v15, 4  ;;  %v492_v62 = vld [vmem:[%s15352_s2] sm:$0x1] }
 0x175   :  { %v582_v21 = vrot.slane %v581_v63, 2  ;;  %v716_v10 = vadd.f32 %v715_v13, %v714_v15 }
 0x177   :  { %v583_v55 = vadd.f32 %v582_v21, %v581_v63  ;;  %v717_v44 = vrot.slane %v716_v10, 2 }
 0x179   :  { %v584_v19 = vrot.slane %v583_v55, 1  ;;  %v718_v31 = vadd.f32 %v717_v44, %v716_v10  ;;  %v493_v44 = vld [vmem:[%s15353_s3] sm:$0x1] }
 0x17b   :  { %v585_v27 = vadd.f32 %v584_v19, %v583_v55  ;;  %v719_v39 = vrot.slane %v718_v31, 1  ;;  %v11785_v19 = vsub.s32 0, %v731_v11 }
 0x17d   :  { %v586_v58 = vmul.f32 0.00295858, %v585_v27  ;;  %v720_v52 = vadd.f32 %v719_v39, %v718_v31  ;;  %15505 = vst [vmem:[#allocation22_spill] sm:$0xff] %v11785_v19 }
 0x17f   :  { %v721_v0 = vmul.f32 0.00295858, %v720_v52  ;;  %v722_v57 = vmul.f32 %v586_v58, %v586_v58 }
 0x181   :  { %v723_v61 = vsub.f32 %v721_v0, %v722_v57 }
 0x183   :  { %v724_v47 = vadd.f32 1e-05, %v723_v61 }
 0x185   :  { %10965 = vrsqrt.f32 %v724_v47 }
 0x192   :  { %v10966_v14 = vpop.eup %10965 }
 0x193   :  { %v726_v12 = vmul.f32 %v10966_v14, %v492_v62 }
 0x195   :  { %v727_v45 = vmul.f32 %v726_v12, %v586_v58  ;;  %v11788_v15 = vrot.slane %v726_v12, %v11785_v19 }
 0x197   :  { %v728_v31 = vsub.f32 %v493_v44, %v727_v45  ;;  %v750_v47 = vmul.f32 %v11788_v15, %v11502_v28  ;;  %v766_v50 = vmul.f32 %v11788_v15, %v11640_v56  ;;  %v765_v63 = vmul.f32 %v11788_v15, %v11628_v17 }
 0x198   :  { %v749_v21 = vmul.f32 %v11788_v15, %v11500_v26  ;;  %v764_v10 = vmul.f32 %v11788_v15, %v11616_v48  ;;  %v748_v28 = vmul.f32 %v11788_v15, %v11498_v24  ;;  %v763_v39 = vmul.f32 %v11788_v15, %v11604_v9 }
 0x199   :  { %v11791_v57 = vrot.slane %v728_v31, %v11785_v19  ;;  %v747_v26 = vmul.f32 %v11788_v15, %v11496_v23  ;;  %v762_v48 = vmul.f32 %v11788_v15, %v11592_v34  ;;  %v746_v61 = vmul.f32 %v11788_v15, %v11494_v22 }
 0x19a   :  { %v761_v11 = vmul.f32 %v11788_v15, %v11580_v1  ;;  %v745_v34 = vmul.f32 %v11788_v15, %v11492_v20  ;;  %v760_v22 = vmul.f32 %v11788_v15, %v11568_v30  ;;  %v744_v1 = vmul.f32 %v11788_v15, %v11490_v18 }
 0x19b   :  { %v799_v14 = vadd.f32 %v11791_v57, %v750_v47  ;;  %v815_v13 = vadd.f32 %v11791_v57, %v766_v50  ;;  %v814_v55 = vadd.f32 %v11791_v57, %v765_v63  ;;  %v798_v56 = vadd.f32 %v11791_v57, %v749_v21 }
 0x19c   :  { %v813_v17 = vadd.f32 %v11791_v57, %v764_v10  ;;  %v797_v52 = vadd.f32 %v11791_v57, %v748_v28  ;;  %v812_v0 = vadd.f32 %v11791_v57, %v763_v39  ;;  %v796_v62 = vadd.f32 %v11791_v57, %v747_v26 }
 0x19d   :  { %v842_v27 = vmul.f32 0.2, %v799_v14  ;;  %v858_v58 = vmul.f32 0.2, %v815_v13  ;;  %v857_v24 = vmul.f32 0.2, %v814_v55  ;;  %v811_v23 = vadd.f32 %v11791_v57, %v762_v48 }
 0x19e   :  { %v841_v9 = vmul.f32 0.2, %v798_v56  ;;  %v856_v45 = vmul.f32 0.2, %v813_v17  ;;  %v795_v31 = vadd.f32 %v11791_v57, %v746_v61  ;;  %v840_v47 = vmul.f32 0.2, %v797_v52 }
 0x19f   :  { %v11821_v12 = vmax.f32 %v799_v14, %v842_v27  ;;  %v11826_v44 = vmax.f32 %v815_v13, %v858_v58  ;;  %v810_v50 = vadd.f32 %v11791_v57, %v761_v11  ;;  %v855_v14 = vmul.f32 0.2, %v812_v0 }
 0x1a0   :  { %v11834_v63 = vmax.f32 %v814_v55, %v857_v24  ;;  %v794_v13 = vadd.f32 %v11791_v57, %v745_v34  ;;  %v839_v21 = vmul.f32 0.2, %v796_v62  ;;  %v11840_v20 = vmax.f32 %v798_v56, %v841_v9 }
 0x1a1   :  { %15506 = vst [vmem:[#allocation23_spill] sm:$0xff] %v11826_v44  ;;  %8454 = vmatprep.subr.mxu1 %v11826_v44  ;;  %v759_v30 = vmul.f32 %v11788_v15, %v11556_v3  ;;  %v809_v10 = vadd.f32 %v11791_v57, %v760_v22  ;;  %v854_v28 = vmul.f32 0.2, %v811_v23  ;;  %v11846_v55 = vmax.f32 %v813_v17, %v856_v45 }
 0x1a2   :  { %8455 = vmatpush3.msra.mxu1 %v11821_v12  ;;  %v743_v18 = vmul.f32 %v11788_v15, %v11484_v16  ;;  %v793_v27 = vadd.f32 %v11791_v57, %v744_v1  ;;  %v838_v39 = vmul.f32 0.2, %v795_v31  ;;  %v11852_v56 = vmax.f32 %v797_v52, %v840_v47 }
 0x1a3   :  { %8456 = vmatprep.subr.mxu1 %v11834_v63  ;;  %v758_v3 = vmul.f32 %v11788_v15, %v11544_v36  ;;  %v808_v58 = vadd.f32 %v11791_v57, %v759_v30  ;;  %v853_v26 = vmul.f32 0.2, %v810_v50  ;;  %v11858_v17 = vmax.f32 %v812_v0, %v855_v14 }
 0x1a4   :  { %8457 = vmatpush3.msra.mxu1 %v11840_v20  ;;  %v742_v16 = vmul.f32 %v11788_v15, %v11476_v5  ;;  %v792_v48 = vadd.f32 %v11791_v57, %v743_v18  ;;  %v837_v24 = vmul.f32 0.2, %v794_v13  ;;  %v11864_v52 = vmax.f32 %v796_v62, %v839_v21 }
 0x1a5   :  { %8458 = vmatprep.subr.mxu1 %v11846_v55  ;;  %v757_v36 = vmul.f32 %v11788_v15, %v11531_v7  ;;  %v807_v61 = vadd.f32 %v11791_v57, %v758_v3  ;;  %v852_v9 = vmul.f32 0.2, %v809_v10  ;;  %v11870_v0 = vmax.f32 %v811_v23, %v854_v28 }
 0x1a6   :  { %8459 = vmatpush3.msra.mxu1 %v11852_v56  ;;  %v741_v5 = vmul.f32 %v11788_v15, %v11472_v2  ;;  %v791_v11 = vadd.f32 %v11791_v57, %v742_v16  ;;  %v836_v45 = vmul.f32 0.2, %v793_v27  ;;  %v11876_v62 = vmax.f32 %v795_v31, %v838_v39 }
 0x1a7   :  { %8460 = vmatprep.subr.mxu1 %v11858_v17  ;;  %v756_v7 = vmul.f32 %v11788_v15, %v11516_v51  ;;  %v806_v34 = vadd.f32 %v11791_v57, %v757_v36  ;;  %v851_v47 = vmul.f32 0.2, %v808_v58  ;;  %v11882_v23 = vmax.f32 %v810_v50, %v853_v26 }
 0x1a8   :  { %8461 = vmatpush3.msra.mxu1 %v11864_v52  ;;  %v740_v2 = vmul.f32 %v11788_v15, %v11464_v59  ;;  %v790_v22 = vadd.f32 %v11791_v57, %v741_v5  ;;  %v835_v14 = vmul.f32 0.2, %v792_v48  ;;  %v11888_v31 = vmax.f32 %v794_v13, %v837_v24 }
 0x1a9   :  { %8462 = vmatprep.subr.mxu1 %v11870_v0  ;;  %v755_v51 = vmul.f32 %v11788_v15, %v11512_v46  ;;  %v805_v1 = vadd.f32 %v11791_v57, %v756_v7  ;;  %v850_v21 = vmul.f32 0.2, %v807_v61  ;;  %v11894_v50 = vmax.f32 %v809_v10, %v852_v9 }
 0x1aa   :  { %8463 = vmatpush3.msra.mxu1 %v11876_v62  ;;  %v739_v59 = vmul.f32 %v11788_v15, %v11456_v53  ;;  %v789_v30 = vadd.f32 %v11791_v57, %v740_v2  ;;  %v834_v28 = vmul.f32 0.2, %v791_v11  ;;  %v11900_v13 = vmax.f32 %v793_v27, %v836_v45 }
 0x1ab   :  { %8464 = vmatprep.subr.mxu1 %v11882_v23  ;;  %v754_v46 = vmul.f32 %v11788_v15, %v11510_v42  ;;  %v804_v18 = vadd.f32 %v11791_v57, %v755_v51  ;;  %v849_v39 = vmul.f32 0.2, %v806_v34  ;;  %v11906_v10 = vmax.f32 %v808_v58, %v851_v47 }
 0x1ac   :  { %8465 = vmatpush3.msra.mxu1 %v11888_v31  ;;  %v738_v53 = vmul.f32 %v11788_v15, %v11452_v49  ;;  %v788_v3 = vadd.f32 %v11791_v57, %v739_v59  ;;  %v833_v26 = vmul.f32 0.2, %v790_v22  ;;  %v11912_v27 = vmax.f32 %v792_v48, %v835_v14 }
 0x1ad   :  { %8466 = vmatprep.subr.mxu1 %v11894_v50  ;;  %v753_v42 = vmul.f32 %v11788_v15, %v11508_v40  ;;  %v803_v16 = vadd.f32 %v11791_v57, %v754_v46  ;;  %v848_v24 = vmul.f32 0.2, %v805_v1  ;;  %v11918_v58 = vmax.f32 %v807_v61, %v850_v21 }
 0x1ae   :  { %8467 = vmatpush3.msra.mxu1 %v11900_v13  ;;  %v737_v49 = vmul.f32 %v11788_v15, %v11444_v43  ;;  %v787_v36 = vadd.f32 %v11791_v57, %v738_v53  ;;  %v832_v9 = vmul.f32 0.2, %v789_v30  ;;  %v11924_v48 = vmax.f32 %v791_v11, %v834_v28  ;;  %v1214_v43 = vld [vmem:[%s15354_s5 + $0x8] sm:$0xff] }
 0x1af   :  { %8468 = vmatprep.subr.mxu1 %v11906_v10  ;;  %v752_v40 = vmul.f32 %v11788_v15, %v11506_v35  ;;  %v802_v5 = vadd.f32 %v11791_v57, %v753_v42  ;;  %v847_v45 = vmul.f32 0.2, %v804_v18  ;;  %v11930_v61 = vmax.f32 %v806_v34, %v849_v39  ;;  %9979 = vmatpush3.msra.mxu0 %v1214_v43 }
 0x1b0   :  { %8469 = vmatpush3.msra.mxu1 %v11912_v27  ;;  %v736_v11 = vmul.f32 %v11788_v15, %v11436_v37  ;;  %v786_v7 = vadd.f32 %v11791_v57, %v737_v49  ;;  %v831_v47 = vmul.f32 0.2, %v788_v3  ;;  %v11939_v2 = vmax.f32 %v790_v22, %v833_v26 }
 0x1b1   :  { %8470 = vmatprep.subr.mxu1 %v11918_v58  ;;  %v751_v35 = vmul.f32 %v11788_v15, %v11504_v32  ;;  %v801_v34 = vadd.f32 %v11791_v57, %v752_v40  ;;  %v846_v14 = vmul.f32 0.2, %v803_v16  ;;  %v11945_v51 = vmax.f32 %v805_v1, %v848_v24 }
 0x1b2   :  { %8471 = vmatpush3.msra.mxu1 %v11924_v48  ;;  %v15508_v21 = vmov 0.0   ;;  %v735_v37 = vmul.f32 %v11788_v15, %v11432_v33  ;;  %v785_v22 = vadd.f32 %v11791_v57, %v736_v11  ;;  %v830_v59 = vmul.f32 0.2, %v787_v36 }
 0x1b3   :  { %15507 = vst [vmem:[#allocation24_spill] sm:$0xff] %v11945_v51  ;;  %8472 = vmatprep.subr.mxu1 %v11930_v61  ;;  %9980 = vmatprep.subr.mxu0 %v15508_v21  ;;  %v11952_v28 = vmax.f32 %v789_v30, %v832_v9  ;;  %v800_v32 = vadd.f32 %v11791_v57, %v751_v35  ;;  %v845_v46 = vmul.f32 0.2, %v802_v5  ;;  %v829_v33 = vmul.f32 0.2, %v786_v7 }
 0x1b4   :  { %8473 = vmatpush3.msra.mxu1 %v11939_v2  ;;  %v11956_v39 = vmax.f32 %v804_v18, %v847_v45  ;;  %v777_v1 = vmul.f32 %v11788_v15, %v11768_v6  ;;  %v784_v53 = vadd.f32 %v11791_v57, %v735_v37  ;;  %v11962_v26 = vmax.f32 %v788_v3, %v831_v47 }
 0x1b5   :  { %15509 = vst [vmem:[#allocation25_spill] sm:$0xff] %v11952_v28  ;;  %8474 = vmatprep.subr.mxu1 %v11945_v51  ;;  %v844_v30 = vmul.f32 0.2, %v801_v34  ;;  %v11965_v42 = vmax.f32 %v803_v16, %v846_v14  ;;  %v776_v24 = vmul.f32 %v11788_v15, %v11760_v8  ;;  %v828_v49 = vmul.f32 0.2, %v785_v22 }
 0x1b6   :  { %15510 = vst [vmem:[#allocation26_spill] sm:$0xff] %v11956_v39  ;;  %15511 = vst [vmem:[#allocation27_spill] sm:$0xff] %v11962_v26  ;;  %8475 = vmatpush3.msra.mxu1 %v11952_v28  ;;  %v826_v18 = vadd.f32 %v11791_v57, %v777_v1  ;;  %v11971_v9 = vmax.f32 %v787_v36, %v830_v59  ;;  %v843_v6 = vmul.f32 0.2, %v800_v32  ;;  %v827_v45 = vmul.f32 0.2, %v784_v53 }
 0x1b7   :  { %15512 = vst [vmem:[#allocation28_spill] sm:$0xff] %v11965_v42  ;;  %8476 = vmatprep.subr.mxu1 %v11956_v39  ;;  %v11974_v3 = vmax.f32 %v802_v5, %v845_v46  ;;  %v775_v16 = vmul.f32 %v11788_v15, %v11748_v41  ;;  %v825_v40 = vadd.f32 %v11791_v57, %v776_v24  ;;  %v15522_v46 = vld [vmem:[#allocation19_spill] sm:$0xff] }
 0x1b8   :  { %15513 = vst [vmem:[#allocation29_spill] sm:$0xff] %v11971_v9  ;;  %8477 = vmatpush3.msra.mxu1 %v11962_v26  ;;  %v11980_v43 = vmax.f32 %v786_v7, %v829_v33  ;;  %v11983_v8 = vmax.f32 %v801_v34, %v844_v30  ;;  %v869_v36 = vmul.f32 0.2, %v826_v18  ;;  %v774_v5 = vmul.f32 %v11788_v15, %v11736_v60 }
 0x1b9   :  { %15514 = vst [vmem:[#allocation30_spill] sm:$0xff] %v11974_v3  ;;  %8478 = vmatprep.subr.mxu1 %v11965_v42  ;;  %v824_v11 = vadd.f32 %v11791_v57, %v775_v16  ;;  %v11989_v47 = vmax.f32 %v785_v22, %v828_v49  ;;  %v11992_v41 = vmax.f32 %v800_v32, %v843_v6  ;;  %v868_v34 = vmul.f32 0.2, %v825_v40  ;;  %v15521_v32 = vld [vmem:[#allocation21_spill] sm:$0xff] }
 0x1ba   :  { %15515 = vst [vmem:[#allocation31_spill] sm:$0xff] %v11980_v43  ;;  %8479 = vmatpush3.msra.mxu1 %v11971_v9  ;;  %15516 = vst [vmem:[#allocation32_spill] sm:$0xff] %v11983_v8  ;;  %v773_v7 = vmul.f32 %v11788_v15, %v11724_v4  ;;  %v823_v35 = vadd.f32 %v11791_v57, %v774_v5  ;;  %v12000_v60 = vmax.f32 %v784_v53, %v827_v45  ;;  %v15520_v4 = vmov 1.0  }
 0x1bb   :  { %8480 = vmatprep.subr.mxu1 %v11974_v3  ;;  %15517 = vst [vmem:[#allocation33_spill] sm:$0xff] %v11989_v47  ;;  %15518 = vst [vmem:[#allocation34_spill] sm:$0xff] %v11992_v41  ;;  %v12004_v14 = vmax.f32 %v826_v18, %v869_v36  ;;  %v772_v37 = vmul.f32 %v11788_v15, %v11712_v25  ;;  %v867_v59 = vmul.f32 0.2, %v824_v11  ;;  %v15524_v25 = vld [vmem:[#allocation3_spill] sm:$0xff]  ;;  %v15525_v18 = vld [vmem:[#allocation18_spill] sm:$0xff] }
 0x1bc   :  { %8481 = vmatpush3.msra.mxu1 %v11980_v43  ;;  %15519 = vst [vmem:[#allocation35_spill] sm:$0xff] %v12000_v60  ;;  %v822_v22 = vadd.f32 %v11791_v57, %v773_v7  ;;  %vm949_vm6 = vcmp.eq.s32.totalorder %v15521_v32, %v11438_v38  ;;  %v771_v1 = vmul.f32 %v11788_v15, %v15522_v46  ;;  %v866_v33 = vmul.f32 0.2, %v823_v35 }
 0x1bd   :  { %8482 = vmatprep.subr.mxu1 %v11983_v8  ;;  %v821_v53 = vadd.f32 %v11791_v57, %v772_v37  ;;  %v12017_v30 = vmax.f32 %v825_v40, %v868_v34  ;;  %vm952_vm8 = vcmp.eq.s32.totalorder %v15521_v32, %v15524_v25  ;;  %v770_v24 = vmul.f32 %v11788_v15, %v15525_v18  ;;  %v15527_v40 = vld [vmem:[#allocation17_spill] sm:$0xff] }
 0x1be   :  { %8483 = vmatpush3.msra.mxu1 %v11989_v47  ;;  %v820_v49 = vadd.f32 %v11791_v57, %v771_v1  ;;  %v865_v6 = vmul.f32 0.2, %v822_v22  ;;  %v12030_v16 = vmax.f32 %v824_v11, %v867_v59  ;;  %vm951_vm9 = vcmp.eq.s32.totalorder %v11758_v54, %v15524_v25  ;;  %v15529_v11 = vld [vmem:[#allocation16_spill] sm:$0xff]  ;;  %v15532_v1 = vld [vmem:[#allocation15_spill] sm:$0xff] }
 0x1bf   :  { %8484 = vmatprep.subr.mxu1 %v11992_v41  ;;  %15523 = vst [vmem:[#allocation19_spill] sm:$0xff] %v12017_v30  ;;  %v769_v45 = vmul.f32 %v11788_v15, %v15527_v40  ;;  %v819_v36 = vadd.f32 %v11791_v57, %v770_v24  ;;  %v864_v5 = vmul.f32 0.2, %v821_v53  ;;  %v12040_v7 = vmax.f32 %v823_v35, %v866_v33  ;;  %v15531_v35 = vld [vmem:[#allocation4_spill] sm:$0xff] }
 0x1c0   :  { %8485 = vmatpush3.msra.mxu1 %v12000_v60  ;;  %15526 = vst [vmem:[#allocation3_spill] sm:$0xff] %v12030_v16  ;;  %v768_v34 = vmul.f32 %v11788_v15, %v15529_v11  ;;  %v863_v59 = vmul.f32 0.2, %v820_v49  ;;  %v12048_v46 = vmax.f32 %v822_v22, %v865_v6  ;;  %vm955_vm10 = vcmp.eq.s32.totalorder %v15521_v32, %v15531_v35 }
 0x1c1   :  { %7909 = vmatmul.mubr.msk.f32.vlgmr.msra.gmra.mxu1 %vm945_vm4, %v15520_v4  ;;  %9867 = vmatprep.subr.mxu1 %v15508_v21  ;;  %15528 = vst [vmem:[#allocation18_spill] sm:$0xff] %v12040_v7  ;;  %v818_v37 = vadd.f32 %v11791_v57, %v769_v45  ;;  %v767_v33 = vmul.f32 %v11788_v15, %v15532_v1  ;;  %v862_v24 = vmul.f32 0.2, %v819_v36  ;;  %v15535_v15 = vld [vmem:[#allocation5_spill] sm:$0xff] }
 0x1c2   :  { %7910 = vmatprep.mubr.msk.f32.mxu1 %vm949_vm6, %v15520_v4  ;;  %9868 = vmatpush3.msk.msra.mxu1 %vm1009_vm5, %v12004_v14  ;;  %15530 = vst [vmem:[#allocation17_spill] sm:$0xff] %v12048_v46  ;;  %v817_v18 = vadd.f32 %v11791_v57, %v768_v34  ;;  %v12058_v40 = vmax.f32 %v821_v53, %v864_v5  ;;  %vm987_vm6 = vcmask 670720  }
 0x1c3   :  { %9869 = vmatprep.subr.mxu1 %v15508_v21  ;;  %v816_v22 = vadd.f32 %v11791_v57, %v767_v33  ;;  %v861_v6 = vmul.f32 0.2, %v818_v37  ;;  %v12064_v45 = vmax.f32 %v820_v49, %v863_v59  ;;  %vm954_vm11 = vcmp.eq.s32.totalorder %v11758_v54, %v15531_v35  ;;  %v15542_v59 = vld [vmem:[#allocation7_spill] sm:$0xff] }
 0x1c4   :  { %9870 = vmatpush3.msra.mxu1 %v12017_v30  ;;  %15533 = vst [vmem:[#allocation16_spill] sm:$0xff] %v12058_v40  ;;  %vm958_vm12 = vcmp.eq.s32.totalorder %v15521_v32, %v15535_v15  ;;  %v860_v53 = vmul.f32 0.2, %v817_v18  ;;  %v12073_v5 = vmax.f32 %v819_v36, %v862_v24  ;;  %vm957_vm13 = vcmp.eq.s32.totalorder %v11758_v54, %v15535_v15  ;;  %v15538_v36 = vld [vmem:[#allocation6_spill] sm:$0xff]  ;;  %v15543_v24 = vld [vmem:[#allocation8_spill] sm:$0xff] }
 0x1c5   :  { %7911 = vmatmul.mubr.msk.f32.gmra.mxu1 %vm948_vm7, %v15520_v4  ;;  %9871 = vmatprep.subr.mxu1 %v15508_v21  ;;  %15534 = vst [vmem:[#allocation4_spill] sm:$0xff] %v12064_v45  ;;  %v859_v57 = vmul.f32 0.2, %v816_v22  ;;  %v12078_v49 = vmax.f32 %v818_v37, %v861_v6  ;;  %vm961_vm14 = vcmp.eq.s32.totalorder %v15521_v32, %v15538_v36  ;;  %v12098_v37 = vadd.s32 256, %v11758_v54  ;;  %v15545_v6 = vld [vmem:[#allocation10_spill] sm:$0xff] }
 0x1c6   :  { %9872 = vmatpush3.msra.mxu1 %v12030_v16  ;;  %7912 = vmatprep.mubr.msk.f32.mxu1 %vm952_vm8, %v15520_v4  ;;  %15536 = vst [vmem:[#allocation15_spill] sm:$0xff] %v12073_v5  ;;  %v12087_v11 = vmax.f32 %v817_v18, %v860_v53  ;;  %vm960_vm15 = vcmp.eq.s32.totalorder %v11758_v54, %v15538_v36  ;;  %v15547_v53 = vld [vmem:[#allocation12_spill] sm:$0xff] }
 0x1c7   :  { %9873 = vmatprep.subr.mxu1 %v15508_v21  ;;  %15537 = vst [vmem:[#allocation5_spill] sm:$0xff] %v12078_v49  ;;  %v12092_v34 = vmax.f32 %v816_v22, %v859_v57  ;;  %15541 = vst [vmem:[#allocation37_spill] sm:$0xff] %v12098_v37  ;;  %vm964_vm2 = vcmp.eq.s32.totalorder %v15521_v32, %v15542_v59  ;;  %vm963_vm3 = vcmp.eq.s32.totalorder %v11758_v54, %v15542_v59  ;;  %v15544_v22 = vld [vmem:[#allocation9_spill] sm:$0xff] }
 0x1c8   :  { %9874 = vmatpush3.msra.mxu1 %v12040_v7  ;;  %15539 = vst [vmem:[#allocation6_spill] sm:$0xff] %v12087_v11  ;;  %vm947_vm4 = vcmp.eq.s32.totalorder %v12098_v37, %v11426_v29  ;;  %vm950_vm7 = vcmp.eq.s32.totalorder %v12098_v37, %v11438_v38  ;;  %vm953_vm8 = vcmp.eq.s32.totalorder %v12098_v37, %v15524_v25  ;;  %v15548_v57 = vld [vmem:[#allocation13_spill] sm:$0xff] }
 0x1c9   :  { %7913 = vmatmul.mubr.msk.f32.gmra.mxu1 %vm951_vm9, %v15520_v4  ;;  %9875 = vmatprep.subr.mxu1 %v15508_v21  ;;  %15540 = vst [vmem:[#allocation36_spill] sm:$0xff] %v12092_v34  ;;  %v968_v1 = vsel %vm947_vm4, 1.0, %v15508_v21  ;;  %v971_v29 = vsel %vm950_vm7, 1.0, %v15508_v21  ;;  %v974_v38 = vsel %vm953_vm8, 1.0, %v15508_v21  ;;  %vm956_vm9 = vcmp.eq.s32.totalorder %v12098_v37, %v15531_v35 }
 0x1ca   :  { %7914 = vmatprep.mubr.msk.f32.mxu1 %vm955_vm10, %v15520_v4  ;;  %9876 = vmatpush3.msra.mxu1 %v12048_v46  ;;  %v977_v25 = vsel %vm956_vm9, 1.0, %v15508_v21  ;;  %vm959_vm10 = vcmp.eq.s32.totalorder %v12098_v37, %v15535_v15  ;;  %vm1249_vm4 = vcmp.eq.s32.totalorder %v11758_v54, %v15545_v6  ;;  %v15546_v15 = vld [vmem:[#allocation11_spill] sm:$0xff]  ;;  %vm1256_vm9 = vcmp.eq.s32.totalorder %v15521_v32, %v15547_v53 }
 0x1cb   :  { %9877 = vmatprep.subr.mxu1 %v15508_v21  ;;  %v980_v35 = vsel %vm959_vm10, 1.0, %v15508_v21  ;;  %vm1253_vm7 = vcmp.eq.s32.totalorder %v15521_v32, %v15546_v15  ;;  %vm1252_vm8 = vcmp.eq.s32.totalorder %v11758_v54, %v15546_v15  ;;  %vm1255_vm10 = vcmp.eq.s32.totalorder %v11758_v54, %v15547_v53 }
 0x1cc   :  { %9878 = vmatpush3.msra.mxu1 %v12058_v40 }
 0x1cd   :  { %7915 = vmatmul.mubr.msk.f32.gmra.mxu1 %vm954_vm11, %v15520_v4  ;;  %9879 = vmatprep.subr.mxu1 %v15508_v21  ;;  %vm962_vm11 = vcmp.eq.s32.totalorder %v12098_v37, %v15538_v36  ;;  %v1213_v36 = vld [vmem:[%s15354_s5] sm:$0xff] }
 0x1ce   :  { %7916 = vmatprep.mubr.msk.f32.mxu1 %vm958_vm12, %v15520_v4  ;;  %9880 = vmatpush3.msra.mxu1 %v12064_v45  ;;  %v983_v33 = vsel %vm962_vm11, 1.0, %v15508_v21  ;;  %vm965_vm12 = vcmp.eq.s32.totalorder %v12098_v37, %v15542_v59  ;;  %vm1259_vm11 = vcmp.eq.s32.totalorder %v15521_v32, %v15548_v57  ;;  %v15549_v59 = vld [vmem:[#allocation14_spill] sm:$0xff] }
 0x1cf   :  { %9881 = vmatprep.subr.mxu1 %v15508_v21  ;;  %v986_v18 = vsel %vm965_vm12, 1.0, %v15508_v21  ;;  %9981 = vmatpush3.msra.mxu0 %v1213_v36  ;;  %vm1258_vm12 = vcmp.eq.s32.totalorder %v11758_v54, %v15548_v57 }
 0x1d0   :  { %9882 = vmatpush3.msra.mxu1 %v12073_v5  ;;  %10003 = vmatprep.subr.mxu0 %v15508_v21 }
 0x1d1   :  { %7917 = vmatmul.mubr.msk.f32.gmra.mxu1 %vm957_vm13, %v15520_v4  ;;  %9883 = vmatprep.subr.mxu1 %v15508_v21  ;;  %vm1244_vm13 = vcmp.eq.s32.totalorder %v15521_v32, %v15543_v24 }
 0x1d2   :  { %7918 = vmatprep.mubr.msk.f32.mxu1 %vm961_vm14, %v15520_v4  ;;  %9884 = vmatpush3.msra.mxu1 %v12078_v49  ;;  %vm1243_vm14 = vcmp.eq.s32.totalorder %v11758_v54, %v15543_v24 }
 0x1d3   :  { %9885 = vmatprep.subr.mxu1 %v15508_v21 }
 0x1d4   :  { %9886 = vmatpush3.msra.mxu1 %v12087_v11 }
 0x1d5   :  { %7919 = vmatmul.mubr.msk.f32.gmra.mxu1 %vm960_vm15, %v15520_v4  ;;  %9887 = vmatprep.subr.mxu1 %v15508_v21  ;;  %vm1247_vm15 = vcmp.eq.s32.totalorder %v15521_v32, %v15544_v22 }
 0x1d6   :  { %7920 = vmatprep.mubr.msk.f32.mxu1 %vm964_vm2, %v15520_v4  ;;  %9888 = vmatpush3.msra.mxu1 %v12092_v34  ;;  %vm1246_vm2 = vcmp.eq.s32.totalorder %v11758_v54, %v15544_v22 }
 0x1d7   :  { %8525 = vmatprep.subr.mxu1 %v11826_v44 }
 0x1d9   :  { %7921 = vmatmul.mubr.msk.f32.gmra.mxu1 %vm963_vm3, %v15520_v4  ;;  %vm1250_vm3 = vcmp.eq.s32.totalorder %v15521_v32, %v15545_v6 }
 0x1da   :  { %9889 = vmatprep.mubr.msk.f32.mxu1 %vm10970_vm0, %v15508_v21 }
 0x1dd   :  { %9890 = vmatmul.mubr.msk.f32.vlgmr.msra.gmra.mxu1 %vm987_vm6, %v968_v1  ;;  %v7953_v1 = vld [vmem:[%s15354_s5 + $0x18] sm:$0xff] }
 0x1de   :  { %8526 = vmatpush3.msra.mxu1 %v11821_v12  ;;  %9892 = vmatprep.mubr.msk.f32.mxu1 %vm10970_vm0, %v15508_v21 }
 0x1df   :  { %8527 = vmatprep.subr.mxu1 %v11834_v63 }
 0x1e0   :  { %8528 = vmatpush3.msra.mxu1 %v11840_v20 }
 0x1e1   :  { %8529 = vmatprep.subr.mxu1 %v11846_v55  ;;  %9893 = vmatmul.mubr.msk.f32.gmra.mxu1 %vm987_vm6, %v971_v29 }
 0x1e2   :  { %8530 = vmatpush3.msra.mxu1 %v11852_v56  ;;  %9895 = vmatprep.mubr.msk.f32.mxu1 %vm10970_vm0, %v15508_v21 }
 0x1e3   :  { %8531 = vmatprep.subr.mxu1 %v11858_v17 }
 0x1e4   :  { %8532 = vmatpush3.msra.mxu1 %v11864_v52 }
 0x1e5   :  { %8533 = vmatprep.subr.mxu1 %v11870_v0  ;;  %9896 = vmatmul.mubr.msk.f32.gmra.mxu1 %vm987_vm6, %v974_v38  ;;  %v7952_v38 = vld [vmem:[%s15354_s5 + $0x10] sm:$0xff] }
 0x1e6   :  { %8534 = vmatpush3.msra.mxu1 %v11876_v62  ;;  %9898 = vmatprep.mubr.msk.f32.mxu1 %vm10970_vm0, %v15508_v21 }
 0x1e7   :  { %8535 = vmatprep.subr.mxu1 %v11882_v23 }
 0x1e8   :  { %8536 = vmatpush3.msra.mxu1 %v11888_v31 }
 0x1e9   :  { %8537 = vmatprep.subr.mxu1 %v11894_v50  ;;  %9899 = vmatmul.mubr.msk.f32.gmra.mxu1 %vm987_vm6, %v977_v25 }
 0x1ea   :  { %8538 = vmatpush3.msra.mxu1 %v11900_v13  ;;  %9901 = vmatprep.mubr.msk.f32.mxu1 %vm10970_vm0, %v15508_v21 }
 0x1eb   :  { %8539 = vmatprep.subr.mxu1 %v11906_v10 }
 0x1ec   :  { %8540 = vmatpush3.msra.mxu1 %v11912_v27 }
 0x1ed   :  { %8541 = vmatprep.subr.mxu1 %v11918_v58  ;;  %9902 = vmatmul.mubr.msk.f32.gmra.mxu1 %vm987_vm6, %v980_v35 }
 0x1ee   :  { %8542 = vmatpush3.msra.mxu1 %v11924_v48  ;;  %9904 = vmatprep.mubr.msk.f32.mxu1 %vm10970_vm0, %v15508_v21 }
 0x1ef   :  { %8543 = vmatprep.subr.mxu1 %v11930_v61 }
 0x1f0   :  { %8544 = vmatpush3.msra.mxu1 %v11939_v2 }
 0x1f1   :  { %8545 = vmatprep.subr.mxu1 %v11945_v51  ;;  %9905 = vmatmul.mubr.msk.f32.gmra.mxu1 %vm987_vm6, %v983_v33 }
 0x1f2   :  { %8546 = vmatpush3.msra.mxu1 %v11952_v28  ;;  %9907 = vmatprep.mubr.msk.f32.mxu1 %vm10970_vm0, %v15508_v21 }
 0x1f3   :  { %8547 = vmatprep.subr.mxu1 %v11956_v39 }
 0x1f4   :  { %8548 = vmatpush3.msra.mxu1 %v11962_v26 }
 0x1f5   :  { %8549 = vmatprep.subr.mxu1 %v11965_v42  ;;  %9908 = vmatmul.mubr.msk.f32.gmra.mxu1 %vm987_vm6, %v986_v18 }
 0x1f6   :  { %8550 = vmatpush3.msra.mxu1 %v11971_v9  ;;  %7930 = vmatprep.mubr.msk.f32.mxu1 %vm1244_vm13, %v15520_v4  ;;  %vm1262_vm13 = vcmp.eq.s32.totalorder %v15521_v32, %v15549_v59 }
 0x1f7   :  { %8551 = vmatprep.subr.mxu1 %v11974_v3 }
 0x1f8   :  { %8552 = vmatpush3.msra.mxu1 %v11980_v43 }
 0x1f9   :  { %8553 = vmatprep.subr.mxu1 %v11983_v8 }
 0x1fa   :  { %8554 = vmatpush3.msra.mxu1 %v11989_v47 }
 0x1fb   :  { %8555 = vmatprep.subr.mxu1 %v11992_v41 }
 0x1fc   :  { %8556 = vmatpush3.msra.mxu1 %v12000_v60 }
 0x1fd   :  { %7931 = vmatmul.mubr.msk.f32.vlgmr.msra.gmra.mxu1 %vm1243_vm14, %v15520_v4  ;;  %9910 = vmatprep.subr.mxu1 %v15508_v21  ;;  %vm1261_vm14 = vcmp.eq.s32.totalorder %v11758_v54, %v15549_v59 }
 0x1fe   :  { %7932 = vmatprep.mubr.msk.f32.mxu1 %vm1247_vm15, %v15520_v4  ;;  %9911 = vmatpush3.msk.msra.mxu1 %vm1009_vm5, %v12004_v14  ;;  %vm1245_vm15 = vcmp.eq.s32.totalorder %v12098_v37, %v15543_v24 }
 0x1ff   :  { %9912 = vmatprep.subr.mxu1 %v15508_v21  ;;  %v1266_v29 = vsel %vm1245_vm15, 1.0, %v15508_v21 }
 0x200   :  { %9913 = vmatpush3.msra.mxu1 %v12017_v30 }
 0x201   :  { %7933 = vmatmul.mubr.msk.f32.gmra.mxu1 %vm1246_vm2, %v15520_v4  ;;  %9914 = vmatprep.subr.mxu1 %v15508_v21  ;;  %vm1248_vm2 = vcmp.eq.s32.totalorder %v12098_v37, %v15544_v22 }
 0x202   :  { %7934 = vmatprep.mubr.msk.f32.mxu1 %vm1250_vm3, %v15520_v4  ;;  %9915 = vmatpush3.msra.mxu1 %v12030_v16  ;;  %v1269_v25 = vsel %vm1248_vm2, 1.0, %v15508_v21  ;;  %vm1251_vm3 = vcmp.eq.s32.totalorder %v12098_v37, %v15545_v6 }
 0x203   :  { %9916 = vmatprep.subr.mxu1 %v15508_v21  ;;  %v1272_v35 = vsel %vm1251_vm3, 1.0, %v15508_v21 }
 0x204   :  { %9917 = vmatpush3.msra.mxu1 %v12040_v7 }
 0x205   :  { %7935 = vmatmul.mubr.msk.f32.gmra.mxu1 %vm1249_vm4, %v15520_v4  ;;  %9918 = vmatprep.subr.mxu1 %v15508_v21  ;;  %vm1254_vm4 = vcmp.eq.s32.totalorder %v12098_v37, %v15546_v15 }
 0x206   :  { %7936 = vmatprep.mubr.msk.f32.mxu1 %vm1253_vm7, %v15520_v4  ;;  %9919 = vmatpush3.msra.mxu1 %v12048_v46  ;;  %v1275_v33 = vsel %vm1254_vm4, 1.0, %v15508_v21  ;;  %vm1257_vm7 = vcmp.eq.s32.totalorder %v12098_v37, %v15547_v53 }
 0x207   :  { %9920 = vmatprep.subr.mxu1 %v15508_v21  ;;  %v1278_v18 = vsel %vm1257_vm7, 1.0, %v15508_v21 }
 0x208   :  { %9921 = vmatpush3.msra.mxu1 %v12058_v40 }
 0x209   :  { %7937 = vmatmul.mubr.msk.f32.gmra.mxu1 %vm1252_vm8, %v15520_v4  ;;  %9922 = vmatprep.subr.mxu1 %v15508_v21  ;;  %vm1260_vm8 = vcmp.eq.s32.totalorder %v12098_v37, %v15548_v57 }
 0x20a   :  { %7938 = vmatprep.mubr.msk.f32.mxu1 %vm1256_vm9, %v15520_v4  ;;  %9923 = vmatpush3.msra.mxu1 %v12064_v45  ;;  %v1281_v24 = vsel %vm1260_vm8, 1.0, %v15508_v21  ;;  %vm1263_vm9 = vcmp.eq.s32.totalorder %v12098_v37, %v15549_v59 }
 0x20b   :  { %9924 = vmatprep.subr.mxu1 %v15508_v21  ;;  %v1284_v22 = vsel %vm1263_vm9, 1.0, %v15508_v21 }
 0x20c   :  { %9925 = vmatpush3.msra.mxu1 %v12073_v5 }
 0x20d   :  { %7939 = vmatmul.mubr.msk.f32.gmra.mxu1 %vm1255_vm10, %v15520_v4  ;;  %9926 = vmatprep.subr.mxu1 %v15508_v21 }
 0x20e   :  { %7940 = vmatprep.mubr.msk.f32.mxu1 %vm1259_vm11, %v15520_v4  ;;  %9927 = vmatpush3.msra.mxu1 %v12078_v49 }
 0x20f   :  { %9928 = vmatprep.subr.mxu1 %v15508_v21 }
 0x210   :  { %9929 = vmatpush3.msra.mxu1 %v12087_v11 }
 0x211   :  { %7941 = vmatmul.mubr.msk.f32.gmra.mxu1 %vm1258_vm12, %v15520_v4  ;;  %9930 = vmatprep.subr.mxu1 %v15508_v21 }
 0x212   :  { %7942 = vmatprep.mubr.msk.f32.mxu1 %vm1262_vm13, %v15520_v4  ;;  %9931 = vmatpush3.msra.mxu1 %v12092_v34 }
 0x213   :  { %9953 = vmatprep.subr.mxu1 %v15508_v21 }
 0x215   :  { %7943 = vmatmul.mubr.msk.f32.gmra.mxu1 %vm1261_vm14, %v15520_v4 }
 0x216   :  { %9932 = vmatprep.mubr.msk.f32.mxu1 %vm10970_vm0, %v15508_v21 }
 0x219   :  { %9933 = vmatmul.mubr.msk.f32.vlgmr.msra.gmra.mxu1 %vm987_vm6, %v1266_v29 }
 0x21a   :  { %9954 = vmatpush3.msra.mxu1 %v7953_v1  ;;  %9935 = vmatprep.mubr.msk.f32.mxu1 %vm10970_vm0, %v15508_v21 }
 0x21b   :  { %9955 = vmatprep.subr.mxu1 %v15508_v21 }
 0x21c   :  { %9956 = vmatpush3.msra.mxu1 %v7952_v38 }
 0x21d   :  { %8614 = vmatprep.subr.mxu1 %v11826_v44  ;;  %9936 = vmatmul.mubr.msk.f32.gmra.mxu1 %vm987_vm6, %v1269_v25 }
 0x21e   :  { %9938 = vmatprep.mubr.msk.f32.mxu1 %vm10970_vm0, %v15508_v21 }
 0x221   :  { %9939 = vmatmul.mubr.msk.f32.gmra.mxu1 %vm987_vm6, %v1272_v35 }
 0x222   :  { %9941 = vmatprep.mubr.msk.f32.mxu1 %vm10970_vm0, %v15508_v21 }
 0x225   :  { %9942 = vmatmul.mubr.msk.f32.gmra.mxu1 %vm987_vm6, %v1275_v33 }
 0x226   :  { %9944 = vmatprep.mubr.msk.f32.mxu1 %vm10970_vm0, %v15508_v21 }
 0x229   :  { %9945 = vmatmul.mubr.msk.f32.gmra.mxu1 %vm987_vm6, %v1278_v18 }
 0x22a   :  { %9947 = vmatprep.mubr.msk.f32.mxu1 %vm10970_vm0, %v15508_v21 }
 0x22d   :  { %9948 = vmatmul.mubr.msk.f32.gmra.mxu1 %vm987_vm6, %v1281_v24 }
 0x22e   :  { %9950 = vmatprep.mubr.msk.f32.mxu1 %vm10970_vm0, %v15508_v21 }
 0x231   :  { %9951 = vmatmul.mubr.msk.f32.gmra.mxu1 %vm987_vm6, %v1284_v22 }
 0x232   :  { %9957 = vmatprep.mubr.msk.f32.mxu1 %vm10970_vm0, %v15508_v21 }
 0x281   :  { %v8486_v6 = vpop.f32.mrf.mxu1 }
 0x283   :  { %v8487_v15 = vpop.f32.mrf.mxu1 }
 0x284   :  { %v8488_v19 = vadd.f32 %v8487_v15, %v8486_v6 }
 0x285   :  { %v8489_v53 = vpop.f32.mrf.mxu1 }
 0x287   :  { %v8490_v57 = vpop.f32.mrf.mxu1 }
 0x288   :  { %v8491_v41 = vadd.f32 %v8490_v57, %v8489_v53 }
 0x289   :  { %v8492_v36 = vpop.f32.mrf.mxu1 }
 0x28b   :  { %v8493_v1 = vpop.f32.mrf.mxu1 }
 0x28c   :  { %v8494_v6 = vadd.f32 %v8493_v1, %v8492_v36 }
 0x28d   :  { %v8495_v29 = vpop.f32.mrf.mxu1 }
 0x28f   :  { %v8496_v38 = vpop.f32.mrf.mxu1 }
 0x291   :  { %v8498_v25 = vpop.f32.mrf.mxu1 }
 0x293   :  { %v8499_v59 = vpop.f32.mrf.mxu1 }
 0x294   :  { %v8500_v15 = vadd.f32 %v8499_v59, %v8498_v25 }
 0x295   :  { %v8501_v35 = vpop.f32.mrf.mxu1 }
 0x297   :  { %v8502_v33 = vpop.f32.mrf.mxu1 }
 0x298   :  { %v8503_v1 = vadd.f32 %v8502_v33, %v8501_v35 }
 0x299   :  { %v8504_v18 = vpop.f32.mrf.mxu1 }
 0x29b   :  { %v8505_v24 = vpop.f32.mrf.mxu1 }
 0x29c   :  { %v8506_v59 = vadd.f32 %v8505_v24, %v8504_v18  ;;  %v12354_v24 = vpop.permute.xlu1 %1762 }
 0x29d   :  { %v1179_v60 = vpop.f32.mrf.mxu1  ;;  %vm1784_vm11 = vcmp.eq.s32.totalorder %v12098_v37, %v12354_v24 }
 0x29e   :  { %v1180_v22 = vadd.f32 %v8488_v19, %v1179_v60 }
 0x29f   :  { %v9891_v54 = vpop.f32.mrf.mxu1 }
 0x2a0   :  { %9983 = vmatmul.mubr.msk.f32.vlgmr.msra.gmra.mxu0 %vm82_vm1, %v1180_v22  ;;  %v12346_v22 = vpop.permute.xlu0 %1759 }
 0x2a1   :  { %10004 = vmatpush3.msk.msra.mxu0 %vm1009_vm5, %v12004_v14  ;;  %v1184_v47 = vpop.f32.mrf.mxu1  ;;  %9985 = vmatprep.mubr.msk.f32.mxu0 %vm10970_vm0, %v15508_v21  ;;  %vm1781_vm10 = vcmp.eq.s32.totalorder %v12098_v37, %v12346_v22 }
 0x2a2   :  { %v1185_v8 = vadd.f32 %v8491_v41, %v1184_v47  ;;  %10005 = vmatprep.subr.mxu0 %v15508_v21  ;;  %v8497_v41 = vadd.f32 %v8496_v38, %v8495_v29  ;;  %v1802_v18 = vsel %vm1781_vm10, 1.0, %v15508_v21 }
 0x2a3   :  { %10006 = vmatpush3.msra.mxu0 %v12017_v30  ;;  %v9894_v43 = vpop.f32.mrf.mxu1 }
 0x2a4   :  { %10007 = vmatprep.subr.mxu0 %v15508_v21  ;;  %9986 = vmatmul.mubr.msk.f32.gmra.mxu0 %vm82_vm1, %v1185_v8 }
 0x2a5   :  { %10008 = vmatpush3.msra.mxu0 %v12030_v16  ;;  %v1189_v54 = vpop.f32.mrf.mxu1  ;;  %9988 = vmatprep.mubr.msk.f32.mxu0 %vm10970_vm0, %v15508_v21  ;;  %v15555_v16 = vld [vmem:[#allocation35_spill] sm:$0xff] }
 0x2a6   :  { %v1190_v19 = vadd.f32 %v8494_v6, %v1189_v54  ;;  %10009 = vmatprep.subr.mxu0 %v15508_v21 }
 0x2a7   :  { %10010 = vmatpush3.msra.mxu0 %v12040_v7  ;;  %v9897_v47 = vpop.f32.mrf.mxu1 }
 0x2a8   :  { %10011 = vmatprep.subr.mxu0 %v15508_v21  ;;  %9989 = vmatmul.mubr.msk.f32.gmra.mxu0 %vm82_vm1, %v1190_v19  ;;  %v12365_v19 = vpop.permute.xlu0 %1765 }
 0x2a9   :  { %10012 = vmatpush3.msra.mxu0 %v12048_v46  ;;  %v1194_v43 = vpop.f32.mrf.mxu1  ;;  %9991 = vmatprep.mubr.msk.f32.mxu0 %vm10970_vm0, %v15508_v21  ;;  %vm1787_vm12 = vcmp.eq.s32.totalorder %v12098_v37, %v12365_v19  ;;  %v15554_v46 = vld [vmem:[#allocation20_spill] sm:$0xff] }
 0x2aa   :  { %v1195_v8 = vadd.f32 %v8497_v41, %v1194_v43  ;;  %10013 = vmatprep.subr.mxu0 %v15508_v21  ;;  %v1805_v41 = vsel %vm1784_vm11, 1.0, %v15508_v21 }
 0x2ab   :  { %10014 = vmatpush3.msra.mxu0 %v12058_v40  ;;  %v9900_v60 = vpop.f32.mrf.mxu1 }
 0x2ac   :  { %10015 = vmatprep.subr.mxu0 %v15508_v21  ;;  %9992 = vmatmul.mubr.msk.f32.gmra.mxu0 %vm82_vm1, %v1195_v8  ;;  %v12381_v8 = vpop.permute.xlu1 %1768 }
 0x2ad   :  { %10016 = vmatpush3.msra.mxu0 %v12064_v45  ;;  %v1199_v53 = vpop.f32.mrf.mxu1  ;;  %9994 = vmatprep.mubr.msk.f32.mxu0 %vm10970_vm0, %v15508_v21  ;;  %vm1790_vm13 = vcmp.eq.s32.totalorder %v12098_v37, %v12381_v8  ;;  %v15553_v45 = vld [vmem:[#allocation34_spill] sm:$0xff] }
 0x2ae   :  { %v1200_v57 = vadd.f32 %v8500_v15, %v1199_v53  ;;  %10017 = vmatprep.subr.mxu0 %v15508_v21  ;;  %v1808_v15 = vsel %vm1787_vm12, 1.0, %v15508_v21 }
 0x2af   :  { %10018 = vmatpush3.msra.mxu0 %v12073_v5  ;;  %v9903_v36 = vpop.f32.mrf.mxu1 }
 0x2b0   :  { %10019 = vmatprep.subr.mxu0 %v15508_v21  ;;  %9995 = vmatmul.mubr.msk.f32.gmra.mxu0 %vm82_vm1, %v1200_v57  ;;  %v12397_v57 = vpop.permute.xlu0 %1771 }
 0x2b1   :  { %10020 = vmatpush3.msra.mxu0 %v12078_v49  ;;  %v1204_v29 = vpop.f32.mrf.mxu1  ;;  %9997 = vmatprep.mubr.msk.f32.mxu0 %vm10970_vm0, %v15508_v21  ;;  %vm1793_vm14 = vcmp.eq.s32.totalorder %v12098_v37, %v12397_v57  ;;  %v15552_v49 = vld [vmem:[#allocation33_spill] sm:$0xff] }
 0x2b2   :  { %v1205_v38 = vadd.f32 %v8503_v1, %v1204_v29  ;;  %10021 = vmatprep.subr.mxu0 %v15508_v21  ;;  %v1811_v1 = vsel %vm1790_vm13, 1.0, %v15508_v21 }
 0x2b3   :  { %10022 = vmatpush3.msra.mxu0 %v12087_v11  ;;  %v9906_v25 = vpop.f32.mrf.mxu1  ;;  %v15551_v11 = vld [vmem:[#allocation32_spill] sm:$0xff] }
 0x2b4   :  { %10023 = vmatprep.subr.mxu0 %v15508_v21  ;;  %9998 = vmatmul.mubr.msk.f32.gmra.mxu0 %vm82_vm1, %v1205_v38  ;;  %v12413_v38 = vpop.permute.xlu1 %1774 }
 0x2b5   :  { %10024 = vmatpush3.msra.mxu0 %v12092_v34  ;;  %v1209_v35 = vpop.f32.mrf.mxu1  ;;  %10000 = vmatprep.mubr.msk.f32.mxu0 %vm10970_vm0, %v15508_v21  ;;  %vm1796_vm15 = vcmp.eq.s32.totalorder %v12098_v37, %v12413_v38 }
 0x2b6   :  { %v1210_v33 = vadd.f32 %v8506_v59, %v1209_v35  ;;  %8694 = vmatprep.subr.mxu0 %v11826_v44  ;;  %v1814_v59 = vsel %vm1793_vm14, 1.0, %v15508_v21  ;;  %v15550_v44 = vld [vmem:[#allocation31_spill] sm:$0xff] }
 0x2b7   :  { %v9909_v6 = vpop.f32.mrf.mxu1 }
 0x2b8   :  { %10001 = vmatmul.mubr.msk.f32.gmra.mxu0 %vm82_vm1, %v1210_v33  ;;  %v12429_v33 = vpop.permute.xlu0 %1777 }
 0x2b9   :  { %10025 = vmatprep.mubr.msk.f32.mxu0 %vm10970_vm0, %v15508_v21  ;;  %vm1799_vm2 = vcmp.eq.s32.totalorder %v12098_v37, %v12429_v33 }
 0x2bc   :  { %10026 = vmatmul.mubr.msk.f32.vlgmr.msra.gmra.mxu0 %vm987_vm6, %v1802_v18  ;;  %v1817_v18 = vsel %vm1796_vm15, 1.0, %v15508_v21  ;;  %v12468_v40 = vpop.permute.xlu0 %2184 }
 0x2bd   :  { %v12359_v54 = vpop.f32.mrf.mxu1  ;;  %8695 = vmatpush3.msra.mxu0 %v11821_v12  ;;  %10028 = vmatprep.mubr.msk.f32.mxu0 %vm10970_vm0, %v15508_v21  ;;  %vm2205_vm7 = vcmp.eq.s32.totalorder %v15521_v32, %v12468_v40  ;;  %vm2204_vm8 = vcmp.eq.s32.totalorder %v15554_v46, %v12468_v40 }
 0x2be   :  { %8696 = vmatprep.subr.mxu0 %v11834_v63 }
 0x2bf   :  { %v12367_v47 = vpop.f32.mrf.mxu1  ;;  %8697 = vmatpush3.msra.mxu0 %v11840_v20 }
 0x2c0   :  { %8698 = vmatprep.subr.mxu0 %v11846_v55  ;;  %10029 = vmatmul.mubr.msk.f32.gmra.mxu0 %vm987_vm6, %v1805_v41  ;;  %v8559_v34 = vadd.f32 %v12367_v47, %v12359_v54 }
 0x2c1   :  { %v12375_v43 = vpop.f32.mrf.mxu1  ;;  %8699 = vmatpush3.msra.mxu0 %v11852_v56  ;;  %10031 = vmatprep.mubr.msk.f32.mxu0 %vm10970_vm0, %v15508_v21 }
 0x2c2   :  { %8700 = vmatprep.subr.mxu0 %v11858_v17 }
 0x2c3   :  { %v12383_v60 = vpop.f32.mrf.mxu1  ;;  %8701 = vmatpush3.msra.mxu0 %v11864_v52 }
 0x2c4   :  { %8702 = vmatprep.subr.mxu0 %v11870_v0  ;;  %10032 = vmatmul.mubr.msk.f32.gmra.mxu0 %vm987_vm6, %v1808_v15  ;;  %v12445_v15 = vpop.permute.xlu1 %2181  ;;  %v8562_v30 = vadd.f32 %v12383_v60, %v12375_v43 }
 0x2c5   :  { %v12391_v53 = vpop.f32.mrf.mxu1  ;;  %8703 = vmatpush3.msra.mxu0 %v11876_v62  ;;  %10034 = vmatprep.mubr.msk.f32.mxu0 %vm10970_vm0, %v15508_v21  ;;  %vm2202_vm3 = vcmp.eq.s32.totalorder %v15521_v32, %v12445_v15  ;;  %vm2201_vm4 = vcmp.eq.s32.totalorder %v15554_v46, %v12445_v15 }
 0x2c6   :  { %8704 = vmatprep.subr.mxu0 %v11882_v23 }
 0x2c7   :  { %v12399_v36 = vpop.f32.mrf.mxu1  ;;  %8705 = vmatpush3.msra.mxu0 %v11888_v31 }
 0x2c8   :  { %8706 = vmatprep.subr.mxu0 %v11894_v50  ;;  %10035 = vmatmul.mubr.msk.f32.gmra.mxu0 %vm987_vm6, %v1811_v1  ;;  %v8565_v47 = vadd.f32 %v12399_v36, %v12391_v53  ;;  %v12503_v53 = vpop.permute.xlu0 %2190 }
 0x2c9   :  { %v12407_v29 = vpop.f32.mrf.mxu1  ;;  %8707 = vmatpush3.msra.mxu0 %v11900_v13  ;;  %10037 = vmatprep.mubr.msk.f32.mxu0 %vm10970_vm0, %v15508_v21  ;;  %vm2211_vm11 = vcmp.eq.s32.totalorder %v15521_v32, %v12503_v53  ;;  %vm2210_vm12 = vcmp.eq.s32.totalorder %v15554_v46, %v12503_v53 }
 0x2ca   :  { %8708 = vmatprep.subr.mxu0 %v11906_v10 }
 0x2cb   :  { %v12415_v25 = vpop.f32.mrf.mxu1  ;;  %8709 = vmatpush3.msra.mxu0 %v11912_v27 }
 0x2cc   :  { %8710 = vmatprep.subr.mxu0 %v11918_v58  ;;  %10038 = vmatmul.mubr.msk.f32.gmra.mxu0 %vm987_vm6, %v1814_v59  ;;  %v1820_v59 = vsel %vm1799_vm2, 1.0, %v15508_v21  ;;  %v8568_v36 = vadd.f32 %v12415_v25, %v12407_v29 }
 0x2cd   :  { %v12423_v35 = vpop.f32.mrf.mxu1  ;;  %8711 = vmatpush3.msra.mxu0 %v11924_v48  ;;  %10040 = vmatprep.mubr.msk.f32.mxu0 %vm10970_vm0, %v15508_v21 }
 0x2ce   :  { %8712 = vmatprep.subr.mxu0 %v11930_v61 }
 0x2cf   :  { %v12431_v6 = vpop.f32.mrf.mxu1  ;;  %8713 = vmatpush3.msra.mxu0 %v11939_v2 }
 0x2d0   :  { %8714 = vmatprep.subr.mxu0 %v11945_v51  ;;  %10041 = vmatmul.mubr.msk.f32.gmra.mxu0 %vm987_vm6, %v1817_v18 }
 0x2d1   :  { %v12439_v41 = vpop.f32.mrf.mxu1  ;;  %8715 = vmatpush3.msra.mxu0 %v11952_v28  ;;  %10043 = vmatprep.mubr.msk.f32.mxu0 %vm10970_vm0, %v15508_v21 }
 0x2d2   :  { %8716 = vmatprep.subr.mxu0 %v11956_v39 }
 0x2d3   :  { %v12447_v1 = vpop.f32.mrf.mxu1  ;;  %8717 = vmatpush3.msra.mxu0 %v11962_v26 }
 0x2d4   :  { %8718 = vmatprep.subr.mxu0 %v11965_v42  ;;  %10044 = vmatmul.mubr.msk.f32.gmra.mxu0 %vm987_vm6, %v1820_v59 }
 0x2d5   :  { %v12455_v18 = vpop.f32.mrf.mxu1  ;;  %8719 = vmatpush3.msra.mxu0 %v11971_v9  ;;  %7999 = vmatprep.mubr.msk.f32.mxu0 %vm2202_vm3, %v15520_v4 }
 0x2d6   :  { %8720 = vmatprep.subr.mxu0 %v11974_v3 }
 0x2d7   :  { %v12460_v37 = vpop.f32.mrf.mxu1  ;;  %8721 = vmatpush3.msra.mxu0 %v15550_v44 }
 0x2d8   :  { %8722 = vmatprep.subr.mxu0 %v15551_v11 }
 0x2d9   :  { %v1472_v59 = vpop.f32.mrf.mxu1  ;;  %8723 = vmatpush3.msra.mxu0 %v15552_v49 }
 0x2da   :  { %v1473_v5 = vadd.f32 %v8559_v34, %v1472_v59  ;;  %8724 = vmatprep.subr.mxu0 %v15553_v45 }
 0x2db   :  { %v9934_v7 = vpop.f32.mrf.mxu1  ;;  %8725 = vmatpush3.msra.mxu0 %v15555_v16 }
 0x2dc   :  { %9958 = vmatmul.mubr.msk.f32.vlgmr.msra.gmra.mxu1 %vm82_vm1, %v1473_v5  ;;  %8000 = vmatmul.mubr.msk.f32.vlgmr.msra.gmra.mxu0 %vm2201_vm4, %v15520_v4  ;;  %v12486_v5 = vpop.permute.xlu1 %2187 }
 0x2dd   :  { %8615 = vmatpush3.msra.mxu1 %v11821_v12  ;;  %v1477_v34 = vpop.f32.mrf.mxu1  ;;  %8001 = vmatprep.mubr.msk.f32.mxu0 %vm2205_vm7, %v15520_v4  ;;  %vm2208_vm9 = vcmp.eq.s32.totalorder %v15521_v32, %v12486_v5  ;;  %vm2207_vm10 = vcmp.eq.s32.totalorder %v15554_v46, %v12486_v5  ;;  %vm1780_vm7 = vcmp.eq.s32.totalorder %v15521_v32, %v12346_v22 }
 0x2de   :  { %v1478_v54 = vadd.f32 %v8562_v30, %v1477_v34  ;;  %8616 = vmatprep.subr.mxu1 %v11834_v63  ;;  %9960 = vmatprep.mubr.msk.f32.mxu1 %vm10970_vm0, %v15508_v21 }
 0x2df   :  { %8617 = vmatpush3.msra.mxu1 %v11840_v20  ;;  %v9937_v7 = vpop.f32.mrf.mxu1  ;;  %10114 = vmatprep.subr.mxu0 %v15508_v21 }
 0x2e0   :  { %8618 = vmatprep.subr.mxu1 %v11846_v55  ;;  %9961 = vmatmul.mubr.msk.f32.gmra.mxu1 %vm82_vm1, %v1478_v54  ;;  %v12520_v25 = vpop.permute.xlu1 %2193  ;;  %v8571_v54 = vadd.f32 %v12431_v6, %v12423_v35  ;;  %v12537_v6 = vpop.permute.xlu0 %2196 }
 0x2e1   :  { %8619 = vmatpush3.msra.mxu1 %v11852_v56  ;;  %8002 = vmatmul.mubr.msk.f32.gmra.mxu0 %vm2204_vm8, %v15520_v4  ;;  %v1482_v30 = vpop.f32.mrf.mxu1  ;;  %vm2214_vm13 = vcmp.eq.s32.totalorder %v15521_v32, %v12520_v25  ;;  %vm2213_vm14 = vcmp.eq.s32.totalorder %v15554_v46, %v12520_v25  ;;  %vm2217_vm15 = vcmp.eq.s32.totalorder %v15521_v32, %v12537_v6 }
 0x2e2   :  { %v1483_v43 = vadd.f32 %v8565_v47, %v1482_v30  ;;  %8620 = vmatprep.subr.mxu1 %v11858_v17  ;;  %8003 = vmatprep.mubr.msk.f32.mxu0 %vm2208_vm9, %v15520_v4  ;;  %v8574_v30 = vadd.f32 %v12447_v1, %v12439_v41  ;;  %vm2216_vm2 = vcmp.eq.s32.totalorder %v15554_v46, %v12537_v6 }
 0x2e3   :  { %8621 = vmatpush3.msra.mxu1 %v11864_v52  ;;  %v9940_v60 = vpop.f32.mrf.mxu1  ;;  %9963 = vmatprep.mubr.msk.f32.mxu1 %vm10970_vm0, %v15508_v21  ;;  %vm1779_vm8 = vcmp.eq.s32.totalorder %v15554_v46, %v12346_v22  ;;  %vm1783_vm9 = vcmp.eq.s32.totalorder %v15521_v32, %v12354_v24  ;;  %v7991_v22 = vld [vmem:[%s15354_s5 + $0x28] sm:$0xff] }
 0x2e4   :  { %8622 = vmatprep.subr.mxu1 %v11870_v0  ;;  %9964 = vmatmul.mubr.msk.f32.gmra.mxu1 %vm82_vm1, %v1483_v43  ;;  %v12554_v1 = vpop.permute.xlu1 %2199 }
 0x2e5   :  { %8623 = vmatpush3.msra.mxu1 %v11876_v62  ;;  %8004 = vmatmul.mubr.msk.f32.gmra.mxu0 %vm2207_vm10, %v15520_v4  ;;  %v1487_v59 = vpop.f32.mrf.mxu1  ;;  %vm2220_vm3 = vcmp.eq.s32.totalorder %v15521_v32, %v12554_v1  ;;  %vm2219_vm4 = vcmp.eq.s32.totalorder %v15554_v46, %v12554_v1  ;;  %vm1782_vm10 = vcmp.eq.s32.totalorder %v15554_v46, %v12354_v24  ;;  %v7990_v24 = vld [vmem:[%s15354_s5 + $0x20] sm:$0xff] }
 0x2e6   :  { %v1488_v34 = vadd.f32 %v8568_v36, %v1487_v59  ;;  %8624 = vmatprep.subr.mxu1 %v11882_v23  ;;  %8005 = vmatprep.mubr.msk.f32.mxu0 %vm2211_vm11, %v15520_v4  ;;  %v8577_v36 = vadd.f32 %v12460_v37, %v12455_v18  ;;  %vm1786_vm11 = vcmp.eq.s32.totalorder %v15521_v32, %v12365_v19 }
 0x2e7   :  { %8625 = vmatpush3.msra.mxu1 %v11888_v31  ;;  %v9943_v29 = vpop.f32.mrf.mxu1  ;;  %9966 = vmatprep.mubr.msk.f32.mxu1 %vm10970_vm0, %v15508_v21 }
 0x2e8   :  { %8626 = vmatprep.subr.mxu1 %v11894_v50  ;;  %9967 = vmatmul.mubr.msk.f32.gmra.mxu1 %vm82_vm1, %v1488_v34 }
 0x2e9   :  { %8627 = vmatpush3.msra.mxu1 %v11900_v13  ;;  %8006 = vmatmul.mubr.msk.f32.gmra.mxu0 %vm2210_vm12, %v15520_v4  ;;  %v1492_v7 = vpop.f32.mrf.mxu1  ;;  %vm1785_vm12 = vcmp.eq.s32.totalorder %v15554_v46, %v12365_v19 }
 0x2ea   :  { %v1493_v47 = vadd.f32 %v8571_v54, %v1492_v7  ;;  %8628 = vmatprep.subr.mxu1 %v11906_v10  ;;  %8007 = vmatprep.mubr.msk.f32.mxu0 %vm2214_vm13, %v15520_v4  ;;  %vm1789_vm13 = vcmp.eq.s32.totalorder %v15521_v32, %v12381_v8 }
 0x2eb   :  { %8629 = vmatpush3.msra.mxu1 %v11912_v27  ;;  %v9946_v35 = vpop.f32.mrf.mxu1  ;;  %9969 = vmatprep.mubr.msk.f32.mxu1 %vm10970_vm0, %v15508_v21 }
 0x2ec   :  { %8630 = vmatprep.subr.mxu1 %v11918_v58  ;;  %9970 = vmatmul.mubr.msk.f32.gmra.mxu1 %vm82_vm1, %v1493_v47 }
 0x2ed   :  { %8631 = vmatpush3.msra.mxu1 %v11924_v48  ;;  %8008 = vmatmul.mubr.msk.f32.gmra.mxu0 %vm2213_vm14, %v15520_v4  ;;  %v1497_v43 = vpop.f32.mrf.mxu1  ;;  %vm1788_vm14 = vcmp.eq.s32.totalorder %v15554_v46, %v12381_v8 }
 0x2ee   :  { %v1498_v60 = vadd.f32 %v8574_v30, %v1497_v43  ;;  %8632 = vmatprep.subr.mxu1 %v11930_v61  ;;  %8009 = vmatprep.mubr.msk.f32.mxu0 %vm2217_vm15, %v15520_v4  ;;  %vm1792_vm15 = vcmp.eq.s32.totalorder %v15521_v32, %v12397_v57 }
 0x2ef   :  { %8633 = vmatpush3.msra.mxu1 %v11939_v2  ;;  %v9949_v41 = vpop.f32.mrf.mxu1  ;;  %9972 = vmatprep.mubr.msk.f32.mxu1 %vm10970_vm0, %v15508_v21 }
 0x2f0   :  { %8634 = vmatprep.subr.mxu1 %v11945_v51  ;;  %9973 = vmatmul.mubr.msk.f32.gmra.mxu1 %vm82_vm1, %v1498_v60 }
 0x2f1   :  { %8635 = vmatpush3.msra.mxu1 %v11952_v28  ;;  %8010 = vmatmul.mubr.msk.f32.gmra.mxu0 %vm2216_vm2, %v15520_v4  ;;  %v1502_v59 = vpop.f32.mrf.mxu1  ;;  %vm1791_vm2 = vcmp.eq.s32.totalorder %v15554_v46, %v12397_v57 }
 0x2f2   :  { %v1503_v34 = vadd.f32 %v8577_v36, %v1502_v59  ;;  %8636 = vmatprep.subr.mxu1 %v11956_v39  ;;  %8011 = vmatprep.mubr.msk.f32.mxu0 %vm2220_vm3, %v15520_v4  ;;  %vm1795_vm3 = vcmp.eq.s32.totalorder %v15521_v32, %v12413_v38 }
 0x2f3   :  { %8637 = vmatpush3.msra.mxu1 %v11962_v26  ;;  %v9952_v37 = vpop.f32.mrf.mxu1  ;;  %9975 = vmatprep.mubr.msk.f32.mxu1 %vm10970_vm0, %v15508_v21 }
 0x2f4   :  { %8638 = vmatprep.subr.mxu1 %v11965_v42  ;;  %9976 = vmatmul.mubr.msk.f32.gmra.mxu1 %vm82_vm1, %v1503_v34 }
 0x2f5   :  { %8639 = vmatpush3.msra.mxu1 %v11971_v9  ;;  %8012 = vmatmul.mubr.msk.f32.gmra.mxu0 %vm2219_vm4, %v15520_v4  ;;  %vm1794_vm4 = vcmp.eq.s32.totalorder %v15554_v46, %v12413_v38 }
 0x2f6   :  { %8640 = vmatprep.subr.mxu1 %v11974_v3  ;;  %7968 = vmatprep.mubr.msk.f32.mxu1 %vm1780_vm7, %v15520_v4  ;;  %vm1798_vm7 = vcmp.eq.s32.totalorder %v15521_v32, %v12429_v33 }
 0x2f7   :  { %8641 = vmatpush3.msra.mxu1 %v15550_v44  ;;  %10118 = vmatprep.mubr.msk.f32.mxu0 %vm10970_vm0, %v15508_v21 }
 0x2f8   :  { %8642 = vmatprep.subr.mxu1 %v15551_v11 }
 0x2f9   :  { %8643 = vmatpush3.msra.mxu1 %v15552_v49 }
 0x2fa   :  { %8644 = vmatprep.subr.mxu1 %v15553_v45 }
 0x2fb   :  { %8645 = vmatpush3.msra.mxu1 %v15555_v16 }
 0x2fc   :  { %7969 = vmatmul.mubr.msk.f32.vlgmr.msra.gmra.mxu1 %vm1779_vm8, %v15520_v4  ;;  %10046 = vmatprep.subr.mxu1 %v15508_v21  ;;  %vm1797_vm8 = vcmp.eq.s32.totalorder %v15554_v46, %v12429_v33 }
 0x2fd   :  { %7970 = vmatprep.mubr.msk.f32.mxu1 %vm1783_vm9, %v15520_v4  ;;  %10047 = vmatpush3.msra.mxu1 %v7991_v22 }
 0x2fe   :  { %10048 = vmatprep.subr.mxu1 %v15508_v21 }
 0x2ff   :  { %10049 = vmatpush3.msra.mxu1 %v7990_v24 }
 0x300   :  { %7971 = vmatmul.mubr.msk.f32.gmra.mxu1 %vm1782_vm10, %v15520_v4  ;;  %10071 = vmatprep.subr.mxu1 %v15508_v21 }
 0x301   :  { %7972 = vmatprep.mubr.msk.f32.mxu1 %vm1786_vm11, %v15520_v4 }
 0x304   :  { %7973 = vmatmul.mubr.msk.f32.gmra.mxu1 %vm1785_vm12, %v15520_v4 }
 0x305   :  { %7974 = vmatprep.mubr.msk.f32.mxu1 %vm1789_vm13, %v15520_v4 }
 0x308   :  { %7975 = vmatmul.mubr.msk.f32.gmra.mxu1 %vm1788_vm14, %v15520_v4 }
 0x309   :  { %7976 = vmatprep.mubr.msk.f32.mxu1 %vm1792_vm15, %v15520_v4 }
 0x30c   :  { %7977 = vmatmul.mubr.msk.f32.gmra.mxu1 %vm1791_vm2, %v15520_v4 }
 0x30d   :  { %7978 = vmatprep.mubr.msk.f32.mxu1 %vm1795_vm3, %v15520_v4 }
 0x310   :  { %7979 = vmatmul.mubr.msk.f32.gmra.mxu1 %vm1794_vm4, %v15520_v4 }
 0x311   :  { %7980 = vmatprep.mubr.msk.f32.mxu1 %vm1798_vm7, %v15520_v4 }
 0x314   :  { %7981 = vmatmul.mubr.msk.f32.gmra.mxu1 %vm1797_vm8, %v15520_v4 }
 0x315   :  { %10050 = vmatprep.mubr.msk.f32.mxu1 %vm10970_vm0, %v15508_v21 }
 0x360   :  { %v1717_v19 = vpop.f32.mrf.mxu0 }
 0x362   :  { %v9984_v8 = vpop.f32.mrf.mxu0 }
 0x364   :  { %v1722_v57 = vpop.f32.mrf.mxu0 }
 0x366   :  { %v9987_v38 = vpop.f32.mrf.mxu0 }
 0x368   :  { %v1727_v33 = vpop.f32.mrf.mxu0 }
 0x36a   :  { %v9990_v18 = vpop.f32.mrf.mxu0 }
 0x36c   :  { %v1732_v29 = vpop.f32.mrf.mxu0 }
 0x36e   :  { %v9993_v54 = vpop.f32.mrf.mxu0 }
 0x370   :  { %v1737_v7 = vpop.f32.mrf.mxu0 }
 0x372   :  { %v9996_v47 = vpop.f32.mrf.mxu0 }
 0x374   :  { %v1742_v35 = vpop.f32.mrf.mxu0 }
 0x376   :  { %v9999_v30 = vpop.f32.mrf.mxu0 }
 0x378   :  { %v1747_v43 = vpop.f32.mrf.mxu0 }
 0x37a   :  { %v10002_v60 = vpop.f32.mrf.mxu0 }
 0x37c   :  { %v2008_v41 = vpop.f32.mrf.mxu0 }
 0x37e   :  { %v10027_v36 = vpop.f32.mrf.mxu0 }
 0x380   :  { %v2013_v59 = vpop.f32.mrf.mxu0 }
 0x382   :  { %v10030_v34 = vpop.f32.mrf.mxu0 }
 0x384   :  { %v2018_v37 = vpop.f32.mrf.mxu0 }
 0x386   :  { %v10033_v22 = vpop.f32.mrf.mxu0 }
 0x388   :  { %v2023_v24 = vpop.f32.mrf.mxu0 }
 0x38a   :  { %v10036_v8 = vpop.f32.mrf.mxu0 }
 0x38c   :  { %v12638_v16 = vpop.f32.mrf.mxu0 }
 0x38e   :  { %v10039_v38 = vpop.f32.mrf.mxu0 }
 0x390   :  { %v12640_v18 = vpop.f32.mrf.mxu0 }
 0x392   :  { %v10042_v54 = vpop.f32.mrf.mxu0 }
 0x394   :  { %v12642_v46 = vpop.f32.mrf.mxu0 }
 0x396   :  { %v10045_v47 = vpop.f32.mrf.mxu0 }
 0x39c   :  { %v1596_v30 = vpop.f32.mrf.mxu1 }
 0x39d   :  { %v12644_v45 = vadd.f32 %v1717_v19, %v1596_v30 }
 0x39e   :  { %v9959_v60 = vpop.f32.mrf.mxu1 }
 0x3a0   :  { %v1601_v36 = vpop.f32.mrf.mxu1 }
 0x3a1   :  { %v12646_v49 = vadd.f32 %v1722_v57, %v1601_v36 }
 0x3a2   :  { %v9962_v34 = vpop.f32.mrf.mxu1 }
 0x3a4   :  { %v1606_v22 = vpop.f32.mrf.mxu1 }
 0x3a5   :  { %v12648_v11 = vadd.f32 %v1727_v33, %v1606_v22 }
 0x3a6   :  { %v9965_v8 = vpop.f32.mrf.mxu1 }
 0x3a7   :  { %15556 = vst [vmem:[#allocation7_spill] sm:$0xff] %v12648_v11 }
 0x3a8   :  { %v1611_v44 = vpop.f32.mrf.mxu1 }
 0x3a9   :  { %v12650_v38 = vadd.f32 %v1732_v29, %v1611_v44 }
 0x3aa   :  { %v9968_v3 = vpop.f32.mrf.mxu1 }
 0x3ac   :  { %v1616_v54 = vpop.f32.mrf.mxu1 }
 0x3ad   :  { %v12652_v4 = vadd.f32 %v1737_v7, %v1616_v54  ;;  %v15557_v7 = vld [vmem:[#allocation19_spill] sm:$0xff] }
 0x3ae   :  { %v9971_v47 = vpop.f32.mrf.mxu1 }
 0x3b0   :  { %v1621_v9 = vpop.f32.mrf.mxu1 }
 0x3b1   :  { %v12654_v19 = vadd.f32 %v1742_v35, %v1621_v9 }
 0x3b2   :  { %v9974_v30 = vpop.f32.mrf.mxu1 }
 0x3b4   :  { %v1626_v60 = vpop.f32.mrf.mxu1 }
 0x3b5   :  { %v12656_v57 = vadd.f32 %v1747_v43, %v1626_v60  ;;  %v15560_v60 = vld [vmem:[#allocation17_spill] sm:$0xff] }
 0x3b6   :  { %v9977_v36 = vpop.f32.mrf.mxu1 }
 0x3bc   :  { %v8646_v34 = vpop.f32.mrf.mxu1 }
 0x3be   :  { %v8647_v33 = vpop.f32.mrf.mxu1 }
 0x3bf   :  { %v8648_v22 = vadd.f32 %v8647_v33, %v8646_v34 }
 0x3c0   :  { %v8649_v8 = vpop.f32.mrf.mxu1 }
 0x3c1   :  { %v2009_v11 = vadd.f32 %v8648_v22, %v2008_v41  ;;  %v15558_v41 = vld [vmem:[#allocation3_spill] sm:$0xff] }
 0x3c2   :  { %v8650_v44 = vpop.f32.mrf.mxu1 }
 0x3c3   :  { %v8651_v29 = vadd.f32 %v8650_v44, %v8649_v8  ;;  %10051 = vmatmul.mubr.msk.f32.vlgmr.msra.gmra.mxu1 %vm82_vm1, %v2009_v11  ;;  %v15562_v8 = vld [vmem:[#allocation4_spill] sm:$0xff] }
 0x3c4   :  { %10072 = vmatpush3.msk.msra.mxu1 %vm1009_vm5, %v12004_v14  ;;  %v8652_v3 = vpop.f32.mrf.mxu1  ;;  %10053 = vmatprep.mubr.msk.f32.mxu1 %vm10970_vm0, %v15508_v21 }
 0x3c5   :  { %v2014_v9 = vadd.f32 %v8651_v29, %v2013_v59  ;;  %10073 = vmatprep.subr.mxu1 %v15508_v21  ;;  %v15559_v59 = vld [vmem:[#allocation18_spill] sm:$0xff] }
 0x3c6   :  { %10074 = vmatpush3.msra.mxu1 %v15557_v7  ;;  %v8653_v35 = vpop.f32.mrf.mxu1 }
 0x3c7   :  { %v8654_v43 = vadd.f32 %v8653_v35, %v8652_v3  ;;  %10075 = vmatprep.subr.mxu1 %v15508_v21  ;;  %10054 = vmatmul.mubr.msk.f32.gmra.mxu1 %vm82_vm1, %v2014_v9  ;;  %v15564_v35 = vld [vmem:[#allocation5_spill] sm:$0xff] }
 0x3c8   :  { %10076 = vmatpush3.msra.mxu1 %v15558_v41  ;;  %v8655_v11 = vpop.f32.mrf.mxu1  ;;  %10056 = vmatprep.mubr.msk.f32.mxu1 %vm10970_vm0, %v15508_v21 }
 0x3c9   :  { %v2019_v54 = vadd.f32 %v8654_v43, %v2018_v37  ;;  %10077 = vmatprep.subr.mxu1 %v15508_v21  ;;  %v15561_v37 = vld [vmem:[#allocation16_spill] sm:$0xff] }
 0x3ca   :  { %10078 = vmatpush3.msra.mxu1 %v15559_v59  ;;  %v8656_v47 = vpop.f32.mrf.mxu1 }
 0x3cb   :  { %v8657_v30 = vadd.f32 %v8656_v47, %v8655_v11  ;;  %10079 = vmatprep.subr.mxu1 %v15508_v21  ;;  %10057 = vmatmul.mubr.msk.f32.gmra.mxu1 %vm82_vm1, %v2019_v54 }
 0x3cc   :  { %10080 = vmatpush3.msra.mxu1 %v15560_v60  ;;  %v8658_v36 = vpop.f32.mrf.mxu1  ;;  %10059 = vmatprep.mubr.msk.f32.mxu1 %vm10970_vm0, %v15508_v21 }
 0x3cd   :  { %v2024_v34 = vadd.f32 %v8657_v30, %v2023_v24  ;;  %10081 = vmatprep.subr.mxu1 %v15508_v21  ;;  %v15563_v24 = vld [vmem:[#allocation15_spill] sm:$0xff]  ;;  %v15566_v30 = vld [vmem:[#allocation36_spill] sm:$0xff] }
 0x3ce   :  { %10082 = vmatpush3.msra.mxu1 %v15561_v37  ;;  %v8659_v33 = vpop.f32.mrf.mxu1 }
 0x3cf   :  { %v8660_v22 = vadd.f32 %v8659_v33, %v8658_v36  ;;  %10083 = vmatprep.subr.mxu1 %v15508_v21  ;;  %10060 = vmatmul.mubr.msk.f32.gmra.mxu1 %vm82_vm1, %v2024_v34  ;;  %v15567_v34 = vld [vmem:[#allocation23_spill] sm:$0xff] }
 0x3d0   :  { %10084 = vmatpush3.msra.mxu1 %v15562_v8  ;;  %v8661_v44 = vpop.f32.mrf.mxu1  ;;  %10062 = vmatprep.mubr.msk.f32.mxu1 %vm10970_vm0, %v15508_v21 }
 0x3d1   :  { %v2029_v29 = vadd.f32 %v8660_v22, %v12638_v16  ;;  %10085 = vmatprep.subr.mxu1 %v15508_v21  ;;  %v15565_v16 = vld [vmem:[#allocation6_spill] sm:$0xff]  ;;  %v15570_v22 = vmov 1.0  }
 0x3d2   :  { %10086 = vmatpush3.msra.mxu1 %v15563_v24  ;;  %v8662_v3 = vpop.f32.mrf.mxu1 }
 0x3d3   :  { %v8663_v9 = vadd.f32 %v8662_v3, %v8661_v44  ;;  %10087 = vmatprep.subr.mxu1 %v15508_v21  ;;  %10063 = vmatmul.mubr.msk.f32.gmra.mxu1 %vm82_vm1, %v2029_v29  ;;  %v15571_v44 = vld [vmem:[#allocation30_spill] sm:$0xff]  ;;  %v15572_v29 = vld [vmem:[#allocation31_spill] sm:$0xff]  ;;  %v15573_v3 = vld [vmem:[#allocation32_spill] sm:$0xff] }
 0x3d4   :  { %10088 = vmatpush3.msra.mxu1 %v15564_v35  ;;  %v8664_v43 = vpop.f32.mrf.mxu1  ;;  %10065 = vmatprep.mubr.msk.f32.mxu1 %vm10970_vm0, %v15508_v21 }
 0x3d5   :  { %v2034_v11 = vadd.f32 %v8663_v9, %v12640_v18  ;;  %10089 = vmatprep.subr.mxu1 %v15508_v21  ;;  %v15568_v18 = vld [vmem:[#allocation37_spill] sm:$0xff] }
 0x3d6   :  { %10090 = vmatpush3.msra.mxu1 %v15565_v16  ;;  %v8665_v54 = vpop.f32.mrf.mxu1  ;;  %vm2203_vm9 = vcmp.eq.s32.totalorder %v15568_v18, %v12445_v15  ;;  %vm2206_vm10 = vcmp.eq.s32.totalorder %v15568_v18, %v12468_v40  ;;  %vm2209_vm11 = vcmp.eq.s32.totalorder %v15568_v18, %v12486_v5  ;;  %vm2212_vm12 = vcmp.eq.s32.totalorder %v15568_v18, %v12503_v53  ;;  %v15574_v9 = vld [vmem:[#allocation33_spill] sm:$0xff] }
 0x3d7   :  { %v8666_v47 = vadd.f32 %v8665_v54, %v8664_v43  ;;  %10091 = vmatprep.subr.mxu1 %v15508_v21  ;;  %10066 = vmatmul.mubr.msk.f32.gmra.mxu1 %vm82_vm1, %v2034_v11  ;;  %v2224_v33 = vsel %vm2203_vm9, 1.0, %v15508_v21  ;;  %v2230_v40 = vsel %vm2209_vm11, 1.0, %v15508_v21  ;;  %v2233_v15 = vsel %vm2212_vm12, 1.0, %v15508_v21  ;;  %v15575_v43 = vld [vmem:[#allocation34_spill] sm:$0xff]  ;;  %v15576_v11 = vld [vmem:[#allocation20_spill] sm:$0xff]  ;;  %v12782_v54 = vpop.permute.xlu1 %2606 }
 0x3d8   :  { %10092 = vmatpush3.msra.mxu1 %v15566_v30  ;;  %10068 = vmatprep.mubr.msk.f32.mxu1 %vm10970_vm0, %v15508_v21  ;;  %vm2215_vm13 = vcmp.eq.s32.totalorder %v15568_v18, %v12520_v25  ;;  %vm2218_vm14 = vcmp.eq.s32.totalorder %v15568_v18, %v12537_v6  ;;  %vm2221_vm15 = vcmp.eq.s32.totalorder %v15568_v18, %v12554_v1  ;;  %v12765_v25 = vpop.permute.xlu0 %2603  ;;  %v15569_v1 = vld [vmem:[#allocation29_spill] sm:$0xff] }
 0x3d9   :  { %v2039_v36 = vadd.f32 %v8666_v47, %v12642_v46  ;;  %8774 = vmatprep.subr.mxu1 %v15567_v34  ;;  %v2227_v46 = vsel %vm2206_vm10, 1.0, %v15508_v21  ;;  %v2236_v5 = vsel %vm2215_vm13, 1.0, %v15508_v21  ;;  %v2239_v53 = vsel %vm2218_vm14, 1.0, %v15508_v21  ;;  %v15577_v47 = vld [vmem:[#allocation35_spill] sm:$0xff] }
 0x3da   :  { %v2242_v6 = vsel %vm2221_vm15, 1.0, %v15508_v21  ;;  %vm2624_vm2 = vcmp.eq.s32.totalorder %v15521_v32, %v12765_v25  ;;  %vm2623_vm3 = vcmp.eq.s32.totalorder %v15576_v11, %v12765_v25  ;;  %vm2627_vm4 = vcmp.eq.s32.totalorder %v15521_v32, %v12782_v54 }
 0x3db   :  { %10069 = vmatmul.mubr.msk.f32.gmra.mxu1 %vm82_vm1, %v2039_v36  ;;  %vm2626_vm7 = vcmp.eq.s32.totalorder %v15576_v11, %v12782_v54 }
 0x3dc   :  { %10093 = vmatprep.mubr.msk.f32.mxu1 %vm10970_vm0, %v15508_v21  ;;  %v12790_v36 = vpop.permute.xlu0 %2609 }
 0x3dd   :  { %vm2630_vm8 = vcmp.eq.s32.totalorder %v15521_v32, %v12790_v36  ;;  %vm2629_vm9 = vcmp.eq.s32.totalorder %v15576_v11, %v12790_v36 }
 0x3df   :  { %10094 = vmatmul.mubr.msk.f32.vlgmr.msra.gmra.mxu1 %vm987_vm6, %v2224_v33  ;;  %v12800_v33 = vpop.permute.xlu1 %2612 }
 0x3e0   :  { %8775 = vmatpush3.msra.mxu1 %v11821_v12  ;;  %10096 = vmatprep.mubr.msk.f32.mxu1 %vm10970_vm0, %v15508_v21  ;;  %vm2633_vm10 = vcmp.eq.s32.totalorder %v15521_v32, %v12800_v33  ;;  %vm2632_vm11 = vcmp.eq.s32.totalorder %v15576_v11, %v12800_v33 }
 0x3e1   :  { %8776 = vmatprep.subr.mxu1 %v11834_v63 }
 0x3e2   :  { %8777 = vmatpush3.msra.mxu1 %v11840_v20 }
 0x3e3   :  { %8778 = vmatprep.subr.mxu1 %v11846_v55  ;;  %10097 = vmatmul.mubr.msk.f32.gmra.mxu1 %vm987_vm6, %v2227_v46  ;;  %v8022_v46 = vld [vmem:[%s15354_s5 + $0x38] sm:$0xff] }
 0x3e4   :  { %8779 = vmatpush3.msra.mxu1 %v11852_v56  ;;  %10099 = vmatprep.mubr.msk.f32.mxu1 %vm10970_vm0, %v15508_v21 }
 0x3e5   :  { %8780 = vmatprep.subr.mxu1 %v11858_v17  ;;  %10115 = vmatpush3.msra.mxu0 %v8022_v46 }
 0x3e6   :  { %8781 = vmatpush3.msra.mxu1 %v11864_v52  ;;  %10116 = vmatprep.subr.mxu0 %v15508_v21 }
 0x3e7   :  { %8782 = vmatprep.subr.mxu1 %v11870_v0  ;;  %10100 = vmatmul.mubr.msk.f32.gmra.mxu1 %vm987_vm6, %v2230_v40  ;;  %v12809_v40 = vpop.permute.xlu0 %2615 }
 0x3e8   :  { %8783 = vmatpush3.msra.mxu1 %v11876_v62  ;;  %10102 = vmatprep.mubr.msk.f32.mxu1 %vm10970_vm0, %v15508_v21  ;;  %vm2636_vm12 = vcmp.eq.s32.totalorder %v15521_v32, %v12809_v40  ;;  %vm2635_vm13 = vcmp.eq.s32.totalorder %v15576_v11, %v12809_v40 }
 0x3e9   :  { %8784 = vmatprep.subr.mxu1 %v11882_v23 }
 0x3ea   :  { %8785 = vmatpush3.msra.mxu1 %v11888_v31 }
 0x3eb   :  { %8786 = vmatprep.subr.mxu1 %v11894_v50  ;;  %10103 = vmatmul.mubr.msk.f32.gmra.mxu1 %vm987_vm6, %v2233_v15  ;;  %v12820_v15 = vpop.permute.xlu1 %2618 }
 0x3ec   :  { %8787 = vmatpush3.msra.mxu1 %v11900_v13  ;;  %10105 = vmatprep.mubr.msk.f32.mxu1 %vm10970_vm0, %v15508_v21  ;;  %vm2639_vm14 = vcmp.eq.s32.totalorder %v15521_v32, %v12820_v15  ;;  %vm2638_vm15 = vcmp.eq.s32.totalorder %v15576_v11, %v12820_v15 }
 0x3ed   :  { %8788 = vmatprep.subr.mxu1 %v11906_v10 }
 0x3ee   :  { %8789 = vmatpush3.msra.mxu1 %v11912_v27 }
 0x3ef   :  { %8790 = vmatprep.subr.mxu1 %v11918_v58  ;;  %10106 = vmatmul.mubr.msk.f32.gmra.mxu1 %vm987_vm6, %v2236_v5  ;;  %v12826_v5 = vpop.permute.xlu0 %2621 }
 0x3f0   :  { %8791 = vmatpush3.msra.mxu1 %v11924_v48  ;;  %10108 = vmatprep.mubr.msk.f32.mxu1 %vm10970_vm0, %v15508_v21  ;;  %15578 = vst [vmem:[#allocation8_spill] sm:$0xff] %v12826_v5 }
 0x3f1   :  { %8792 = vmatprep.subr.mxu1 %v11930_v61 }
 0x3f2   :  { %8793 = vmatpush3.msra.mxu1 %v11939_v2 }
 0x3f3   :  { %8794 = vmatprep.subr.mxu1 %v11945_v51  ;;  %10109 = vmatmul.mubr.msk.f32.gmra.mxu1 %vm987_vm6, %v2239_v53  ;;  %v8021_v53 = vld [vmem:[%s15354_s5 + $0x30] sm:$0xff] }
 0x3f4   :  { %8795 = vmatpush3.msra.mxu1 %v11952_v28  ;;  %10111 = vmatprep.mubr.msk.f32.mxu1 %vm10970_vm0, %v15508_v21 }
 0x3f5   :  { %8796 = vmatprep.subr.mxu1 %v11956_v39  ;;  %10117 = vmatpush3.msra.mxu0 %v8021_v53 }
 0x3f6   :  { %8797 = vmatpush3.msra.mxu1 %v11962_v26  ;;  %10139 = vmatprep.subr.mxu0 %v15508_v21 }
 0x3f7   :  { %8798 = vmatprep.subr.mxu1 %v11965_v42  ;;  %10112 = vmatmul.mubr.msk.f32.gmra.mxu1 %vm987_vm6, %v2242_v6  ;;  %v8726_v6 = vpop.f32.mrf.mxu0 }
 0x3f8   :  { %8799 = vmatpush3.msra.mxu1 %v15569_v1  ;;  %8030 = vmatprep.mubr.msk.f32.mxu1 %vm2624_vm2, %v15570_v22  ;;  %vm2642_vm2 = vcmp.eq.s32.totalorder %v15521_v32, %v12826_v5  ;;  %v15581_v1 = vld [vmem:[#allocation7_spill] sm:$0xff] }
 0x3f9   :  { %8800 = vmatprep.subr.mxu1 %v15571_v44  ;;  %v8727_v46 = vpop.f32.mrf.mxu0 }
 0x3fa   :  { %8801 = vmatpush3.msra.mxu1 %v15572_v29 }
 0x3fb   :  { %8802 = vmatprep.subr.mxu1 %v15573_v3  ;;  %v8729_v3 = vpop.f32.mrf.mxu0 }
 0x3fc   :  { %8803 = vmatpush3.msra.mxu1 %v15574_v9 }
 0x3fd   :  { %8804 = vmatprep.subr.mxu1 %v15575_v43 }
 0x3fe   :  { %8805 = vmatpush3.msra.mxu1 %v15577_v47 }
 0x3ff   :  { %8031 = vmatmul.mubr.msk.f32.vlgmr.msra.gmra.mxu1 %vm2623_vm3, %v15570_v22  ;;  %10182 = vmatprep.subr.mxu1 %v15508_v21  ;;  %vm2641_vm3 = vcmp.eq.s32.totalorder %v15576_v11, %v12826_v5  ;;  %v8730_v11 = vpop.f32.mrf.mxu0 }
 0x400   :  { %8032 = vmatprep.mubr.msk.f32.mxu1 %vm2627_vm4, %v15570_v22  ;;  %vm2625_vm4 = vcmp.eq.s32.totalorder %v15568_v18, %v12765_v25 }
 0x401   :  { %v8732_v26 = vpop.f32.mrf.mxu0 }
 0x403   :  { %8033 = vmatmul.mubr.msk.f32.gmra.mxu1 %vm2626_vm7, %v15570_v22  ;;  %vm2628_vm7 = vcmp.eq.s32.totalorder %v15568_v18, %v12782_v54 }
 0x404   :  { %8034 = vmatprep.mubr.msk.f32.mxu1 %vm2630_vm8, %v15570_v22  ;;  %v2649_v25 = vsel %vm2628_vm7, 1.0, %v15508_v21  ;;  %vm2631_vm8 = vcmp.eq.s32.totalorder %v15568_v18, %v12790_v36 }
 0x405   :  { %v2652_v54 = vsel %vm2631_vm8, 1.0, %v15508_v21 }
 0x407   :  { %8035 = vmatmul.mubr.msk.f32.gmra.mxu1 %vm2629_vm9, %v15570_v22  ;;  %vm2634_vm9 = vcmp.eq.s32.totalorder %v15568_v18, %v12800_v33 }
 0x408   :  { %8036 = vmatprep.mubr.msk.f32.mxu1 %vm2633_vm10, %v15570_v22  ;;  %v2655_v36 = vsel %vm2634_vm9, 1.0, %v15508_v21  ;;  %vm2637_vm10 = vcmp.eq.s32.totalorder %v15568_v18, %v12809_v40 }
 0x409   :  { %v2658_v33 = vsel %vm2637_vm10, 1.0, %v15508_v21 }
 0x40b   :  { %8037 = vmatmul.mubr.msk.f32.gmra.mxu1 %vm2632_vm11, %v15570_v22  ;;  %vm2640_vm11 = vcmp.eq.s32.totalorder %v15568_v18, %v12820_v15  ;;  %v15586_v15 = vld [vmem:[#allocation25_spill] sm:$0xff] }
 0x40c   :  { %8038 = vmatprep.mubr.msk.f32.mxu1 %vm2636_vm12, %v15570_v22  ;;  %v2661_v40 = vsel %vm2640_vm11, 1.0, %v15508_v21 }
 0x40f   :  { %8039 = vmatmul.mubr.msk.f32.gmra.mxu1 %vm2635_vm13, %v15570_v22 }
 0x410   :  { %8040 = vmatprep.mubr.msk.f32.mxu1 %vm2639_vm14, %v15570_v22 }
 0x413   :  { %8041 = vmatmul.mubr.msk.f32.gmra.mxu1 %vm2638_vm15, %v15570_v22 }
 0x414   :  { %8042 = vmatprep.mubr.msk.f32.mxu1 %vm2642_vm2, %v15570_v22 }
 0x417   :  { %8043 = vmatmul.mubr.msk.f32.gmra.mxu1 %vm2641_vm3, %v15570_v22 }
 0x418   :  { %10186 = vmatprep.mubr.msk.f32.mxu1 %vm10970_vm0, %v15508_v21 }
 0x483   :  { %v2132_v47 = vpop.f32.mrf.mxu1 }
 0x484   :  { %v12844_v43 = vadd.f32 %v2132_v47, %v12644_v45  ;;  %v8733_v47 = vpop.f32.mrf.mxu0 }
 0x485   :  { %v10052_v9 = vpop.f32.mrf.mxu1 }
 0x486   :  { %15579 = vst [vmem:[#allocation9_spill] sm:$0xff] %v12844_v43 }
 0x487   :  { %v2137_v29 = vpop.f32.mrf.mxu1 }
 0x488   :  { %v12847_v44 = vadd.f32 %v2137_v29, %v12646_v49  ;;  %v8735_v29 = vpop.f32.mrf.mxu0 }
 0x489   :  { %v10055_v53 = vpop.f32.mrf.mxu1 }
 0x48a   :  { %15580 = vst [vmem:[#allocation10_spill] sm:$0xff] %v12847_v44 }
 0x48b   :  { %v2142_v22 = vpop.f32.mrf.mxu1 }
 0x48c   :  { %v12850_v32 = vadd.f32 %v2142_v22, %v15581_v1  ;;  %v8736_v22 = vpop.f32.mrf.mxu0 }
 0x48d   :  { %v10058_v42 = vpop.f32.mrf.mxu1 }
 0x48e   :  { %15582 = vst [vmem:[#allocation11_spill] sm:$0xff] %v12850_v32 }
 0x48f   :  { %v2147_v39 = vpop.f32.mrf.mxu1 }
 0x490   :  { %v12853_v28 = vadd.f32 %v2147_v39, %v12650_v38  ;;  %v8728_v38 = vadd.f32 %v8727_v46, %v8726_v6  ;;  %v8734_v6 = vadd.f32 %v8733_v47, %v8732_v26 }
 0x491   :  { %v10061_v45 = vpop.f32.mrf.mxu1 }
 0x492   :  { %15583 = vst [vmem:[#allocation12_spill] sm:$0xff] %v12853_v28  ;;  %v8738_v45 = vpop.f32.mrf.mxu0 }
 0x493   :  { %v2152_v9 = vpop.f32.mrf.mxu1 }
 0x494   :  { %v12856_v43 = vadd.f32 %v2152_v9, %v12652_v4  ;;  %v8731_v4 = vadd.f32 %v8730_v11, %v8729_v3  ;;  %v8739_v9 = vpop.f32.mrf.mxu0 }
 0x495   :  { %v10064_v49 = vpop.f32.mrf.mxu1 }
 0x497   :  { %v2157_v53 = vpop.f32.mrf.mxu1 }
 0x498   :  { %v12859_v44 = vadd.f32 %v2157_v53, %v12654_v19 }
 0x499   :  { %v10067_v1 = vpop.f32.mrf.mxu1 }
 0x49a   :  { %v8740_v1 = vadd.f32 %v8739_v9, %v8738_v45 }
 0x49b   :  { %v2162_v42 = vpop.f32.mrf.mxu1 }
 0x49c   :  { %v12862_v32 = vadd.f32 %v2162_v42, %v12656_v57 }
 0x49d   :  { %v10070_v39 = vpop.f32.mrf.mxu1 }
 0x49f   :  { %v2430_v28 = vpop.f32.mrf.mxu1 }
 0x4a0   :  { %v2431_v51 = vadd.f32 %v8728_v38, %v2430_v28 }
 0x4a1   :  { %v10095_v5 = vpop.f32.mrf.mxu1 }
 0x4a2   :  { %10119 = vmatmul.mubr.msk.f32.vlgmr.msra.gmra.mxu0 %vm82_vm1, %v2431_v51  ;;  %v8741_v51 = vpop.f32.mrf.mxu0  ;;  %v8737_v5 = vadd.f32 %v8736_v22, %v8735_v29 }
 0x4a3   :  { %10140 = vmatpush3.msk.msra.mxu0 %vm1009_vm5, %v12004_v14  ;;  %v2435_v19 = vpop.f32.mrf.mxu1  ;;  %10121 = vmatprep.mubr.msk.f32.mxu0 %vm10970_vm0, %v15508_v21 }
 0x4a4   :  { %v2436_v49 = vadd.f32 %v8731_v4, %v2435_v19  ;;  %10141 = vmatprep.subr.mxu0 %v15508_v21  ;;  %v8742_v26 = vpop.f32.mrf.mxu0 }
 0x4a5   :  { %10142 = vmatpush3.msra.mxu0 %v15557_v7  ;;  %v10098_v57 = vpop.f32.mrf.mxu1  ;;  %v8743_v38 = vadd.f32 %v8742_v26, %v8741_v51 }
 0x4a6   :  { %10143 = vmatprep.subr.mxu0 %v15508_v21  ;;  %10122 = vmatmul.mubr.msk.f32.gmra.mxu0 %vm82_vm1, %v2436_v49  ;;  %v8744_v29 = vpop.f32.mrf.mxu0 }
 0x4a7   :  { %10144 = vmatpush3.msra.mxu0 %v15558_v41  ;;  %v2440_v28 = vpop.f32.mrf.mxu1  ;;  %10124 = vmatprep.mubr.msk.f32.mxu0 %vm10970_vm0, %v15508_v21 }
 0x4a8   :  { %v2441_v3 = vadd.f32 %v8734_v6, %v2440_v28  ;;  %10145 = vmatprep.subr.mxu0 %v15508_v21  ;;  %v8745_v45 = vpop.f32.mrf.mxu0  ;;  %v2646_v28 = vsel %vm2625_vm4, 1.0, %v15508_v21 }
 0x4a9   :  { %10146 = vmatpush3.msra.mxu0 %v15559_v59  ;;  %v10101_v11 = vpop.f32.mrf.mxu1  ;;  %v8746_v49 = vadd.f32 %v8745_v45, %v8744_v29  ;;  %v15591_v29 = vld [vmem:[#allocation29_spill] sm:$0xff] }
 0x4aa   :  { %10147 = vmatprep.subr.mxu0 %v15508_v21  ;;  %10125 = vmatmul.mubr.msk.f32.gmra.mxu0 %vm82_vm1, %v2441_v3  ;;  %v15584_v3 = vld [vmem:[#allocation8_spill] sm:$0xff]  ;;  %v15596_v45 = vld [vmem:[#allocation33_spill] sm:$0xff] }
 0x4ab   :  { %10148 = vmatpush3.msra.mxu0 %v15560_v60  ;;  %v2445_v46 = vpop.f32.mrf.mxu1  ;;  %10127 = vmatprep.mubr.msk.f32.mxu0 %vm10970_vm0, %v15508_v21  ;;  %vm2643_vm12 = vcmp.eq.s32.totalorder %v15568_v18, %v15584_v3  ;;  %v15585_v11 = vld [vmem:[#allocation24_spill] sm:$0xff] }
 0x4ac   :  { %v2446_v47 = vadd.f32 %v8737_v5, %v2445_v46  ;;  %10149 = vmatprep.subr.mxu0 %v15508_v21  ;;  %v15587_v5 = vld [vmem:[#allocation26_spill] sm:$0xff]  ;;  %v2664_v26 = vsel %vm2643_vm12, 1.0, %v15508_v21  ;;  %v12969_v46 = vpop.permute.xlu1 %3025 }
 0x4ad   :  { %10150 = vmatpush3.msra.mxu0 %v15561_v37  ;;  %v10104_v53 = vpop.f32.mrf.mxu1 }
 0x4ae   :  { %10151 = vmatprep.subr.mxu0 %v15508_v21  ;;  %10128 = vmatmul.mubr.msk.f32.gmra.mxu0 %vm82_vm1, %v2446_v47  ;;  %v15588_v47 = vld [vmem:[#allocation27_spill] sm:$0xff]  ;;  %v15589_v53 = vld [vmem:[#allocation28_spill] sm:$0xff] }
 0x4af   :  { %10152 = vmatpush3.msra.mxu0 %v15562_v8  ;;  %v2450_v22 = vpop.f32.mrf.mxu1  ;;  %10130 = vmatprep.mubr.msk.f32.mxu0 %vm10970_vm0, %v15508_v21 }
 0x4b0   :  { %v2451_v42 = vadd.f32 %v8740_v1, %v2450_v22  ;;  %10153 = vmatprep.subr.mxu0 %v15508_v21  ;;  %v15590_v1 = vld [vmem:[#allocation21_spill] sm:$0xff]  ;;  %v15592_v22 = vmov 1.0  }
 0x4b1   :  { %10154 = vmatpush3.msra.mxu0 %v15563_v24  ;;  %v10107_v39 = vpop.f32.mrf.mxu1  ;;  %vm3046_vm13 = vcmp.eq.s32.totalorder %v15590_v1, %v12969_v46 }
 0x4b2   :  { %10155 = vmatprep.subr.mxu0 %v15508_v21  ;;  %10131 = vmatmul.mubr.msk.f32.gmra.mxu0 %vm82_vm1, %v2451_v42  ;;  %v15593_v42 = vld [vmem:[#allocation30_spill] sm:$0xff]  ;;  %v15594_v39 = vld [vmem:[#allocation31_spill] sm:$0xff] }
 0x4b3   :  { %10156 = vmatpush3.msra.mxu0 %v15564_v35  ;;  %v2455_v4 = vpop.f32.mrf.mxu1  ;;  %10133 = vmatprep.mubr.msk.f32.mxu0 %vm10970_vm0, %v15508_v21 }
 0x4b4   :  { %v2456_v9 = vadd.f32 %v8743_v38, %v2455_v4  ;;  %10157 = vmatprep.subr.mxu0 %v15508_v21  ;;  %v15595_v38 = vld [vmem:[#allocation32_spill] sm:$0xff]  ;;  %v15597_v4 = vld [vmem:[#allocation34_spill] sm:$0xff] }
 0x4b5   :  { %10158 = vmatpush3.msra.mxu0 %v15565_v16  ;;  %v10110_v19 = vpop.f32.mrf.mxu1 }
 0x4b6   :  { %10159 = vmatprep.subr.mxu0 %v15508_v21  ;;  %10134 = vmatmul.mubr.msk.f32.gmra.mxu0 %vm82_vm1, %v2456_v9  ;;  %v12983_v9 = vpop.permute.xlu0 %3028  ;;  %v15598_v19 = vld [vmem:[#allocation20_spill] sm:$0xff] }
 0x4b7   :  { %10160 = vmatpush3.msra.mxu0 %v15566_v30  ;;  %v2460_v57 = vpop.f32.mrf.mxu1  ;;  %10136 = vmatprep.mubr.msk.f32.mxu0 %vm10970_vm0, %v15508_v21  ;;  %vm3045_vm14 = vcmp.eq.s32.totalorder %v15598_v19, %v12969_v46  ;;  %vm3049_vm15 = vcmp.eq.s32.totalorder %v15590_v1, %v12983_v9  ;;  %vm3048_vm2 = vcmp.eq.s32.totalorder %v15598_v19, %v12983_v9 }
 0x4b8   :  { %v2461_v6 = vadd.f32 %v8746_v49, %v2460_v57  ;;  %8854 = vmatprep.subr.mxu0 %v15567_v34  ;;  %v15599_v49 = vld [vmem:[#allocation35_spill] sm:$0xff]  ;;  %v12995_v57 = vpop.permute.xlu1 %3031 }
 0x4b9   :  { %v10113_v51 = vpop.f32.mrf.mxu1  ;;  %vm3052_vm3 = vcmp.eq.s32.totalorder %v15590_v1, %v12995_v57  ;;  %vm3051_vm4 = vcmp.eq.s32.totalorder %v15598_v19, %v12995_v57 }
 0x4ba   :  { %10137 = vmatmul.mubr.msk.f32.gmra.mxu0 %vm82_vm1, %v2461_v6  ;;  %v13001_v6 = vpop.permute.xlu0 %3034  ;;  %v8053_v51 = vld [vmem:[%s15354_s5 + $0x48] sm:$0xff] }
 0x4bb   :  { %10161 = vmatprep.mubr.msk.f32.mxu0 %vm10970_vm0, %v15508_v21  ;;  %vm3055_vm7 = vcmp.eq.s32.totalorder %v15590_v1, %v13001_v6  ;;  %10183 = vmatpush3.msra.mxu1 %v8053_v51  ;;  %vm3054_vm8 = vcmp.eq.s32.totalorder %v15598_v19, %v13001_v6 }
 0x4bc   :  { %10184 = vmatprep.subr.mxu1 %v15508_v21 }
 0x4be   :  { %10162 = vmatmul.mubr.msk.f32.vlgmr.msra.gmra.mxu0 %vm987_vm6, %v2646_v28  ;;  %v13014_v28 = vpop.permute.xlu1 %3037 }
 0x4bf   :  { %8855 = vmatpush3.msra.mxu0 %v11821_v12  ;;  %10164 = vmatprep.mubr.msk.f32.mxu0 %vm10970_vm0, %v15508_v21  ;;  %vm3058_vm9 = vcmp.eq.s32.totalorder %v15590_v1, %v13014_v28  ;;  %vm3057_vm10 = vcmp.eq.s32.totalorder %v15598_v19, %v13014_v28 }
 0x4c0   :  { %8856 = vmatprep.subr.mxu0 %v11834_v63 }
 0x4c1   :  { %8857 = vmatpush3.msra.mxu0 %v11840_v20 }
 0x4c2   :  { %8858 = vmatprep.subr.mxu0 %v11846_v55  ;;  %10165 = vmatmul.mubr.msk.f32.gmra.mxu0 %vm987_vm6, %v2649_v25  ;;  %v13021_v25 = vpop.permute.xlu0 %3040 }
 0x4c3   :  { %8859 = vmatpush3.msra.mxu0 %v11852_v56  ;;  %10167 = vmatprep.mubr.msk.f32.mxu0 %vm10970_vm0, %v15508_v21  ;;  %vm3061_vm11 = vcmp.eq.s32.totalorder %v15590_v1, %v13021_v25  ;;  %vm3060_vm12 = vcmp.eq.s32.totalorder %v15598_v19, %v13021_v25 }
 0x4c4   :  { %8860 = vmatprep.subr.mxu0 %v11858_v17 }
 0x4c5   :  { %8861 = vmatpush3.msra.mxu0 %v11864_v52 }
 0x4c6   :  { %8862 = vmatprep.subr.mxu0 %v11870_v0  ;;  %10168 = vmatmul.mubr.msk.f32.gmra.mxu0 %vm987_vm6, %v2652_v54  ;;  %v13031_v54 = vpop.permute.xlu1 %3043 }
 0x4c7   :  { %8863 = vmatpush3.msra.mxu0 %v11876_v62  ;;  %10170 = vmatprep.mubr.msk.f32.mxu0 %vm10970_vm0, %v15508_v21  ;;  %15600 = vst [vmem:[#allocation13_spill] sm:$0xff] %v13031_v54 }
 0x4c8   :  { %8864 = vmatprep.subr.mxu0 %v11882_v23 }
 0x4c9   :  { %8865 = vmatpush3.msra.mxu0 %v11888_v31 }
 0x4ca   :  { %8866 = vmatprep.subr.mxu0 %v11894_v50  ;;  %10171 = vmatmul.mubr.msk.f32.gmra.mxu0 %vm987_vm6, %v2655_v36  ;;  %v8052_v36 = vld [vmem:[%s15354_s5 + $0x40] sm:$0xff] }
 0x4cb   :  { %8867 = vmatpush3.msra.mxu0 %v11900_v13  ;;  %10173 = vmatprep.mubr.msk.f32.mxu0 %vm10970_vm0, %v15508_v21 }
 0x4cc   :  { %8868 = vmatprep.subr.mxu0 %v11906_v10  ;;  %10185 = vmatpush3.msra.mxu1 %v8052_v36 }
 0x4cd   :  { %8869 = vmatpush3.msra.mxu0 %v11912_v27  ;;  %10207 = vmatprep.subr.mxu1 %v15508_v21 }
 0x4ce   :  { %8870 = vmatprep.subr.mxu0 %v11918_v58  ;;  %10174 = vmatmul.mubr.msk.f32.gmra.mxu0 %vm987_vm6, %v2658_v33  ;;  %v8806_v33 = vpop.f32.mrf.mxu1 }
 0x4cf   :  { %8871 = vmatpush3.msra.mxu0 %v11924_v48  ;;  %10176 = vmatprep.mubr.msk.f32.mxu0 %vm10970_vm0, %v15508_v21 }
 0x4d0   :  { %8872 = vmatprep.subr.mxu0 %v11930_v61 }
 0x4d1   :  { %8873 = vmatpush3.msra.mxu0 %v11939_v2 }
 0x4d2   :  { %8874 = vmatprep.subr.mxu0 %v15585_v11  ;;  %10177 = vmatmul.mubr.msk.f32.gmra.mxu0 %vm987_vm6, %v2661_v40  ;;  %v8807_v40 = vpop.f32.mrf.mxu1 }
 0x4d3   :  { %8875 = vmatpush3.msra.mxu0 %v15586_v15  ;;  %10179 = vmatprep.mubr.msk.f32.mxu0 %vm10970_vm0, %v15508_v21 }
 0x4d4   :  { %8876 = vmatprep.subr.mxu0 %v15587_v5  ;;  %v15607_v5 = vld [vmem:[#allocation12_spill] sm:$0xff] }
 0x4d5   :  { %8877 = vmatpush3.msra.mxu0 %v15588_v47 }
 0x4d6   :  { %8878 = vmatprep.subr.mxu0 %v15589_v53  ;;  %10180 = vmatmul.mubr.msk.f32.gmra.mxu0 %vm987_vm6, %v2664_v26  ;;  %v15601_v26 = vld [vmem:[#allocation9_spill] sm:$0xff] }
 0x4d7   :  { %8879 = vmatpush3.msra.mxu0 %v15591_v29  ;;  %8061 = vmatprep.mubr.msk.f32.mxu0 %vm3046_vm13, %v15592_v22  ;;  %vm3064_vm13 = vcmp.eq.s32.totalorder %v15590_v1, %v13031_v54 }
 0x4d8   :  { %8880 = vmatprep.subr.mxu0 %v15593_v42 }
 0x4d9   :  { %8881 = vmatpush3.msra.mxu0 %v15594_v39 }
 0x4da   :  { %8882 = vmatprep.subr.mxu0 %v15595_v38  ;;  %v15603_v38 = vld [vmem:[#allocation10_spill] sm:$0xff] }
 0x4db   :  { %8883 = vmatpush3.msra.mxu0 %v15596_v45 }
 0x4dc   :  { %8884 = vmatprep.subr.mxu0 %v15597_v4  ;;  %v8809_v4 = vpop.f32.mrf.mxu1 }
 0x4dd   :  { %8885 = vmatpush3.msra.mxu0 %v15599_v49 }
 0x4de   :  { %8062 = vmatmul.mubr.msk.f32.vlgmr.msra.gmra.mxu0 %vm3045_vm14, %v15592_v22  ;;  %10250 = vmatprep.subr.mxu0 %v15508_v21  ;;  %vm3063_vm14 = vcmp.eq.s32.totalorder %v15598_v19, %v13031_v54  ;;  %v8810_v19 = vpop.f32.mrf.mxu1 }
 0x4df   :  { %8063 = vmatprep.mubr.msk.f32.mxu0 %vm3049_vm15, %v15592_v22  ;;  %vm3047_vm15 = vcmp.eq.s32.totalorder %v15568_v18, %v12969_v46 }
 0x4e0   :  { %v8812_v53 = vpop.f32.mrf.mxu1 }
 0x4e2   :  { %8064 = vmatmul.mubr.msk.f32.gmra.mxu0 %vm3048_vm2, %v15592_v22  ;;  %vm3050_vm2 = vcmp.eq.s32.totalorder %v15568_v18, %v12983_v9 }
 0x4e3   :  { %8065 = vmatprep.mubr.msk.f32.mxu0 %vm3052_vm3, %v15592_v22  ;;  %v3071_v46 = vsel %vm3050_vm2, 1.0, %v15508_v21  ;;  %vm3053_vm3 = vcmp.eq.s32.totalorder %v15568_v18, %v12995_v57 }
 0x4e4   :  { %v3074_v9 = vsel %vm3053_vm3, 1.0, %v15508_v21 }
 0x4e6   :  { %8066 = vmatmul.mubr.msk.f32.gmra.mxu0 %vm3051_vm4, %v15592_v22  ;;  %vm3056_vm4 = vcmp.eq.s32.totalorder %v15568_v18, %v13001_v6 }
 0x4e7   :  { %8067 = vmatprep.mubr.msk.f32.mxu0 %vm3055_vm7, %v15592_v22  ;;  %v3077_v57 = vsel %vm3056_vm4, 1.0, %v15508_v21  ;;  %vm3059_vm7 = vcmp.eq.s32.totalorder %v15568_v18, %v13014_v28 }
 0x4e8   :  { %v3080_v6 = vsel %vm3059_vm7, 1.0, %v15508_v21 }
 0x4ea   :  { %8068 = vmatmul.mubr.msk.f32.gmra.mxu0 %vm3054_vm8, %v15592_v22  ;;  %vm3062_vm8 = vcmp.eq.s32.totalorder %v15568_v18, %v13021_v25  ;;  %v15611_v25 = vld [vmem:[#allocation25_spill] sm:$0xff] }
 0x4eb   :  { %8069 = vmatprep.mubr.msk.f32.mxu0 %vm3058_vm9, %v15592_v22  ;;  %v3083_v28 = vsel %vm3062_vm8, 1.0, %v15508_v21 }
 0x4ee   :  { %8070 = vmatmul.mubr.msk.f32.gmra.mxu0 %vm3057_vm10, %v15592_v22 }
 0x4ef   :  { %8071 = vmatprep.mubr.msk.f32.mxu0 %vm3061_vm11, %v15592_v22 }
 0x4f2   :  { %8072 = vmatmul.mubr.msk.f32.gmra.mxu0 %vm3060_vm12, %v15592_v22 }
 0x4f3   :  { %8073 = vmatprep.mubr.msk.f32.mxu0 %vm3064_vm13, %v15592_v22 }
 0x4f6   :  { %8074 = vmatmul.mubr.msk.f32.gmra.mxu0 %vm3063_vm14, %v15592_v22  ;;  %v15605_v22 = vld [vmem:[#allocation11_spill] sm:$0xff] }
 0x4f7   :  { %10254 = vmatprep.mubr.msk.f32.mxu0 %vm10970_vm0, %v15508_v21 }
 0x562   :  { %v2554_v3 = vpop.f32.mrf.mxu0 }
 0x563   :  { %v13047_v51 = vadd.f32 %v2554_v3, %v15601_v26  ;;  %v8813_v26 = vpop.f32.mrf.mxu1 }
 0x564   :  { %v10120_v49 = vpop.f32.mrf.mxu0 }
 0x565   :  { %15602 = vst [vmem:[#allocation14_spill] sm:$0xff] %v13047_v51 }
 0x566   :  { %v2559_v45 = vpop.f32.mrf.mxu0 }
 0x567   :  { %v13050_v39 = vadd.f32 %v2559_v45, %v15603_v38  ;;  %v8815_v45 = vpop.f32.mrf.mxu1 }
 0x568   :  { %v10123_v36 = vpop.f32.mrf.mxu0 }
 0x569   :  { %15604 = vst [vmem:[#allocation19_spill] sm:$0xff] %v13050_v39 }
 0x56a   :  { %v2564_v42 = vpop.f32.mrf.mxu0 }
 0x56b   :  { %v13053_v29 = vadd.f32 %v2564_v42, %v15605_v22  ;;  %v8816_v42 = vpop.f32.mrf.mxu1 }
 0x56c   :  { %v10126_v1 = vpop.f32.mrf.mxu0 }
 0x56d   :  { %15606 = vst [vmem:[#allocation3_spill] sm:$0xff] %v13053_v29 }
 0x56e   :  { %v2569_v47 = vpop.f32.mrf.mxu0 }
 0x56f   :  { %v13056_v15 = vadd.f32 %v2569_v47, %v15607_v5  ;;  %v8808_v47 = vadd.f32 %v8807_v40, %v8806_v33  ;;  %v8814_v33 = vadd.f32 %v8813_v26, %v8812_v53 }
 0x570   :  { %v10129_v3 = vpop.f32.mrf.mxu0 }
 0x571   :  { %15608 = vst [vmem:[#allocation18_spill] sm:$0xff] %v13056_v15  ;;  %v8818_v3 = vpop.f32.mrf.mxu1 }
 0x572   :  { %v2574_v49 = vpop.f32.mrf.mxu0 }
 0x573   :  { %v13059_v51 = vadd.f32 %v2574_v49, %v12856_v43  ;;  %v8811_v43 = vadd.f32 %v8810_v19, %v8809_v4  ;;  %v8819_v49 = vpop.f32.mrf.mxu1 }
 0x574   :  { %v10132_v38 = vpop.f32.mrf.mxu0 }
 0x576   :  { %v2579_v36 = vpop.f32.mrf.mxu0 }
 0x577   :  { %v13062_v39 = vadd.f32 %v2579_v36, %v12859_v44 }
 0x578   :  { %v10135_v22 = vpop.f32.mrf.mxu0 }
 0x579   :  { %v8820_v22 = vadd.f32 %v8819_v49, %v8818_v3 }
 0x57a   :  { %v2584_v1 = vpop.f32.mrf.mxu0 }
 0x57b   :  { %v13065_v29 = vadd.f32 %v2584_v1, %v12862_v32 }
 0x57c   :  { %v10138_v5 = vpop.f32.mrf.mxu0 }
 0x57e   :  { %v2852_v15 = vpop.f32.mrf.mxu0 }
 0x57f   :  { %v2853_v11 = vadd.f32 %v8808_v47, %v2852_v15 }
 0x580   :  { %v10163_v54 = vpop.f32.mrf.mxu0 }
 0x581   :  { %10187 = vmatmul.mubr.msk.f32.vlgmr.msra.gmra.mxu1 %vm82_vm1, %v2853_v11  ;;  %v8821_v11 = vpop.f32.mrf.mxu1  ;;  %v8817_v54 = vadd.f32 %v8816_v42, %v8815_v45 }
 0x582   :  { %10208 = vmatpush3.msk.msra.mxu1 %vm1009_vm5, %v12004_v14  ;;  %v2857_v44 = vpop.f32.mrf.mxu0  ;;  %10189 = vmatprep.mubr.msk.f32.mxu1 %vm10970_vm0, %v15508_v21 }
 0x583   :  { %v2858_v38 = vadd.f32 %v8811_v43, %v2857_v44  ;;  %10209 = vmatprep.subr.mxu1 %v15508_v21  ;;  %v8822_v53 = vpop.f32.mrf.mxu1 }
 0x584   :  { %10210 = vmatpush3.msra.mxu1 %v15557_v7  ;;  %v10166_v32 = vpop.f32.mrf.mxu0  ;;  %v8823_v47 = vadd.f32 %v8822_v53, %v8821_v11  ;;  %v13171_v53 = vpop.permute.xlu0 %3447 }
 0x585   :  { %10211 = vmatprep.subr.mxu1 %v15508_v21  ;;  %10190 = vmatmul.mubr.msk.f32.gmra.mxu1 %vm82_vm1, %v2858_v38  ;;  %v8824_v45 = vpop.f32.mrf.mxu1 }
 0x586   :  { %10212 = vmatpush3.msra.mxu1 %v15558_v41  ;;  %v2862_v15 = vpop.f32.mrf.mxu0  ;;  %10192 = vmatprep.mubr.msk.f32.mxu1 %vm10970_vm0, %v15508_v21 }
 0x587   :  { %v2863_v4 = vadd.f32 %v8814_v33, %v2862_v15  ;;  %10213 = vmatprep.subr.mxu1 %v15508_v21  ;;  %v8825_v3 = vpop.f32.mrf.mxu1  ;;  %v3068_v15 = vsel %vm3047_vm15, 1.0, %v15508_v21 }
 0x588   :  { %10214 = vmatpush3.msra.mxu1 %v15559_v59  ;;  %v10169_v19 = vpop.f32.mrf.mxu0  ;;  %v8826_v38 = vadd.f32 %v8825_v3, %v8824_v45  ;;  %v15616_v45 = vld [vmem:[#allocation29_spill] sm:$0xff] }
 0x589   :  { %10215 = vmatprep.subr.mxu1 %v15508_v21  ;;  %10193 = vmatmul.mubr.msk.f32.gmra.mxu1 %vm82_vm1, %v2863_v4  ;;  %v15609_v4 = vld [vmem:[#allocation13_spill] sm:$0xff]  ;;  %v15610_v19 = vld [vmem:[#allocation24_spill] sm:$0xff] }
 0x58a   :  { %10216 = vmatpush3.msra.mxu1 %v15560_v60  ;;  %v2867_v40 = vpop.f32.mrf.mxu0  ;;  %10195 = vmatprep.mubr.msk.f32.mxu1 %vm10970_vm0, %v15508_v21  ;;  %vm3065_vm9 = vcmp.eq.s32.totalorder %v15568_v18, %v15609_v4  ;;  %v15621_v3 = vld [vmem:[#allocation33_spill] sm:$0xff] }
 0x58b   :  { %v2868_v26 = vadd.f32 %v8817_v54, %v2867_v40  ;;  %10217 = vmatprep.subr.mxu1 %v15508_v21  ;;  %v15612_v54 = vld [vmem:[#allocation26_spill] sm:$0xff]  ;;  %v3086_v40 = vsel %vm3065_vm9, 1.0, %v15508_v21 }
 0x58c   :  { %10218 = vmatpush3.msra.mxu1 %v15561_v37  ;;  %v10172_v36 = vpop.f32.mrf.mxu0 }
 0x58d   :  { %10219 = vmatprep.subr.mxu1 %v15508_v21  ;;  %10196 = vmatmul.mubr.msk.f32.gmra.mxu1 %vm82_vm1, %v2868_v26  ;;  %v15613_v26 = vld [vmem:[#allocation27_spill] sm:$0xff]  ;;  %v15614_v36 = vld [vmem:[#allocation28_spill] sm:$0xff] }
 0x58e   :  { %10220 = vmatpush3.msra.mxu1 %v15562_v8  ;;  %v2872_v42 = vpop.f32.mrf.mxu0  ;;  %10198 = vmatprep.mubr.msk.f32.mxu1 %vm10970_vm0, %v15508_v21 }
 0x58f   :  { %v2873_v1 = vadd.f32 %v8820_v22, %v2872_v42  ;;  %10221 = vmatprep.subr.mxu1 %v15508_v21  ;;  %v15615_v22 = vld [vmem:[#allocation21_spill] sm:$0xff]  ;;  %v15617_v42 = vmov 1.0  }
 0x590   :  { %10222 = vmatpush3.msra.mxu1 %v15563_v24  ;;  %v10175_v5 = vpop.f32.mrf.mxu0  ;;  %vm3468_vm10 = vcmp.eq.s32.totalorder %v15615_v22, %v13171_v53 }
 0x591   :  { %10223 = vmatprep.subr.mxu1 %v15508_v21  ;;  %10199 = vmatmul.mubr.msk.f32.gmra.mxu1 %vm82_vm1, %v2873_v1  ;;  %v15618_v1 = vld [vmem:[#allocation30_spill] sm:$0xff]  ;;  %v15619_v5 = vld [vmem:[#allocation31_spill] sm:$0xff] }
 0x592   :  { %10224 = vmatpush3.msra.mxu1 %v15564_v35  ;;  %v2877_v43 = vpop.f32.mrf.mxu0  ;;  %10201 = vmatprep.mubr.msk.f32.mxu1 %vm10970_vm0, %v15508_v21 }
 0x593   :  { %v2878_v49 = vadd.f32 %v8823_v47, %v2877_v43  ;;  %10225 = vmatprep.subr.mxu1 %v15508_v21  ;;  %v15620_v47 = vld [vmem:[#allocation32_spill] sm:$0xff]  ;;  %v15622_v43 = vld [vmem:[#allocation34_spill] sm:$0xff] }
 0x594   :  { %10226 = vmatpush3.msra.mxu1 %v15565_v16  ;;  %v10178_v44 = vpop.f32.mrf.mxu0 }
 0x595   :  { %10227 = vmatprep.subr.mxu1 %v15508_v21  ;;  %10202 = vmatmul.mubr.msk.f32.gmra.mxu1 %vm82_vm1, %v2878_v49  ;;  %v15623_v49 = vld [vmem:[#allocation20_spill] sm:$0xff]  ;;  %v13188_v44 = vpop.permute.xlu1 %3450 }
 0x596   :  { %10228 = vmatpush3.msra.mxu1 %v15566_v30  ;;  %v2882_v32 = vpop.f32.mrf.mxu0  ;;  %10204 = vmatprep.mubr.msk.f32.mxu1 %vm10970_vm0, %v15508_v21  ;;  %vm3467_vm11 = vcmp.eq.s32.totalorder %v15623_v49, %v13171_v53  ;;  %vm3471_vm12 = vcmp.eq.s32.totalorder %v15615_v22, %v13188_v44  ;;  %vm3470_vm13 = vcmp.eq.s32.totalorder %v15623_v49, %v13188_v44 }
 0x597   :  { %v2883_v33 = vadd.f32 %v8826_v38, %v2882_v32  ;;  %8934 = vmatprep.subr.mxu1 %v15567_v34  ;;  %v15624_v38 = vld [vmem:[#allocation35_spill] sm:$0xff]  ;;  %v13196_v32 = vpop.permute.xlu0 %3453 }
 0x598   :  { %v10181_v11 = vpop.f32.mrf.mxu0  ;;  %vm3474_vm14 = vcmp.eq.s32.totalorder %v15615_v22, %v13196_v32  ;;  %vm3473_vm15 = vcmp.eq.s32.totalorder %v15623_v49, %v13196_v32 }
 0x599   :  { %10205 = vmatmul.mubr.msk.f32.gmra.mxu1 %vm82_vm1, %v2883_v33  ;;  %v13206_v33 = vpop.permute.xlu1 %3456  ;;  %v8084_v11 = vld [vmem:[%s15354_s5 + $0x58] sm:$0xff] }
 0x59a   :  { %10229 = vmatprep.mubr.msk.f32.mxu1 %vm10970_vm0, %v15508_v21  ;;  %vm3477_vm2 = vcmp.eq.s32.totalorder %v15615_v22, %v13206_v33  ;;  %10251 = vmatpush3.msra.mxu0 %v8084_v11  ;;  %vm3476_vm3 = vcmp.eq.s32.totalorder %v15623_v49, %v13206_v33 }
 0x59b   :  { %10252 = vmatprep.subr.mxu0 %v15508_v21 }
 0x59d   :  { %10230 = vmatmul.mubr.msk.f32.vlgmr.msra.gmra.mxu1 %vm987_vm6, %v3068_v15  ;;  %v13215_v15 = vpop.permute.xlu0 %3459 }
 0x59e   :  { %8935 = vmatpush3.msra.mxu1 %v11821_v12  ;;  %10232 = vmatprep.mubr.msk.f32.mxu1 %vm10970_vm0, %v15508_v21  ;;  %vm3480_vm4 = vcmp.eq.s32.totalorder %v15615_v22, %v13215_v15  ;;  %vm3479_vm7 = vcmp.eq.s32.totalorder %v15623_v49, %v13215_v15 }
 0x59f   :  { %8936 = vmatprep.subr.mxu1 %v11834_v63 }
 0x5a0   :  { %8937 = vmatpush3.msra.mxu1 %v11840_v20 }
 0x5a1   :  { %8938 = vmatprep.subr.mxu1 %v11846_v55  ;;  %10233 = vmatmul.mubr.msk.f32.gmra.mxu1 %vm987_vm6, %v3071_v46  ;;  %v13226_v46 = vpop.permute.xlu1 %3462 }
 0x5a2   :  { %8939 = vmatpush3.msra.mxu1 %v11852_v56  ;;  %10235 = vmatprep.mubr.msk.f32.mxu1 %vm10970_vm0, %v15508_v21  ;;  %vm3483_vm8 = vcmp.eq.s32.totalorder %v15615_v22, %v13226_v46  ;;  %vm3482_vm9 = vcmp.eq.s32.totalorder %v15623_v49, %v13226_v46 }
 0x5a3   :  { %8940 = vmatprep.subr.mxu1 %v11858_v17 }
 0x5a4   :  { %8941 = vmatpush3.msra.mxu1 %v11864_v52 }
 0x5a5   :  { %8942 = vmatprep.subr.mxu1 %v11870_v0  ;;  %10236 = vmatmul.mubr.msk.f32.gmra.mxu1 %vm987_vm6, %v3074_v9  ;;  %v13232_v9 = vpop.permute.xlu0 %3465 }
 0x5a6   :  { %8943 = vmatpush3.msra.mxu1 %v11876_v62  ;;  %10238 = vmatprep.mubr.msk.f32.mxu1 %vm10970_vm0, %v15508_v21  ;;  %15625 = vst [vmem:[#allocation17_spill] sm:$0xff] %v13232_v9 }
 0x5a7   :  { %8944 = vmatprep.subr.mxu1 %v11882_v23 }
 0x5a8   :  { %8945 = vmatpush3.msra.mxu1 %v11888_v31 }
 0x5a9   :  { %8946 = vmatprep.subr.mxu1 %v11894_v50  ;;  %10239 = vmatmul.mubr.msk.f32.gmra.mxu1 %vm987_vm6, %v3077_v57  ;;  %v8083_v57 = vld [vmem:[%s15354_s5 + $0x50] sm:$0xff] }
 0x5aa   :  { %8947 = vmatpush3.msra.mxu1 %v11900_v13  ;;  %10241 = vmatprep.mubr.msk.f32.mxu1 %vm10970_vm0, %v15508_v21 }
 0x5ab   :  { %8948 = vmatprep.subr.mxu1 %v11906_v10  ;;  %10253 = vmatpush3.msra.mxu0 %v8083_v57 }
 0x5ac   :  { %8949 = vmatpush3.msra.mxu1 %v11912_v27  ;;  %10275 = vmatprep.subr.mxu0 %v15508_v21 }
 0x5ad   :  { %8950 = vmatprep.subr.mxu1 %v11918_v58  ;;  %10242 = vmatmul.mubr.msk.f32.gmra.mxu1 %vm987_vm6, %v3080_v6  ;;  %v8886_v6 = vpop.f32.mrf.mxu0 }
 0x5ae   :  { %8951 = vmatpush3.msra.mxu1 %v11924_v48  ;;  %10244 = vmatprep.mubr.msk.f32.mxu1 %vm10970_vm0, %v15508_v21 }
 0x5af   :  { %8952 = vmatprep.subr.mxu1 %v11930_v61 }
 0x5b0   :  { %8953 = vmatpush3.msra.mxu1 %v11939_v2 }
 0x5b1   :  { %8954 = vmatprep.subr.mxu1 %v15610_v19  ;;  %10245 = vmatmul.mubr.msk.f32.gmra.mxu1 %vm987_vm6, %v3083_v28  ;;  %v8887_v28 = vpop.f32.mrf.mxu0 }
 0x5b2   :  { %8955 = vmatpush3.msra.mxu1 %v15611_v25  ;;  %10247 = vmatprep.mubr.msk.f32.mxu1 %vm10970_vm0, %v15508_v21 }
 0x5b3   :  { %8956 = vmatprep.subr.mxu1 %v15612_v54  ;;  %v15632_v54 = vld [vmem:[#allocation18_spill] sm:$0xff] }
 0x5b4   :  { %8957 = vmatpush3.msra.mxu1 %v15613_v26 }
 0x5b5   :  { %8958 = vmatprep.subr.mxu1 %v15614_v36  ;;  %10248 = vmatmul.mubr.msk.f32.gmra.mxu1 %vm987_vm6, %v3086_v40  ;;  %v15626_v40 = vld [vmem:[#allocation14_spill] sm:$0xff] }
 0x5b6   :  { %8959 = vmatpush3.msra.mxu1 %v15616_v45  ;;  %8092 = vmatprep.mubr.msk.f32.mxu1 %vm3468_vm10, %v15617_v42  ;;  %vm3486_vm10 = vcmp.eq.s32.totalorder %v15615_v22, %v13232_v9 }
 0x5b7   :  { %8960 = vmatprep.subr.mxu1 %v15618_v1 }
 0x5b8   :  { %8961 = vmatpush3.msra.mxu1 %v15619_v5 }
 0x5b9   :  { %8962 = vmatprep.subr.mxu1 %v15620_v47  ;;  %v15628_v47 = vld [vmem:[#allocation19_spill] sm:$0xff] }
 0x5ba   :  { %8963 = vmatpush3.msra.mxu1 %v15621_v3 }
 0x5bb   :  { %8964 = vmatprep.subr.mxu1 %v15622_v43  ;;  %v8889_v43 = vpop.f32.mrf.mxu0 }
 0x5bc   :  { %8965 = vmatpush3.msra.mxu1 %v15624_v38 }
 0x5bd   :  { %8093 = vmatmul.mubr.msk.f32.vlgmr.msra.gmra.mxu1 %vm3467_vm11, %v15617_v42  ;;  %10318 = vmatprep.subr.mxu1 %v15508_v21  ;;  %vm3485_vm11 = vcmp.eq.s32.totalorder %v15623_v49, %v13232_v9  ;;  %v8890_v49 = vpop.f32.mrf.mxu0 }
 0x5be   :  { %8094 = vmatprep.mubr.msk.f32.mxu1 %vm3471_vm12, %v15617_v42  ;;  %vm3469_vm12 = vcmp.eq.s32.totalorder %v15568_v18, %v13171_v53 }
 0x5bf   :  { %v8892_v36 = vpop.f32.mrf.mxu0 }
 0x5c1   :  { %8095 = vmatmul.mubr.msk.f32.gmra.mxu1 %vm3470_vm13, %v15617_v42  ;;  %vm3472_vm13 = vcmp.eq.s32.totalorder %v15568_v18, %v13188_v44 }
 0x5c2   :  { %8096 = vmatprep.mubr.msk.f32.mxu1 %vm3474_vm14, %v15617_v42  ;;  %v3493_v53 = vsel %vm3472_vm13, 1.0, %v15508_v21  ;;  %vm3475_vm14 = vcmp.eq.s32.totalorder %v15568_v18, %v13196_v32 }
 0x5c3   :  { %v3496_v44 = vsel %vm3475_vm14, 1.0, %v15508_v21 }
 0x5c5   :  { %8097 = vmatmul.mubr.msk.f32.gmra.mxu1 %vm3473_vm15, %v15617_v42  ;;  %vm3478_vm15 = vcmp.eq.s32.totalorder %v15568_v18, %v13206_v33 }
 0x5c6   :  { %8098 = vmatprep.mubr.msk.f32.mxu1 %vm3477_vm2, %v15617_v42  ;;  %v3499_v32 = vsel %vm3478_vm15, 1.0, %v15508_v21  ;;  %vm3481_vm2 = vcmp.eq.s32.totalorder %v15568_v18, %v13215_v15 }
 0x5c7   :  { %v3502_v33 = vsel %vm3481_vm2, 1.0, %v15508_v21 }
 0x5c9   :  { %8099 = vmatmul.mubr.msk.f32.gmra.mxu1 %vm3476_vm3, %v15617_v42  ;;  %vm3484_vm3 = vcmp.eq.s32.totalorder %v15568_v18, %v13226_v46  ;;  %v15636_v46 = vld [vmem:[#allocation25_spill] sm:$0xff] }
 0x5ca   :  { %8100 = vmatprep.mubr.msk.f32.mxu1 %vm3480_vm4, %v15617_v42  ;;  %v3505_v15 = vsel %vm3484_vm3, 1.0, %v15508_v21 }
 0x5cd   :  { %8101 = vmatmul.mubr.msk.f32.gmra.mxu1 %vm3479_vm7, %v15617_v42 }
 0x5ce   :  { %8102 = vmatprep.mubr.msk.f32.mxu1 %vm3483_vm8, %v15617_v42 }
 0x5d1   :  { %8103 = vmatmul.mubr.msk.f32.gmra.mxu1 %vm3482_vm9, %v15617_v42 }
 0x5d2   :  { %8104 = vmatprep.mubr.msk.f32.mxu1 %vm3486_vm10, %v15617_v42 }
 0x5d5   :  { %8105 = vmatmul.mubr.msk.f32.gmra.mxu1 %vm3485_vm11, %v15617_v42  ;;  %v15630_v42 = vld [vmem:[#allocation3_spill] sm:$0xff] }
 0x5d6   :  { %10322 = vmatprep.mubr.msk.f32.mxu1 %vm10970_vm0, %v15508_v21 }
 0x641   :  { %v2976_v4 = vpop.f32.mrf.mxu1 }
 0x642   :  { %v13250_v11 = vadd.f32 %v2976_v4, %v15626_v40  ;;  %v8893_v40 = vpop.f32.mrf.mxu0 }
 0x643   :  { %v10188_v38 = vpop.f32.mrf.mxu1 }
 0x644   :  { %15627 = vst [vmem:[#allocation16_spill] sm:$0xff] %v13250_v11 }
 0x645   :  { %v2981_v3 = vpop.f32.mrf.mxu1 }
 0x646   :  { %v13253_v5 = vadd.f32 %v2981_v3, %v15628_v47  ;;  %v8895_v3 = vpop.f32.mrf.mxu0 }
 0x647   :  { %v10191_v57 = vpop.f32.mrf.mxu1 }
 0x648   :  { %15629 = vst [vmem:[#allocation4_spill] sm:$0xff] %v13253_v5 }
 0x649   :  { %v2986_v1 = vpop.f32.mrf.mxu1 }
 0x64a   :  { %v13256_v45 = vadd.f32 %v2986_v1, %v15630_v42  ;;  %v8896_v1 = vpop.f32.mrf.mxu0 }
 0x64b   :  { %v10194_v22 = vpop.f32.mrf.mxu1 }
 0x64c   :  { %15631 = vst [vmem:[#allocation15_spill] sm:$0xff] %v13256_v45 }
 0x64d   :  { %v2991_v26 = vpop.f32.mrf.mxu1 }
 0x64e   :  { %v13259_v25 = vadd.f32 %v2991_v26, %v15632_v54  ;;  %v8888_v26 = vadd.f32 %v8887_v28, %v8886_v6  ;;  %v8894_v6 = vadd.f32 %v8893_v40, %v8892_v36 }
 0x64f   :  { %v10197_v4 = vpop.f32.mrf.mxu1 }
 0x650   :  { %15633 = vst [vmem:[#allocation5_spill] sm:$0xff] %v13259_v25  ;;  %v8898_v4 = vpop.f32.mrf.mxu0 }
 0x651   :  { %v2996_v38 = vpop.f32.mrf.mxu1 }
 0x652   :  { %v13262_v11 = vadd.f32 %v2996_v38, %v13059_v51  ;;  %v8891_v51 = vadd.f32 %v8890_v49, %v8889_v43  ;;  %v8899_v38 = vpop.f32.mrf.mxu0 }
 0x653   :  { %v10200_v47 = vpop.f32.mrf.mxu1 }
 0x655   :  { %v3001_v57 = vpop.f32.mrf.mxu1 }
 0x656   :  { %v13265_v5 = vadd.f32 %v3001_v57, %v13062_v39 }
 0x657   :  { %v10203_v42 = vpop.f32.mrf.mxu1 }
 0x658   :  { %v8900_v42 = vadd.f32 %v8899_v38, %v8898_v4 }
 0x659   :  { %v3006_v22 = vpop.f32.mrf.mxu1 }
 0x65a   :  { %v13268_v45 = vadd.f32 %v3006_v22, %v13065_v29 }
 0x65b   :  { %v10206_v54 = vpop.f32.mrf.mxu1 }
 0x65d   :  { %v3274_v25 = vpop.f32.mrf.mxu1 }
 0x65e   :  { %v3275_v19 = vadd.f32 %v8888_v26, %v3274_v25 }
 0x65f   :  { %v10231_v9 = vpop.f32.mrf.mxu1 }
 0x660   :  { %10255 = vmatmul.mubr.msk.f32.vlgmr.msra.gmra.mxu0 %vm82_vm1, %v3275_v19  ;;  %v8901_v19 = vpop.f32.mrf.mxu0  ;;  %v8897_v9 = vadd.f32 %v8896_v1, %v8895_v3 }
 0x661   :  { %10276 = vmatpush3.msk.msra.mxu0 %vm1009_vm5, %v12004_v14  ;;  %v3279_v39 = vpop.f32.mrf.mxu1  ;;  %10257 = vmatprep.mubr.msk.f32.mxu0 %vm10970_vm0, %v15508_v21 }
 0x662   :  { %v3280_v47 = vadd.f32 %v8891_v51, %v3279_v39  ;;  %10277 = vmatprep.subr.mxu0 %v15508_v21  ;;  %v8902_v36 = vpop.f32.mrf.mxu0 }
 0x663   :  { %10278 = vmatpush3.msra.mxu0 %v15557_v7  ;;  %v10234_v29 = vpop.f32.mrf.mxu1  ;;  %v8903_v26 = vadd.f32 %v8902_v36, %v8901_v19 }
 0x664   :  { %10279 = vmatprep.subr.mxu0 %v15508_v21  ;;  %10258 = vmatmul.mubr.msk.f32.gmra.mxu0 %vm82_vm1, %v3280_v47  ;;  %v8904_v3 = vpop.f32.mrf.mxu0 }
 0x665   :  { %10280 = vmatpush3.msra.mxu0 %v15558_v41  ;;  %v3284_v25 = vpop.f32.mrf.mxu1  ;;  %10260 = vmatprep.mubr.msk.f32.mxu0 %vm10970_vm0, %v15508_v21 }
 0x666   :  { %v3285_v43 = vadd.f32 %v8894_v6, %v3284_v25  ;;  %10281 = vmatprep.subr.mxu0 %v15508_v21  ;;  %v8905_v4 = vpop.f32.mrf.mxu0  ;;  %v3490_v25 = vsel %vm3469_vm12, 1.0, %v15508_v21 }
 0x667   :  { %10282 = vmatpush3.msra.mxu0 %v15559_v59  ;;  %v10237_v49 = vpop.f32.mrf.mxu1  ;;  %v8906_v47 = vadd.f32 %v8905_v4, %v8904_v3  ;;  %v15641_v3 = vld [vmem:[#allocation29_spill] sm:$0xff] }
 0x668   :  { %10283 = vmatprep.subr.mxu0 %v15508_v21  ;;  %10261 = vmatmul.mubr.msk.f32.gmra.mxu0 %vm82_vm1, %v3285_v43  ;;  %v15634_v43 = vld [vmem:[#allocation17_spill] sm:$0xff]  ;;  %v15635_v49 = vld [vmem:[#allocation24_spill] sm:$0xff] }
 0x669   :  { %10284 = vmatpush3.msra.mxu0 %v15560_v60  ;;  %v3289_v28 = vpop.f32.mrf.mxu1  ;;  %10263 = vmatprep.mubr.msk.f32.mxu0 %vm10970_vm0, %v15508_v21  ;;  %vm3487_vm4 = vcmp.eq.s32.totalorder %v15568_v18, %v15634_v43  ;;  %v15646_v4 = vld [vmem:[#allocation33_spill] sm:$0xff] }
 0x66a   :  { %v3290_v40 = vadd.f32 %v8897_v9, %v3289_v28  ;;  %10285 = vmatprep.subr.mxu0 %v15508_v21  ;;  %v15637_v9 = vld [vmem:[#allocation26_spill] sm:$0xff]  ;;  %v3508_v36 = vsel %vm3487_vm4, 1.0, %v15508_v21  ;;  %v13375_v28 = vpop.permute.xlu1 %3869 }
 0x66b   :  { %10286 = vmatpush3.msra.mxu0 %v15561_v37  ;;  %v10240_v57 = vpop.f32.mrf.mxu1 }
 0x66c   :  { %10287 = vmatprep.subr.mxu0 %v15508_v21  ;;  %10264 = vmatmul.mubr.msk.f32.gmra.mxu0 %vm82_vm1, %v3290_v40  ;;  %v15638_v40 = vld [vmem:[#allocation27_spill] sm:$0xff]  ;;  %v15639_v57 = vld [vmem:[#allocation28_spill] sm:$0xff] }
 0x66d   :  { %10288 = vmatpush3.msra.mxu0 %v15562_v8  ;;  %v3294_v1 = vpop.f32.mrf.mxu1  ;;  %10266 = vmatprep.mubr.msk.f32.mxu0 %vm10970_vm0, %v15508_v21 }
 0x66e   :  { %v3295_v22 = vadd.f32 %v8900_v42, %v3294_v1  ;;  %10289 = vmatprep.subr.mxu0 %v15508_v21  ;;  %v15640_v42 = vld [vmem:[#allocation21_spill] sm:$0xff]  ;;  %v15642_v1 = vmov 1.0  }
 0x66f   :  { %10290 = vmatpush3.msra.mxu0 %v15563_v24  ;;  %v10243_v54 = vpop.f32.mrf.mxu1  ;;  %vm3890_vm7 = vcmp.eq.s32.totalorder %v15640_v42, %v13375_v28 }
 0x670   :  { %10291 = vmatprep.subr.mxu0 %v15508_v21  ;;  %10267 = vmatmul.mubr.msk.f32.gmra.mxu0 %vm82_vm1, %v3295_v22  ;;  %v15643_v22 = vld [vmem:[#allocation30_spill] sm:$0xff]  ;;  %v15644_v54 = vld [vmem:[#allocation31_spill] sm:$0xff] }
 0x671   :  { %10292 = vmatpush3.msra.mxu0 %v15564_v35  ;;  %v3299_v51 = vpop.f32.mrf.mxu1  ;;  %10269 = vmatprep.mubr.msk.f32.mxu0 %vm10970_vm0, %v15508_v21 }
 0x672   :  { %v3300_v38 = vadd.f32 %v8903_v26, %v3299_v51  ;;  %10293 = vmatprep.subr.mxu0 %v15508_v21  ;;  %v15645_v26 = vld [vmem:[#allocation32_spill] sm:$0xff]  ;;  %v15647_v51 = vld [vmem:[#allocation34_spill] sm:$0xff] }
 0x673   :  { %10294 = vmatpush3.msra.mxu0 %v15565_v16  ;;  %v10246_v39 = vpop.f32.mrf.mxu1 }
 0x674   :  { %10295 = vmatprep.subr.mxu0 %v15508_v21  ;;  %10270 = vmatmul.mubr.msk.f32.gmra.mxu0 %vm82_vm1, %v3300_v38  ;;  %v13389_v38 = vpop.permute.xlu0 %3872  ;;  %v15648_v39 = vld [vmem:[#allocation20_spill] sm:$0xff] }
 0x675   :  { %10296 = vmatpush3.msra.mxu0 %v15566_v30  ;;  %v3304_v29 = vpop.f32.mrf.mxu1  ;;  %10272 = vmatprep.mubr.msk.f32.mxu0 %vm10970_vm0, %v15508_v21  ;;  %vm3889_vm8 = vcmp.eq.s32.totalorder %v15648_v39, %v13375_v28  ;;  %vm3893_vm9 = vcmp.eq.s32.totalorder %v15640_v42, %v13389_v38  ;;  %vm3892_vm10 = vcmp.eq.s32.totalorder %v15648_v39, %v13389_v38 }
 0x676   :  { %v3305_v6 = vadd.f32 %v8906_v47, %v3304_v29  ;;  %9014 = vmatprep.subr.mxu0 %v15567_v34  ;;  %v15649_v47 = vld [vmem:[#allocation35_spill] sm:$0xff]  ;;  %v13401_v29 = vpop.permute.xlu1 %3875 }
 0x677   :  { %v10249_v19 = vpop.f32.mrf.mxu1  ;;  %vm3896_vm11 = vcmp.eq.s32.totalorder %v15640_v42, %v13401_v29  ;;  %vm3895_vm12 = vcmp.eq.s32.totalorder %v15648_v39, %v13401_v29 }
 0x678   :  { %10273 = vmatmul.mubr.msk.f32.gmra.mxu0 %vm82_vm1, %v3305_v6  ;;  %v13407_v6 = vpop.permute.xlu0 %3878  ;;  %v8115_v19 = vld [vmem:[%s15354_s5 + $0x68] sm:$0xff] }
 0x679   :  { %10297 = vmatprep.mubr.msk.f32.mxu0 %vm10970_vm0, %v15508_v21  ;;  %vm3899_vm13 = vcmp.eq.s32.totalorder %v15640_v42, %v13407_v6  ;;  %10319 = vmatpush3.msra.mxu1 %v8115_v19  ;;  %vm3898_vm14 = vcmp.eq.s32.totalorder %v15648_v39, %v13407_v6 }
 0x67a   :  { %10320 = vmatprep.subr.mxu1 %v15508_v21 }
 0x67c   :  { %10298 = vmatmul.mubr.msk.f32.vlgmr.msra.gmra.mxu0 %vm987_vm6, %v3490_v25  ;;  %v13420_v25 = vpop.permute.xlu1 %3881 }
 0x67d   :  { %9015 = vmatpush3.msra.mxu0 %v11821_v12  ;;  %10300 = vmatprep.mubr.msk.f32.mxu0 %vm10970_vm0, %v15508_v21  ;;  %vm3902_vm15 = vcmp.eq.s32.totalorder %v15640_v42, %v13420_v25  ;;  %vm3901_vm2 = vcmp.eq.s32.totalorder %v15648_v39, %v13420_v25 }
 0x67e   :  { %9016 = vmatprep.subr.mxu0 %v11834_v63 }
 0x67f   :  { %9017 = vmatpush3.msra.mxu0 %v11840_v20 }
 0x680   :  { %9018 = vmatprep.subr.mxu0 %v11846_v55  ;;  %10301 = vmatmul.mubr.msk.f32.gmra.mxu0 %vm987_vm6, %v3493_v53  ;;  %v13427_v53 = vpop.permute.xlu0 %3884 }
 0x681   :  { %9019 = vmatpush3.msra.mxu0 %v11852_v56  ;;  %10303 = vmatprep.mubr.msk.f32.mxu0 %vm10970_vm0, %v15508_v21  ;;  %vm3905_vm3 = vcmp.eq.s32.totalorder %v15640_v42, %v13427_v53  ;;  %vm3904_vm4 = vcmp.eq.s32.totalorder %v15648_v39, %v13427_v53 }
 0x682   :  { %9020 = vmatprep.subr.mxu0 %v11858_v17 }
 0x683   :  { %9021 = vmatpush3.msra.mxu0 %v11864_v52 }
 0x684   :  { %9022 = vmatprep.subr.mxu0 %v11870_v0  ;;  %10304 = vmatmul.mubr.msk.f32.gmra.mxu0 %vm987_vm6, %v3496_v44  ;;  %v13437_v44 = vpop.permute.xlu1 %3887 }
 0x685   :  { %9023 = vmatpush3.msra.mxu0 %v11876_v62  ;;  %10306 = vmatprep.mubr.msk.f32.mxu0 %vm10970_vm0, %v15508_v21  ;;  %15650 = vst [vmem:[#allocation6_spill] sm:$0xff] %v13437_v44 }
 0x686   :  { %9024 = vmatprep.subr.mxu0 %v11882_v23 }
 0x687   :  { %9025 = vmatpush3.msra.mxu0 %v11888_v31 }
 0x688   :  { %9026 = vmatprep.subr.mxu0 %v11894_v50  ;;  %10307 = vmatmul.mubr.msk.f32.gmra.mxu0 %vm987_vm6, %v3499_v32  ;;  %v8114_v32 = vld [vmem:[%s15354_s5 + $0x60] sm:$0xff] }
 0x689   :  { %9027 = vmatpush3.msra.mxu0 %v11900_v13  ;;  %10309 = vmatprep.mubr.msk.f32.mxu0 %vm10970_vm0, %v15508_v21 }
 0x68a   :  { %9028 = vmatprep.subr.mxu0 %v11906_v10  ;;  %10321 = vmatpush3.msra.mxu1 %v8114_v32 }
 0x68b   :  { %9029 = vmatpush3.msra.mxu0 %v11912_v27  ;;  %10343 = vmatprep.subr.mxu1 %v15508_v21 }
 0x68c   :  { %9030 = vmatprep.subr.mxu0 %v11918_v58  ;;  %10310 = vmatmul.mubr.msk.f32.gmra.mxu0 %vm987_vm6, %v3502_v33  ;;  %v8966_v33 = vpop.f32.mrf.mxu1 }
 0x68d   :  { %9031 = vmatpush3.msra.mxu0 %v11924_v48  ;;  %10312 = vmatprep.mubr.msk.f32.mxu0 %vm10970_vm0, %v15508_v21 }
 0x68e   :  { %9032 = vmatprep.subr.mxu0 %v11930_v61 }
 0x68f   :  { %9033 = vmatpush3.msra.mxu0 %v11939_v2 }
 0x690   :  { %9034 = vmatprep.subr.mxu0 %v15635_v49  ;;  %10313 = vmatmul.mubr.msk.f32.gmra.mxu0 %vm987_vm6, %v3505_v15  ;;  %v8967_v15 = vpop.f32.mrf.mxu1 }
 0x691   :  { %9035 = vmatpush3.msra.mxu0 %v15636_v46  ;;  %10315 = vmatprep.mubr.msk.f32.mxu0 %vm10970_vm0, %v15508_v21 }
 0x692   :  { %9036 = vmatprep.subr.mxu0 %v15637_v9  ;;  %v15657_v9 = vld [vmem:[#allocation5_spill] sm:$0xff] }
 0x693   :  { %9037 = vmatpush3.msra.mxu0 %v15638_v40 }
 0x694   :  { %9038 = vmatprep.subr.mxu0 %v15639_v57  ;;  %10316 = vmatmul.mubr.msk.f32.gmra.mxu0 %vm987_vm6, %v3508_v36  ;;  %v15651_v36 = vld [vmem:[#allocation16_spill] sm:$0xff] }
 0x695   :  { %9039 = vmatpush3.msra.mxu0 %v15641_v3  ;;  %8123 = vmatprep.mubr.msk.f32.mxu0 %vm3890_vm7, %v15642_v1  ;;  %vm3908_vm7 = vcmp.eq.s32.totalorder %v15640_v42, %v13437_v44 }
 0x696   :  { %9040 = vmatprep.subr.mxu0 %v15643_v22 }
 0x697   :  { %9041 = vmatpush3.msra.mxu0 %v15644_v54 }
 0x698   :  { %9042 = vmatprep.subr.mxu0 %v15645_v26  ;;  %v15653_v26 = vld [vmem:[#allocation4_spill] sm:$0xff] }
 0x699   :  { %9043 = vmatpush3.msra.mxu0 %v15646_v4 }
 0x69a   :  { %9044 = vmatprep.subr.mxu0 %v15647_v51  ;;  %v8969_v51 = vpop.f32.mrf.mxu1 }
 0x69b   :  { %9045 = vmatpush3.msra.mxu0 %v15649_v47 }
 0x69c   :  { %8124 = vmatmul.mubr.msk.f32.vlgmr.msra.gmra.mxu0 %vm3889_vm8, %v15642_v1  ;;  %10386 = vmatprep.subr.mxu0 %v15508_v21  ;;  %vm3907_vm8 = vcmp.eq.s32.totalorder %v15648_v39, %v13437_v44  ;;  %v8970_v39 = vpop.f32.mrf.mxu1 }
 0x69d   :  { %8125 = vmatprep.mubr.msk.f32.mxu0 %vm3893_vm9, %v15642_v1  ;;  %vm3891_vm9 = vcmp.eq.s32.totalorder %v15568_v18, %v13375_v28 }
 0x69e   :  { %v8972_v57 = vpop.f32.mrf.mxu1 }
 0x6a0   :  { %8126 = vmatmul.mubr.msk.f32.gmra.mxu0 %vm3892_vm10, %v15642_v1  ;;  %vm3894_vm10 = vcmp.eq.s32.totalorder %v15568_v18, %v13389_v38 }
 0x6a1   :  { %8127 = vmatprep.mubr.msk.f32.mxu0 %vm3896_vm11, %v15642_v1  ;;  %v3915_v28 = vsel %vm3894_vm10, 1.0, %v15508_v21  ;;  %vm3897_vm11 = vcmp.eq.s32.totalorder %v15568_v18, %v13401_v29 }
 0x6a2   :  { %v3918_v38 = vsel %vm3897_vm11, 1.0, %v15508_v21 }
 0x6a4   :  { %8128 = vmatmul.mubr.msk.f32.gmra.mxu0 %vm3895_vm12, %v15642_v1  ;;  %vm3900_vm12 = vcmp.eq.s32.totalorder %v15568_v18, %v13407_v6 }
 0x6a5   :  { %8129 = vmatprep.mubr.msk.f32.mxu0 %vm3899_vm13, %v15642_v1  ;;  %v3921_v29 = vsel %vm3900_vm12, 1.0, %v15508_v21  ;;  %vm3903_vm13 = vcmp.eq.s32.totalorder %v15568_v18, %v13420_v25 }
 0x6a6   :  { %v3924_v6 = vsel %vm3903_vm13, 1.0, %v15508_v21 }
 0x6a8   :  { %8130 = vmatmul.mubr.msk.f32.gmra.mxu0 %vm3898_vm14, %v15642_v1  ;;  %vm3906_vm14 = vcmp.eq.s32.totalorder %v15568_v18, %v13427_v53  ;;  %v15661_v53 = vld [vmem:[#allocation25_spill] sm:$0xff] }
 0x6a9   :  { %8131 = vmatprep.mubr.msk.f32.mxu0 %vm3902_vm15, %v15642_v1  ;;  %v3927_v25 = vsel %vm3906_vm14, 1.0, %v15508_v21 }
 0x6ac   :  { %8132 = vmatmul.mubr.msk.f32.gmra.mxu0 %vm3901_vm2, %v15642_v1 }
 0x6ad   :  { %8133 = vmatprep.mubr.msk.f32.mxu0 %vm3905_vm3, %v15642_v1 }
 0x6b0   :  { %8134 = vmatmul.mubr.msk.f32.gmra.mxu0 %vm3904_vm4, %v15642_v1 }
 0x6b1   :  { %8135 = vmatprep.mubr.msk.f32.mxu0 %vm3908_vm7, %v15642_v1 }
 0x6b4   :  { %8136 = vmatmul.mubr.msk.f32.gmra.mxu0 %vm3907_vm8, %v15642_v1  ;;  %v15655_v1 = vld [vmem:[#allocation15_spill] sm:$0xff] }
 0x6b5   :  { %10390 = vmatprep.mubr.msk.f32.mxu0 %vm10970_vm0, %v15508_v21 }
 0x720   :  { %v3398_v43 = vpop.f32.mrf.mxu0 }
 0x721   :  { %v13453_v19 = vadd.f32 %v3398_v43, %v15651_v36  ;;  %v8973_v36 = vpop.f32.mrf.mxu1 }
 0x722   :  { %v10256_v47 = vpop.f32.mrf.mxu0 }
 0x723   :  { %15652 = vst [vmem:[#allocation36_spill] sm:$0xff] %v13453_v19 }
 0x724   :  { %v3403_v4 = vpop.f32.mrf.mxu0 }
 0x725   :  { %v13456_v54 = vadd.f32 %v3403_v4, %v15653_v26  ;;  %v8975_v4 = vpop.f32.mrf.mxu1 }
 0x726   :  { %v10259_v32 = vpop.f32.mrf.mxu0 }
 0x727   :  { %15654 = vst [vmem:[#allocation23_spill] sm:$0xff] %v13456_v54 }
 0x728   :  { %v3408_v22 = vpop.f32.mrf.mxu0 }
 0x729   :  { %v13459_v3 = vadd.f32 %v3408_v22, %v15655_v1  ;;  %v8976_v22 = vpop.f32.mrf.mxu1 }
 0x72a   :  { %v10262_v42 = vpop.f32.mrf.mxu0 }
 0x72b   :  { %15656 = vst [vmem:[#allocation37_spill] sm:$0xff] %v13459_v3 }
 0x72c   :  { %v3413_v40 = vpop.f32.mrf.mxu0 }
 0x72d   :  { %v13462_v46 = vadd.f32 %v3413_v40, %v15657_v9  ;;  %v8968_v40 = vadd.f32 %v8967_v15, %v8966_v33  ;;  %v8974_v33 = vadd.f32 %v8973_v36, %v8972_v57 }
 0x72e   :  { %v10265_v43 = vpop.f32.mrf.mxu0 }
 0x72f   :  { %15658 = vst [vmem:[#allocation7_spill] sm:$0xff] %v13462_v46  ;;  %v8978_v43 = vpop.f32.mrf.mxu1 }
 0x730   :  { %v3418_v47 = vpop.f32.mrf.mxu0 }
 0x731   :  { %v13465_v19 = vadd.f32 %v3418_v47, %v13262_v11  ;;  %v8971_v11 = vadd.f32 %v8970_v39, %v8969_v51  ;;  %v8979_v47 = vpop.f32.mrf.mxu1 }
 0x732   :  { %v10268_v26 = vpop.f32.mrf.mxu0 }
 0x734   :  { %v3423_v32 = vpop.f32.mrf.mxu0 }
 0x735   :  { %v13468_v54 = vadd.f32 %v3423_v32, %v13265_v5 }
 0x736   :  { %v10271_v1 = vpop.f32.mrf.mxu0 }
 0x737   :  { %v8980_v1 = vadd.f32 %v8979_v47, %v8978_v43 }
 0x738   :  { %v3428_v42 = vpop.f32.mrf.mxu0 }
 0x739   :  { %v13471_v3 = vadd.f32 %v3428_v42, %v13268_v45 }
 0x73a   :  { %v10274_v9 = vpop.f32.mrf.mxu0 }
 0x73c   :  { %v3696_v46 = vpop.f32.mrf.mxu0 }
 0x73d   :  { %v3697_v49 = vadd.f32 %v8968_v40, %v3696_v46 }
 0x73e   :  { %v10299_v44 = vpop.f32.mrf.mxu0 }
 0x73f   :  { %10323 = vmatmul.mubr.msk.f32.vlgmr.msra.gmra.mxu1 %vm82_vm1, %v3697_v49  ;;  %v8981_v49 = vpop.f32.mrf.mxu1  ;;  %v8977_v44 = vadd.f32 %v8976_v22, %v8975_v4 }
 0x740   :  { %10344 = vmatpush3.msk.msra.mxu1 %vm1009_vm5, %v12004_v14  ;;  %v3701_v5 = vpop.f32.mrf.mxu0  ;;  %10325 = vmatprep.mubr.msk.f32.mxu1 %vm10970_vm0, %v15508_v21 }
 0x741   :  { %v3702_v26 = vadd.f32 %v8971_v11, %v3701_v5  ;;  %10345 = vmatprep.subr.mxu1 %v15508_v21  ;;  %v8982_v57 = vpop.f32.mrf.mxu1 }
 0x742   :  { %10346 = vmatpush3.msra.mxu1 %v15557_v7  ;;  %v10302_v45 = vpop.f32.mrf.mxu0  ;;  %v8983_v40 = vadd.f32 %v8982_v57, %v8981_v49  ;;  %v13577_v57 = vpop.permute.xlu0 %4291 }
 0x743   :  { %10347 = vmatprep.subr.mxu1 %v15508_v21  ;;  %10326 = vmatmul.mubr.msk.f32.gmra.mxu1 %vm82_vm1, %v3702_v26  ;;  %v8984_v4 = vpop.f32.mrf.mxu1 }
 0x744   :  { %10348 = vmatpush3.msra.mxu1 %v15558_v41  ;;  %v3706_v46 = vpop.f32.mrf.mxu0  ;;  %10328 = vmatprep.mubr.msk.f32.mxu1 %vm10970_vm0, %v15508_v21 }
 0x745   :  { %v3707_v51 = vadd.f32 %v8974_v33, %v3706_v46  ;;  %10349 = vmatprep.subr.mxu1 %v15508_v21  ;;  %v8985_v43 = vpop.f32.mrf.mxu1  ;;  %v3912_v46 = vsel %vm3891_vm9, 1.0, %v15508_v21 }
 0x746   :  { %10350 = vmatpush3.msra.mxu1 %v15559_v59  ;;  %v10305_v39 = vpop.f32.mrf.mxu0  ;;  %v8986_v26 = vadd.f32 %v8985_v43, %v8984_v4  ;;  %v15666_v4 = vld [vmem:[#allocation29_spill] sm:$0xff] }
 0x747   :  { %10351 = vmatprep.subr.mxu1 %v15508_v21  ;;  %10329 = vmatmul.mubr.msk.f32.gmra.mxu1 %vm82_vm1, %v3707_v51  ;;  %v15659_v51 = vld [vmem:[#allocation6_spill] sm:$0xff]  ;;  %v15660_v39 = vld [vmem:[#allocation24_spill] sm:$0xff]  ;;  %v15671_v43 = vld [vmem:[#allocation33_spill] sm:$0xff] }
 0x748   :  { %10352 = vmatpush3.msra.mxu1 %v15560_v60  ;;  %v3711_v15 = vpop.f32.mrf.mxu0  ;;  %10331 = vmatprep.mubr.msk.f32.mxu1 %vm10970_vm0, %v15508_v21  ;;  %vm3909_vm15 = vcmp.eq.s32.totalorder %v15568_v18, %v15659_v51 }
 0x749   :  { %v3712_v36 = vadd.f32 %v8977_v44, %v3711_v15  ;;  %10353 = vmatprep.subr.mxu1 %v15508_v21  ;;  %v15662_v44 = vld [vmem:[#allocation26_spill] sm:$0xff]  ;;  %v3930_v15 = vsel %vm3909_vm15, 1.0, %v15508_v21 }
 0x74a   :  { %10354 = vmatpush3.msra.mxu1 %v15561_v37  ;;  %v10308_v32 = vpop.f32.mrf.mxu0 }
 0x74b   :  { %10355 = vmatprep.subr.mxu1 %v15508_v21  ;;  %10332 = vmatmul.mubr.msk.f32.gmra.mxu1 %vm82_vm1, %v3712_v36  ;;  %v15663_v36 = vld [vmem:[#allocation27_spill] sm:$0xff]  ;;  %v15664_v32 = vld [vmem:[#allocation28_spill] sm:$0xff] }
 0x74c   :  { %10356 = vmatpush3.msra.mxu1 %v15562_v8  ;;  %v3716_v22 = vpop.f32.mrf.mxu0  ;;  %10334 = vmatprep.mubr.msk.f32.mxu1 %vm10970_vm0, %v15508_v21 }
 0x74d   :  { %v3717_v42 = vadd.f32 %v8980_v1, %v3716_v22  ;;  %10357 = vmatprep.subr.mxu1 %v15508_v21  ;;  %v15665_v1 = vld [vmem:[#allocation21_spill] sm:$0xff]  ;;  %v15667_v22 = vmov 1.0  }
 0x74e   :  { %10358 = vmatpush3.msra.mxu1 %v15563_v24  ;;  %v10311_v9 = vpop.f32.mrf.mxu0  ;;  %vm4312_vm2 = vcmp.eq.s32.totalorder %v15665_v1, %v13577_v57 }
 0x74f   :  { %10359 = vmatprep.subr.mxu1 %v15508_v21  ;;  %10335 = vmatmul.mubr.msk.f32.gmra.mxu1 %vm82_vm1, %v3717_v42  ;;  %v15668_v42 = vld [vmem:[#allocation30_spill] sm:$0xff]  ;;  %v15669_v9 = vld [vmem:[#allocation31_spill] sm:$0xff] }
 0x750   :  { %10360 = vmatpush3.msra.mxu1 %v15564_v35  ;;  %v3721_v11 = vpop.f32.mrf.mxu0  ;;  %10337 = vmatprep.mubr.msk.f32.mxu1 %vm10970_vm0, %v15508_v21 }
 0x751   :  { %v3722_v47 = vadd.f32 %v8983_v40, %v3721_v11  ;;  %10361 = vmatprep.subr.mxu1 %v15508_v21  ;;  %v15670_v40 = vld [vmem:[#allocation32_spill] sm:$0xff]  ;;  %v15672_v11 = vld [vmem:[#allocation34_spill] sm:$0xff] }
 0x752   :  { %10362 = vmatpush3.msra.mxu1 %v15565_v16  ;;  %v10314_v5 = vpop.f32.mrf.mxu0 }
 0x753   :  { %10363 = vmatprep.subr.mxu1 %v15508_v21  ;;  %10338 = vmatmul.mubr.msk.f32.gmra.mxu1 %vm82_vm1, %v3722_v47  ;;  %v15673_v47 = vld [vmem:[#allocation20_spill] sm:$0xff]  ;;  %v13594_v5 = vpop.permute.xlu1 %4294 }
 0x754   :  { %10364 = vmatpush3.msra.mxu1 %v15566_v30  ;;  %v3726_v45 = vpop.f32.mrf.mxu0  ;;  %10340 = vmatprep.mubr.msk.f32.mxu1 %vm10970_vm0, %v15508_v21  ;;  %vm4311_vm3 = vcmp.eq.s32.totalorder %v15673_v47, %v13577_v57  ;;  %vm4315_vm4 = vcmp.eq.s32.totalorder %v15665_v1, %v13594_v5  ;;  %vm4314_vm7 = vcmp.eq.s32.totalorder %v15673_v47, %v13594_v5 }
 0x755   :  { %v3727_v33 = vadd.f32 %v8986_v26, %v3726_v45  ;;  %9094 = vmatprep.subr.mxu1 %v15567_v34  ;;  %v15674_v26 = vld [vmem:[#allocation35_spill] sm:$0xff]  ;;  %v13602_v45 = vpop.permute.xlu0 %4297 }
 0x756   :  { %v10317_v49 = vpop.f32.mrf.mxu0  ;;  %vm4318_vm8 = vcmp.eq.s32.totalorder %v15665_v1, %v13602_v45  ;;  %vm4317_vm9 = vcmp.eq.s32.totalorder %v15673_v47, %v13602_v45 }
 0x757   :  { %10341 = vmatmul.mubr.msk.f32.gmra.mxu1 %vm82_vm1, %v3727_v33  ;;  %v13612_v33 = vpop.permute.xlu1 %4300  ;;  %v8146_v49 = vld [vmem:[%s15354_s5 + $0x78] sm:$0xff] }
 0x758   :  { %10365 = vmatprep.mubr.msk.f32.mxu1 %vm10970_vm0, %v15508_v21  ;;  %vm4321_vm10 = vcmp.eq.s32.totalorder %v15665_v1, %v13612_v33  ;;  %10387 = vmatpush3.msra.mxu0 %v8146_v49  ;;  %vm4320_vm11 = vcmp.eq.s32.totalorder %v15673_v47, %v13612_v33 }
 0x759   :  { %10388 = vmatprep.subr.mxu0 %v15508_v21 }
 0x75b   :  { %10366 = vmatmul.mubr.msk.f32.vlgmr.msra.gmra.mxu1 %vm987_vm6, %v3912_v46  ;;  %v13621_v46 = vpop.permute.xlu0 %4303 }
 0x75c   :  { %9095 = vmatpush3.msra.mxu1 %v11821_v12  ;;  %10368 = vmatprep.mubr.msk.f32.mxu1 %vm10970_vm0, %v15508_v21  ;;  %vm4324_vm12 = vcmp.eq.s32.totalorder %v15665_v1, %v13621_v46  ;;  %vm4323_vm13 = vcmp.eq.s32.totalorder %v15673_v47, %v13621_v46 }
 0x75d   :  { %9096 = vmatprep.subr.mxu1 %v11834_v63 }
 0x75e   :  { %9097 = vmatpush3.msra.mxu1 %v11840_v20 }
 0x75f   :  { %9098 = vmatprep.subr.mxu1 %v11846_v55  ;;  %10369 = vmatmul.mubr.msk.f32.gmra.mxu1 %vm987_vm6, %v3915_v28  ;;  %v13632_v28 = vpop.permute.xlu1 %4306 }
 0x760   :  { %9099 = vmatpush3.msra.mxu1 %v11852_v56  ;;  %10371 = vmatprep.mubr.msk.f32.mxu1 %vm10970_vm0, %v15508_v21  ;;  %vm4327_vm14 = vcmp.eq.s32.totalorder %v15665_v1, %v13632_v28  ;;  %vm4326_vm15 = vcmp.eq.s32.totalorder %v15673_v47, %v13632_v28 }
 0x761   :  { %9100 = vmatprep.subr.mxu1 %v11858_v17 }
 0x762   :  { %9101 = vmatpush3.msra.mxu1 %v11864_v52 }
 0x763   :  { %9102 = vmatprep.subr.mxu1 %v11870_v0  ;;  %10372 = vmatmul.mubr.msk.f32.gmra.mxu1 %vm987_vm6, %v3918_v38  ;;  %v13638_v38 = vpop.permute.xlu0 %4309 }
 0x764   :  { %9103 = vmatpush3.msra.mxu1 %v11876_v62  ;;  %10374 = vmatprep.mubr.msk.f32.mxu1 %vm10970_vm0, %v15508_v21  ;;  %15675 = vst [vmem:[#allocation8_spill] sm:$0xff] %v13638_v38 }
 0x765   :  { %9104 = vmatprep.subr.mxu1 %v11882_v23 }
 0x766   :  { %9105 = vmatpush3.msra.mxu1 %v11888_v31 }
 0x767   :  { %9106 = vmatprep.subr.mxu1 %v11894_v50  ;;  %10375 = vmatmul.mubr.msk.f32.gmra.mxu1 %vm987_vm6, %v3921_v29  ;;  %v8145_v29 = vld [vmem:[%s15354_s5 + $0x70] sm:$0xff] }
 0x768   :  { %9107 = vmatpush3.msra.mxu1 %v11900_v13  ;;  %10377 = vmatprep.mubr.msk.f32.mxu1 %vm10970_vm0, %v15508_v21 }
 0x769   :  { %9108 = vmatprep.subr.mxu1 %v11906_v10  ;;  %10389 = vmatpush3.msra.mxu0 %v8145_v29 }
 0x76a   :  { %9109 = vmatpush3.msra.mxu1 %v11912_v27  ;;  %10411 = vmatprep.subr.mxu0 %v15508_v21 }
 0x76b   :  { %9110 = vmatprep.subr.mxu1 %v11918_v58  ;;  %10378 = vmatmul.mubr.msk.f32.gmra.mxu1 %vm987_vm6, %v3924_v6  ;;  %v9046_v6 = vpop.f32.mrf.mxu0 }
 0x76c   :  { %9111 = vmatpush3.msra.mxu1 %v11924_v48  ;;  %10380 = vmatprep.mubr.msk.f32.mxu1 %vm10970_vm0, %v15508_v21 }
 0x76d   :  { %9112 = vmatprep.subr.mxu1 %v11930_v61 }
 0x76e   :  { %9113 = vmatpush3.msra.mxu1 %v11939_v2 }
 0x76f   :  { %9114 = vmatprep.subr.mxu1 %v15660_v39  ;;  %10381 = vmatmul.mubr.msk.f32.gmra.mxu1 %vm987_vm6, %v3927_v25  ;;  %v9047_v25 = vpop.f32.mrf.mxu0 }
 0x770   :  { %9115 = vmatpush3.msra.mxu1 %v15661_v53  ;;  %10383 = vmatprep.mubr.msk.f32.mxu1 %vm10970_vm0, %v15508_v21 }
 0x771   :  { %9116 = vmatprep.subr.mxu1 %v15662_v44  ;;  %v15682_v44 = vld [vmem:[#allocation7_spill] sm:$0xff] }
 0x772   :  { %9117 = vmatpush3.msra.mxu1 %v15663_v36 }
 0x773   :  { %9118 = vmatprep.subr.mxu1 %v15664_v32  ;;  %10384 = vmatmul.mubr.msk.f32.gmra.mxu1 %vm987_vm6, %v3930_v15  ;;  %v15676_v15 = vld [vmem:[#allocation36_spill] sm:$0xff] }
 0x774   :  { %9119 = vmatpush3.msra.mxu1 %v15666_v4  ;;  %8154 = vmatprep.mubr.msk.f32.mxu1 %vm4312_vm2, %v15667_v22  ;;  %vm4330_vm2 = vcmp.eq.s32.totalorder %v15665_v1, %v13638_v38 }
 0x775   :  { %9120 = vmatprep.subr.mxu1 %v15668_v42 }
 0x776   :  { %9121 = vmatpush3.msra.mxu1 %v15669_v9 }
 0x777   :  { %9122 = vmatprep.subr.mxu1 %v15670_v40  ;;  %v15678_v40 = vld [vmem:[#allocation23_spill] sm:$0xff] }
 0x778   :  { %9123 = vmatpush3.msra.mxu1 %v15671_v43 }
 0x779   :  { %9124 = vmatprep.subr.mxu1 %v15672_v11  ;;  %v9049_v11 = vpop.f32.mrf.mxu0 }
 0x77a   :  { %9125 = vmatpush3.msra.mxu1 %v15674_v26 }
 0x77b   :  { %8155 = vmatmul.mubr.msk.f32.vlgmr.msra.gmra.mxu1 %vm4311_vm3, %v15667_v22  ;;  %10454 = vmatprep.subr.mxu1 %v15508_v21  ;;  %vm4329_vm3 = vcmp.eq.s32.totalorder %v15673_v47, %v13638_v38  ;;  %v9050_v47 = vpop.f32.mrf.mxu0 }
 0x77c   :  { %8156 = vmatprep.mubr.msk.f32.mxu1 %vm4315_vm4, %v15667_v22  ;;  %vm4313_vm4 = vcmp.eq.s32.totalorder %v15568_v18, %v13577_v57 }
 0x77d   :  { %v9052_v32 = vpop.f32.mrf.mxu0 }
 0x77f   :  { %8157 = vmatmul.mubr.msk.f32.gmra.mxu1 %vm4314_vm7, %v15667_v22  ;;  %vm4316_vm7 = vcmp.eq.s32.totalorder %v15568_v18, %v13594_v5 }
 0x780   :  { %8158 = vmatprep.mubr.msk.f32.mxu1 %vm4318_vm8, %v15667_v22  ;;  %v4337_v57 = vsel %vm4316_vm7, 1.0, %v15508_v21  ;;  %vm4319_vm8 = vcmp.eq.s32.totalorder %v15568_v18, %v13602_v45 }
 0x781   :  { %v4340_v5 = vsel %vm4319_vm8, 1.0, %v15508_v21 }
 0x783   :  { %8159 = vmatmul.mubr.msk.f32.gmra.mxu1 %vm4317_vm9, %v15667_v22  ;;  %vm4322_vm9 = vcmp.eq.s32.totalorder %v15568_v18, %v13612_v33 }
 0x784   :  { %8160 = vmatprep.mubr.msk.f32.mxu1 %vm4321_vm10, %v15667_v22  ;;  %v4343_v45 = vsel %vm4322_vm9, 1.0, %v15508_v21  ;;  %vm4325_vm10 = vcmp.eq.s32.totalorder %v15568_v18, %v13621_v46 }
 0x785   :  { %v4346_v33 = vsel %vm4325_vm10, 1.0, %v15508_v21 }
 0x787   :  { %8161 = vmatmul.mubr.msk.f32.gmra.mxu1 %vm4320_vm11, %v15667_v22  ;;  %vm4328_vm11 = vcmp.eq.s32.totalorder %v15568_v18, %v13632_v28  ;;  %v15686_v28 = vld [vmem:[#allocation25_spill] sm:$0xff] }
 0x788   :  { %8162 = vmatprep.mubr.msk.f32.mxu1 %vm4324_vm12, %v15667_v22  ;;  %v4349_v46 = vsel %vm4328_vm11, 1.0, %v15508_v21 }
 0x78b   :  { %8163 = vmatmul.mubr.msk.f32.gmra.mxu1 %vm4323_vm13, %v15667_v22 }
 0x78c   :  { %8164 = vmatprep.mubr.msk.f32.mxu1 %vm4327_vm14, %v15667_v22 }
 0x78f   :  { %8165 = vmatmul.mubr.msk.f32.gmra.mxu1 %vm4326_vm15, %v15667_v22 }
 0x790   :  { %8166 = vmatprep.mubr.msk.f32.mxu1 %vm4330_vm2, %v15667_v22 }
 0x793   :  { %8167 = vmatmul.mubr.msk.f32.gmra.mxu1 %vm4329_vm3, %v15667_v22  ;;  %v15680_v22 = vld [vmem:[#allocation37_spill] sm:$0xff] }
 0x794   :  { %10458 = vmatprep.mubr.msk.f32.mxu1 %vm10970_vm0, %v15508_v21 }
 0x7ff   :  { %v3820_v51 = vpop.f32.mrf.mxu1 }
 0x800   :  { %v13656_v49 = vadd.f32 %v3820_v51, %v15676_v15  ;;  %v9053_v15 = vpop.f32.mrf.mxu0 }
 0x801   :  { %v10324_v26 = vpop.f32.mrf.mxu1 }
 0x802   :  { %15677 = vst [vmem:[#allocation9_spill] sm:$0xff] %v13656_v49 }
 0x803   :  { %v3825_v43 = vpop.f32.mrf.mxu1 }
 0x804   :  { %v13659_v9 = vadd.f32 %v3825_v43, %v15678_v40  ;;  %v9055_v43 = vpop.f32.mrf.mxu0 }
 0x805   :  { %v10327_v29 = vpop.f32.mrf.mxu1 }
 0x806   :  { %15679 = vst [vmem:[#allocation10_spill] sm:$0xff] %v13659_v9 }
 0x807   :  { %v3830_v42 = vpop.f32.mrf.mxu1 }
 0x808   :  { %v13662_v4 = vadd.f32 %v3830_v42, %v15680_v22  ;;  %v9056_v42 = vpop.f32.mrf.mxu0 }
 0x809   :  { %v10330_v1 = vpop.f32.mrf.mxu1 }
 0x80a   :  { %15681 = vst [vmem:[#allocation11_spill] sm:$0xff] %v13662_v4 }
 0x80b   :  { %v3835_v36 = vpop.f32.mrf.mxu1 }
 0x80c   :  { %v13665_v53 = vadd.f32 %v3835_v36, %v15682_v44  ;;  %v9048_v36 = vadd.f32 %v9047_v25, %v9046_v6  ;;  %v9054_v6 = vadd.f32 %v9053_v15, %v9052_v32 }
 0x80d   :  { %v10333_v51 = vpop.f32.mrf.mxu1 }
 0x80e   :  { %15683 = vst [vmem:[#allocation12_spill] sm:$0xff] %v13665_v53  ;;  %v9058_v51 = vpop.f32.mrf.mxu0 }
 0x80f   :  { %v3840_v26 = vpop.f32.mrf.mxu1 }
 0x810   :  { %v13668_v49 = vadd.f32 %v3840_v26, %v13465_v19  ;;  %v9051_v19 = vadd.f32 %v9050_v47, %v9049_v11  ;;  %v9059_v26 = vpop.f32.mrf.mxu0 }
 0x811   :  { %v10336_v40 = vpop.f32.mrf.mxu1 }
 0x813   :  { %v3845_v29 = vpop.f32.mrf.mxu1 }
 0x814   :  { %v13671_v9 = vadd.f32 %v3845_v29, %v13468_v54 }
 0x815   :  { %v10339_v22 = vpop.f32.mrf.mxu1 }
 0x816   :  { %v9060_v22 = vadd.f32 %v9059_v26, %v9058_v51 }
 0x817   :  { %v3850_v1 = vpop.f32.mrf.mxu1 }
 0x818   :  { %v13674_v4 = vadd.f32 %v3850_v1, %v13471_v3 }
 0x819   :  { %v10342_v44 = vpop.f32.mrf.mxu1 }
 0x81b   :  { %v4118_v53 = vpop.f32.mrf.mxu1 }
 0x81c   :  { %v4119_v39 = vadd.f32 %v9048_v36, %v4118_v53 }
 0x81d   :  { %v10367_v38 = vpop.f32.mrf.mxu1 }
 0x81e   :  { %10391 = vmatmul.mubr.msk.f32.vlgmr.msra.gmra.mxu0 %vm82_vm1, %v4119_v39  ;;  %v9061_v39 = vpop.f32.mrf.mxu0  ;;  %v9057_v38 = vadd.f32 %v9056_v42, %v9055_v43 }
 0x81f   :  { %10412 = vmatpush3.msk.msra.mxu0 %vm1009_vm5, %v12004_v14  ;;  %v4123_v54 = vpop.f32.mrf.mxu1  ;;  %10393 = vmatprep.mubr.msk.f32.mxu0 %vm10970_vm0, %v15508_v21 }
 0x820   :  { %v4124_v40 = vadd.f32 %v9051_v19, %v4123_v54  ;;  %10413 = vmatprep.subr.mxu0 %v15508_v21  ;;  %v9062_v32 = vpop.f32.mrf.mxu0 }
 0x821   :  { %10414 = vmatpush3.msra.mxu0 %v15557_v7  ;;  %v10370_v3 = vpop.f32.mrf.mxu1  ;;  %v9063_v36 = vadd.f32 %v9062_v32, %v9061_v39 }
 0x822   :  { %10415 = vmatprep.subr.mxu0 %v15508_v21  ;;  %10394 = vmatmul.mubr.msk.f32.gmra.mxu0 %vm82_vm1, %v4124_v40  ;;  %v9064_v43 = vpop.f32.mrf.mxu0 }
 0x823   :  { %10416 = vmatpush3.msra.mxu0 %v15558_v41  ;;  %v4128_v53 = vpop.f32.mrf.mxu1  ;;  %10396 = vmatprep.mubr.msk.f32.mxu0 %vm10970_vm0, %v15508_v21 }
 0x824   :  { %v4129_v11 = vadd.f32 %v9054_v6, %v4128_v53  ;;  %10417 = vmatprep.subr.mxu0 %v15508_v21  ;;  %v9065_v51 = vpop.f32.mrf.mxu0  ;;  %v4334_v53 = vsel %vm4313_vm4, 1.0, %v15508_v21 }
 0x825   :  { %10418 = vmatpush3.msra.mxu0 %v15559_v59  ;;  %v10373_v47 = vpop.f32.mrf.mxu1  ;;  %v9066_v40 = vadd.f32 %v9065_v51, %v9064_v43  ;;  %v15691_v43 = vld [vmem:[#allocation29_spill] sm:$0xff] }
 0x826   :  { %10419 = vmatprep.subr.mxu0 %v15508_v21  ;;  %10397 = vmatmul.mubr.msk.f32.gmra.mxu0 %vm82_vm1, %v4129_v11  ;;  %v15684_v11 = vld [vmem:[#allocation8_spill] sm:$0xff]  ;;  %v15696_v51 = vld [vmem:[#allocation33_spill] sm:$0xff] }
 0x827   :  { %10420 = vmatpush3.msra.mxu0 %v15560_v60  ;;  %v4133_v25 = vpop.f32.mrf.mxu1  ;;  %10399 = vmatprep.mubr.msk.f32.mxu0 %vm10970_vm0, %v15508_v21  ;;  %vm4331_vm12 = vcmp.eq.s32.totalorder %v15568_v18, %v15684_v11  ;;  %v15685_v47 = vld [vmem:[#allocation24_spill] sm:$0xff] }
 0x828   :  { %v4134_v15 = vadd.f32 %v9057_v38, %v4133_v25  ;;  %10421 = vmatprep.subr.mxu0 %v15508_v21  ;;  %v15687_v38 = vld [vmem:[#allocation26_spill] sm:$0xff]  ;;  %v4352_v32 = vsel %vm4331_vm12, 1.0, %v15508_v21  ;;  %v13781_v25 = vpop.permute.xlu1 %4713 }
 0x829   :  { %10422 = vmatpush3.msra.mxu0 %v15561_v37  ;;  %v10376_v29 = vpop.f32.mrf.mxu1 }
 0x82a   :  { %10423 = vmatprep.subr.mxu0 %v15508_v21  ;;  %10400 = vmatmul.mubr.msk.f32.gmra.mxu0 %vm82_vm1, %v4134_v15  ;;  %v15688_v15 = vld [vmem:[#allocation27_spill] sm:$0xff]  ;;  %v15689_v29 = vld [vmem:[#allocation28_spill] sm:$0xff] }
 0x82b   :  { %10424 = vmatpush3.msra.mxu0 %v15562_v8  ;;  %v4138_v42 = vpop.f32.mrf.mxu1  ;;  %10402 = vmatprep.mubr.msk.f32.mxu0 %vm10970_vm0, %v15508_v21 }
 0x82c   :  { %v4139_v1 = vadd.f32 %v9060_v22, %v4138_v42  ;;  %10425 = vmatprep.subr.mxu0 %v15508_v21  ;;  %v15690_v22 = vld [vmem:[#allocation21_spill] sm:$0xff]  ;;  %v15692_v42 = vmov 1.0  }
 0x82d   :  { %10426 = vmatpush3.msra.mxu0 %v15563_v24  ;;  %v10379_v44 = vpop.f32.mrf.mxu1  ;;  %vm4734_vm13 = vcmp.eq.s32.totalorder %v15690_v22, %v13781_v25 }
 0x82e   :  { %10427 = vmatprep.subr.mxu0 %v15508_v21  ;;  %10403 = vmatmul.mubr.msk.f32.gmra.mxu0 %vm82_vm1, %v4139_v1  ;;  %v15693_v1 = vld [vmem:[#allocation30_spill] sm:$0xff]  ;;  %v15694_v44 = vld [vmem:[#allocation31_spill] sm:$0xff] }
 0x82f   :  { %10428 = vmatpush3.msra.mxu0 %v15564_v35  ;;  %v4143_v19 = vpop.f32.mrf.mxu1  ;;  %10405 = vmatprep.mubr.msk.f32.mxu0 %vm10970_vm0, %v15508_v21 }
 0x830   :  { %v4144_v26 = vadd.f32 %v9063_v36, %v4143_v19  ;;  %10429 = vmatprep.subr.mxu0 %v15508_v21  ;;  %v15695_v36 = vld [vmem:[#allocation32_spill] sm:$0xff]  ;;  %v15697_v19 = vld [vmem:[#allocation34_spill] sm:$0xff] }
 0x831   :  { %10430 = vmatpush3.msra.mxu0 %v15565_v16  ;;  %v10382_v54 = vpop.f32.mrf.mxu1 }
 0x832   :  { %10431 = vmatprep.subr.mxu0 %v15508_v21  ;;  %10406 = vmatmul.mubr.msk.f32.gmra.mxu0 %vm82_vm1, %v4144_v26  ;;  %v13795_v26 = vpop.permute.xlu0 %4716  ;;  %v15698_v54 = vld [vmem:[#allocation20_spill] sm:$0xff] }
 0x833   :  { %10432 = vmatpush3.msra.mxu0 %v15566_v30  ;;  %v4148_v3 = vpop.f32.mrf.mxu1  ;;  %10408 = vmatprep.mubr.msk.f32.mxu0 %vm10970_vm0, %v15508_v21  ;;  %vm4733_vm14 = vcmp.eq.s32.totalorder %v15698_v54, %v13781_v25  ;;  %vm4737_vm15 = vcmp.eq.s32.totalorder %v15690_v22, %v13795_v26  ;;  %vm4736_vm2 = vcmp.eq.s32.totalorder %v15698_v54, %v13795_v26 }
 0x834   :  { %v4149_v6 = vadd.f32 %v9066_v40, %v4148_v3  ;;  %9174 = vmatprep.subr.mxu0 %v15567_v34  ;;  %v15699_v40 = vld [vmem:[#allocation35_spill] sm:$0xff]  ;;  %v13807_v3 = vpop.permute.xlu1 %4719 }
 0x835   :  { %v10385_v39 = vpop.f32.mrf.mxu1  ;;  %vm4740_vm3 = vcmp.eq.s32.totalorder %v15690_v22, %v13807_v3  ;;  %vm4739_vm4 = vcmp.eq.s32.totalorder %v15698_v54, %v13807_v3 }
 0x836   :  { %10409 = vmatmul.mubr.msk.f32.gmra.mxu0 %vm82_vm1, %v4149_v6  ;;  %v13813_v6 = vpop.permute.xlu0 %4722  ;;  %v8177_v39 = vld [vmem:[%s15354_s5 + $0x88] sm:$0xff] }
 0x837   :  { %10433 = vmatprep.mubr.msk.f32.mxu0 %vm10970_vm0, %v15508_v21  ;;  %vm4743_vm7 = vcmp.eq.s32.totalorder %v15690_v22, %v13813_v6  ;;  %10455 = vmatpush3.msra.mxu1 %v8177_v39  ;;  %vm4742_vm8 = vcmp.eq.s32.totalorder %v15698_v54, %v13813_v6 }
 0x838   :  { %10456 = vmatprep.subr.mxu1 %v15508_v21 }
 0x83a   :  { %10434 = vmatmul.mubr.msk.f32.vlgmr.msra.gmra.mxu0 %vm987_vm6, %v4334_v53  ;;  %v13826_v53 = vpop.permute.xlu1 %4725 }
 0x83b   :  { %9175 = vmatpush3.msra.mxu0 %v11821_v12  ;;  %10436 = vmatprep.mubr.msk.f32.mxu0 %vm10970_vm0, %v15508_v21  ;;  %vm4746_vm9 = vcmp.eq.s32.totalorder %v15690_v22, %v13826_v53  ;;  %vm4745_vm10 = vcmp.eq.s32.totalorder %v15698_v54, %v13826_v53 }
 0x83c   :  { %9176 = vmatprep.subr.mxu0 %v11834_v63 }
 0x83d   :  { %9177 = vmatpush3.msra.mxu0 %v11840_v20 }
 0x83e   :  { %9178 = vmatprep.subr.mxu0 %v11846_v55  ;;  %10437 = vmatmul.mubr.msk.f32.gmra.mxu0 %vm987_vm6, %v4337_v57  ;;  %v13833_v57 = vpop.permute.xlu0 %4728 }
 0x83f   :  { %9179 = vmatpush3.msra.mxu0 %v11852_v56  ;;  %10439 = vmatprep.mubr.msk.f32.mxu0 %vm10970_vm0, %v15508_v21  ;;  %vm4749_vm11 = vcmp.eq.s32.totalorder %v15690_v22, %v13833_v57  ;;  %vm4748_vm12 = vcmp.eq.s32.totalorder %v15698_v54, %v13833_v57 }
 0x840   :  { %9180 = vmatprep.subr.mxu0 %v11858_v17 }
 0x841   :  { %9181 = vmatpush3.msra.mxu0 %v11864_v52 }
 0x842   :  { %9182 = vmatprep.subr.mxu0 %v11870_v0  ;;  %10440 = vmatmul.mubr.msk.f32.gmra.mxu0 %vm987_vm6, %v4340_v5  ;;  %v13843_v5 = vpop.permute.xlu1 %4731 }
 0x843   :  { %9183 = vmatpush3.msra.mxu0 %v11876_v62  ;;  %10442 = vmatprep.mubr.msk.f32.mxu0 %vm10970_vm0, %v15508_v21  ;;  %15700 = vst [vmem:[#allocation13_spill] sm:$0xff] %v13843_v5 }
 0x844   :  { %9184 = vmatprep.subr.mxu0 %v11882_v23 }
 0x845   :  { %9185 = vmatpush3.msra.mxu0 %v11888_v31 }
 0x846   :  { %9186 = vmatprep.subr.mxu0 %v11894_v50  ;;  %10443 = vmatmul.mubr.msk.f32.gmra.mxu0 %vm987_vm6, %v4343_v45  ;;  %v8176_v45 = vld [vmem:[%s15354_s5 + $0x80] sm:$0xff] }
 0x847   :  { %9187 = vmatpush3.msra.mxu0 %v11900_v13  ;;  %10445 = vmatprep.mubr.msk.f32.mxu0 %vm10970_vm0, %v15508_v21 }
 0x848   :  { %9188 = vmatprep.subr.mxu0 %v11906_v10  ;;  %10457 = vmatpush3.msra.mxu1 %v8176_v45 }
 0x849   :  { %9189 = vmatpush3.msra.mxu0 %v11912_v27  ;;  %10479 = vmatprep.subr.mxu1 %v15508_v21 }
 0x84a   :  { %9190 = vmatprep.subr.mxu0 %v11918_v58  ;;  %10446 = vmatmul.mubr.msk.f32.gmra.mxu0 %vm987_vm6, %v4346_v33  ;;  %v9126_v33 = vpop.f32.mrf.mxu1 }
 0x84b   :  { %9191 = vmatpush3.msra.mxu0 %v11924_v48  ;;  %10448 = vmatprep.mubr.msk.f32.mxu0 %vm10970_vm0, %v15508_v21 }
 0x84c   :  { %9192 = vmatprep.subr.mxu0 %v11930_v61 }
 0x84d   :  { %9193 = vmatpush3.msra.mxu0 %v11939_v2 }
 0x84e   :  { %9194 = vmatprep.subr.mxu0 %v15685_v47  ;;  %10449 = vmatmul.mubr.msk.f32.gmra.mxu0 %vm987_vm6, %v4349_v46  ;;  %v9127_v46 = vpop.f32.mrf.mxu1 }
 0x84f   :  { %9195 = vmatpush3.msra.mxu0 %v15686_v28  ;;  %10451 = vmatprep.mubr.msk.f32.mxu0 %vm10970_vm0, %v15508_v21 }
 0x850   :  { %9196 = vmatprep.subr.mxu0 %v15687_v38  ;;  %v15707_v38 = vld [vmem:[#allocation12_spill] sm:$0xff] }
 0x851   :  { %9197 = vmatpush3.msra.mxu0 %v15688_v15 }
 0x852   :  { %9198 = vmatprep.subr.mxu0 %v15689_v29  ;;  %10452 = vmatmul.mubr.msk.f32.gmra.mxu0 %vm987_vm6, %v4352_v32  ;;  %v15701_v32 = vld [vmem:[#allocation9_spill] sm:$0xff] }
 0x853   :  { %9199 = vmatpush3.msra.mxu0 %v15691_v43  ;;  %8185 = vmatprep.mubr.msk.f32.mxu0 %vm4734_vm13, %v15692_v42  ;;  %vm4752_vm13 = vcmp.eq.s32.totalorder %v15690_v22, %v13843_v5 }
 0x854   :  { %9200 = vmatprep.subr.mxu0 %v15693_v1 }
 0x855   :  { %9201 = vmatpush3.msra.mxu0 %v15694_v44 }
 0x856   :  { %9202 = vmatprep.subr.mxu0 %v15695_v36  ;;  %v15703_v36 = vld [vmem:[#allocation10_spill] sm:$0xff] }
 0x857   :  { %9203 = vmatpush3.msra.mxu0 %v15696_v51 }
 0x858   :  { %9204 = vmatprep.subr.mxu0 %v15697_v19  ;;  %v9129_v19 = vpop.f32.mrf.mxu1 }
 0x859   :  { %9205 = vmatpush3.msra.mxu0 %v15699_v40 }
 0x85a   :  { %8186 = vmatmul.mubr.msk.f32.vlgmr.msra.gmra.mxu0 %vm4733_vm14, %v15692_v42  ;;  %10522 = vmatprep.subr.mxu0 %v15508_v21  ;;  %vm4751_vm14 = vcmp.eq.s32.totalorder %v15698_v54, %v13843_v5  ;;  %v9130_v54 = vpop.f32.mrf.mxu1 }
 0x85b   :  { %8187 = vmatprep.mubr.msk.f32.mxu0 %vm4737_vm15, %v15692_v42  ;;  %vm4735_vm15 = vcmp.eq.s32.totalorder %v15568_v18, %v13781_v25 }
 0x85c   :  { %v9132_v29 = vpop.f32.mrf.mxu1 }
 0x85e   :  { %8188 = vmatmul.mubr.msk.f32.gmra.mxu0 %vm4736_vm2, %v15692_v42  ;;  %vm4738_vm2 = vcmp.eq.s32.totalorder %v15568_v18, %v13795_v26 }
 0x85f   :  { %8189 = vmatprep.mubr.msk.f32.mxu0 %vm4740_vm3, %v15692_v42  ;;  %v4759_v25 = vsel %vm4738_vm2, 1.0, %v15508_v21  ;;  %vm4741_vm3 = vcmp.eq.s32.totalorder %v15568_v18, %v13807_v3 }
 0x860   :  { %v4762_v26 = vsel %vm4741_vm3, 1.0, %v15508_v21 }
 0x862   :  { %8190 = vmatmul.mubr.msk.f32.gmra.mxu0 %vm4739_vm4, %v15692_v42  ;;  %vm4744_vm4 = vcmp.eq.s32.totalorder %v15568_v18, %v13813_v6 }
 0x863   :  { %8191 = vmatprep.mubr.msk.f32.mxu0 %vm4743_vm7, %v15692_v42  ;;  %v4765_v3 = vsel %vm4744_vm4, 1.0, %v15508_v21  ;;  %vm4747_vm7 = vcmp.eq.s32.totalorder %v15568_v18, %v13826_v53 }
 0x864   :  { %v4768_v6 = vsel %vm4747_vm7, 1.0, %v15508_v21 }
 0x866   :  { %8192 = vmatmul.mubr.msk.f32.gmra.mxu0 %vm4742_vm8, %v15692_v42  ;;  %vm4750_vm8 = vcmp.eq.s32.totalorder %v15568_v18, %v13833_v57  ;;  %v15711_v57 = vld [vmem:[#allocation25_spill] sm:$0xff] }
 0x867   :  { %8193 = vmatprep.mubr.msk.f32.mxu0 %vm4746_vm9, %v15692_v42  ;;  %v4771_v53 = vsel %vm4750_vm8, 1.0, %v15508_v21 }
 0x86a   :  { %8194 = vmatmul.mubr.msk.f32.gmra.mxu0 %vm4745_vm10, %v15692_v42 }
 0x86b   :  { %8195 = vmatprep.mubr.msk.f32.mxu0 %vm4749_vm11, %v15692_v42 }
 0x86e   :  { %8196 = vmatmul.mubr.msk.f32.gmra.mxu0 %vm4748_vm12, %v15692_v42 }
 0x86f   :  { %8197 = vmatprep.mubr.msk.f32.mxu0 %vm4752_vm13, %v15692_v42 }
 0x872   :  { %8198 = vmatmul.mubr.msk.f32.gmra.mxu0 %vm4751_vm14, %v15692_v42  ;;  %v15705_v42 = vld [vmem:[#allocation11_spill] sm:$0xff] }
 0x873   :  { %10526 = vmatprep.mubr.msk.f32.mxu0 %vm10970_vm0, %v15508_v21 }
 0x8de   :  { %v4242_v11 = vpop.f32.mrf.mxu0 }
 0x8df   :  { %v13859_v39 = vadd.f32 %v4242_v11, %v15701_v32  ;;  %v9133_v32 = vpop.f32.mrf.mxu1 }
 0x8e0   :  { %v10392_v40 = vpop.f32.mrf.mxu0 }
 0x8e1   :  { %15702 = vst [vmem:[#allocation14_spill] sm:$0xff] %v13859_v39 }
 0x8e2   :  { %v4247_v51 = vpop.f32.mrf.mxu0 }
 0x8e3   :  { %v13862_v44 = vadd.f32 %v4247_v51, %v15703_v36  ;;  %v9135_v51 = vpop.f32.mrf.mxu1 }
 0x8e4   :  { %v10395_v45 = vpop.f32.mrf.mxu0 }
 0x8e5   :  { %15704 = vst [vmem:[#allocation19_spill] sm:$0xff] %v13862_v44 }
 0x8e6   :  { %v4252_v1 = vpop.f32.mrf.mxu0 }
 0x8e7   :  { %v13865_v43 = vadd.f32 %v4252_v1, %v15705_v42  ;;  %v9136_v1 = vpop.f32.mrf.mxu1 }
 0x8e8   :  { %v10398_v22 = vpop.f32.mrf.mxu0 }
 0x8e9   :  { %15706 = vst [vmem:[#allocation3_spill] sm:$0xff] %v13865_v43 }
 0x8ea   :  { %v4257_v15 = vpop.f32.mrf.mxu0 }
 0x8eb   :  { %v13868_v28 = vadd.f32 %v4257_v15, %v15707_v38  ;;  %v9128_v15 = vadd.f32 %v9127_v46, %v9126_v33  ;;  %v9134_v33 = vadd.f32 %v9133_v32, %v9132_v29 }
 0x8ec   :  { %v10401_v11 = vpop.f32.mrf.mxu0 }
 0x8ed   :  { %15708 = vst [vmem:[#allocation18_spill] sm:$0xff] %v13868_v28  ;;  %v9138_v11 = vpop.f32.mrf.mxu1 }
 0x8ee   :  { %v4262_v40 = vpop.f32.mrf.mxu0 }
 0x8ef   :  { %v13871_v39 = vadd.f32 %v4262_v40, %v13668_v49  ;;  %v9131_v49 = vadd.f32 %v9130_v54, %v9129_v19  ;;  %v9139_v40 = vpop.f32.mrf.mxu1 }
 0x8f0   :  { %v10404_v36 = vpop.f32.mrf.mxu0 }
 0x8f2   :  { %v4267_v45 = vpop.f32.mrf.mxu0 }
 0x8f3   :  { %v13874_v44 = vadd.f32 %v4267_v45, %v13671_v9 }
 0x8f4   :  { %v10407_v42 = vpop.f32.mrf.mxu0 }
 0x8f5   :  { %v9140_v42 = vadd.f32 %v9139_v40, %v9138_v11 }
 0x8f6   :  { %v4272_v22 = vpop.f32.mrf.mxu0 }
 0x8f7   :  { %v13877_v43 = vadd.f32 %v4272_v22, %v13674_v4 }
 0x8f8   :  { %v10410_v38 = vpop.f32.mrf.mxu0 }
 0x8fa   :  { %v4540_v28 = vpop.f32.mrf.mxu0 }
 0x8fb   :  { %v4541_v47 = vadd.f32 %v9128_v15, %v4540_v28 }
 0x8fc   :  { %v10435_v5 = vpop.f32.mrf.mxu0 }
 0x8fd   :  { %10459 = vmatmul.mubr.msk.f32.vlgmr.msra.gmra.mxu1 %vm82_vm1, %v4541_v47  ;;  %v9141_v47 = vpop.f32.mrf.mxu1  ;;  %v9137_v5 = vadd.f32 %v9136_v1, %v9135_v51 }
 0x8fe   :  { %10480 = vmatpush3.msk.msra.mxu1 %vm1009_vm5, %v12004_v14  ;;  %v4545_v9 = vpop.f32.mrf.mxu0  ;;  %10461 = vmatprep.mubr.msk.f32.mxu1 %vm10970_vm0, %v15508_v21 }
 0x8ff   :  { %v4546_v36 = vadd.f32 %v9131_v49, %v4545_v9  ;;  %10481 = vmatprep.subr.mxu1 %v15508_v21  ;;  %v9142_v29 = vpop.f32.mrf.mxu1 }
 0x900   :  { %10482 = vmatpush3.msra.mxu1 %v15557_v7  ;;  %v10438_v4 = vpop.f32.mrf.mxu0  ;;  %v9143_v15 = vadd.f32 %v9142_v29, %v9141_v47  ;;  %v13983_v29 = vpop.permute.xlu0 %5135 }
 0x901   :  { %10483 = vmatprep.subr.mxu1 %v15508_v21  ;;  %10462 = vmatmul.mubr.msk.f32.gmra.mxu1 %vm82_vm1, %v4546_v36  ;;  %v9144_v51 = vpop.f32.mrf.mxu1 }
 0x902   :  { %10484 = vmatpush3.msra.mxu1 %v15558_v41  ;;  %v4550_v28 = vpop.f32.mrf.mxu0  ;;  %10464 = vmatprep.mubr.msk.f32.mxu1 %vm10970_vm0, %v15508_v21 }
 0x903   :  { %v4551_v19 = vadd.f32 %v9134_v33, %v4550_v28  ;;  %10485 = vmatprep.subr.mxu1 %v15508_v21  ;;  %v9145_v11 = vpop.f32.mrf.mxu1  ;;  %v4756_v28 = vsel %vm4735_vm15, 1.0, %v15508_v21 }
 0x904   :  { %10486 = vmatpush3.msra.mxu1 %v15559_v59  ;;  %v10441_v54 = vpop.f32.mrf.mxu0  ;;  %v9146_v36 = vadd.f32 %v9145_v11, %v9144_v51  ;;  %v15716_v51 = vld [vmem:[#allocation29_spill] sm:$0xff] }
 0x905   :  { %10487 = vmatprep.subr.mxu1 %v15508_v21  ;;  %10465 = vmatmul.mubr.msk.f32.gmra.mxu1 %vm82_vm1, %v4551_v19  ;;  %v15709_v19 = vld [vmem:[#allocation13_spill] sm:$0xff]  ;;  %v15710_v54 = vld [vmem:[#allocation24_spill] sm:$0xff] }
 0x906   :  { %10488 = vmatpush3.msra.mxu1 %v15560_v60  ;;  %v4555_v46 = vpop.f32.mrf.mxu0  ;;  %10467 = vmatprep.mubr.msk.f32.mxu1 %vm10970_vm0, %v15508_v21  ;;  %vm4753_vm9 = vcmp.eq.s32.totalorder %v15568_v18, %v15709_v19  ;;  %v15721_v11 = vld [vmem:[#allocation33_spill] sm:$0xff] }
 0x907   :  { %v4556_v32 = vadd.f32 %v9137_v5, %v4555_v46  ;;  %10489 = vmatprep.subr.mxu1 %v15508_v21  ;;  %v15712_v5 = vld [vmem:[#allocation26_spill] sm:$0xff]  ;;  %v4774_v46 = vsel %vm4753_vm9, 1.0, %v15508_v21 }
 0x908   :  { %10490 = vmatpush3.msra.mxu1 %v15561_v37  ;;  %v10444_v45 = vpop.f32.mrf.mxu0 }
 0x909   :  { %10491 = vmatprep.subr.mxu1 %v15508_v21  ;;  %10468 = vmatmul.mubr.msk.f32.gmra.mxu1 %vm82_vm1, %v4556_v32  ;;  %v15713_v32 = vld [vmem:[#allocation27_spill] sm:$0xff]  ;;  %v15714_v45 = vld [vmem:[#allocation28_spill] sm:$0xff] }
 0x90a   :  { %10492 = vmatpush3.msra.mxu1 %v15562_v8  ;;  %v4560_v1 = vpop.f32.mrf.mxu0  ;;  %10470 = vmatprep.mubr.msk.f32.mxu1 %vm10970_vm0, %v15508_v21 }
 0x90b   :  { %v4561_v22 = vadd.f32 %v9140_v42, %v4560_v1  ;;  %10493 = vmatprep.subr.mxu1 %v15508_v21  ;;  %v15715_v42 = vld [vmem:[#allocation21_spill] sm:$0xff]  ;;  %v15717_v1 = vmov 1.0  }
 0x90c   :  { %10494 = vmatpush3.msra.mxu1 %v15563_v24  ;;  %v10447_v38 = vpop.f32.mrf.mxu0  ;;  %vm5156_vm10 = vcmp.eq.s32.totalorder %v15715_v42, %v13983_v29 }
 0x90d   :  { %10495 = vmatprep.subr.mxu1 %v15508_v21  ;;  %10471 = vmatmul.mubr.msk.f32.gmra.mxu1 %vm82_vm1, %v4561_v22  ;;  %v15718_v22 = vld [vmem:[#allocation30_spill] sm:$0xff]  ;;  %v15719_v38 = vld [vmem:[#allocation31_spill] sm:$0xff] }
 0x90e   :  { %10496 = vmatpush3.msra.mxu1 %v15564_v35  ;;  %v4565_v49 = vpop.f32.mrf.mxu0  ;;  %10473 = vmatprep.mubr.msk.f32.mxu1 %vm10970_vm0, %v15508_v21 }
 0x90f   :  { %v4566_v40 = vadd.f32 %v9143_v15, %v4565_v49  ;;  %10497 = vmatprep.subr.mxu1 %v15508_v21  ;;  %v15720_v15 = vld [vmem:[#allocation32_spill] sm:$0xff]  ;;  %v15722_v49 = vld [vmem:[#allocation34_spill] sm:$0xff] }
 0x910   :  { %10498 = vmatpush3.msra.mxu1 %v15565_v16  ;;  %v10450_v9 = vpop.f32.mrf.mxu0 }
 0x911   :  { %10499 = vmatprep.subr.mxu1 %v15508_v21  ;;  %10474 = vmatmul.mubr.msk.f32.gmra.mxu1 %vm82_vm1, %v4566_v40  ;;  %v15723_v40 = vld [vmem:[#allocation20_spill] sm:$0xff]  ;;  %v14000_v9 = vpop.permute.xlu1 %5138 }
 0x912   :  { %10500 = vmatpush3.msra.mxu1 %v15566_v30  ;;  %v4570_v4 = vpop.f32.mrf.mxu0  ;;  %10476 = vmatprep.mubr.msk.f32.mxu1 %vm10970_vm0, %v15508_v21  ;;  %vm5155_vm11 = vcmp.eq.s32.totalorder %v15723_v40, %v13983_v29  ;;  %vm5159_vm12 = vcmp.eq.s32.totalorder %v15715_v42, %v14000_v9  ;;  %vm5158_vm13 = vcmp.eq.s32.totalorder %v15723_v40, %v14000_v9 }
 0x913   :  { %v4571_v33 = vadd.f32 %v9146_v36, %v4570_v4  ;;  %9254 = vmatprep.subr.mxu1 %v15567_v34  ;;  %v15724_v36 = vld [vmem:[#allocation35_spill] sm:$0xff]  ;;  %v14008_v4 = vpop.permute.xlu0 %5141 }
 0x914   :  { %v10453_v47 = vpop.f32.mrf.mxu0  ;;  %vm5162_vm14 = vcmp.eq.s32.totalorder %v15715_v42, %v14008_v4  ;;  %vm5161_vm15 = vcmp.eq.s32.totalorder %v15723_v40, %v14008_v4 }
 0x915   :  { %10477 = vmatmul.mubr.msk.f32.gmra.mxu1 %vm82_vm1, %v4571_v33  ;;  %v14018_v33 = vpop.permute.xlu1 %5144  ;;  %v8208_v47 = vld [vmem:[%s15354_s5 + $0x98] sm:$0xff] }
 0x916   :  { %10501 = vmatprep.mubr.msk.f32.mxu1 %vm10970_vm0, %v15508_v21  ;;  %vm5165_vm2 = vcmp.eq.s32.totalorder %v15715_v42, %v14018_v33  ;;  %10523 = vmatpush3.msra.mxu0 %v8208_v47  ;;  %vm5164_vm3 = vcmp.eq.s32.totalorder %v15723_v40, %v14018_v33 }
 0x917   :  { %10524 = vmatprep.subr.mxu0 %v15508_v21 }
 0x919   :  { %10502 = vmatmul.mubr.msk.f32.vlgmr.msra.gmra.mxu1 %vm987_vm6, %v4756_v28  ;;  %v14027_v28 = vpop.permute.xlu0 %5147 }
 0x91a   :  { %9255 = vmatpush3.msra.mxu1 %v11821_v12  ;;  %10504 = vmatprep.mubr.msk.f32.mxu1 %vm10970_vm0, %v15508_v21  ;;  %vm5168_vm4 = vcmp.eq.s32.totalorder %v15715_v42, %v14027_v28  ;;  %vm5167_vm7 = vcmp.eq.s32.totalorder %v15723_v40, %v14027_v28 }
 0x91b   :  { %9256 = vmatprep.subr.mxu1 %v11834_v63 }
 0x91c   :  { %9257 = vmatpush3.msra.mxu1 %v11840_v20 }
 0x91d   :  { %9258 = vmatprep.subr.mxu1 %v11846_v55  ;;  %10505 = vmatmul.mubr.msk.f32.gmra.mxu1 %vm987_vm6, %v4759_v25  ;;  %v14038_v25 = vpop.permute.xlu1 %5150 }
 0x91e   :  { %9259 = vmatpush3.msra.mxu1 %v11852_v56  ;;  %10507 = vmatprep.mubr.msk.f32.mxu1 %vm10970_vm0, %v15508_v21  ;;  %vm5171_vm8 = vcmp.eq.s32.totalorder %v15715_v42, %v14038_v25  ;;  %vm5170_vm9 = vcmp.eq.s32.totalorder %v15723_v40, %v14038_v25 }
 0x91f   :  { %9260 = vmatprep.subr.mxu1 %v11858_v17 }
 0x920   :  { %9261 = vmatpush3.msra.mxu1 %v11864_v52 }
 0x921   :  { %9262 = vmatprep.subr.mxu1 %v11870_v0  ;;  %10508 = vmatmul.mubr.msk.f32.gmra.mxu1 %vm987_vm6, %v4762_v26  ;;  %v14044_v26 = vpop.permute.xlu0 %5153 }
 0x922   :  { %9263 = vmatpush3.msra.mxu1 %v11876_v62  ;;  %10510 = vmatprep.mubr.msk.f32.mxu1 %vm10970_vm0, %v15508_v21  ;;  %15725 = vst [vmem:[#allocation17_spill] sm:$0xff] %v14044_v26 }
 0x923   :  { %9264 = vmatprep.subr.mxu1 %v11882_v23 }
 0x924   :  { %9265 = vmatpush3.msra.mxu1 %v11888_v31 }
 0x925   :  { %9266 = vmatprep.subr.mxu1 %v11894_v50  ;;  %10511 = vmatmul.mubr.msk.f32.gmra.mxu1 %vm987_vm6, %v4765_v3  ;;  %v8207_v3 = vld [vmem:[%s15354_s5 + $0x90] sm:$0xff] }
 0x926   :  { %9267 = vmatpush3.msra.mxu1 %v11900_v13  ;;  %10513 = vmatprep.mubr.msk.f32.mxu1 %vm10970_vm0, %v15508_v21 }
 0x927   :  { %9268 = vmatprep.subr.mxu1 %v11906_v10  ;;  %10525 = vmatpush3.msra.mxu0 %v8207_v3 }
 0x928   :  { %9269 = vmatpush3.msra.mxu1 %v11912_v27  ;;  %10547 = vmatprep.subr.mxu0 %v15508_v21 }
 0x929   :  { %9270 = vmatprep.subr.mxu1 %v11918_v58  ;;  %10514 = vmatmul.mubr.msk.f32.gmra.mxu1 %vm987_vm6, %v4768_v6  ;;  %v9206_v6 = vpop.f32.mrf.mxu0 }
 0x92a   :  { %9271 = vmatpush3.msra.mxu1 %v11924_v48  ;;  %10516 = vmatprep.mubr.msk.f32.mxu1 %vm10970_vm0, %v15508_v21 }
 0x92b   :  { %9272 = vmatprep.subr.mxu1 %v11930_v61 }
 0x92c   :  { %9273 = vmatpush3.msra.mxu1 %v11939_v2 }
 0x92d   :  { %9274 = vmatprep.subr.mxu1 %v15710_v54  ;;  %10517 = vmatmul.mubr.msk.f32.gmra.mxu1 %vm987_vm6, %v4771_v53  ;;  %v9207_v53 = vpop.f32.mrf.mxu0 }
 0x92e   :  { %9275 = vmatpush3.msra.mxu1 %v15711_v57  ;;  %10519 = vmatprep.mubr.msk.f32.mxu1 %vm10970_vm0, %v15508_v21 }
 0x92f   :  { %9276 = vmatprep.subr.mxu1 %v15712_v5  ;;  %v15732_v5 = vld [vmem:[#allocation18_spill] sm:$0xff] }
 0x930   :  { %9277 = vmatpush3.msra.mxu1 %v15713_v32 }
 0x931   :  { %9278 = vmatprep.subr.mxu1 %v15714_v45  ;;  %10520 = vmatmul.mubr.msk.f32.gmra.mxu1 %vm987_vm6, %v4774_v46  ;;  %v15726_v46 = vld [vmem:[#allocation14_spill] sm:$0xff] }
 0x932   :  { %9279 = vmatpush3.msra.mxu1 %v15716_v51  ;;  %8216 = vmatprep.mubr.msk.f32.mxu1 %vm5156_vm10, %v15717_v1  ;;  %vm5174_vm10 = vcmp.eq.s32.totalorder %v15715_v42, %v14044_v26 }
 0x933   :  { %9280 = vmatprep.subr.mxu1 %v15718_v22 }
 0x934   :  { %9281 = vmatpush3.msra.mxu1 %v15719_v38 }
 0x935   :  { %9282 = vmatprep.subr.mxu1 %v15720_v15  ;;  %v15728_v15 = vld [vmem:[#allocation19_spill] sm:$0xff] }
 0x936   :  { %9283 = vmatpush3.msra.mxu1 %v15721_v11 }
 0x937   :  { %9284 = vmatprep.subr.mxu1 %v15722_v49  ;;  %v9209_v49 = vpop.f32.mrf.mxu0 }
 0x938   :  { %9285 = vmatpush3.msra.mxu1 %v15724_v36 }
 0x939   :  { %8217 = vmatmul.mubr.msk.f32.vlgmr.msra.gmra.mxu1 %vm5155_vm11, %v15717_v1  ;;  %10590 = vmatprep.subr.mxu1 %v15508_v21  ;;  %vm5173_vm11 = vcmp.eq.s32.totalorder %v15723_v40, %v14044_v26  ;;  %v9210_v40 = vpop.f32.mrf.mxu0 }
 0x93a   :  { %8218 = vmatprep.mubr.msk.f32.mxu1 %vm5159_vm12, %v15717_v1  ;;  %vm5157_vm12 = vcmp.eq.s32.totalorder %v15568_v18, %v13983_v29 }
 0x93b   :  { %v9212_v45 = vpop.f32.mrf.mxu0 }
 0x93d   :  { %8219 = vmatmul.mubr.msk.f32.gmra.mxu1 %vm5158_vm13, %v15717_v1  ;;  %vm5160_vm13 = vcmp.eq.s32.totalorder %v15568_v18, %v14000_v9 }
 0x93e   :  { %8220 = vmatprep.mubr.msk.f32.mxu1 %vm5162_vm14, %v15717_v1  ;;  %v5181_v29 = vsel %vm5160_vm13, 1.0, %v15508_v21  ;;  %vm5163_vm14 = vcmp.eq.s32.totalorder %v15568_v18, %v14008_v4 }
 0x93f   :  { %v5184_v9 = vsel %vm5163_vm14, 1.0, %v15508_v21 }
 0x941   :  { %8221 = vmatmul.mubr.msk.f32.gmra.mxu1 %vm5161_vm15, %v15717_v1  ;;  %vm5166_vm15 = vcmp.eq.s32.totalorder %v15568_v18, %v14018_v33 }
 0x942   :  { %8222 = vmatprep.mubr.msk.f32.mxu1 %vm5165_vm2, %v15717_v1  ;;  %v5187_v4 = vsel %vm5166_vm15, 1.0, %v15508_v21  ;;  %vm5169_vm2 = vcmp.eq.s32.totalorder %v15568_v18, %v14027_v28 }
 0x943   :  { %v5190_v33 = vsel %vm5169_vm2, 1.0, %v15508_v21 }
 0x945   :  { %8223 = vmatmul.mubr.msk.f32.gmra.mxu1 %vm5164_vm3, %v15717_v1  ;;  %vm5172_vm3 = vcmp.eq.s32.totalorder %v15568_v18, %v14038_v25  ;;  %v15736_v25 = vld [vmem:[#allocation25_spill] sm:$0xff] }
 0x946   :  { %8224 = vmatprep.mubr.msk.f32.mxu1 %vm5168_vm4, %v15717_v1  ;;  %v5193_v28 = vsel %vm5172_vm3, 1.0, %v15508_v21 }
 0x949   :  { %8225 = vmatmul.mubr.msk.f32.gmra.mxu1 %vm5167_vm7, %v15717_v1 }
 0x94a   :  { %8226 = vmatprep.mubr.msk.f32.mxu1 %vm5171_vm8, %v15717_v1 }
 0x94d   :  { %8227 = vmatmul.mubr.msk.f32.gmra.mxu1 %vm5170_vm9, %v15717_v1 }
 0x94e   :  { %8228 = vmatprep.mubr.msk.f32.mxu1 %vm5174_vm10, %v15717_v1 }
 0x951   :  { %8229 = vmatmul.mubr.msk.f32.gmra.mxu1 %vm5173_vm11, %v15717_v1  ;;  %v15730_v1 = vld [vmem:[#allocation3_spill] sm:$0xff] }
 0x952   :  { %10594 = vmatprep.mubr.msk.f32.mxu1 %vm10970_vm0, %v15508_v21 }
 0x9bd   :  { %v4664_v19 = vpop.f32.mrf.mxu1 }
 0x9be   :  { %v14062_v47 = vadd.f32 %v4664_v19, %v15726_v46  ;;  %v9213_v46 = vpop.f32.mrf.mxu0 }
 0x9bf   :  { %v10460_v36 = vpop.f32.mrf.mxu1 }
 0x9c0   :  { %15727 = vst [vmem:[#allocation16_spill] sm:$0xff] %v14062_v47 }
 0x9c1   :  { %v4669_v11 = vpop.f32.mrf.mxu1 }
 0x9c2   :  { %v14065_v38 = vadd.f32 %v4669_v11, %v15728_v15  ;;  %v9215_v11 = vpop.f32.mrf.mxu0 }
 0x9c3   :  { %v10463_v3 = vpop.f32.mrf.mxu1 }
 0x9c4   :  { %15729 = vst [vmem:[#allocation4_spill] sm:$0xff] %v14065_v38 }
 0x9c5   :  { %v4674_v22 = vpop.f32.mrf.mxu1 }
 0x9c6   :  { %v14068_v51 = vadd.f32 %v4674_v22, %v15730_v1  ;;  %v9216_v22 = vpop.f32.mrf.mxu0 }
 0x9c7   :  { %v10466_v42 = vpop.f32.mrf.mxu1 }
 0x9c8   :  { %15731 = vst [vmem:[#allocation15_spill] sm:$0xff] %v14068_v51 }
 0x9c9   :  { %v4679_v32 = vpop.f32.mrf.mxu1 }
 0x9ca   :  { %v14071_v57 = vadd.f32 %v4679_v32, %v15732_v5  ;;  %v9208_v32 = vadd.f32 %v9207_v53, %v9206_v6  ;;  %v9214_v6 = vadd.f32 %v9213_v46, %v9212_v45 }
 0x9cb   :  { %v10469_v19 = vpop.f32.mrf.mxu1 }
 0x9cc   :  { %15733 = vst [vmem:[#allocation5_spill] sm:$0xff] %v14071_v57  ;;  %v9218_v19 = vpop.f32.mrf.mxu0 }
 0x9cd   :  { %v4684_v36 = vpop.f32.mrf.mxu1 }
 0x9ce   :  { %v14074_v47 = vadd.f32 %v4684_v36, %v13871_v39  ;;  %v9211_v39 = vadd.f32 %v9210_v40, %v9209_v49  ;;  %v9219_v36 = vpop.f32.mrf.mxu0 }
 0x9cf   :  { %v10472_v15 = vpop.f32.mrf.mxu1 }
 0x9d1   :  { %v4689_v3 = vpop.f32.mrf.mxu1 }
 0x9d2   :  { %v14077_v38 = vadd.f32 %v4689_v3, %v13874_v44 }
 0x9d3   :  { %v10475_v1 = vpop.f32.mrf.mxu1 }
 0x9d4   :  { %v9220_v1 = vadd.f32 %v9219_v36, %v9218_v19 }
 0x9d5   :  { %v4694_v42 = vpop.f32.mrf.mxu1 }
 0x9d6   :  { %v14080_v51 = vadd.f32 %v4694_v42, %v13877_v43 }
 0x9d7   :  { %v10478_v5 = vpop.f32.mrf.mxu1 }
 0x9d9   :  { %v4962_v57 = vpop.f32.mrf.mxu1 }
 0x9da   :  { %v4963_v54 = vadd.f32 %v9208_v32, %v4962_v57 }
 0x9db   :  { %v10503_v26 = vpop.f32.mrf.mxu1 }
 0x9dc   :  { %10527 = vmatmul.mubr.msk.f32.vlgmr.msra.gmra.mxu0 %vm82_vm1, %v4963_v54  ;;  %v9221_v54 = vpop.f32.mrf.mxu0  ;;  %v9217_v26 = vadd.f32 %v9216_v22, %v9215_v11 }
 0x9dd   :  { %10548 = vmatpush3.msk.msra.mxu0 %vm1009_vm5, %v12004_v14  ;;  %v4967_v44 = vpop.f32.mrf.mxu1  ;;  %10529 = vmatprep.mubr.msk.f32.mxu0 %vm10970_vm0, %v15508_v21 }
 0x9de   :  { %v4968_v15 = vadd.f32 %v9211_v39, %v4967_v44  ;;  %10549 = vmatprep.subr.mxu0 %v15508_v21  ;;  %v9222_v45 = vpop.f32.mrf.mxu0 }
 0x9df   :  { %10550 = vmatpush3.msra.mxu0 %v15557_v7  ;;  %v10506_v43 = vpop.f32.mrf.mxu1  ;;  %v9223_v32 = vadd.f32 %v9222_v45, %v9221_v54 }
 0x9e0   :  { %10551 = vmatprep.subr.mxu0 %v15508_v21  ;;  %10530 = vmatmul.mubr.msk.f32.gmra.mxu0 %vm82_vm1, %v4968_v15  ;;  %v9224_v11 = vpop.f32.mrf.mxu0 }
 0x9e1   :  { %10552 = vmatpush3.msra.mxu0 %v15558_v41  ;;  %v4972_v57 = vpop.f32.mrf.mxu1  ;;  %10532 = vmatprep.mubr.msk.f32.mxu0 %vm10970_vm0, %v15508_v21 }
 0x9e2   :  { %v4973_v49 = vadd.f32 %v9214_v6, %v4972_v57  ;;  %10553 = vmatprep.subr.mxu0 %v15508_v21  ;;  %v9225_v19 = vpop.f32.mrf.mxu0  ;;  %v5178_v57 = vsel %vm5157_vm12, 1.0, %v15508_v21 }
 0x9e3   :  { %10554 = vmatpush3.msra.mxu0 %v15559_v59  ;;  %v10509_v40 = vpop.f32.mrf.mxu1  ;;  %v9226_v15 = vadd.f32 %v9225_v19, %v9224_v11  ;;  %v15741_v11 = vld [vmem:[#allocation29_spill] sm:$0xff] }
 0x9e4   :  { %10555 = vmatprep.subr.mxu0 %v15508_v21  ;;  %10533 = vmatmul.mubr.msk.f32.gmra.mxu0 %vm82_vm1, %v4973_v49  ;;  %v15734_v49 = vld [vmem:[#allocation17_spill] sm:$0xff]  ;;  %v15735_v40 = vld [vmem:[#allocation24_spill] sm:$0xff] }
 0x9e5   :  { %10556 = vmatpush3.msra.mxu0 %v15560_v60  ;;  %v4977_v53 = vpop.f32.mrf.mxu1  ;;  %10535 = vmatprep.mubr.msk.f32.mxu0 %vm10970_vm0, %v15508_v21  ;;  %vm5175_vm4 = vcmp.eq.s32.totalorder %v15568_v18, %v15734_v49  ;;  %v15746_v19 = vld [vmem:[#allocation33_spill] sm:$0xff] }
 0x9e6   :  { %v4978_v46 = vadd.f32 %v9217_v26, %v4977_v53  ;;  %10557 = vmatprep.subr.mxu0 %v15508_v21  ;;  %v15737_v26 = vld [vmem:[#allocation26_spill] sm:$0xff]  ;;  %v5196_v45 = vsel %vm5175_vm4, 1.0, %v15508_v21  ;;  %v14187_v53 = vpop.permute.xlu1 %5557 }
 0x9e7   :  { %10558 = vmatpush3.msra.mxu0 %v15561_v37  ;;  %v10512_v3 = vpop.f32.mrf.mxu1 }
 0x9e8   :  { %10559 = vmatprep.subr.mxu0 %v15508_v21  ;;  %10536 = vmatmul.mubr.msk.f32.gmra.mxu0 %vm82_vm1, %v4978_v46  ;;  %v15738_v46 = vld [vmem:[#allocation27_spill] sm:$0xff]  ;;  %v15739_v3 = vld [vmem:[#allocation28_spill] sm:$0xff] }
 0x9e9   :  { %10560 = vmatpush3.msra.mxu0 %v15562_v8  ;;  %v4982_v22 = vpop.f32.mrf.mxu1  ;;  %10538 = vmatprep.mubr.msk.f32.mxu0 %vm10970_vm0, %v15508_v21 }
 0x9ea   :  { %v4983_v42 = vadd.f32 %v9220_v1, %v4982_v22  ;;  %10561 = vmatprep.subr.mxu0 %v15508_v21  ;;  %v15740_v1 = vld [vmem:[#allocation21_spill] sm:$0xff]  ;;  %v15742_v22 = vmov 1.0  }
 0x9eb   :  { %10562 = vmatpush3.msra.mxu0 %v15563_v24  ;;  %v10515_v5 = vpop.f32.mrf.mxu1  ;;  %vm5578_vm7 = vcmp.eq.s32.totalorder %v15740_v1, %v14187_v53 }
 0x9ec   :  { %10563 = vmatprep.subr.mxu0 %v15508_v21  ;;  %10539 = vmatmul.mubr.msk.f32.gmra.mxu0 %vm82_vm1, %v4983_v42  ;;  %v15743_v42 = vld [vmem:[#allocation30_spill] sm:$0xff]  ;;  %v15744_v5 = vld [vmem:[#allocation31_spill] sm:$0xff] }
 0x9ed   :  { %10564 = vmatpush3.msra.mxu0 %v15564_v35  ;;  %v4987_v39 = vpop.f32.mrf.mxu1  ;;  %10541 = vmatprep.mubr.msk.f32.mxu0 %vm10970_vm0, %v15508_v21 }
 0x9ee   :  { %v4988_v36 = vadd.f32 %v9223_v32, %v4987_v39  ;;  %10565 = vmatprep.subr.mxu0 %v15508_v21  ;;  %v15745_v32 = vld [vmem:[#allocation32_spill] sm:$0xff]  ;;  %v15747_v39 = vld [vmem:[#allocation34_spill] sm:$0xff] }
 0x9ef   :  { %10566 = vmatpush3.msra.mxu0 %v15565_v16  ;;  %v10518_v44 = vpop.f32.mrf.mxu1 }
 0x9f0   :  { %10567 = vmatprep.subr.mxu0 %v15508_v21  ;;  %10542 = vmatmul.mubr.msk.f32.gmra.mxu0 %vm82_vm1, %v4988_v36  ;;  %v14201_v36 = vpop.permute.xlu0 %5560  ;;  %v15748_v44 = vld [vmem:[#allocation20_spill] sm:$0xff] }
 0x9f1   :  { %10568 = vmatpush3.msra.mxu0 %v15566_v30  ;;  %v4992_v43 = vpop.f32.mrf.mxu1  ;;  %10544 = vmatprep.mubr.msk.f32.mxu0 %vm10970_vm0, %v15508_v21  ;;  %vm5577_vm8 = vcmp.eq.s32.totalorder %v15748_v44, %v14187_v53  ;;  %vm5581_vm9 = vcmp.eq.s32.totalorder %v15740_v1, %v14201_v36  ;;  %vm5580_vm10 = vcmp.eq.s32.totalorder %v15748_v44, %v14201_v36 }
 0x9f2   :  { %v4993_v6 = vadd.f32 %v9226_v15, %v4992_v43  ;;  %9334 = vmatprep.subr.mxu0 %v15567_v34  ;;  %v15749_v15 = vld [vmem:[#allocation35_spill] sm:$0xff]  ;;  %v14213_v43 = vpop.permute.xlu1 %5563 }
 0x9f3   :  { %v10521_v54 = vpop.f32.mrf.mxu1  ;;  %vm5584_vm11 = vcmp.eq.s32.totalorder %v15740_v1, %v14213_v43  ;;  %vm5583_vm12 = vcmp.eq.s32.totalorder %v15748_v44, %v14213_v43 }
 0x9f4   :  { %10545 = vmatmul.mubr.msk.f32.gmra.mxu0 %vm82_vm1, %v4993_v6  ;;  %v14219_v6 = vpop.permute.xlu0 %5566  ;;  %v8239_v54 = vld [vmem:[%s15354_s5 + $0xa8] sm:$0xff] }
 0x9f5   :  { %10569 = vmatprep.mubr.msk.f32.mxu0 %vm10970_vm0, %v15508_v21  ;;  %vm5587_vm13 = vcmp.eq.s32.totalorder %v15740_v1, %v14219_v6  ;;  %10591 = vmatpush3.msra.mxu1 %v8239_v54  ;;  %vm5586_vm14 = vcmp.eq.s32.totalorder %v15748_v44, %v14219_v6 }
 0x9f6   :  { %10592 = vmatprep.subr.mxu1 %v15508_v21 }
 0x9f8   :  { %10570 = vmatmul.mubr.msk.f32.vlgmr.msra.gmra.mxu0 %vm987_vm6, %v5178_v57  ;;  %v14232_v57 = vpop.permute.xlu1 %5569 }
 0x9f9   :  { %9335 = vmatpush3.msra.mxu0 %v11821_v12  ;;  %10572 = vmatprep.mubr.msk.f32.mxu0 %vm10970_vm0, %v15508_v21  ;;  %vm5590_vm15 = vcmp.eq.s32.totalorder %v15740_v1, %v14232_v57  ;;  %vm5589_vm2 = vcmp.eq.s32.totalorder %v15748_v44, %v14232_v57 }
 0x9fa   :  { %9336 = vmatprep.subr.mxu0 %v11834_v63 }
 0x9fb   :  { %9337 = vmatpush3.msra.mxu0 %v11840_v20 }
 0x9fc   :  { %9338 = vmatprep.subr.mxu0 %v11846_v55  ;;  %10573 = vmatmul.mubr.msk.f32.gmra.mxu0 %vm987_vm6, %v5181_v29  ;;  %v14239_v29 = vpop.permute.xlu0 %5572 }
 0x9fd   :  { %9339 = vmatpush3.msra.mxu0 %v11852_v56  ;;  %10575 = vmatprep.mubr.msk.f32.mxu0 %vm10970_vm0, %v15508_v21  ;;  %vm5593_vm3 = vcmp.eq.s32.totalorder %v15740_v1, %v14239_v29  ;;  %vm5592_vm4 = vcmp.eq.s32.totalorder %v15748_v44, %v14239_v29 }
 0x9fe   :  { %9340 = vmatprep.subr.mxu0 %v11858_v17 }
 0x9ff   :  { %9341 = vmatpush3.msra.mxu0 %v11864_v52 }
 0xa00   :  { %9342 = vmatprep.subr.mxu0 %v11870_v0  ;;  %10576 = vmatmul.mubr.msk.f32.gmra.mxu0 %vm987_vm6, %v5184_v9  ;;  %v14249_v9 = vpop.permute.xlu1 %5575 }
 0xa01   :  { %9343 = vmatpush3.msra.mxu0 %v11876_v62  ;;  %10578 = vmatprep.mubr.msk.f32.mxu0 %vm10970_vm0, %v15508_v21  ;;  %15750 = vst [vmem:[#allocation6_spill] sm:$0xff] %v14249_v9 }
 0xa02   :  { %9344 = vmatprep.subr.mxu0 %v11882_v23 }
 0xa03   :  { %9345 = vmatpush3.msra.mxu0 %v11888_v31 }
 0xa04   :  { %9346 = vmatprep.subr.mxu0 %v11894_v50  ;;  %10579 = vmatmul.mubr.msk.f32.gmra.mxu0 %vm987_vm6, %v5187_v4  ;;  %v8238_v4 = vld [vmem:[%s15354_s5 + $0xa0] sm:$0xff] }
 0xa05   :  { %9347 = vmatpush3.msra.mxu0 %v11900_v13  ;;  %10581 = vmatprep.mubr.msk.f32.mxu0 %vm10970_vm0, %v15508_v21 }
 0xa06   :  { %9348 = vmatprep.subr.mxu0 %v11906_v10  ;;  %10593 = vmatpush3.msra.mxu1 %v8238_v4 }
 0xa07   :  { %9349 = vmatpush3.msra.mxu0 %v11912_v27  ;;  %10615 = vmatprep.subr.mxu1 %v15508_v21 }
 0xa08   :  { %9350 = vmatprep.subr.mxu0 %v11918_v58  ;;  %10582 = vmatmul.mubr.msk.f32.gmra.mxu0 %vm987_vm6, %v5190_v33  ;;  %v9286_v33 = vpop.f32.mrf.mxu1 }
 0xa09   :  { %9351 = vmatpush3.msra.mxu0 %v11924_v48  ;;  %10584 = vmatprep.mubr.msk.f32.mxu0 %vm10970_vm0, %v15508_v21 }
 0xa0a   :  { %9352 = vmatprep.subr.mxu0 %v11930_v61 }
 0xa0b   :  { %9353 = vmatpush3.msra.mxu0 %v11939_v2 }
 0xa0c   :  { %9354 = vmatprep.subr.mxu0 %v15735_v40  ;;  %10585 = vmatmul.mubr.msk.f32.gmra.mxu0 %vm987_vm6, %v5193_v28  ;;  %v9287_v28 = vpop.f32.mrf.mxu1 }
 0xa0d   :  { %9355 = vmatpush3.msra.mxu0 %v15736_v25  ;;  %10587 = vmatprep.mubr.msk.f32.mxu0 %vm10970_vm0, %v15508_v21 }
 0xa0e   :  { %9356 = vmatprep.subr.mxu0 %v15737_v26  ;;  %v15757_v26 = vld [vmem:[#allocation5_spill] sm:$0xff] }
 0xa0f   :  { %9357 = vmatpush3.msra.mxu0 %v15738_v46 }
 0xa10   :  { %9358 = vmatprep.subr.mxu0 %v15739_v3  ;;  %10588 = vmatmul.mubr.msk.f32.gmra.mxu0 %vm987_vm6, %v5196_v45  ;;  %v15751_v45 = vld [vmem:[#allocation16_spill] sm:$0xff] }
 0xa11   :  { %9359 = vmatpush3.msra.mxu0 %v15741_v11  ;;  %8247 = vmatprep.mubr.msk.f32.mxu0 %vm5578_vm7, %v15742_v22  ;;  %vm5596_vm7 = vcmp.eq.s32.totalorder %v15740_v1, %v14249_v9 }
 0xa12   :  { %9360 = vmatprep.subr.mxu0 %v15743_v42 }
 0xa13   :  { %9361 = vmatpush3.msra.mxu0 %v15744_v5 }
 0xa14   :  { %9362 = vmatprep.subr.mxu0 %v15745_v32  ;;  %v15753_v32 = vld [vmem:[#allocation4_spill] sm:$0xff] }
 0xa15   :  { %9363 = vmatpush3.msra.mxu0 %v15746_v19 }
 0xa16   :  { %9364 = vmatprep.subr.mxu0 %v15747_v39  ;;  %v9289_v39 = vpop.f32.mrf.mxu1 }
 0xa17   :  { %9365 = vmatpush3.msra.mxu0 %v15749_v15 }
 0xa18   :  { %8248 = vmatmul.mubr.msk.f32.vlgmr.msra.gmra.mxu0 %vm5577_vm8, %v15742_v22  ;;  %10658 = vmatprep.subr.mxu0 %v15508_v21  ;;  %vm5595_vm8 = vcmp.eq.s32.totalorder %v15748_v44, %v14249_v9  ;;  %v9290_v44 = vpop.f32.mrf.mxu1 }
 0xa19   :  { %8249 = vmatprep.mubr.msk.f32.mxu0 %vm5581_vm9, %v15742_v22  ;;  %vm5579_vm9 = vcmp.eq.s32.totalorder %v15568_v18, %v14187_v53 }
 0xa1a   :  { %v9292_v3 = vpop.f32.mrf.mxu1 }
 0xa1c   :  { %8250 = vmatmul.mubr.msk.f32.gmra.mxu0 %vm5580_vm10, %v15742_v22  ;;  %vm5582_vm10 = vcmp.eq.s32.totalorder %v15568_v18, %v14201_v36 }
 0xa1d   :  { %8251 = vmatprep.mubr.msk.f32.mxu0 %vm5584_vm11, %v15742_v22  ;;  %v5603_v53 = vsel %vm5582_vm10, 1.0, %v15508_v21  ;;  %vm5585_vm11 = vcmp.eq.s32.totalorder %v15568_v18, %v14213_v43 }
 0xa1e   :  { %v5606_v36 = vsel %vm5585_vm11, 1.0, %v15508_v21 }
 0xa20   :  { %8252 = vmatmul.mubr.msk.f32.gmra.mxu0 %vm5583_vm12, %v15742_v22  ;;  %vm5588_vm12 = vcmp.eq.s32.totalorder %v15568_v18, %v14219_v6 }
 0xa21   :  { %8253 = vmatprep.mubr.msk.f32.mxu0 %vm5587_vm13, %v15742_v22  ;;  %v5609_v43 = vsel %vm5588_vm12, 1.0, %v15508_v21  ;;  %vm5591_vm13 = vcmp.eq.s32.totalorder %v15568_v18, %v14232_v57 }
 0xa22   :  { %v5612_v6 = vsel %vm5591_vm13, 1.0, %v15508_v21 }
 0xa24   :  { %8254 = vmatmul.mubr.msk.f32.gmra.mxu0 %vm5586_vm14, %v15742_v22  ;;  %vm5594_vm14 = vcmp.eq.s32.totalorder %v15568_v18, %v14239_v29  ;;  %v15761_v29 = vld [vmem:[#allocation25_spill] sm:$0xff] }
 0xa25   :  { %8255 = vmatprep.mubr.msk.f32.mxu0 %vm5590_vm15, %v15742_v22  ;;  %v5615_v57 = vsel %vm5594_vm14, 1.0, %v15508_v21 }
 0xa28   :  { %8256 = vmatmul.mubr.msk.f32.gmra.mxu0 %vm5589_vm2, %v15742_v22 }
 0xa29   :  { %8257 = vmatprep.mubr.msk.f32.mxu0 %vm5593_vm3, %v15742_v22 }
 0xa2c   :  { %8258 = vmatmul.mubr.msk.f32.gmra.mxu0 %vm5592_vm4, %v15742_v22 }
 0xa2d   :  { %8259 = vmatprep.mubr.msk.f32.mxu0 %vm5596_vm7, %v15742_v22 }
 0xa30   :  { %8260 = vmatmul.mubr.msk.f32.gmra.mxu0 %vm5595_vm8, %v15742_v22  ;;  %v15755_v22 = vld [vmem:[#allocation15_spill] sm:$0xff] }
 0xa31   :  { %10662 = vmatprep.mubr.msk.f32.mxu0 %vm10970_vm0, %v15508_v21 }
 0xa9c   :  { %v5086_v49 = vpop.f32.mrf.mxu0 }
 0xa9d   :  { %v14265_v54 = vadd.f32 %v5086_v49, %v15751_v45  ;;  %v9293_v45 = vpop.f32.mrf.mxu1 }
 0xa9e   :  { %v10528_v15 = vpop.f32.mrf.mxu0 }
 0xa9f   :  { %15752 = vst [vmem:[#allocation36_spill] sm:$0xff] %v14265_v54 }
 0xaa0   :  { %v5091_v19 = vpop.f32.mrf.mxu0 }
 0xaa1   :  { %v14268_v5 = vadd.f32 %v5091_v19, %v15753_v32  ;;  %v9295_v19 = vpop.f32.mrf.mxu1 }
 0xaa2   :  { %v10531_v4 = vpop.f32.mrf.mxu0 }
 0xaa3   :  { %15754 = vst [vmem:[#allocation23_spill] sm:$0xff] %v14268_v5 }
 0xaa4   :  { %v5096_v42 = vpop.f32.mrf.mxu0 }
 0xaa5   :  { %v14271_v11 = vadd.f32 %v5096_v42, %v15755_v22  ;;  %v9296_v42 = vpop.f32.mrf.mxu1 }
 0xaa6   :  { %v10534_v1 = vpop.f32.mrf.mxu0 }
 0xaa7   :  { %15756 = vst [vmem:[#allocation37_spill] sm:$0xff] %v14271_v11 }
 0xaa8   :  { %v5101_v46 = vpop.f32.mrf.mxu0 }
 0xaa9   :  { %v14274_v25 = vadd.f32 %v5101_v46, %v15757_v26  ;;  %v9288_v46 = vadd.f32 %v9287_v28, %v9286_v33  ;;  %v9294_v33 = vadd.f32 %v9293_v45, %v9292_v3 }
 0xaaa   :  { %v10537_v49 = vpop.f32.mrf.mxu0 }
 0xaab   :  { %15758 = vst [vmem:[#allocation7_spill] sm:$0xff] %v14274_v25  ;;  %v9298_v49 = vpop.f32.mrf.mxu1 }
 0xaac   :  { %v5106_v15 = vpop.f32.mrf.mxu0 }
 0xaad   :  { %v14277_v54 = vadd.f32 %v5106_v15, %v14074_v47  ;;  %v9291_v47 = vadd.f32 %v9290_v44, %v9289_v39  ;;  %v9299_v15 = vpop.f32.mrf.mxu1 }
 0xaae   :  { %v10540_v32 = vpop.f32.mrf.mxu0 }
 0xab0   :  { %v5111_v4 = vpop.f32.mrf.mxu0 }
 0xab1   :  { %v14280_v5 = vadd.f32 %v5111_v4, %v14077_v38 }
 0xab2   :  { %v10543_v22 = vpop.f32.mrf.mxu0 }
 0xab3   :  { %v9300_v22 = vadd.f32 %v9299_v15, %v9298_v49 }
 0xab4   :  { %v5116_v1 = vpop.f32.mrf.mxu0 }
 0xab5   :  { %v14283_v11 = vadd.f32 %v5116_v1, %v14080_v51 }
 0xab6   :  { %v10546_v26 = vpop.f32.mrf.mxu0 }
 0xab8   :  { %v5384_v25 = vpop.f32.mrf.mxu0 }
 0xab9   :  { %v5385_v40 = vadd.f32 %v9288_v46, %v5384_v25 }
 0xaba   :  { %v10571_v9 = vpop.f32.mrf.mxu0 }
 0xabb   :  { %10595 = vmatmul.mubr.msk.f32.vlgmr.msra.gmra.mxu1 %vm82_vm1, %v5385_v40  ;;  %v9301_v40 = vpop.f32.mrf.mxu1  ;;  %v9297_v9 = vadd.f32 %v9296_v42, %v9295_v19 }
 0xabc   :  { %10616 = vmatpush3.msk.msra.mxu1 %vm1009_vm5, %v12004_v14  ;;  %v5389_v38 = vpop.f32.mrf.mxu0  ;;  %10597 = vmatprep.mubr.msk.f32.mxu1 %vm10970_vm0, %v15508_v21 }
 0xabd   :  { %v5390_v32 = vadd.f32 %v9291_v47, %v5389_v38  ;;  %10617 = vmatprep.subr.mxu1 %v15508_v21  ;;  %v9302_v3 = vpop.f32.mrf.mxu1 }
 0xabe   :  { %10618 = vmatpush3.msra.mxu1 %v15557_v7  ;;  %v10574_v51 = vpop.f32.mrf.mxu0  ;;  %v9303_v46 = vadd.f32 %v9302_v3, %v9301_v40  ;;  %v14389_v3 = vpop.permute.xlu0 %5979 }
 0xabf   :  { %10619 = vmatprep.subr.mxu1 %v15508_v21  ;;  %10598 = vmatmul.mubr.msk.f32.gmra.mxu1 %vm82_vm1, %v5390_v32  ;;  %v9304_v19 = vpop.f32.mrf.mxu1 }
 0xac0   :  { %10620 = vmatpush3.msra.mxu1 %v15558_v41  ;;  %v5394_v25 = vpop.f32.mrf.mxu0  ;;  %10600 = vmatprep.mubr.msk.f32.mxu1 %vm10970_vm0, %v15508_v21 }
 0xac1   :  { %v5395_v39 = vadd.f32 %v9294_v33, %v5394_v25  ;;  %10621 = vmatprep.subr.mxu1 %v15508_v21  ;;  %v9305_v49 = vpop.f32.mrf.mxu1  ;;  %v5600_v25 = vsel %vm5579_vm9, 1.0, %v15508_v21 }
 0xac2   :  { %10622 = vmatpush3.msra.mxu1 %v15559_v59  ;;  %v10577_v44 = vpop.f32.mrf.mxu0  ;;  %v9306_v32 = vadd.f32 %v9305_v49, %v9304_v19  ;;  %v15766_v19 = vld [vmem:[#allocation29_spill] sm:$0xff] }
 0xac3   :  { %10623 = vmatprep.subr.mxu1 %v15508_v21  ;;  %10601 = vmatmul.mubr.msk.f32.gmra.mxu1 %vm82_vm1, %v5395_v39  ;;  %v15759_v39 = vld [vmem:[#allocation6_spill] sm:$0xff]  ;;  %v15760_v44 = vld [vmem:[#allocation24_spill] sm:$0xff]  ;;  %v15771_v49 = vld [vmem:[#allocation33_spill] sm:$0xff] }
 0xac4   :  { %10624 = vmatpush3.msra.mxu1 %v15560_v60  ;;  %v5399_v28 = vpop.f32.mrf.mxu0  ;;  %10603 = vmatprep.mubr.msk.f32.mxu1 %vm10970_vm0, %v15508_v21  ;;  %vm5597_vm15 = vcmp.eq.s32.totalorder %v15568_v18, %v15759_v39 }
 0xac5   :  { %v5400_v45 = vadd.f32 %v9297_v9, %v5399_v28  ;;  %10625 = vmatprep.subr.mxu1 %v15508_v21  ;;  %v15762_v9 = vld [vmem:[#allocation26_spill] sm:$0xff]  ;;  %v5618_v28 = vsel %vm5597_vm15, 1.0, %v15508_v21 }
 0xac6   :  { %10626 = vmatpush3.msra.mxu1 %v15561_v37  ;;  %v10580_v4 = vpop.f32.mrf.mxu0 }
 0xac7   :  { %10627 = vmatprep.subr.mxu1 %v15508_v21  ;;  %10604 = vmatmul.mubr.msk.f32.gmra.mxu1 %vm82_vm1, %v5400_v45  ;;  %v15763_v45 = vld [vmem:[#allocation27_spill] sm:$0xff]  ;;  %v15764_v4 = vld [vmem:[#allocation28_spill] sm:$0xff] }
 0xac8   :  { %10628 = vmatpush3.msra.mxu1 %v15562_v8  ;;  %v5404_v42 = vpop.f32.mrf.mxu0  ;;  %10606 = vmatprep.mubr.msk.f32.mxu1 %vm10970_vm0, %v15508_v21 }
 0xac9   :  { %v5405_v1 = vadd.f32 %v9300_v22, %v5404_v42  ;;  %10629 = vmatprep.subr.mxu1 %v15508_v21  ;;  %v15765_v22 = vld [vmem:[#allocation21_spill] sm:$0xff]  ;;  %v15767_v42 = vmov 1.0  }
 0xaca   :  { %10630 = vmatpush3.msra.mxu1 %v15563_v24  ;;  %v10583_v26 = vpop.f32.mrf.mxu0  ;;  %vm6000_vm2 = vcmp.eq.s32.totalorder %v15765_v22, %v14389_v3 }
 0xacb   :  { %10631 = vmatprep.subr.mxu1 %v15508_v21  ;;  %10607 = vmatmul.mubr.msk.f32.gmra.mxu1 %vm82_vm1, %v5405_v1  ;;  %v15768_v1 = vld [vmem:[#allocation30_spill] sm:$0xff]  ;;  %v15769_v26 = vld [vmem:[#allocation31_spill] sm:$0xff] }
 0xacc   :  { %10632 = vmatpush3.msra.mxu1 %v15564_v35  ;;  %v5409_v47 = vpop.f32.mrf.mxu0  ;;  %10609 = vmatprep.mubr.msk.f32.mxu1 %vm10970_vm0, %v15508_v21 }
 0xacd   :  { %v5410_v15 = vadd.f32 %v9303_v46, %v5409_v47  ;;  %10633 = vmatprep.subr.mxu1 %v15508_v21  ;;  %v15770_v46 = vld [vmem:[#allocation32_spill] sm:$0xff]  ;;  %v15772_v47 = vld [vmem:[#allocation34_spill] sm:$0xff] }
 0xace   :  { %10634 = vmatpush3.msra.mxu1 %v15565_v16  ;;  %v10586_v38 = vpop.f32.mrf.mxu0 }
 0xacf   :  { %10635 = vmatprep.subr.mxu1 %v15508_v21  ;;  %10610 = vmatmul.mubr.msk.f32.gmra.mxu1 %vm82_vm1, %v5410_v15  ;;  %v15773_v15 = vld [vmem:[#allocation20_spill] sm:$0xff]  ;;  %v14406_v38 = vpop.permute.xlu1 %5982 }
 0xad0   :  { %10636 = vmatpush3.msra.mxu1 %v15566_v30  ;;  %v5414_v51 = vpop.f32.mrf.mxu0  ;;  %10612 = vmatprep.mubr.msk.f32.mxu1 %vm10970_vm0, %v15508_v21  ;;  %vm5999_vm3 = vcmp.eq.s32.totalorder %v15773_v15, %v14389_v3  ;;  %vm6003_vm4 = vcmp.eq.s32.totalorder %v15765_v22, %v14406_v38  ;;  %vm6002_vm7 = vcmp.eq.s32.totalorder %v15773_v15, %v14406_v38 }
 0xad1   :  { %v5415_v33 = vadd.f32 %v9306_v32, %v5414_v51  ;;  %9414 = vmatprep.subr.mxu1 %v15567_v34  ;;  %v15774_v32 = vld [vmem:[#allocation35_spill] sm:$0xff]  ;;  %v14414_v51 = vpop.permute.xlu0 %5985 }
 0xad2   :  { %v10589_v40 = vpop.f32.mrf.mxu0  ;;  %vm6006_vm8 = vcmp.eq.s32.totalorder %v15765_v22, %v14414_v51  ;;  %vm6005_vm9 = vcmp.eq.s32.totalorder %v15773_v15, %v14414_v51 }
 0xad3   :  { %10613 = vmatmul.mubr.msk.f32.gmra.mxu1 %vm82_vm1, %v5415_v33  ;;  %v14424_v33 = vpop.permute.xlu1 %5988  ;;  %v8270_v40 = vld [vmem:[%s15354_s5 + $0xb8] sm:$0xff] }
 0xad4   :  { %10637 = vmatprep.mubr.msk.f32.mxu1 %vm10970_vm0, %v15508_v21  ;;  %vm6009_vm10 = vcmp.eq.s32.totalorder %v15765_v22, %v14424_v33  ;;  %10659 = vmatpush3.msra.mxu0 %v8270_v40  ;;  %vm6008_vm11 = vcmp.eq.s32.totalorder %v15773_v15, %v14424_v33 }
 0xad5   :  { %10660 = vmatprep.subr.mxu0 %v15508_v21 }
 0xad7   :  { %10638 = vmatmul.mubr.msk.f32.vlgmr.msra.gmra.mxu1 %vm987_vm6, %v5600_v25  ;;  %v14433_v25 = vpop.permute.xlu0 %5991 }
 0xad8   :  { %9415 = vmatpush3.msra.mxu1 %v11821_v12  ;;  %10640 = vmatprep.mubr.msk.f32.mxu1 %vm10970_vm0, %v15508_v21  ;;  %vm6012_vm12 = vcmp.eq.s32.totalorder %v15765_v22, %v14433_v25  ;;  %vm6011_vm13 = vcmp.eq.s32.totalorder %v15773_v15, %v14433_v25 }
 0xad9   :  { %9416 = vmatprep.subr.mxu1 %v11834_v63 }
 0xada   :  { %9417 = vmatpush3.msra.mxu1 %v11840_v20 }
 0xadb   :  { %9418 = vmatprep.subr.mxu1 %v11846_v55  ;;  %10641 = vmatmul.mubr.msk.f32.gmra.mxu1 %vm987_vm6, %v5603_v53  ;;  %v14444_v53 = vpop.permute.xlu1 %5994 }
 0xadc   :  { %9419 = vmatpush3.msra.mxu1 %v11852_v56  ;;  %10643 = vmatprep.mubr.msk.f32.mxu1 %vm10970_vm0, %v15508_v21  ;;  %vm6015_vm14 = vcmp.eq.s32.totalorder %v15765_v22, %v14444_v53  ;;  %vm6014_vm15 = vcmp.eq.s32.totalorder %v15773_v15, %v14444_v53 }
 0xadd   :  { %9420 = vmatprep.subr.mxu1 %v11858_v17 }
 0xade   :  { %9421 = vmatpush3.msra.mxu1 %v11864_v52 }
 0xadf   :  { %9422 = vmatprep.subr.mxu1 %v11870_v0  ;;  %10644 = vmatmul.mubr.msk.f32.gmra.mxu1 %vm987_vm6, %v5606_v36  ;;  %v14450_v36 = vpop.permute.xlu0 %5997 }
 0xae0   :  { %9423 = vmatpush3.msra.mxu1 %v11876_v62  ;;  %10646 = vmatprep.mubr.msk.f32.mxu1 %vm10970_vm0, %v15508_v21  ;;  %15775 = vst [vmem:[#allocation8_spill] sm:$0xff] %v14450_v36 }
 0xae1   :  { %9424 = vmatprep.subr.mxu1 %v11882_v23 }
 0xae2   :  { %9425 = vmatpush3.msra.mxu1 %v11888_v31 }
 0xae3   :  { %9426 = vmatprep.subr.mxu1 %v11894_v50  ;;  %10647 = vmatmul.mubr.msk.f32.gmra.mxu1 %vm987_vm6, %v5609_v43  ;;  %v8269_v43 = vld [vmem:[%s15354_s5 + $0xb0] sm:$0xff] }
 0xae4   :  { %9427 = vmatpush3.msra.mxu1 %v11900_v13  ;;  %10649 = vmatprep.mubr.msk.f32.mxu1 %vm10970_vm0, %v15508_v21 }
 0xae5   :  { %9428 = vmatprep.subr.mxu1 %v11906_v10  ;;  %10661 = vmatpush3.msra.mxu0 %v8269_v43 }
 0xae6   :  { %9429 = vmatpush3.msra.mxu1 %v11912_v27  ;;  %10683 = vmatprep.subr.mxu0 %v15508_v21 }
 0xae7   :  { %9430 = vmatprep.subr.mxu1 %v11918_v58  ;;  %10650 = vmatmul.mubr.msk.f32.gmra.mxu1 %vm987_vm6, %v5612_v6  ;;  %v9366_v6 = vpop.f32.mrf.mxu0 }
 0xae8   :  { %9431 = vmatpush3.msra.mxu1 %v11924_v48  ;;  %10652 = vmatprep.mubr.msk.f32.mxu1 %vm10970_vm0, %v15508_v21 }
 0xae9   :  { %9432 = vmatprep.subr.mxu1 %v11930_v61 }
 0xaea   :  { %9433 = vmatpush3.msra.mxu1 %v11939_v2 }
 0xaeb   :  { %9434 = vmatprep.subr.mxu1 %v15760_v44  ;;  %10653 = vmatmul.mubr.msk.f32.gmra.mxu1 %vm987_vm6, %v5615_v57  ;;  %v9367_v57 = vpop.f32.mrf.mxu0 }
 0xaec   :  { %9435 = vmatpush3.msra.mxu1 %v15761_v29  ;;  %10655 = vmatprep.mubr.msk.f32.mxu1 %vm10970_vm0, %v15508_v21 }
 0xaed   :  { %9436 = vmatprep.subr.mxu1 %v15762_v9  ;;  %v15782_v9 = vld [vmem:[#allocation7_spill] sm:$0xff] }
 0xaee   :  { %9437 = vmatpush3.msra.mxu1 %v15763_v45 }
 0xaef   :  { %9438 = vmatprep.subr.mxu1 %v15764_v4  ;;  %10656 = vmatmul.mubr.msk.f32.gmra.mxu1 %vm987_vm6, %v5618_v28  ;;  %v15776_v28 = vld [vmem:[#allocation36_spill] sm:$0xff] }
 0xaf0   :  { %9439 = vmatpush3.msra.mxu1 %v15766_v19  ;;  %8278 = vmatprep.mubr.msk.f32.mxu1 %vm6000_vm2, %v15767_v42  ;;  %vm6018_vm2 = vcmp.eq.s32.totalorder %v15765_v22, %v14450_v36 }
 0xaf1   :  { %9440 = vmatprep.subr.mxu1 %v15768_v1 }
 0xaf2   :  { %9441 = vmatpush3.msra.mxu1 %v15769_v26 }
 0xaf3   :  { %9442 = vmatprep.subr.mxu1 %v15770_v46  ;;  %v15778_v46 = vld [vmem:[#allocation23_spill] sm:$0xff] }
 0xaf4   :  { %9443 = vmatpush3.msra.mxu1 %v15771_v49 }
 0xaf5   :  { %9444 = vmatprep.subr.mxu1 %v15772_v47  ;;  %v9369_v47 = vpop.f32.mrf.mxu0 }
 0xaf6   :  { %9445 = vmatpush3.msra.mxu1 %v15774_v32 }
 0xaf7   :  { %8279 = vmatmul.mubr.msk.f32.vlgmr.msra.gmra.mxu1 %vm5999_vm3, %v15767_v42  ;;  %10726 = vmatprep.subr.mxu1 %v15508_v21  ;;  %vm6017_vm3 = vcmp.eq.s32.totalorder %v15773_v15, %v14450_v36  ;;  %v9370_v15 = vpop.f32.mrf.mxu0 }
 0xaf8   :  { %8280 = vmatprep.mubr.msk.f32.mxu1 %vm6003_vm4, %v15767_v42  ;;  %vm6001_vm4 = vcmp.eq.s32.totalorder %v15568_v18, %v14389_v3 }
 0xaf9   :  { %v9372_v4 = vpop.f32.mrf.mxu0 }
 0xafb   :  { %8281 = vmatmul.mubr.msk.f32.gmra.mxu1 %vm6002_vm7, %v15767_v42  ;;  %vm6004_vm7 = vcmp.eq.s32.totalorder %v15568_v18, %v14406_v38 }
 0xafc   :  { %8282 = vmatprep.mubr.msk.f32.mxu1 %vm6006_vm8, %v15767_v42  ;;  %v6025_v3 = vsel %vm6004_vm7, 1.0, %v15508_v21  ;;  %vm6007_vm8 = vcmp.eq.s32.totalorder %v15568_v18, %v14414_v51 }
 0xafd   :  { %v6028_v38 = vsel %vm6007_vm8, 1.0, %v15508_v21 }
 0xaff   :  { %8283 = vmatmul.mubr.msk.f32.gmra.mxu1 %vm6005_vm9, %v15767_v42  ;;  %vm6010_vm9 = vcmp.eq.s32.totalorder %v15568_v18, %v14424_v33 }
 0xb00   :  { %8284 = vmatprep.mubr.msk.f32.mxu1 %vm6009_vm10, %v15767_v42  ;;  %v6031_v51 = vsel %vm6010_vm9, 1.0, %v15508_v21  ;;  %vm6013_vm10 = vcmp.eq.s32.totalorder %v15568_v18, %v14433_v25 }
 0xb01   :  { %v6034_v33 = vsel %vm6013_vm10, 1.0, %v15508_v21 }
 0xb03   :  { %8285 = vmatmul.mubr.msk.f32.gmra.mxu1 %vm6008_vm11, %v15767_v42  ;;  %vm6016_vm11 = vcmp.eq.s32.totalorder %v15568_v18, %v14444_v53  ;;  %v15786_v53 = vld [vmem:[#allocation25_spill] sm:$0xff] }
 0xb04   :  { %8286 = vmatprep.mubr.msk.f32.mxu1 %vm6012_vm12, %v15767_v42  ;;  %v6037_v25 = vsel %vm6016_vm11, 1.0, %v15508_v21 }
 0xb07   :  { %8287 = vmatmul.mubr.msk.f32.gmra.mxu1 %vm6011_vm13, %v15767_v42 }
 0xb08   :  { %8288 = vmatprep.mubr.msk.f32.mxu1 %vm6015_vm14, %v15767_v42 }
 0xb0b   :  { %8289 = vmatmul.mubr.msk.f32.gmra.mxu1 %vm6014_vm15, %v15767_v42 }
 0xb0c   :  { %8290 = vmatprep.mubr.msk.f32.mxu1 %vm6018_vm2, %v15767_v42 }
 0xb0f   :  { %8291 = vmatmul.mubr.msk.f32.gmra.mxu1 %vm6017_vm3, %v15767_v42  ;;  %v15780_v42 = vld [vmem:[#allocation37_spill] sm:$0xff] }
 0xb10   :  { %10730 = vmatprep.mubr.msk.f32.mxu1 %vm10970_vm0, %v15508_v21 }
 0xb7b   :  { %v5508_v39 = vpop.f32.mrf.mxu1 }
 0xb7c   :  { %v14468_v40 = vadd.f32 %v5508_v39, %v15776_v28  ;;  %v9373_v28 = vpop.f32.mrf.mxu0 }
 0xb7d   :  { %v10596_v32 = vpop.f32.mrf.mxu1 }
 0xb7e   :  { %15777 = vst [vmem:[#allocation9_spill] sm:$0xff] %v14468_v40 }
 0xb7f   :  { %v5513_v49 = vpop.f32.mrf.mxu1 }
 0xb80   :  { %v14471_v26 = vadd.f32 %v5513_v49, %v15778_v46  ;;  %v9375_v49 = vpop.f32.mrf.mxu0 }
 0xb81   :  { %v10599_v43 = vpop.f32.mrf.mxu1 }
 0xb82   :  { %15779 = vst [vmem:[#allocation10_spill] sm:$0xff] %v14471_v26 }
 0xb83   :  { %v5518_v1 = vpop.f32.mrf.mxu1 }
 0xb84   :  { %v14474_v19 = vadd.f32 %v5518_v1, %v15780_v42  ;;  %v9376_v1 = vpop.f32.mrf.mxu0 }
 0xb85   :  { %v10602_v22 = vpop.f32.mrf.mxu1 }
 0xb86   :  { %15781 = vst [vmem:[#allocation11_spill] sm:$0xff] %v14474_v19 }
 0xb87   :  { %v5523_v45 = vpop.f32.mrf.mxu1 }
 0xb88   :  { %v14477_v29 = vadd.f32 %v5523_v45, %v15782_v9  ;;  %v9368_v45 = vadd.f32 %v9367_v57, %v9366_v6  ;;  %v9374_v6 = vadd.f32 %v9373_v28, %v9372_v4 }
 0xb89   :  { %v10605_v39 = vpop.f32.mrf.mxu1 }
 0xb8a   :  { %15783 = vst [vmem:[#allocation12_spill] sm:$0xff] %v14477_v29  ;;  %v9378_v39 = vpop.f32.mrf.mxu0 }
 0xb8b   :  { %v5528_v32 = vpop.f32.mrf.mxu1 }
 0xb8c   :  { %v14480_v40 = vadd.f32 %v5528_v32, %v14277_v54  ;;  %v9371_v54 = vadd.f32 %v9370_v15, %v9369_v47  ;;  %v9379_v32 = vpop.f32.mrf.mxu0 }
 0xb8d   :  { %v10608_v46 = vpop.f32.mrf.mxu1 }
 0xb8f   :  { %v5533_v43 = vpop.f32.mrf.mxu1 }
 0xb90   :  { %v14483_v26 = vadd.f32 %v5533_v43, %v14280_v5 }
 0xb91   :  { %v10611_v42 = vpop.f32.mrf.mxu1 }
 0xb92   :  { %v9380_v42 = vadd.f32 %v9379_v32, %v9378_v39 }
 0xb93   :  { %v5538_v22 = vpop.f32.mrf.mxu1 }
 0xb94   :  { %v14486_v19 = vadd.f32 %v5538_v22, %v14283_v11 }
 0xb95   :  { %v10614_v9 = vpop.f32.mrf.mxu1 }
 0xb97   :  { %v5806_v29 = vpop.f32.mrf.mxu1 }
 0xb98   :  { %v5807_v44 = vadd.f32 %v9368_v45, %v5806_v29 }
 0xb99   :  { %v10639_v36 = vpop.f32.mrf.mxu1 }
 0xb9a   :  { %10663 = vmatmul.mubr.msk.f32.vlgmr.msra.gmra.mxu0 %vm82_vm1, %v5807_v44  ;;  %v9381_v44 = vpop.f32.mrf.mxu0  ;;  %v9377_v36 = vadd.f32 %v9376_v1, %v9375_v49 }
 0xb9b   :  { %10684 = vmatpush3.msk.msra.mxu0 %vm1009_vm5, %v12004_v14  ;;  %v5811_v5 = vpop.f32.mrf.mxu1  ;;  %10665 = vmatprep.mubr.msk.f32.mxu0 %vm10970_vm0, %v15508_v21 }
 0xb9c   :  { %v5812_v46 = vadd.f32 %v9371_v54, %v5811_v5  ;;  %10685 = vmatprep.subr.mxu0 %v15508_v21  ;;  %v9382_v4 = vpop.f32.mrf.mxu0 }
 0xb9d   :  { %10686 = vmatpush3.msra.mxu0 %v15557_v7  ;;  %v10642_v11 = vpop.f32.mrf.mxu1  ;;  %v9383_v45 = vadd.f32 %v9382_v4, %v9381_v44 }
 0xb9e   :  { %10687 = vmatprep.subr.mxu0 %v15508_v21  ;;  %10666 = vmatmul.mubr.msk.f32.gmra.mxu0 %vm82_vm1, %v5812_v46  ;;  %v9384_v49 = vpop.f32.mrf.mxu0 }
 0xb9f   :  { %10688 = vmatpush3.msra.mxu0 %v15558_v41  ;;  %v5816_v29 = vpop.f32.mrf.mxu1  ;;  %10668 = vmatprep.mubr.msk.f32.mxu0 %vm10970_vm0, %v15508_v21 }
 0xba0   :  { %v5817_v47 = vadd.f32 %v9374_v6, %v5816_v29  ;;  %10689 = vmatprep.subr.mxu0 %v15508_v21  ;;  %v9385_v39 = vpop.f32.mrf.mxu0  ;;  %v6022_v29 = vsel %vm6001_vm4, 1.0, %v15508_v21 }
 0xba1   :  { %10690 = vmatpush3.msra.mxu0 %v15559_v59  ;;  %v10645_v15 = vpop.f32.mrf.mxu1  ;;  %v9386_v46 = vadd.f32 %v9385_v39, %v9384_v49  ;;  %v15791_v49 = vld [vmem:[#allocation29_spill] sm:$0xff] }
 0xba2   :  { %10691 = vmatprep.subr.mxu0 %v15508_v21  ;;  %10669 = vmatmul.mubr.msk.f32.gmra.mxu0 %vm82_vm1, %v5817_v47  ;;  %v15784_v47 = vld [vmem:[#allocation8_spill] sm:$0xff]  ;;  %v15796_v39 = vld [vmem:[#allocation33_spill] sm:$0xff] }
 0xba3   :  { %10692 = vmatpush3.msra.mxu0 %v15560_v60  ;;  %v5821_v57 = vpop.f32.mrf.mxu1  ;;  %10671 = vmatprep.mubr.msk.f32.mxu0 %vm10970_vm0, %v15508_v21  ;;  %vm6019_vm12 = vcmp.eq.s32.totalorder %v15568_v18, %v15784_v47  ;;  %v15785_v15 = vld [vmem:[#allocation24_spill] sm:$0xff] }
 0xba4   :  { %v5822_v28 = vadd.f32 %v9377_v36, %v5821_v57  ;;  %10693 = vmatprep.subr.mxu0 %v15508_v21  ;;  %v15787_v36 = vld [vmem:[#allocation26_spill] sm:$0xff]  ;;  %v6040_v4 = vsel %vm6019_vm12, 1.0, %v15508_v21  ;;  %v14593_v57 = vpop.permute.xlu1 %6401 }
 0xba5   :  { %10694 = vmatpush3.msra.mxu0 %v15561_v37  ;;  %v10648_v43 = vpop.f32.mrf.mxu1 }
 0xba6   :  { %10695 = vmatprep.subr.mxu0 %v15508_v21  ;;  %10672 = vmatmul.mubr.msk.f32.gmra.mxu0 %vm82_vm1, %v5822_v28  ;;  %v15788_v28 = vld [vmem:[#allocation27_spill] sm:$0xff]  ;;  %v15789_v43 = vld [vmem:[#allocation28_spill] sm:$0xff] }
 0xba7   :  { %10696 = vmatpush3.msra.mxu0 %v15562_v8  ;;  %v5826_v1 = vpop.f32.mrf.mxu1  ;;  %10674 = vmatprep.mubr.msk.f32.mxu0 %vm10970_vm0, %v15508_v21 }
 0xba8   :  { %v5827_v22 = vadd.f32 %v9380_v42, %v5826_v1  ;;  %10697 = vmatprep.subr.mxu0 %v15508_v21  ;;  %v15790_v42 = vld [vmem:[#allocation21_spill] sm:$0xff]  ;;  %v15792_v1 = vmov 1.0  }
 0xba9   :  { %10698 = vmatpush3.msra.mxu0 %v15563_v24  ;;  %v10651_v9 = vpop.f32.mrf.mxu1  ;;  %vm6422_vm13 = vcmp.eq.s32.totalorder %v15790_v42, %v14593_v57 }
 0xbaa   :  { %10699 = vmatprep.subr.mxu0 %v15508_v21  ;;  %10675 = vmatmul.mubr.msk.f32.gmra.mxu0 %vm82_vm1, %v5827_v22  ;;  %v15793_v22 = vld [vmem:[#allocation30_spill] sm:$0xff]  ;;  %v15794_v9 = vld [vmem:[#allocation31_spill] sm:$0xff] }
 0xbab   :  { %10700 = vmatpush3.msra.mxu0 %v15564_v35  ;;  %v5831_v54 = vpop.f32.mrf.mxu1  ;;  %10677 = vmatprep.mubr.msk.f32.mxu0 %vm10970_vm0, %v15508_v21 }
 0xbac   :  { %v5832_v32 = vadd.f32 %v9383_v45, %v5831_v54  ;;  %10701 = vmatprep.subr.mxu0 %v15508_v21  ;;  %v15795_v45 = vld [vmem:[#allocation32_spill] sm:$0xff]  ;;  %v15797_v54 = vld [vmem:[#allocation34_spill] sm:$0xff] }
 0xbad   :  { %10702 = vmatpush3.msra.mxu0 %v15565_v16  ;;  %v10654_v5 = vpop.f32.mrf.mxu1 }
 0xbae   :  { %10703 = vmatprep.subr.mxu0 %v15508_v21  ;;  %10678 = vmatmul.mubr.msk.f32.gmra.mxu0 %vm82_vm1, %v5832_v32  ;;  %v14607_v32 = vpop.permute.xlu0 %6404  ;;  %v15798_v5 = vld [vmem:[#allocation20_spill] sm:$0xff] }
 0xbaf   :  { %10704 = vmatpush3.msra.mxu0 %v15566_v30  ;;  %v5836_v11 = vpop.f32.mrf.mxu1  ;;  %10680 = vmatprep.mubr.msk.f32.mxu0 %vm10970_vm0, %v15508_v21  ;;  %vm6421_vm14 = vcmp.eq.s32.totalorder %v15798_v5, %v14593_v57  ;;  %vm6425_vm15 = vcmp.eq.s32.totalorder %v15790_v42, %v14607_v32  ;;  %vm6424_vm2 = vcmp.eq.s32.totalorder %v15798_v5, %v14607_v32 }
 0xbb0   :  { %v5837_v6 = vadd.f32 %v9386_v46, %v5836_v11  ;;  %9494 = vmatprep.subr.mxu0 %v15567_v34  ;;  %v15799_v46 = vld [vmem:[#allocation35_spill] sm:$0xff]  ;;  %v14619_v11 = vpop.permute.xlu1 %6407 }
 0xbb1   :  { %v10657_v44 = vpop.f32.mrf.mxu1  ;;  %vm6428_vm3 = vcmp.eq.s32.totalorder %v15790_v42, %v14619_v11  ;;  %vm6427_vm4 = vcmp.eq.s32.totalorder %v15798_v5, %v14619_v11 }
 0xbb2   :  { %10681 = vmatmul.mubr.msk.f32.gmra.mxu0 %vm82_vm1, %v5837_v6  ;;  %v14625_v6 = vpop.permute.xlu0 %6410  ;;  %v8301_v44 = vld [vmem:[%s15354_s5 + $0xc8] sm:$0xff] }
 0xbb3   :  { %10705 = vmatprep.mubr.msk.f32.mxu0 %vm10970_vm0, %v15508_v21  ;;  %vm6431_vm7 = vcmp.eq.s32.totalorder %v15790_v42, %v14625_v6  ;;  %10727 = vmatpush3.msra.mxu1 %v8301_v44  ;;  %vm6430_vm8 = vcmp.eq.s32.totalorder %v15798_v5, %v14625_v6 }
 0xbb4   :  { %10728 = vmatprep.subr.mxu1 %v15508_v21 }
 0xbb6   :  { %10706 = vmatmul.mubr.msk.f32.vlgmr.msra.gmra.mxu0 %vm987_vm6, %v6022_v29  ;;  %v14638_v29 = vpop.permute.xlu1 %6413 }
 0xbb7   :  { %9495 = vmatpush3.msra.mxu0 %v11821_v12  ;;  %10708 = vmatprep.mubr.msk.f32.mxu0 %vm10970_vm0, %v15508_v21  ;;  %vm6434_vm9 = vcmp.eq.s32.totalorder %v15790_v42, %v14638_v29  ;;  %vm6433_vm10 = vcmp.eq.s32.totalorder %v15798_v5, %v14638_v29 }
 0xbb8   :  { %9496 = vmatprep.subr.mxu0 %v11834_v63 }
 0xbb9   :  { %9497 = vmatpush3.msra.mxu0 %v11840_v20 }
 0xbba   :  { %9498 = vmatprep.subr.mxu0 %v11846_v55  ;;  %10709 = vmatmul.mubr.msk.f32.gmra.mxu0 %vm987_vm6, %v6025_v3  ;;  %v14645_v3 = vpop.permute.xlu0 %6416 }
 0xbbb   :  { %9499 = vmatpush3.msra.mxu0 %v11852_v56  ;;  %10711 = vmatprep.mubr.msk.f32.mxu0 %vm10970_vm0, %v15508_v21  ;;  %vm6437_vm11 = vcmp.eq.s32.totalorder %v15790_v42, %v14645_v3  ;;  %vm6436_vm12 = vcmp.eq.s32.totalorder %v15798_v5, %v14645_v3 }
 0xbbc   :  { %9500 = vmatprep.subr.mxu0 %v11858_v17 }
 0xbbd   :  { %9501 = vmatpush3.msra.mxu0 %v11864_v52 }
 0xbbe   :  { %9502 = vmatprep.subr.mxu0 %v11870_v0  ;;  %10712 = vmatmul.mubr.msk.f32.gmra.mxu0 %vm987_vm6, %v6028_v38  ;;  %v14655_v38 = vpop.permute.xlu1 %6419 }
 0xbbf   :  { %9503 = vmatpush3.msra.mxu0 %v11876_v62  ;;  %10714 = vmatprep.mubr.msk.f32.mxu0 %vm10970_vm0, %v15508_v21  ;;  %15800 = vst [vmem:[#allocation13_spill] sm:$0xff] %v14655_v38 }
 0xbc0   :  { %9504 = vmatprep.subr.mxu0 %v11882_v23 }
 0xbc1   :  { %9505 = vmatpush3.msra.mxu0 %v11888_v31 }
 0xbc2   :  { %9506 = vmatprep.subr.mxu0 %v11894_v50  ;;  %10715 = vmatmul.mubr.msk.f32.gmra.mxu0 %vm987_vm6, %v6031_v51  ;;  %v8300_v51 = vld [vmem:[%s15354_s5 + $0xc0] sm:$0xff] }
 0xbc3   :  { %9507 = vmatpush3.msra.mxu0 %v11900_v13  ;;  %10717 = vmatprep.mubr.msk.f32.mxu0 %vm10970_vm0, %v15508_v21 }
 0xbc4   :  { %9508 = vmatprep.subr.mxu0 %v11906_v10  ;;  %10729 = vmatpush3.msra.mxu1 %v8300_v51 }
 0xbc5   :  { %9509 = vmatpush3.msra.mxu0 %v11912_v27  ;;  %10751 = vmatprep.subr.mxu1 %v15508_v21 }
 0xbc6   :  { %9510 = vmatprep.subr.mxu0 %v11918_v58  ;;  %10718 = vmatmul.mubr.msk.f32.gmra.mxu0 %vm987_vm6, %v6034_v33  ;;  %v9446_v33 = vpop.f32.mrf.mxu1 }
 0xbc7   :  { %9511 = vmatpush3.msra.mxu0 %v11924_v48  ;;  %10720 = vmatprep.mubr.msk.f32.mxu0 %vm10970_vm0, %v15508_v21 }
 0xbc8   :  { %9512 = vmatprep.subr.mxu0 %v11930_v61 }
 0xbc9   :  { %9513 = vmatpush3.msra.mxu0 %v11939_v2 }
 0xbca   :  { %9514 = vmatprep.subr.mxu0 %v15785_v15  ;;  %10721 = vmatmul.mubr.msk.f32.gmra.mxu0 %vm987_vm6, %v6037_v25  ;;  %v9447_v25 = vpop.f32.mrf.mxu1 }
 0xbcb   :  { %9515 = vmatpush3.msra.mxu0 %v15786_v53  ;;  %10723 = vmatprep.mubr.msk.f32.mxu0 %vm10970_vm0, %v15508_v21 }
 0xbcc   :  { %9516 = vmatprep.subr.mxu0 %v15787_v36  ;;  %v15807_v36 = vld [vmem:[#allocation12_spill] sm:$0xff] }
 0xbcd   :  { %9517 = vmatpush3.msra.mxu0 %v15788_v28 }
 0xbce   :  { %9518 = vmatprep.subr.mxu0 %v15789_v43  ;;  %10724 = vmatmul.mubr.msk.f32.gmra.mxu0 %vm987_vm6, %v6040_v4  ;;  %v15801_v4 = vld [vmem:[#allocation9_spill] sm:$0xff] }
 0xbcf   :  { %9519 = vmatpush3.msra.mxu0 %v15791_v49  ;;  %8309 = vmatprep.mubr.msk.f32.mxu0 %vm6422_vm13, %v15792_v1  ;;  %vm6440_vm13 = vcmp.eq.s32.totalorder %v15790_v42, %v14655_v38 }
 0xbd0   :  { %9520 = vmatprep.subr.mxu0 %v15793_v22 }
 0xbd1   :  { %9521 = vmatpush3.msra.mxu0 %v15794_v9 }
 0xbd2   :  { %9522 = vmatprep.subr.mxu0 %v15795_v45  ;;  %v15803_v45 = vld [vmem:[#allocation10_spill] sm:$0xff] }
 0xbd3   :  { %9523 = vmatpush3.msra.mxu0 %v15796_v39 }
 0xbd4   :  { %9524 = vmatprep.subr.mxu0 %v15797_v54  ;;  %v9449_v54 = vpop.f32.mrf.mxu1 }
 0xbd5   :  { %9525 = vmatpush3.msra.mxu0 %v15799_v46 }
 0xbd6   :  { %8310 = vmatmul.mubr.msk.f32.vlgmr.msra.gmra.mxu0 %vm6421_vm14, %v15792_v1  ;;  %10794 = vmatprep.subr.mxu0 %v15508_v21  ;;  %vm6439_vm14 = vcmp.eq.s32.totalorder %v15798_v5, %v14655_v38  ;;  %v9450_v5 = vpop.f32.mrf.mxu1 }
 0xbd7   :  { %8311 = vmatprep.mubr.msk.f32.mxu0 %vm6425_vm15, %v15792_v1  ;;  %vm6423_vm15 = vcmp.eq.s32.totalorder %v15568_v18, %v14593_v57 }
 0xbd8   :  { %v9452_v43 = vpop.f32.mrf.mxu1 }
 0xbda   :  { %8312 = vmatmul.mubr.msk.f32.gmra.mxu0 %vm6424_vm2, %v15792_v1  ;;  %vm6426_vm2 = vcmp.eq.s32.totalorder %v15568_v18, %v14607_v32 }
 0xbdb   :  { %8313 = vmatprep.mubr.msk.f32.mxu0 %vm6428_vm3, %v15792_v1  ;;  %v6447_v57 = vsel %vm6426_vm2, 1.0, %v15508_v21  ;;  %vm6429_vm3 = vcmp.eq.s32.totalorder %v15568_v18, %v14619_v11 }
 0xbdc   :  { %v6450_v32 = vsel %vm6429_vm3, 1.0, %v15508_v21 }
 0xbde   :  { %8314 = vmatmul.mubr.msk.f32.gmra.mxu0 %vm6427_vm4, %v15792_v1  ;;  %vm6432_vm4 = vcmp.eq.s32.totalorder %v15568_v18, %v14625_v6 }
 0xbdf   :  { %8315 = vmatprep.mubr.msk.f32.mxu0 %vm6431_vm7, %v15792_v1  ;;  %v6453_v11 = vsel %vm6432_vm4, 1.0, %v15508_v21  ;;  %vm6435_vm7 = vcmp.eq.s32.totalorder %v15568_v18, %v14638_v29 }
 0xbe0   :  { %v6456_v6 = vsel %vm6435_vm7, 1.0, %v15508_v21 }
 0xbe2   :  { %8316 = vmatmul.mubr.msk.f32.gmra.mxu0 %vm6430_vm8, %v15792_v1  ;;  %vm6438_vm8 = vcmp.eq.s32.totalorder %v15568_v18, %v14645_v3  ;;  %v15811_v3 = vld [vmem:[#allocation25_spill] sm:$0xff] }
 0xbe3   :  { %8317 = vmatprep.mubr.msk.f32.mxu0 %vm6434_vm9, %v15792_v1  ;;  %v6459_v29 = vsel %vm6438_vm8, 1.0, %v15508_v21 }
 0xbe6   :  { %8318 = vmatmul.mubr.msk.f32.gmra.mxu0 %vm6433_vm10, %v15792_v1 }
 0xbe7   :  { %8319 = vmatprep.mubr.msk.f32.mxu0 %vm6437_vm11, %v15792_v1 }
 0xbea   :  { %8320 = vmatmul.mubr.msk.f32.gmra.mxu0 %vm6436_vm12, %v15792_v1 }
 0xbeb   :  { %8321 = vmatprep.mubr.msk.f32.mxu0 %vm6440_vm13, %v15792_v1 }
 0xbee   :  { %8322 = vmatmul.mubr.msk.f32.gmra.mxu0 %vm6439_vm14, %v15792_v1  ;;  %v15805_v1 = vld [vmem:[#allocation11_spill] sm:$0xff] }
 0xbef   :  { %10798 = vmatprep.mubr.msk.f32.mxu0 %vm10970_vm0, %v15508_v21 }
 0xc5a   :  { %v5930_v47 = vpop.f32.mrf.mxu0 }
 0xc5b   :  { %v14671_v44 = vadd.f32 %v5930_v47, %v15801_v4  ;;  %v9453_v4 = vpop.f32.mrf.mxu1 }
 0xc5c   :  { %v10664_v46 = vpop.f32.mrf.mxu0 }
 0xc5d   :  { %15802 = vst [vmem:[#allocation14_spill] sm:$0xff] %v14671_v44 }
 0xc5e   :  { %v5935_v39 = vpop.f32.mrf.mxu0 }
 0xc5f   :  { %v14674_v9 = vadd.f32 %v5935_v39, %v15803_v45  ;;  %v9455_v39 = vpop.f32.mrf.mxu1 }
 0xc60   :  { %v10667_v51 = vpop.f32.mrf.mxu0 }
 0xc61   :  { %15804 = vst [vmem:[#allocation19_spill] sm:$0xff] %v14674_v9 }
 0xc62   :  { %v5940_v22 = vpop.f32.mrf.mxu0 }
 0xc63   :  { %v14677_v49 = vadd.f32 %v5940_v22, %v15805_v1  ;;  %v9456_v22 = vpop.f32.mrf.mxu1 }
 0xc64   :  { %v10670_v42 = vpop.f32.mrf.mxu0 }
 0xc65   :  { %15806 = vst [vmem:[#allocation3_spill] sm:$0xff] %v14677_v49 }
 0xc66   :  { %v5945_v28 = vpop.f32.mrf.mxu0 }
 0xc67   :  { %v14680_v53 = vadd.f32 %v5945_v28, %v15807_v36  ;;  %v9448_v28 = vadd.f32 %v9447_v25, %v9446_v33  ;;  %v9454_v33 = vadd.f32 %v9453_v4, %v9452_v43 }
 0xc68   :  { %v10673_v47 = vpop.f32.mrf.mxu0 }
 0xc69   :  { %15808 = vst [vmem:[#allocation18_spill] sm:$0xff] %v14680_v53  ;;  %v9458_v47 = vpop.f32.mrf.mxu1 }
 0xc6a   :  { %v5950_v46 = vpop.f32.mrf.mxu0 }
 0xc6b   :  { %v14683_v44 = vadd.f32 %v5950_v46, %v14480_v40  ;;  %v9451_v40 = vadd.f32 %v9450_v5, %v9449_v54  ;;  %v9459_v46 = vpop.f32.mrf.mxu1 }
 0xc6c   :  { %v10676_v45 = vpop.f32.mrf.mxu0 }
 0xc6e   :  { %v5955_v51 = vpop.f32.mrf.mxu0 }
 0xc6f   :  { %v14686_v9 = vadd.f32 %v5955_v51, %v14483_v26 }
 0xc70   :  { %v10679_v1 = vpop.f32.mrf.mxu0 }
 0xc71   :  { %v9460_v1 = vadd.f32 %v9459_v46, %v9458_v47 }
 0xc72   :  { %v5960_v42 = vpop.f32.mrf.mxu0 }
 0xc73   :  { %v14689_v49 = vadd.f32 %v5960_v42, %v14486_v19 }
 0xc74   :  { %v10682_v36 = vpop.f32.mrf.mxu0 }
 0xc76   :  { %v6228_v53 = vpop.f32.mrf.mxu0 }
 0xc77   :  { %v6229_v15 = vadd.f32 %v9448_v28, %v6228_v53 }
 0xc78   :  { %v10707_v38 = vpop.f32.mrf.mxu0 }
 0xc79   :  { %10731 = vmatmul.mubr.msk.f32.vlgmr.msra.gmra.mxu1 %vm82_vm1, %v6229_v15  ;;  %v9461_v15 = vpop.f32.mrf.mxu1  ;;  %v9457_v38 = vadd.f32 %v9456_v22, %v9455_v39 }
 0xc7a   :  { %10752 = vmatpush3.msk.msra.mxu1 %vm1009_vm5, %v12004_v14  ;;  %v6233_v26 = vpop.f32.mrf.mxu0  ;;  %10733 = vmatprep.mubr.msk.f32.mxu1 %vm10970_vm0, %v15508_v21 }
 0xc7b   :  { %v6234_v45 = vadd.f32 %v9451_v40, %v6233_v26  ;;  %10753 = vmatprep.subr.mxu1 %v15508_v21  ;;  %v9462_v43 = vpop.f32.mrf.mxu1 }
 0xc7c   :  { %10754 = vmatpush3.msra.mxu1 %v15557_v7  ;;  %v10710_v19 = vpop.f32.mrf.mxu0  ;;  %v9463_v28 = vadd.f32 %v9462_v43, %v9461_v15  ;;  %v14795_v43 = vpop.permute.xlu0 %6823 }
 0xc7d   :  { %10755 = vmatprep.subr.mxu1 %v15508_v21  ;;  %10734 = vmatmul.mubr.msk.f32.gmra.mxu1 %vm82_vm1, %v6234_v45  ;;  %v9464_v39 = vpop.f32.mrf.mxu1 }
 0xc7e   :  { %10756 = vmatpush3.msra.mxu1 %v15558_v41  ;;  %v6238_v53 = vpop.f32.mrf.mxu0  ;;  %10736 = vmatprep.mubr.msk.f32.mxu1 %vm10970_vm0, %v15508_v21 }
 0xc7f   :  { %v6239_v54 = vadd.f32 %v9454_v33, %v6238_v53  ;;  %10757 = vmatprep.subr.mxu1 %v15508_v21  ;;  %v9465_v47 = vpop.f32.mrf.mxu1  ;;  %v6444_v53 = vsel %vm6423_vm15, 1.0, %v15508_v21 }
 0xc80   :  { %10758 = vmatpush3.msra.mxu1 %v15559_v59  ;;  %v10713_v5 = vpop.f32.mrf.mxu0  ;;  %v9466_v45 = vadd.f32 %v9465_v47, %v9464_v39  ;;  %v15816_v39 = vld [vmem:[#allocation29_spill] sm:$0xff] }
 0xc81   :  { %10759 = vmatprep.subr.mxu1 %v15508_v21  ;;  %10737 = vmatmul.mubr.msk.f32.gmra.mxu1 %vm82_vm1, %v6239_v54  ;;  %v15809_v54 = vld [vmem:[#allocation13_spill] sm:$0xff]  ;;  %v15810_v5 = vld [vmem:[#allocation24_spill] sm:$0xff] }
 0xc82   :  { %10760 = vmatpush3.msra.mxu1 %v15560_v60  ;;  %v6243_v25 = vpop.f32.mrf.mxu0  ;;  %10739 = vmatprep.mubr.msk.f32.mxu1 %vm10970_vm0, %v15508_v21  ;;  %vm6441_vm9 = vcmp.eq.s32.totalorder %v15568_v18, %v15809_v54  ;;  %v15821_v47 = vld [vmem:[#allocation33_spill] sm:$0xff] }
 0xc83   :  { %v6244_v4 = vadd.f32 %v9457_v38, %v6243_v25  ;;  %10761 = vmatprep.subr.mxu1 %v15508_v21  ;;  %v15812_v38 = vld [vmem:[#allocation26_spill] sm:$0xff]  ;;  %v6462_v25 = vsel %vm6441_vm9, 1.0, %v15508_v21 }
 0xc84   :  { %10762 = vmatpush3.msra.mxu1 %v15561_v37  ;;  %v10716_v51 = vpop.f32.mrf.mxu0 }
 0xc85   :  { %10763 = vmatprep.subr.mxu1 %v15508_v21  ;;  %10740 = vmatmul.mubr.msk.f32.gmra.mxu1 %vm82_vm1, %v6244_v4  ;;  %v15813_v4 = vld [vmem:[#allocation27_spill] sm:$0xff]  ;;  %v15814_v51 = vld [vmem:[#allocation28_spill] sm:$0xff] }
 0xc86   :  { %10764 = vmatpush3.msra.mxu1 %v15562_v8  ;;  %v6248_v22 = vpop.f32.mrf.mxu0  ;;  %10742 = vmatprep.mubr.msk.f32.mxu1 %vm10970_vm0, %v15508_v21 }
 0xc87   :  { %v6249_v42 = vadd.f32 %v9460_v1, %v6248_v22  ;;  %10765 = vmatprep.subr.mxu1 %v15508_v21  ;;  %v15815_v1 = vld [vmem:[#allocation21_spill] sm:$0xff]  ;;  %v15817_v22 = vmov 1.0  }
 0xc88   :  { %10766 = vmatpush3.msra.mxu1 %v15563_v24  ;;  %v10719_v36 = vpop.f32.mrf.mxu0  ;;  %vm6844_vm10 = vcmp.eq.s32.totalorder %v15815_v1, %v14795_v43 }
 0xc89   :  { %10767 = vmatprep.subr.mxu1 %v15508_v21  ;;  %10743 = vmatmul.mubr.msk.f32.gmra.mxu1 %vm82_vm1, %v6249_v42  ;;  %v15818_v42 = vld [vmem:[#allocation30_spill] sm:$0xff]  ;;  %v15819_v36 = vld [vmem:[#allocation31_spill] sm:$0xff] }
 0xc8a   :  { %10768 = vmatpush3.msra.mxu1 %v15564_v35  ;;  %v6253_v40 = vpop.f32.mrf.mxu0  ;;  %10745 = vmatprep.mubr.msk.f32.mxu1 %vm10970_vm0, %v15508_v21 }
 0xc8b   :  { %v6254_v46 = vadd.f32 %v9463_v28, %v6253_v40  ;;  %10769 = vmatprep.subr.mxu1 %v15508_v21  ;;  %v15820_v28 = vld [vmem:[#allocation32_spill] sm:$0xff]  ;;  %v15822_v40 = vld [vmem:[#allocation34_spill] sm:$0xff] }
 0xc8c   :  { %10770 = vmatpush3.msra.mxu1 %v15565_v16  ;;  %v10722_v26 = vpop.f32.mrf.mxu0 }
 0xc8d   :  { %10771 = vmatprep.subr.mxu1 %v15508_v21  ;;  %10746 = vmatmul.mubr.msk.f32.gmra.mxu1 %vm82_vm1, %v6254_v46  ;;  %v15823_v46 = vld [vmem:[#allocation20_spill] sm:$0xff]  ;;  %v14812_v26 = vpop.permute.xlu1 %6826 }
 0xc8e   :  { %10772 = vmatpush3.msra.mxu1 %v15566_v30  ;;  %v6258_v19 = vpop.f32.mrf.mxu0  ;;  %10748 = vmatprep.mubr.msk.f32.mxu1 %vm10970_vm0, %v15508_v21  ;;  %vm6843_vm11 = vcmp.eq.s32.totalorder %v15823_v46, %v14795_v43  ;;  %vm6847_vm12 = vcmp.eq.s32.totalorder %v15815_v1, %v14812_v26  ;;  %vm6846_vm13 = vcmp.eq.s32.totalorder %v15823_v46, %v14812_v26 }
 0xc8f   :  { %v6259_v33 = vadd.f32 %v9466_v45, %v6258_v19  ;;  %9574 = vmatprep.subr.mxu1 %v15567_v34  ;;  %v15824_v45 = vld [vmem:[#allocation35_spill] sm:$0xff]  ;;  %v14820_v19 = vpop.permute.xlu0 %6829 }
 0xc90   :  { %v10725_v15 = vpop.f32.mrf.mxu0  ;;  %vm6850_vm14 = vcmp.eq.s32.totalorder %v15815_v1, %v14820_v19  ;;  %vm6849_vm15 = vcmp.eq.s32.totalorder %v15823_v46, %v14820_v19 }
 0xc91   :  { %10749 = vmatmul.mubr.msk.f32.gmra.mxu1 %vm82_vm1, %v6259_v33  ;;  %v14830_v33 = vpop.permute.xlu1 %6832  ;;  %v8332_v15 = vld [vmem:[%s15354_s5 + $0xd8] sm:$0xff] }
 0xc92   :  { %10773 = vmatprep.mubr.msk.f32.mxu1 %vm10970_vm0, %v15508_v21  ;;  %vm6853_vm2 = vcmp.eq.s32.totalorder %v15815_v1, %v14830_v33  ;;  %10795 = vmatpush3.msra.mxu0 %v8332_v15  ;;  %vm6852_vm3 = vcmp.eq.s32.totalorder %v15823_v46, %v14830_v33 }
 0xc93   :  { %10796 = vmatprep.subr.mxu0 %v15508_v21 }
 0xc95   :  { %10774 = vmatmul.mubr.msk.f32.vlgmr.msra.gmra.mxu1 %vm987_vm6, %v6444_v53  ;;  %v14839_v53 = vpop.permute.xlu0 %6835 }
 0xc96   :  { %9575 = vmatpush3.msra.mxu1 %v11821_v12  ;;  %10776 = vmatprep.mubr.msk.f32.mxu1 %vm10970_vm0, %v15508_v21  ;;  %vm6856_vm4 = vcmp.eq.s32.totalorder %v15815_v1, %v14839_v53  ;;  %vm6855_vm7 = vcmp.eq.s32.totalorder %v15823_v46, %v14839_v53 }
 0xc97   :  { %9576 = vmatprep.subr.mxu1 %v11834_v63 }
 0xc98   :  { %9577 = vmatpush3.msra.mxu1 %v11840_v20 }
 0xc99   :  { %9578 = vmatprep.subr.mxu1 %v11846_v55  ;;  %10777 = vmatmul.mubr.msk.f32.gmra.mxu1 %vm987_vm6, %v6447_v57  ;;  %v14850_v57 = vpop.permute.xlu1 %6838 }
 0xc9a   :  { %9579 = vmatpush3.msra.mxu1 %v11852_v56  ;;  %10779 = vmatprep.mubr.msk.f32.mxu1 %vm10970_vm0, %v15508_v21  ;;  %vm6859_vm8 = vcmp.eq.s32.totalorder %v15815_v1, %v14850_v57  ;;  %vm6858_vm9 = vcmp.eq.s32.totalorder %v15823_v46, %v14850_v57 }
 0xc9b   :  { %9580 = vmatprep.subr.mxu1 %v11858_v17 }
 0xc9c   :  { %9581 = vmatpush3.msra.mxu1 %v11864_v52 }
 0xc9d   :  { %9582 = vmatprep.subr.mxu1 %v11870_v0  ;;  %10780 = vmatmul.mubr.msk.f32.gmra.mxu1 %vm987_vm6, %v6450_v32  ;;  %v14856_v32 = vpop.permute.xlu0 %6841 }
 0xc9e   :  { %9583 = vmatpush3.msra.mxu1 %v11876_v62  ;;  %10782 = vmatprep.mubr.msk.f32.mxu1 %vm10970_vm0, %v15508_v21  ;;  %15825 = vst [vmem:[#allocation17_spill] sm:$0xff] %v14856_v32 }
 0xc9f   :  { %9584 = vmatprep.subr.mxu1 %v11882_v23 }
 0xca0   :  { %9585 = vmatpush3.msra.mxu1 %v11888_v31 }
 0xca1   :  { %9586 = vmatprep.subr.mxu1 %v11894_v50  ;;  %10783 = vmatmul.mubr.msk.f32.gmra.mxu1 %vm987_vm6, %v6453_v11  ;;  %v8331_v11 = vld [vmem:[%s15354_s5 + $0xd0] sm:$0xff] }
 0xca2   :  { %9587 = vmatpush3.msra.mxu1 %v11900_v13  ;;  %10785 = vmatprep.mubr.msk.f32.mxu1 %vm10970_vm0, %v15508_v21 }
 0xca3   :  { %9588 = vmatprep.subr.mxu1 %v11906_v10  ;;  %10797 = vmatpush3.msra.mxu0 %v8331_v11 }
 0xca4   :  { %9589 = vmatpush3.msra.mxu1 %v11912_v27  ;;  %10819 = vmatprep.subr.mxu0 %v15508_v21 }
 0xca5   :  { %9590 = vmatprep.subr.mxu1 %v11918_v58  ;;  %10786 = vmatmul.mubr.msk.f32.gmra.mxu1 %vm987_vm6, %v6456_v6  ;;  %v9526_v6 = vpop.f32.mrf.mxu0 }
 0xca6   :  { %9591 = vmatpush3.msra.mxu1 %v11924_v48  ;;  %10788 = vmatprep.mubr.msk.f32.mxu1 %vm10970_vm0, %v15508_v21 }
 0xca7   :  { %9592 = vmatprep.subr.mxu1 %v11930_v61 }
 0xca8   :  { %9593 = vmatpush3.msra.mxu1 %v11939_v2 }
 0xca9   :  { %9594 = vmatprep.subr.mxu1 %v15810_v5  ;;  %10789 = vmatmul.mubr.msk.f32.gmra.mxu1 %vm987_vm6, %v6459_v29  ;;  %v9527_v29 = vpop.f32.mrf.mxu0 }
 0xcaa   :  { %9595 = vmatpush3.msra.mxu1 %v15811_v3  ;;  %10791 = vmatprep.mubr.msk.f32.mxu1 %vm10970_vm0, %v15508_v21 }
 0xcab   :  { %9596 = vmatprep.subr.mxu1 %v15812_v38  ;;  %v15832_v38 = vld [vmem:[#allocation18_spill] sm:$0xff] }
 0xcac   :  { %9597 = vmatpush3.msra.mxu1 %v15813_v4 }
 0xcad   :  { %9598 = vmatprep.subr.mxu1 %v15814_v51  ;;  %10792 = vmatmul.mubr.msk.f32.gmra.mxu1 %vm987_vm6, %v6462_v25  ;;  %v15826_v25 = vld [vmem:[#allocation14_spill] sm:$0xff] }
 0xcae   :  { %9599 = vmatpush3.msra.mxu1 %v15816_v39  ;;  %8340 = vmatprep.mubr.msk.f32.mxu1 %vm6844_vm10, %v15817_v22  ;;  %vm6862_vm10 = vcmp.eq.s32.totalorder %v15815_v1, %v14856_v32 }
 0xcaf   :  { %9600 = vmatprep.subr.mxu1 %v15818_v42 }
 0xcb0   :  { %9601 = vmatpush3.msra.mxu1 %v15819_v36 }
 0xcb1   :  { %9602 = vmatprep.subr.mxu1 %v15820_v28  ;;  %v15828_v28 = vld [vmem:[#allocation19_spill] sm:$0xff] }
 0xcb2   :  { %9603 = vmatpush3.msra.mxu1 %v15821_v47 }
 0xcb3   :  { %9604 = vmatprep.subr.mxu1 %v15822_v40  ;;  %v9529_v40 = vpop.f32.mrf.mxu0 }
 0xcb4   :  { %9605 = vmatpush3.msra.mxu1 %v15824_v45 }
 0xcb5   :  { %8341 = vmatmul.mubr.msk.f32.vlgmr.msra.gmra.mxu1 %vm6843_vm11, %v15817_v22  ;;  %10862 = vmatprep.subr.mxu1 %v15508_v21  ;;  %vm6861_vm11 = vcmp.eq.s32.totalorder %v15823_v46, %v14856_v32  ;;  %v9530_v46 = vpop.f32.mrf.mxu0 }
 0xcb6   :  { %8342 = vmatprep.mubr.msk.f32.mxu1 %vm6847_vm12, %v15817_v22  ;;  %vm6845_vm12 = vcmp.eq.s32.totalorder %v15568_v18, %v14795_v43  ;;  %v15847_v43 = vld [vmem:[#allocation34_spill] sm:$0xff] }
 0xcb7   :  { %v9532_v51 = vpop.f32.mrf.mxu0 }
 0xcb9   :  { %8343 = vmatmul.mubr.msk.f32.gmra.mxu1 %vm6846_vm13, %v15817_v22  ;;  %vm6848_vm13 = vcmp.eq.s32.totalorder %v15568_v18, %v14812_v26  ;;  %v15013_v26 = vpop.permute.xlu0 %7248 }
 0xcba   :  { %8344 = vmatprep.mubr.msk.f32.mxu1 %vm6850_vm14, %v15817_v22  ;;  %vm6851_vm14 = vcmp.eq.s32.totalorder %v15568_v18, %v14820_v19  ;;  %v15848_v19 = vld [vmem:[#allocation20_spill] sm:$0xff] }
 0xcbd   :  { %8345 = vmatmul.mubr.msk.f32.gmra.mxu1 %vm6849_vm15, %v15817_v22  ;;  %vm6854_vm15 = vcmp.eq.s32.totalorder %v15568_v18, %v14830_v33  ;;  %v15849_v33 = vld [vmem:[#allocation35_spill] sm:$0xff] }
 0xcbe   :  { %8346 = vmatprep.mubr.msk.f32.mxu1 %vm6853_vm2, %v15817_v22  ;;  %vm6857_vm2 = vcmp.eq.s32.totalorder %v15568_v18, %v14839_v53 }
 0xcc1   :  { %8347 = vmatmul.mubr.msk.f32.gmra.mxu1 %vm6852_vm3, %v15817_v22  ;;  %vm6860_vm3 = vcmp.eq.s32.totalorder %v15568_v18, %v14850_v57  ;;  %v15031_v57 = vpop.permute.xlu0 %7254 }
 0xcc2   :  { %8348 = vmatprep.mubr.msk.f32.mxu1 %vm6856_vm4, %v15817_v22 }
 0xcc5   :  { %8349 = vmatmul.mubr.msk.f32.gmra.mxu1 %vm6855_vm7, %v15817_v22 }
 0xcc6   :  { %8350 = vmatprep.mubr.msk.f32.mxu1 %vm6859_vm8, %v15817_v22 }
 0xcc9   :  { %8351 = vmatmul.mubr.msk.f32.gmra.mxu1 %vm6858_vm9, %v15817_v22 }
 0xcca   :  { %8352 = vmatprep.mubr.msk.f32.mxu1 %vm6862_vm10, %v15817_v22  ;;  %vm7268_vm10 = vcmp.eq.s32.totalorder %v15848_v19, %v15013_v26 }
 0xccd   :  { %8353 = vmatmul.mubr.msk.f32.gmra.mxu1 %vm6861_vm11, %v15817_v22  ;;  %v15830_v22 = vld [vmem:[#allocation3_spill] sm:$0xff] }
 0xcce   :  { %10866 = vmatprep.mubr.msk.f32.mxu1 %vm10970_vm0, %v15508_v21 }
 0xd39   :  { %v6352_v54 = vpop.f32.mrf.mxu1 }
 0xd3a   :  { %v14874_v15 = vadd.f32 %v6352_v54, %v15826_v25  ;;  %v9533_v25 = vpop.f32.mrf.mxu0 }
 0xd3b   :  { %v10732_v45 = vpop.f32.mrf.mxu1 }
 0xd3c   :  { %15827 = vst [vmem:[#allocation16_spill] sm:$0xff] %v14874_v15 }
 0xd3d   :  { %v6357_v47 = vpop.f32.mrf.mxu1 }
 0xd3e   :  { %v14877_v36 = vadd.f32 %v6357_v47, %v15828_v28  ;;  %v9535_v47 = vpop.f32.mrf.mxu0 }
 0xd3f   :  { %v10735_v11 = vpop.f32.mrf.mxu1 }
 0xd40   :  { %15829 = vst [vmem:[#allocation4_spill] sm:$0xff] %v14877_v36 }
 0xd41   :  { %v6362_v42 = vpop.f32.mrf.mxu1 }
 0xd42   :  { %v14880_v39 = vadd.f32 %v6362_v42, %v15830_v22  ;;  %v9536_v42 = vpop.f32.mrf.mxu0 }
 0xd43   :  { %v10738_v1 = vpop.f32.mrf.mxu1 }
 0xd44   :  { %15831 = vst [vmem:[#allocation15_spill] sm:$0xff] %v14880_v39 }
 0xd45   :  { %v6367_v4 = vpop.f32.mrf.mxu1 }
 0xd46   :  { %v14883_v3 = vadd.f32 %v6367_v4, %v15832_v38  ;;  %v9528_v4 = vadd.f32 %v9527_v29, %v9526_v6  ;;  %v9534_v6 = vadd.f32 %v9533_v25, %v9532_v51 }
 0xd47   :  { %v10741_v54 = vpop.f32.mrf.mxu1 }
 0xd48   :  { %15833 = vst [vmem:[#allocation5_spill] sm:$0xff] %v14883_v3  ;;  %v9538_v54 = vpop.f32.mrf.mxu0 }
 0xd49   :  { %v6372_v45 = vpop.f32.mrf.mxu1 }
 0xd4a   :  { %v14886_v15 = vadd.f32 %v6372_v45, %v14683_v44  ;;  %v9531_v44 = vadd.f32 %v9530_v46, %v9529_v40  ;;  %v9539_v45 = vpop.f32.mrf.mxu0 }
 0xd4b   :  { %v10744_v28 = vpop.f32.mrf.mxu1 }
 0xd4d   :  { %v6377_v11 = vpop.f32.mrf.mxu1 }
 0xd4e   :  { %v14889_v36 = vadd.f32 %v6377_v11, %v14686_v9 }
 0xd4f   :  { %v10747_v22 = vpop.f32.mrf.mxu1 }
 0xd50   :  { %v9540_v22 = vadd.f32 %v9539_v45, %v9538_v54 }
 0xd51   :  { %v6382_v1 = vpop.f32.mrf.mxu1 }
 0xd52   :  { %v14892_v39 = vadd.f32 %v6382_v1, %v14689_v49 }
 0xd53   :  { %v10750_v38 = vpop.f32.mrf.mxu1 }
 0xd55   :  { %v6650_v3 = vpop.f32.mrf.mxu1 }
 0xd56   :  { %v6651_v5 = vadd.f32 %v9528_v4, %v6650_v3 }
 0xd57   :  { %v10775_v32 = vpop.f32.mrf.mxu1 }
 0xd58   :  { %10799 = vmatmul.mubr.msk.f32.vlgmr.msra.gmra.mxu0 %vm82_vm1, %v6651_v5  ;;  %v9541_v5 = vpop.f32.mrf.mxu0  ;;  %v9537_v32 = vadd.f32 %v9536_v42, %v9535_v47 }
 0xd59   :  { %10820 = vmatpush3.msk.msra.mxu0 %vm1009_vm5, %v12004_v14  ;;  %v6655_v9 = vpop.f32.mrf.mxu1  ;;  %10801 = vmatprep.mubr.msk.f32.mxu0 %vm10970_vm0, %v15508_v21 }
 0xd5a   :  { %v6656_v28 = vadd.f32 %v9531_v44, %v6655_v9  ;;  %10821 = vmatprep.subr.mxu0 %v15508_v21  ;;  %v9542_v51 = vpop.f32.mrf.mxu0 }
 0xd5b   :  { %10822 = vmatpush3.msra.mxu0 %v15557_v7  ;;  %v10778_v49 = vpop.f32.mrf.mxu1  ;;  %v9543_v4 = vadd.f32 %v9542_v51, %v9541_v5 }
 0xd5c   :  { %10823 = vmatprep.subr.mxu0 %v15508_v21  ;;  %10802 = vmatmul.mubr.msk.f32.gmra.mxu0 %vm82_vm1, %v6656_v28  ;;  %v9544_v47 = vpop.f32.mrf.mxu0 }
 0xd5d   :  { %10824 = vmatpush3.msra.mxu0 %v15558_v41  ;;  %v6660_v3 = vpop.f32.mrf.mxu1  ;;  %10804 = vmatprep.mubr.msk.f32.mxu0 %vm10970_vm0, %v15508_v21 }
 0xd5e   :  { %v6661_v40 = vadd.f32 %v9534_v6, %v6660_v3  ;;  %10825 = vmatprep.subr.mxu0 %v15508_v21  ;;  %v9545_v54 = vpop.f32.mrf.mxu0  ;;  %v6866_v3 = vsel %vm6845_vm12, 1.0, %v15508_v21 }
 0xd5f   :  { %10826 = vmatpush3.msra.mxu0 %v15559_v59  ;;  %v10781_v46 = vpop.f32.mrf.mxu1  ;;  %v9546_v28 = vadd.f32 %v9545_v54, %v9544_v47  ;;  %v15850_v47 = vld [vmem:[#allocation16_spill] sm:$0xff] }
 0xd60   :  { %10827 = vmatprep.subr.mxu0 %v15508_v21  ;;  %10805 = vmatmul.mubr.msk.f32.gmra.mxu0 %vm82_vm1, %v6661_v40  ;;  %v8363_v40 = vld [vmem:[%s15354_s5 + $0xe8] sm:$0xff] }
 0xd61   :  { %10828 = vmatpush3.msra.mxu0 %v15560_v60  ;;  %v6665_v29 = vpop.f32.mrf.mxu1  ;;  %10807 = vmatprep.mubr.msk.f32.mxu0 %vm10970_vm0, %v15508_v21  ;;  %v15851_v54 = vld [vmem:[#allocation4_spill] sm:$0xff] }
 0xd62   :  { %v6666_v25 = vadd.f32 %v9537_v32, %v6665_v29  ;;  %10829 = vmatprep.subr.mxu0 %v15508_v21  ;;  %10863 = vmatpush3.msra.mxu1 %v8363_v40  ;;  %v15050_v32 = vpop.permute.xlu0 %7260  ;;  %v8362_v29 = vld [vmem:[%s15354_s5 + $0xe0] sm:$0xff] }
 0xd63   :  { %10830 = vmatpush3.msra.mxu0 %v15561_v37  ;;  %v10784_v11 = vpop.f32.mrf.mxu1  ;;  %10864 = vmatprep.subr.mxu1 %v15508_v21 }
 0xd64   :  { %10831 = vmatprep.subr.mxu0 %v15508_v21  ;;  %10808 = vmatmul.mubr.msk.f32.gmra.mxu0 %vm82_vm1, %v6666_v25 }
 0xd65   :  { %10832 = vmatpush3.msra.mxu0 %v15562_v8  ;;  %v6670_v42 = vpop.f32.mrf.mxu1  ;;  %10810 = vmatprep.mubr.msk.f32.mxu0 %vm10970_vm0, %v15508_v21 }
 0xd66   :  { %v6671_v1 = vadd.f32 %v9540_v22, %v6670_v42  ;;  %10833 = vmatprep.subr.mxu0 %v15508_v21  ;;  %10865 = vmatpush3.msra.mxu1 %v8362_v29 }
 0xd67   :  { %10834 = vmatpush3.msra.mxu0 %v15563_v24  ;;  %v10787_v38 = vpop.f32.mrf.mxu1  ;;  %10887 = vmatprep.subr.mxu1 %v15508_v21 }
 0xd68   :  { %10835 = vmatprep.subr.mxu0 %v15508_v21  ;;  %10811 = vmatmul.mubr.msk.f32.gmra.mxu0 %vm82_vm1, %v6671_v1 }
 0xd69   :  { %10836 = vmatpush3.msra.mxu0 %v15564_v35  ;;  %v6675_v44 = vpop.f32.mrf.mxu1  ;;  %10813 = vmatprep.mubr.msk.f32.mxu0 %vm10970_vm0, %v15508_v21 }
 0xd6a   :  { %v6676_v45 = vadd.f32 %v9543_v4, %v6675_v44  ;;  %10837 = vmatprep.subr.mxu0 %v15508_v21 }
 0xd6b   :  { %10838 = vmatpush3.msra.mxu0 %v15565_v16  ;;  %v10790_v9 = vpop.f32.mrf.mxu1 }
 0xd6c   :  { %10839 = vmatprep.subr.mxu0 %v15508_v21  ;;  %10814 = vmatmul.mubr.msk.f32.gmra.mxu0 %vm82_vm1, %v6676_v45 }
 0xd6d   :  { %10840 = vmatpush3.msra.mxu0 %v15566_v30  ;;  %v6680_v49 = vpop.f32.mrf.mxu1  ;;  %10816 = vmatprep.mubr.msk.f32.mxu0 %vm10970_vm0, %v15508_v21 }
 0xd6e   :  { %v6681_v6 = vadd.f32 %v9546_v28, %v6680_v49  ;;  %9654 = vmatprep.subr.mxu0 %v15567_v34  ;;  %v6869_v34 = vsel %vm6848_vm13, 1.0, %v15508_v21  ;;  %v15852_v49 = vld [vmem:[#allocation15_spill] sm:$0xff] }
 0xd6f   :  { %v10793_v5 = vpop.f32.mrf.mxu1 }
 0xd70   :  { %10817 = vmatmul.mubr.msk.f32.gmra.mxu0 %vm82_vm1, %v6681_v6 }
 0xd71   :  { %10841 = vmatprep.mubr.msk.f32.mxu0 %vm10970_vm0, %v15508_v21 }
 0xd74   :  { %10842 = vmatmul.mubr.msk.f32.vlgmr.msra.gmra.mxu0 %vm987_vm6, %v6866_v3 }
 0xd75   :  { %9655 = vmatpush3.msra.mxu0 %v11821_v12  ;;  %10844 = vmatprep.mubr.msk.f32.mxu0 %vm10970_vm0, %v15508_v21  ;;  %v6872_v12 = vsel %vm6851_vm14, 1.0, %v15508_v21  ;;  %vm7274_vm14 = vcmp.eq.s32.totalorder %v15848_v19, %v15031_v57  ;;  %v9606_v25 = vpop.f32.mrf.mxu1 }
 0xd76   :  { %9656 = vmatprep.subr.mxu0 %v11834_v63  ;;  %v6875_v63 = vsel %vm6854_vm15, 1.0, %v15508_v21 }
 0xd77   :  { %9657 = vmatpush3.msra.mxu0 %v11840_v20  ;;  %v6878_v20 = vsel %vm6857_vm2, 1.0, %v15508_v21  ;;  %v9607_v11 = vpop.f32.mrf.mxu1 }
 0xd78   :  { %9658 = vmatprep.subr.mxu0 %v11846_v55  ;;  %10845 = vmatmul.mubr.msk.f32.gmra.mxu0 %vm987_vm6, %v6869_v34  ;;  %v6881_v55 = vsel %vm6860_vm3, 1.0, %v15508_v21 }
 0xd79   :  { %9659 = vmatpush3.msra.mxu0 %v11852_v56  ;;  %10847 = vmatprep.mubr.msk.f32.mxu0 %vm10970_vm0, %v15508_v21  ;;  %v15834_v56 = vld [vmem:[#allocation17_spill] sm:$0xff]  ;;  %v9609_v38 = vpop.f32.mrf.mxu1 }
 0xd7a   :  { %9660 = vmatprep.subr.mxu0 %v11858_v17  ;;  %vm6863_vm4 = vcmp.eq.s32.totalorder %v15568_v18, %v15834_v56  ;;  %v15835_v17 = vld [vmem:[#allocation24_spill] sm:$0xff] }
 0xd7b   :  { %9661 = vmatpush3.msra.mxu0 %v11864_v52  ;;  %v15836_v52 = vld [vmem:[#allocation25_spill] sm:$0xff]  ;;  %v9610_v9 = vpop.f32.mrf.mxu1 }
 0xd7c   :  { %9662 = vmatprep.subr.mxu0 %v11870_v0  ;;  %10848 = vmatmul.mubr.msk.f32.gmra.mxu0 %vm987_vm6, %v6872_v12  ;;  %v15837_v0 = vld [vmem:[#allocation26_spill] sm:$0xff]  ;;  %v15853_v12 = vld [vmem:[#allocation5_spill] sm:$0xff] }
 0xd7d   :  { %9663 = vmatpush3.msra.mxu0 %v11876_v62  ;;  %10850 = vmatprep.mubr.msk.f32.mxu0 %vm10970_vm0, %v15508_v21  ;;  %v6884_v62 = vsel %vm6863_vm4, 1.0, %v15508_v21  ;;  %vm7280_vm4 = vcmp.eq.s32.totalorder %v15848_v19, %v15050_v32  ;;  %v9612_v3 = vpop.f32.mrf.mxu1 }
 0xd7e   :  { %9664 = vmatprep.subr.mxu0 %v11882_v23  ;;  %v14999_v23 = vpop.permute.xlu1 %7245 }
 0xd7f   :  { %9665 = vmatpush3.msra.mxu0 %v11888_v31  ;;  %v15838_v31 = vld [vmem:[#allocation27_spill] sm:$0xff]  ;;  %vm7265_vm8 = vcmp.eq.s32.totalorder %v15848_v19, %v14999_v23 }
 0xd80   :  { %9666 = vmatprep.subr.mxu0 %v11894_v50  ;;  %10851 = vmatmul.mubr.msk.f32.gmra.mxu0 %vm987_vm6, %v6875_v63  ;;  %v15839_v50 = vld [vmem:[#allocation28_spill] sm:$0xff] }
 0xd81   :  { %9667 = vmatpush3.msra.mxu0 %v11900_v13  ;;  %10853 = vmatprep.mubr.msk.f32.mxu0 %vm10970_vm0, %v15508_v21  ;;  %v15840_v13 = vld [vmem:[#allocation21_spill] sm:$0xff] }
 0xd82   :  { %9668 = vmatprep.subr.mxu0 %v11906_v10  ;;  %vm7266_vm7 = vcmp.eq.s32.totalorder %v15840_v13, %v14999_v23  ;;  %v15841_v10 = vld [vmem:[#allocation29_spill] sm:$0xff]  ;;  %vm7269_vm9 = vcmp.eq.s32.totalorder %v15840_v13, %v15013_v26  ;;  %v15025_v53 = vpop.permute.xlu1 %7251  ;;  %vm7275_vm13 = vcmp.eq.s32.totalorder %v15840_v13, %v15031_v57  ;;  %vm7281_vm3 = vcmp.eq.s32.totalorder %v15840_v13, %v15050_v32 }
 0xd83   :  { %9669 = vmatpush3.msra.mxu0 %v11912_v27  ;;  %v15842_v27 = vmov 1.0   ;;  %vm7272_vm11 = vcmp.eq.s32.totalorder %v15840_v13, %v15025_v53  ;;  %vm7271_vm12 = vcmp.eq.s32.totalorder %v15848_v19, %v15025_v53 }
 0xd84   :  { %9670 = vmatprep.subr.mxu0 %v11918_v58  ;;  %10854 = vmatmul.mubr.msk.f32.gmra.mxu0 %vm987_vm6, %v6878_v20  ;;  %v15843_v58 = vld [vmem:[#allocation30_spill] sm:$0xff] }
 0xd85   :  { %9671 = vmatpush3.msra.mxu0 %v11924_v48  ;;  %10856 = vmatprep.mubr.msk.f32.mxu0 %vm10970_vm0, %v15508_v21  ;;  %v15844_v48 = vld [vmem:[#allocation31_spill] sm:$0xff] }
 0xd86   :  { %9672 = vmatprep.subr.mxu0 %v11930_v61  ;;  %v15845_v61 = vld [vmem:[#allocation32_spill] sm:$0xff]  ;;  %v15044_v46 = vpop.permute.xlu1 %7257 }
 0xd87   :  { %9673 = vmatpush3.msra.mxu0 %v11939_v2  ;;  %v15846_v2 = vld [vmem:[#allocation33_spill] sm:$0xff]  ;;  %vm7278_vm15 = vcmp.eq.s32.totalorder %v15840_v13, %v15044_v46  ;;  %vm7277_vm2 = vcmp.eq.s32.totalorder %v15848_v19, %v15044_v46 }
 0xd88   :  { %9674 = vmatprep.subr.mxu0 %v15835_v17  ;;  %10857 = vmatmul.mubr.msk.f32.gmra.mxu0 %vm987_vm6, %v6881_v55  ;;  %v9613_v55 = vpop.f32.mrf.mxu1 }
 0xd89   :  { %9675 = vmatpush3.msra.mxu0 %v15836_v52  ;;  %10859 = vmatprep.mubr.msk.f32.mxu0 %vm10970_vm0, %v15508_v21  ;;  %v9614_v29 = vadd.f32 %v9613_v55, %v9612_v3 }
 0xd8a   :  { %9676 = vmatprep.subr.mxu0 %v15837_v0  ;;  %v15058_v51 = vpop.permute.xlu1 %7263  ;;  %v9615_v0 = vpop.f32.mrf.mxu1 }
 0xd8b   :  { %9677 = vmatpush3.msra.mxu0 %v15838_v31 }
 0xd8c   :  { %9678 = vmatprep.subr.mxu0 %v15839_v50  ;;  %10860 = vmatmul.mubr.msk.f32.gmra.mxu0 %vm987_vm6, %v6884_v62 }
 0xd8d   :  { %9679 = vmatpush3.msra.mxu0 %v15841_v10  ;;  %8371 = vmatprep.mubr.msk.f32.mxu0 %vm7266_vm7, %v15842_v27  ;;  %vm7284_vm7 = vcmp.eq.s32.totalorder %v15840_v13, %v15058_v51  ;;  %v9616_v13 = vpop.f32.mrf.mxu1 }
 0xd8e   :  { %9680 = vmatprep.subr.mxu0 %v15843_v58 }
 0xd8f   :  { %9681 = vmatpush3.msra.mxu0 %v15844_v48  ;;  %v9608_v48 = vadd.f32 %v9607_v11, %v9606_v25 }
 0xd90   :  { %9682 = vmatprep.subr.mxu0 %v15845_v61  ;;  %v9618_v61 = vpop.f32.mrf.mxu1 }
 0xd91   :  { %9683 = vmatpush3.msra.mxu0 %v15846_v2 }
 0xd92   :  { %9684 = vmatprep.subr.mxu0 %v15847_v43 }
 0xd93   :  { %9685 = vmatpush3.msra.mxu0 %v15849_v33  ;;  %v9619_v33 = vpop.f32.mrf.mxu1 }
 0xd94   :  { %8372 = vmatmul.mubr.msk.f32.vlgmr.msra.gmra.mxu0 %vm7265_vm8, %v15842_v27  ;;  %10930 = vmatprep.subr.mxu0 %v15508_v21  ;;  %vm7283_vm8 = vcmp.eq.s32.totalorder %v15848_v19, %v15058_v51 }
 0xd95   :  { %8373 = vmatprep.mubr.msk.f32.mxu0 %vm7269_vm9, %v15842_v27  ;;  %v9621_v25 = vpop.f32.mrf.mxu1  ;;  %vm7267_vm9 = vcmp.eq.s32.totalorder %v15568_v18, %v14999_v23 }
 0xd98   :  { %8374 = vmatmul.mubr.msk.f32.gmra.mxu0 %vm7268_vm10, %v15842_v27  ;;  %vm7270_vm10 = vcmp.eq.s32.totalorder %v15568_v18, %v15013_v26 }
 0xd99   :  { %8375 = vmatprep.mubr.msk.f32.mxu0 %vm7272_vm11, %v15842_v27  ;;  %vm7273_vm11 = vcmp.eq.s32.totalorder %v15568_v18, %v15025_v53 }
 0xd9a   :  { %v7294_v23 = vsel %vm7273_vm11, 1.0, %v15508_v21 }
 0xd9c   :  { %8376 = vmatmul.mubr.msk.f32.gmra.mxu0 %vm7271_vm12, %v15842_v27  ;;  %vm7276_vm12 = vcmp.eq.s32.totalorder %v15568_v18, %v15031_v57 }
 0xd9d   :  { %8377 = vmatprep.mubr.msk.f32.mxu0 %vm7275_vm13, %v15842_v27  ;;  %v7297_v26 = vsel %vm7276_vm12, 1.0, %v15508_v21  ;;  %vm7279_vm13 = vcmp.eq.s32.totalorder %v15568_v18, %v15044_v46 }
 0xd9e   :  { %v7300_v53 = vsel %vm7279_vm13, 1.0, %v15508_v21 }
 0xda0   :  { %8378 = vmatmul.mubr.msk.f32.gmra.mxu0 %vm7274_vm14, %v15842_v27  ;;  %vm7282_vm14 = vcmp.eq.s32.totalorder %v15568_v18, %v15050_v32  ;;  %v8394_v32 = vld [vmem:[%s15354_s5 + $0xf8] sm:$0xff] }
 0xda1   :  { %8379 = vmatprep.mubr.msk.f32.mxu0 %vm7278_vm15, %v15842_v27  ;;  %v7303_v57 = vsel %vm7282_vm14, 1.0, %v15508_v21  ;;  %vm7285_vm15 = vcmp.eq.s32.totalorder %v15568_v18, %v15058_v51  ;;  %10931 = vmatpush3.msra.mxu0 %v8394_v32  ;;  %v8393_v18 = vld [vmem:[%s15354_s5 + $0xf0] sm:$0xff] }
 0xda2   :  { %v7306_v46 = vsel %vm7285_vm15, 1.0, %v15508_v21  ;;  %10932 = vmatprep.subr.mxu0 %v15508_v21 }
 0xda3   :  { %10933 = vmatpush3.msra.mxu0 %v8393_v18 }
 0xda4   :  { %8380 = vmatmul.mubr.msk.f32.gmra.mxu0 %vm7277_vm2, %v15842_v27 }
 0xda5   :  { %8381 = vmatprep.mubr.msk.f32.mxu0 %vm7281_vm3, %v15842_v27 }
 0xda8   :  { %8382 = vmatmul.mubr.msk.f32.gmra.mxu0 %vm7280_vm4, %v15842_v27 }
 0xda9   :  { %8383 = vmatprep.mubr.msk.f32.mxu0 %vm7284_vm7, %v15842_v27 }
 0xdac   :  { %8384 = vmatmul.mubr.msk.f32.gmra.mxu0 %vm7283_vm8, %v15842_v27 }
 0xdad   :  { %10934 = vmatprep.mubr.msk.f32.mxu0 %vm10970_vm0, %v15508_v21 }
 0xe18   :  { %v6774_v22 = vpop.f32.mrf.mxu0 }
 0xe19   :  { %v15077_v42 = vadd.f32 %v6774_v22, %v15850_v47  ;;  %v9622_v47 = vpop.f32.mrf.mxu1 }
 0xe1a   :  { %v10800_v1 = vpop.f32.mrf.mxu0 }
 0xe1c   :  { %v6779_v4 = vpop.f32.mrf.mxu0 }
 0xe1d   :  { %v15080_v44 = vadd.f32 %v6779_v4, %v15851_v54  ;;  %v9624_v4 = vpop.f32.mrf.mxu1 }
 0xe1e   :  { %v10803_v45 = vpop.f32.mrf.mxu0 }
 0xe20   :  { %v6784_v28 = vpop.f32.mrf.mxu0 }
 0xe21   :  { %v15083_v6 = vadd.f32 %v6784_v28, %v15852_v49 }
 0xe22   :  { %v10806_v5 = vpop.f32.mrf.mxu0 }
 0xe24   :  { %v6789_v34 = vpop.f32.mrf.mxu0 }
 0xe25   :  { %v15086_v63 = vadd.f32 %v6789_v34, %v15853_v12 }
 0xe26   :  { %v10809_v20 = vpop.f32.mrf.mxu0 }
 0xe28   :  { %v6794_v56 = vpop.f32.mrf.mxu0 }
 0xe29   :  { %v15089_v17 = vadd.f32 %v6794_v56, %v14886_v15  ;;  %v9611_v15 = vadd.f32 %v9610_v9, %v9609_v38  ;;  %v9625_v9 = vpop.f32.mrf.mxu1 }
 0xe2a   :  { %v10812_v52 = vpop.f32.mrf.mxu0 }
 0xe2c   :  { %v6799_v62 = vpop.f32.mrf.mxu0 }
 0xe2d   :  { %v15092_v31 = vadd.f32 %v6799_v62, %v14889_v36 }
 0xe2e   :  { %v10815_v50 = vpop.f32.mrf.mxu0 }
 0xe30   :  { %v6804_v10 = vpop.f32.mrf.mxu0 }
 0xe31   :  { %v15095_v27 = vadd.f32 %v6804_v10, %v14892_v39 }
 0xe32   :  { %v10818_v58 = vpop.f32.mrf.mxu0 }
 0xe34   :  { %v7072_v2 = vpop.f32.mrf.mxu0 }
 0xe35   :  { %v7073_v43 = vadd.f32 %v9608_v48, %v7072_v2 }
 0xe36   :  { %v10843_v19 = vpop.f32.mrf.mxu0 }
 0xe37   :  { %10867 = vmatmul.mubr.msk.f32.vlgmr.msra.gmra.mxu1 %vm82_vm1, %v7073_v43 }
 0xe38   :  { %10888 = vmatpush3.msk.msra.mxu1 %vm1009_vm5, %v12004_v14  ;;  %v7077_v36 = vpop.f32.mrf.mxu0  ;;  %10869 = vmatprep.mubr.msk.f32.mxu1 %vm10970_vm0, %v15508_v21 }
 0xe39   :  { %v7078_v40 = vadd.f32 %v9611_v15, %v7077_v36  ;;  %10889 = vmatprep.subr.mxu1 %v15508_v21 }
 0xe3a   :  { %10890 = vmatpush3.msra.mxu1 %v15557_v7  ;;  %v10846_v39 = vpop.f32.mrf.mxu0  ;;  %v9617_v7 = vadd.f32 %v9616_v13, %v9615_v0 }
 0xe3b   :  { %10891 = vmatprep.subr.mxu1 %v15508_v21  ;;  %10870 = vmatmul.mubr.msk.f32.gmra.mxu1 %vm82_vm1, %v7078_v40 }
 0xe3c   :  { %10892 = vmatpush3.msra.mxu1 %v15558_v41  ;;  %v7082_v11 = vpop.f32.mrf.mxu0  ;;  %10872 = vmatprep.mubr.msk.f32.mxu1 %vm10970_vm0, %v15508_v21 }
 0xe3d   :  { %v7083_v14 = vadd.f32 %v9614_v29, %v7082_v11  ;;  %10893 = vmatprep.subr.mxu1 %v15508_v21 }
 0xe3e   :  { %10894 = vmatpush3.msra.mxu1 %v15559_v59  ;;  %v10849_v22 = vpop.f32.mrf.mxu0  ;;  %v9620_v59 = vadd.f32 %v9619_v33, %v9618_v61 }
 0xe3f   :  { %10895 = vmatprep.subr.mxu1 %v15508_v21  ;;  %10873 = vmatmul.mubr.msk.f32.gmra.mxu1 %vm82_vm1, %v7083_v14 }
 0xe40   :  { %10896 = vmatpush3.msra.mxu1 %v15560_v60  ;;  %v7087_v1 = vpop.f32.mrf.mxu0  ;;  %10875 = vmatprep.mubr.msk.f32.mxu1 %vm10970_vm0, %v15508_v21 }
 0xe41   :  { %v7088_v41 = vadd.f32 %v9617_v7, %v7087_v1  ;;  %10897 = vmatprep.subr.mxu1 %v15508_v21 }
 0xe42   :  { %10898 = vmatpush3.msra.mxu1 %v15561_v37  ;;  %v10852_v38 = vpop.f32.mrf.mxu0  ;;  %v9623_v37 = vadd.f32 %v9622_v47, %v9621_v25 }
 0xe43   :  { %10899 = vmatprep.subr.mxu1 %v15508_v21  ;;  %10876 = vmatmul.mubr.msk.f32.gmra.mxu1 %vm82_vm1, %v7088_v41 }
 0xe44   :  { %10900 = vmatpush3.msra.mxu1 %v15562_v8  ;;  %v7092_v54 = vpop.f32.mrf.mxu0  ;;  %10878 = vmatprep.mubr.msk.f32.mxu1 %vm10970_vm0, %v15508_v21 }
 0xe45   :  { %v7093_v60 = vadd.f32 %v9620_v59, %v7092_v54  ;;  %10901 = vmatprep.subr.mxu1 %v15508_v21 }
 0xe46   :  { %10902 = vmatpush3.msra.mxu1 %v15563_v24  ;;  %v10855_v45 = vpop.f32.mrf.mxu0  ;;  %v9626_v24 = vadd.f32 %v9625_v9, %v9624_v4 }
 0xe47   :  { %10903 = vmatprep.subr.mxu1 %v15508_v21  ;;  %10879 = vmatmul.mubr.msk.f32.gmra.mxu1 %vm82_vm1, %v7093_v60 }
 0xe48   :  { %10904 = vmatpush3.msra.mxu1 %v15564_v35  ;;  %v7097_v28 = vpop.f32.mrf.mxu0  ;;  %10881 = vmatprep.mubr.msk.f32.mxu1 %vm10970_vm0, %v15508_v21 }
 0xe49   :  { %v7098_v8 = vadd.f32 %v9623_v37, %v7097_v28  ;;  %10905 = vmatprep.subr.mxu1 %v15508_v21 }
 0xe4a   :  { %10906 = vmatpush3.msra.mxu1 %v15565_v16  ;;  %v10858_v49 = vpop.f32.mrf.mxu0  ;;  %v7288_v16 = vsel %vm7267_vm9, 1.0, %v15508_v21 }
 0xe4b   :  { %10907 = vmatprep.subr.mxu1 %v15508_v21  ;;  %10882 = vmatmul.mubr.msk.f32.gmra.mxu1 %vm82_vm1, %v7098_v8 }
 0xe4c   :  { %10908 = vmatpush3.msra.mxu1 %v15566_v30  ;;  %v7102_v5 = vpop.f32.mrf.mxu0  ;;  %10884 = vmatprep.mubr.msk.f32.mxu1 %vm10970_vm0, %v15508_v21  ;;  %v7291_v30 = vsel %vm7270_vm10, 1.0, %v15508_v21 }
 0xe4d   :  { %v7103_v35 = vadd.f32 %v9626_v24, %v7102_v5  ;;  %10955 = vmatprep.subr.mxu1 %v15508_v21 }
 0xe4e   :  { %v10861_v3 = vpop.f32.mrf.mxu0 }
 0xe4f   :  { %10885 = vmatmul.mubr.msk.f32.gmra.mxu1 %vm82_vm1, %v7103_v35 }
 0xe50   :  { %10909 = vmatprep.mubr.msk.f32.mxu1 %vm10970_vm0, %v15508_v21 }
 0xe53   :  { %10910 = vmatmul.mubr.msk.f32.vlgmr.msra.gmra.mxu1 %vm987_vm6, %v7288_v16 }
 0xe54   :  { %10912 = vmatprep.mubr.msk.f32.mxu1 %vm10970_vm0, %v15508_v21  ;;  %10957 = vmatpush3.msra.mxu1 %v8394_v32  ;;  %v9686_v51 = vpop.f32.mrf.mxu0 }
 0xe55   :  { %10956 = vmatprep.subr.mxu1 %v15508_v21 }
 0xe56   :  { %10958 = vmatpush3.msra.mxu1 %v8393_v18  ;;  %v9687_v34 = vpop.f32.mrf.mxu0 }
 0xe57   :  { %10913 = vmatmul.mubr.msk.f32.gmra.mxu1 %vm987_vm6, %v7291_v30  ;;  %v9688_v11 = vadd.f32 %v9687_v34, %v9686_v51 }
 0xe58   :  { %10915 = vmatprep.mubr.msk.f32.mxu1 %vm10970_vm0, %v15508_v21  ;;  %v9689_v56 = vpop.f32.mrf.mxu0 }
 0xe5a   :  { %v9690_v50 = vpop.f32.mrf.mxu0 }
 0xe5b   :  { %10916 = vmatmul.mubr.msk.f32.gmra.mxu1 %vm987_vm6, %v7294_v23 }
 0xe5c   :  { %10918 = vmatprep.mubr.msk.f32.mxu1 %vm10970_vm0, %v15508_v21  ;;  %v9692_v48 = vpop.f32.mrf.mxu0 }
 0xe5e   :  { %v9693_v43 = vpop.f32.mrf.mxu0 }
 0xe5f   :  { %10919 = vmatmul.mubr.msk.f32.gmra.mxu1 %vm987_vm6, %v7297_v26  ;;  %v9694_v59 = vadd.f32 %v9693_v43, %v9692_v48 }
 0xe60   :  { %10921 = vmatprep.mubr.msk.f32.mxu1 %vm10970_vm0, %v15508_v21  ;;  %v9695_v33 = vpop.f32.mrf.mxu0 }
 0xe62   :  { %v9696_v39 = vpop.f32.mrf.mxu0 }
 0xe63   :  { %10922 = vmatmul.mubr.msk.f32.gmra.mxu1 %vm987_vm6, %v7300_v53  ;;  %v9697_v45 = vadd.f32 %v9696_v39, %v9695_v33 }
 0xe64   :  { %10924 = vmatprep.mubr.msk.f32.mxu1 %vm10970_vm0, %v15508_v21  ;;  %v9698_v14 = vpop.f32.mrf.mxu0 }
 0xe66   :  { %v9699_v1 = vpop.f32.mrf.mxu0 }
 0xe67   :  { %10925 = vmatmul.mubr.msk.f32.gmra.mxu1 %vm987_vm6, %v7303_v57  ;;  %v9700_v49 = vadd.f32 %v9699_v1, %v9698_v14 }
 0xe68   :  { %10927 = vmatprep.mubr.msk.f32.mxu1 %vm10970_vm0, %v15508_v21 }
 0xe6b   :  { %10928 = vmatmul.mubr.msk.f32.gmra.mxu1 %vm987_vm6, %v7306_v46  ;;  %vm7661_vm6 = vcmask 261120  }
 0xe6c   :  { %10946 = vmatprep.mubr.msk.f32.mxu1 %vm10970_vm0, %v15508_v21 }
 0xef7   :  { %v7196_v12 = vpop.f32.mrf.mxu1 }
 0xef8   :  { %v15192_v20 = vadd.f32 %v7196_v12, %v15077_v42 }
 0xef9   :  { %v10868_v55 = vpop.f32.mrf.mxu1 }
 0xefb   :  { %v7201_v52 = vpop.f32.mrf.mxu1 }
 0xefc   :  { %v15195_v0 = vadd.f32 %v7201_v52, %v15080_v44 }
 0xefd   :  { %v10871_v62 = vpop.f32.mrf.mxu1 }
 0xeff   :  { %v7206_v13 = vpop.f32.mrf.mxu1 }
 0xf00   :  { %v15198_v10 = vadd.f32 %v7206_v13, %v15083_v6 }
 0xf01   :  { %v10874_v58 = vpop.f32.mrf.mxu1 }
 0xf03   :  { %v7211_v61 = vpop.f32.mrf.mxu1 }
 0xf04   :  { %v15201_v2 = vadd.f32 %v7211_v61, %v15086_v63 }
 0xf05   :  { %v10877_v42 = vpop.f32.mrf.mxu1 }
 0xf07   :  { %v7216_v19 = vpop.f32.mrf.mxu1 }
 0xf08   :  { %v15204_v15 = vadd.f32 %v7216_v19, %v15089_v17  ;;  %v9691_v17 = vadd.f32 %v9690_v50, %v9689_v56 }
 0xf09   :  { %v10880_v44 = vpop.f32.mrf.mxu1 }
 0xf0b   :  { %v7221_v36 = vpop.f32.mrf.mxu1 }
 0xf0c   :  { %v15207_v40 = vadd.f32 %v7221_v36, %v15092_v31 }
 0xf0d   :  { %v10883_v6 = vpop.f32.mrf.mxu1 }
 0xf0f   :  { %v7226_v29 = vpop.f32.mrf.mxu1 }
 0xf10   :  { %v15210_v25 = vadd.f32 %v7226_v29, %v15095_v27  ;;  %v9701_v27 = vpop.f32.mrf.mxu0 }
 0xf11   :  { %v10886_v63 = vpop.f32.mrf.mxu1 }
 0xf12   :  { %v9702_v37 = vpop.f32.mrf.mxu0 }
 0xf13   :  { %v7494_v22 = vpop.f32.mrf.mxu1  ;;  %v9703_v16 = vadd.f32 %v9702_v37, %v9701_v27 }
 0xf14   :  { %v7495_v7 = vadd.f32 %v9688_v11, %v7494_v22  ;;  %v9704_v24 = vpop.f32.mrf.mxu0 }
 0xf15   :  { %v10911_v47 = vpop.f32.mrf.mxu1 }
 0xf16   :  { %10935 = vmatmul.mubr.msk.f32.vlgmr.msra.gmra.mxu0 %vm82_vm1, %v7495_v7  ;;  %v9705_v30 = vpop.f32.mrf.mxu0 }
 0xf17   :  { %v7499_v41 = vpop.f32.mrf.mxu1  ;;  %10937 = vmatprep.mubr.msk.f32.mxu0 %vm10970_vm0, %v15508_v21  ;;  %v9706_v57 = vadd.f32 %v9705_v30, %v9704_v24 }
 0xf18   :  { %v7500_v31 = vadd.f32 %v9691_v17, %v7499_v41 }
 0xf19   :  { %v10914_v38 = vpop.f32.mrf.mxu1 }
 0xf1a   :  { %10938 = vmatmul.mubr.msk.f32.gmra.mxu0 %vm82_vm1, %v7500_v31 }
 0xf1b   :  { %v7504_v4 = vpop.f32.mrf.mxu1  ;;  %10940 = vmatprep.mubr.msk.f32.mxu0 %vm10970_vm0, %v15508_v21 }
 0xf1c   :  { %v7505_v54 = vadd.f32 %v9694_v59, %v7504_v4 }
 0xf1d   :  { %v10917_v60 = vpop.f32.mrf.mxu1 }
 0xf1e   :  { %10941 = vmatmul.mubr.msk.f32.gmra.mxu0 %vm82_vm1, %v7505_v54 }
 0xf1f   :  { %v7509_v9 = vpop.f32.mrf.mxu1  ;;  %10943 = vmatprep.mubr.msk.f32.mxu0 %vm10970_vm0, %v15508_v21 }
 0xf20   :  { %v7510_v28 = vadd.f32 %v9697_v45, %v7509_v9 }
 0xf21   :  { %v10920_v8 = vpop.f32.mrf.mxu1 }
 0xf22   :  { %10944 = vmatmul.mubr.msk.f32.gmra.mxu0 %vm82_vm1, %v7510_v28 }
 0xf23   :  { %v7514_v5 = vpop.f32.mrf.mxu1 }
 0xf24   :  { %v7515_v35 = vadd.f32 %v9700_v49, %v7514_v5 }
 0xf25   :  { %v10923_v3 = vpop.f32.mrf.mxu1 }
 0xf26   :  { %10947 = vmatmul.mubr.msk.f32.vlgmr.msra.gmra.mxu1 %vm82_vm1, %v7515_v35 }
 0xf27   :  { %v7519_v23 = vpop.f32.mrf.mxu1  ;;  %10949 = vmatprep.mubr.msk.f32.mxu1 %vm10970_vm0, %v15508_v21 }
 0xf28   :  { %v7520_v26 = vadd.f32 %v9703_v16, %v7519_v23 }
 0xf29   :  { %v10926_v53 = vpop.f32.mrf.mxu1 }
 0xf2a   :  { %10950 = vmatmul.mubr.msk.f32.gmra.mxu1 %vm82_vm1, %v7520_v26 }
 0xf2b   :  { %v7524_v46 = vpop.f32.mrf.mxu1  ;;  %10952 = vmatprep.mubr.msk.f32.mxu1 %vm10970_vm0, %v15508_v21  ;;  %vm7673_vm0 = vcmask 254976  }
 0xf2c   :  { %v7525_v32 = vadd.f32 %v9706_v57, %v7524_v46 }
 0xf2d   :  { %v10929_v18 = vpop.f32.mrf.mxu1 }
 0xf2e   :  { %10953 = vmatmul.mubr.msk.f32.gmra.mxu1 %vm82_vm1, %v7525_v32  ;;  %vm7807_vm1 = vcmask 0  }
 0xfd6   :  { %v7618_v51 = vpop.f32.mrf.mxu0 }
 0xfd7   :  { %v15230_v34 = vadd.f32 %v7618_v51, %v15192_v20 }
 0xfd8   :  { %v10936_v12 = vpop.f32.mrf.mxu0 }
 0xfd9   :  { %v7683_v56 = vmul.f32 %v15230_v34, %v15230_v34  ;;  %v7662_v21 = vsel %vm7661_vm6, %v15230_v34, 0.0 }
 0xfda   :  { %v7623_v55 = vpop.f32.mrf.mxu0 }
 0xfdb   :  { %v15235_v52 = vadd.f32 %v7623_v55, %v15195_v0  ;;  %v7690_v48 = vsel %vm7661_vm6, %v7683_v56, 0.0 }
 0xfdc   :  { %v10939_v62 = vpop.f32.mrf.mxu0 }
 0xfdd   :  { %v7663_v50 = vsel %vm7661_vm6, %v15235_v52, 0.0  ;;  %v7684_v20 = vmul.f32 %v15235_v52, %v15235_v52 }
 0xfde   :  { %v7664_v13 = vadd.f32 %v7663_v50, %v7662_v21  ;;  %v7628_v58 = vpop.f32.mrf.mxu0 }
 0xfdf   :  { %v7691_v61 = vsel %vm7661_vm6, %v7684_v20, 0.0  ;;  %v15246_v42 = vadd.f32 %v7628_v58, %v15198_v10  ;;  %v7659_v20 = vld [vmem:[%s15355_s6] sm:$0x1] }
 0xfe0   :  { %v7692_v0 = vadd.f32 %v7691_v61, %v7690_v48  ;;  %v10942_v43 = vpop.f32.mrf.mxu0  ;;  %v7660_v48 = vld [vmem:[%s15356_s7] sm:$0x1] }
 0xfe1   :  { %v7665_v19 = vsel %vm7661_vm6, %v15246_v42, 0.0  ;;  %v7685_v44 = vmul.f32 %v15246_v42, %v15246_v42 }
 0xfe2   :  { %v7666_v33 = vadd.f32 %v7665_v19, %v7664_v13  ;;  %v7633_v36 = vpop.f32.mrf.mxu0 }
 0xfe3   :  { %v7693_v6 = vsel %vm7661_vm6, %v7685_v44, 0.0  ;;  %v15254_v39 = vadd.f32 %v7633_v36, %v15201_v2 }
 0xfe4   :  { %v7694_v29 = vadd.f32 %v7693_v6, %v7692_v0  ;;  %v10945_v63 = vpop.f32.mrf.mxu0  ;;  %v15854_v0 = vld [vmem:[#allocation22_spill] sm:$0xff] }
 0xfe5   :  { %v7667_v10 = vsel %vm7661_vm6, %v15254_v39, 0.0  ;;  %v7686_v11 = vmul.f32 %v15254_v39, %v15254_v39 }
 0xfe6   :  { %v7668_v14 = vadd.f32 %v7667_v10, %v7666_v33  ;;  %v7638_v22 = vpop.f32.mrf.mxu1 }
 0xfe7   :  { %v7695_v7 = vsel %vm7661_vm6, %v7686_v11, 0.0  ;;  %v7656_v47 = vadd.f32 %v7638_v22, %v15204_v15 }
 0xfe8   :  { %v7696_v17 = vadd.f32 %v7695_v7, %v7694_v29  ;;  %v10948_v1 = vpop.f32.mrf.mxu1 }
 0xfe9   :  { %v7669_v41 = vsel %vm7661_vm6, %v7656_v47, 0.0  ;;  %v7687_v2 = vmul.f32 %v7656_v47, %v7656_v47 }
 0xfea   :  { %v7670_v31 = vadd.f32 %v7669_v41, %v7668_v14  ;;  %v7643_v38 = vpop.f32.mrf.mxu1 }
 0xfeb   :  { %v7697_v59 = vsel %vm7661_vm6, %v7687_v2, 0.0  ;;  %v7657_v27 = vadd.f32 %v7643_v38, %v15207_v40 }
 0xfec   :  { %v7698_v4 = vadd.f32 %v7697_v59, %v7696_v17  ;;  %v10951_v54 = vpop.f32.mrf.mxu1 }
 0xfed   :  { %v7671_v60 = vsel %vm7661_vm6, %v7657_v27, 0.0  ;;  %v7688_v45 = vmul.f32 %v7657_v27, %v7657_v27  ;;  %v8402_v54 = vld [vmem:[%s15357_s8 + $0x38] sm:$0xff] }
 0xfee   :  { %v7672_v37 = vadd.f32 %v7671_v60, %v7670_v31  ;;  %v7648_v9 = vpop.f32.mrf.mxu1 }
 0xfef   :  { %v7699_v15 = vsel %vm7661_vm6, %v7688_v45, 0.0  ;;  %v7658_v28 = vadd.f32 %v7648_v9, %v15210_v25 }
 0xff0   :  { %v7700_v8 = vadd.f32 %v7699_v15, %v7698_v4  ;;  %v10954_v49 = vpop.f32.mrf.mxu1  ;;  %v7759_v4 = vld [vmem:[%s15357_s8 + $0x10] sm:$0xff] }
 0xff1   :  { %v7674_v24 = vsel %vm7673_vm0, %v7658_v28, 0.0  ;;  %v7689_v5 = vmul.f32 %v7658_v28, %v7658_v28 }
 0xff2   :  { %v7675_v35 = vadd.f32 %v7674_v24, %v7672_v37 }
 0xff3   :  { %v7701_v40 = vsel %vm7673_vm0, %v7689_v5, 0.0  ;;  %v7760_v5 = vld [vmem:[%s15357_s8 + $0x18] sm:$0xff] }
 0xff4   :  { %v7676_v3 = vrot.slane %v7675_v35, 4  ;;  %v7702_v16 = vadd.f32 %v7701_v40, %v7700_v8  ;;  %v7763_v40 = vld [vmem:[%s15357_s8 + $0x30] sm:$0x3] }
 0xff6   :  { %v7677_v30 = vadd.f32 %v7676_v3, %v7675_v35  ;;  %v7703_v23 = vrot.slane %v7702_v16, 4  ;;  %v8403_v35 = vld [vmem:[%s15357_s8 + $0x40] sm:$0xff] }
 0xff8   :  { %v7678_v26 = vrot.slane %v7677_v30, 2  ;;  %v7704_v53 = vadd.f32 %v7703_v23, %v7702_v16  ;;  %v8408_v16 = vld [vmem:[%s15357_s8 + $0x68] sm:$0x3] }
 0xffa   :  { %v7679_v57 = vadd.f32 %v7678_v26, %v7677_v30  ;;  %v7705_v46 = vrot.slane %v7704_v53, 2 }
 0xffc   :  { %v7680_v32 = vrot.slane %v7679_v57, 1  ;;  %v7706_v18 = vadd.f32 %v7705_v46, %v7704_v53 }
 0xffe   :  { %v7681_v51 = vadd.f32 %v7680_v32, %v7679_v57  ;;  %v7707_v25 = vrot.slane %v7706_v18, 1 }
0x1000   :  { %v7682_v12 = vmul.f32 0.02, %v7681_v51  ;;  %v7708_v55 = vadd.f32 %v7707_v25, %v7706_v18  ;;  %v7761_v18 = vld [vmem:[%s15357_s8 + $0x20] sm:$0xff]  ;;  %v8404_v51 = vld [vmem:[%s15357_s8 + $0x48] sm:$0xff] }
0x1002   :  { %v7709_v56 = vmul.f32 0.02, %v7708_v55  ;;  %v7710_v62 = vmul.f32 %v7682_v12, %v7682_v12 }
0x1004   :  { %v7711_v21 = vsub.f32 %v7709_v56, %v7710_v62 }
0x1006   :  { %v7712_v50 = vadd.f32 1e-05, %v7711_v21 }
0x1008   :  { %10967 = vrsqrt.f32 %v7712_v50 }
0x1015   :  { %v10968_v13 = vpop.eup %10967 }
0x1016   :  { %v7714_v58 = vmul.f32 %v10968_v13, %v7659_v20  ;;  %v7762_v13 = vld [vmem:[%s15357_s8 + $0x28] sm:$0xff] }
0x1018   :  { %v7715_v61 = vmul.f32 %v7714_v58, %v7682_v12  ;;  %v7721_v43 = vrot.slane %v7714_v58, %v15854_v0  ;;  %v8405_v58 = vld [vmem:[%s15357_s8 + $0x50] sm:$0xff] }
0x101a   :  { %v7716_v19 = vsub.f32 %v7660_v48, %v7715_v61  ;;  %v7729_v44 = vmul.f32 %v7721_v43, %v7658_v28  ;;  %v7724_v33 = vmul.f32 %v7721_v43, %v15235_v52  ;;  %v7723_v36 = vmul.f32 %v7721_v43, %v15230_v34  ;;  %v7758_v34 = vld [vmem:[%s15357_s8 + $0x8] sm:$0xff] }
0x101b   :  { %v7725_v6 = vmul.f32 %v7721_v43, %v15246_v42  ;;  %v7726_v29 = vmul.f32 %v7721_v43, %v15254_v39  ;;  %v7727_v63 = vmul.f32 %v7721_v43, %v7656_v47  ;;  %v7728_v10 = vmul.f32 %v7721_v43, %v7657_v27  ;;  %v7757_v42 = vld [vmem:[%s15357_s8] sm:$0xff] }
0x101c   :  { %v7734_v11 = vrot.slane %v7716_v19, %v15854_v0  ;;  %v8406_v19 = vld [vmem:[%s15357_s8 + $0x58] sm:$0xff] }
0x101e   :  { %v7742_v14 = vadd.f32 %v7734_v11, %v7729_v44  ;;  %v7737_v22 = vadd.f32 %v7734_v11, %v7724_v33  ;;  %v7736_v7 = vadd.f32 %v7734_v11, %v7723_v36  ;;  %v7738_v17 = vadd.f32 %v7734_v11, %v7725_v6  ;;  %v8407_v6 = vld [vmem:[%s15357_s8 + $0x60] sm:$0xff] }
0x101f   :  { %v7739_v1 = vadd.f32 %v7734_v11, %v7726_v29  ;;  %v7740_v41 = vadd.f32 %v7734_v11, %v7727_v63  ;;  %v7741_v2 = vadd.f32 %v7734_v11, %v7728_v10  ;;  %v15_v11 = vstv %s15358_s9 }
0x1020   :  { %v7744_v31 = vmul.f32 0.2, %v7737_v22  ;;  %v7743_v38 = vmul.f32 0.2, %v7736_v7  ;;  %v7745_v52 = vmul.f32 0.2, %v7738_v17 }
0x1021   :  { %v7746_v39 = vmul.f32 0.2, %v7739_v1  ;;  %v7749_v37 = vmul.f32 0.2, %v7742_v14  ;;  %v7747_v15 = vmul.f32 0.2, %v7740_v41 }
0x1022   :  { %v7751_v47 = vmax.f32 %v7737_v22, %v7744_v31  ;;  %v7750_v59 = vmax.f32 %v7736_v7, %v7743_v38  ;;  %v7752_v27 = vmax.f32 %v7738_v17, %v7745_v52  ;;  %v7748_v26 = vmul.f32 0.2, %v7741_v2  ;;  %16 = vst [vmem:[#allocation2] sm:$0x1] %v15_v11 }
0x1023   :  { %v7753_v9 = vmax.f32 %v7739_v1, %v7746_v39  ;;  %v7756_v3 = vmax.f32 %v7742_v14, %v7749_v37  ;;  %v7754_v23 = vmax.f32 %v7740_v41, %v7747_v15 }
0x1024   :  { %v7765_v60 = vmul.f32 %v7758_v34, %v7751_v47  ;;  %v7764_v45 = vmul.f32 %v7757_v42, %v7750_v59  ;;  %v7766_v49 = vmul.f32 %v7759_v4, %v7752_v27  ;;  %v7817_v24 = vmul.f32 %v8402_v54, %v7750_v59 }
0x1025   :  { %v7767_v30 = vmul.f32 %v7760_v5, %v7753_v9  ;;  %v7818_v46 = vmul.f32 %v8403_v35, %v7751_v47  ;;  %v7770_v32 = vmul.f32 %v7763_v40, %v7756_v3  ;;  %v7823_v25 = vmul.f32 %v8408_v16, %v7756_v3 }
0x1026   :  { %v7774_v28 = vsel %vm7661_vm6, %v7765_v60, 0.0  ;;  %v7771_v8 = vsel %vm7661_vm6, %v7764_v45, 0.0  ;;  %v7777_v53 = vsel %vm7661_vm6, %v7766_v49, 0.0  ;;  %v7824_v57 = vsel %vm7661_vm6, %v7817_v24, 0.0 }
0x1027   :  { %7775 = vadd.xlane.f32.xlu1 %v7774_v28  ;;  %7772 = vadd.xlane.f32.xlu0 %v7771_v8  ;;  %v7789_v12 = vsel %vm7673_vm0, %v7770_v32, 0.0  ;;  %v7755_v55 = vmax.f32 %v7741_v2, %v7748_v26  ;;  %v7842_v56 = vsel %vm7673_vm0, %v7823_v25, 0.0  ;;  %v7780_v62 = vsel %vm7661_vm6, %v7767_v30, 0.0 }
0x1028   :  { %v7827_v21 = vsel %vm7661_vm6, %v7818_v46, 0.0  ;;  %v7768_v50 = vmul.f32 %v7761_v18, %v7754_v23  ;;  %v7819_v20 = vmul.f32 %v8404_v51, %v7752_v27  ;;  %v7820_v43 = vmul.f32 %v8405_v58, %v7753_v9 }
0x1029   :  { %v7769_v0 = vmul.f32 %v7762_v13, %v7755_v55  ;;  %v7821_v36 = vmul.f32 %v8406_v19, %v7754_v23  ;;  %v7822_v63 = vmul.f32 %v8407_v6, %v7755_v55  ;;  %v7805_v26 = vld [vmem:[#allocation2] sm:$0x1] }
0x102a   :  { %v7783_v48 = vsel %vm7661_vm6, %v7768_v50, 0.0  ;;  %v7830_v61 = vsel %vm7661_vm6, %v7819_v20, 0.0  ;;  %v7833_v33 = vsel %vm7661_vm6, %v7820_v43, 0.0  ;;  %v7858_v25 = vld [vmem:[#allocation2] sm:$0x1] }
0x102b   :  { %7778 = vadd.xlane.f32.xlu1 %v7777_v53  ;;  %7825 = vadd.xlane.f32.xlu0 %v7824_v57  ;;  %v7786_v44 = vsel %vm7661_vm6, %v7769_v0, 0.0  ;;  %v7836_v29 = vsel %vm7661_vm6, %v7821_v36, 0.0  ;;  %v7839_v10 = vsel %vm7661_vm6, %v7822_v63, 0.0 }
0x102f   :  { %7781 = vadd.xlane.f32.xlu1 %v7780_v62  ;;  %7828 = vadd.xlane.f32.xlu0 %v7827_v21 }
0x1033   :  { %7784 = vadd.xlane.f32.xlu1 %v7783_v48  ;;  %7831 = vadd.xlane.f32.xlu0 %v7830_v61 }
0x1037   :  { %7787 = vadd.xlane.f32.xlu1 %v7786_v44  ;;  %7834 = vadd.xlane.f32.xlu0 %v7833_v33 }
0x103b   :  { %7790 = vadd.xlane.f32.xlu1 %v7789_v12  ;;  %7837 = vadd.xlane.f32.xlu0 %v7836_v29 }
0x103f   :  { %7840 = vadd.xlane.f32.xlu0 %v7839_v10 }
0x1043   :  { %7843 = vadd.xlane.f32.xlu0 %v7842_v56 }
0x10b0   :  { %v7776_v14 = vpop.xlane.xlu1 %7775  ;;  %v7773_v22 = vpop.xlane.xlu0 %7772 }
0x10b1   :  { %v7792_v2 = vadd.f32 %v7776_v14, %v7773_v22 }
0x10b4   :  { %v7779_v7 = vpop.xlane.xlu1 %7778  ;;  %v7826_v17 = vpop.xlane.xlu0 %7825 }
0x10b5   :  { %v7793_v52 = vadd.f32 %v7792_v2, %v7779_v7 }
0x10b8   :  { %v7782_v1 = vpop.xlane.xlu1 %7781  ;;  %v7829_v41 = vpop.xlane.xlu0 %7828 }
0x10b9   :  { %v7794_v34 = vadd.f32 %v7793_v52, %v7782_v1  ;;  %v7845_v59 = vadd.f32 %v7829_v41, %v7826_v17 }
0x10bc   :  { %v7785_v31 = vpop.xlane.xlu1 %7784  ;;  %v7832_v38 = vpop.xlane.xlu0 %7831 }
0x10bd   :  { %v7795_v47 = vadd.f32 %v7794_v34, %v7785_v31  ;;  %v7846_v45 = vadd.f32 %v7845_v59, %v7832_v38 }
0x10c0   :  { %v7788_v42 = vpop.xlane.xlu1 %7787  ;;  %v7835_v39 = vpop.xlane.xlu0 %7834 }
0x10c1   :  { %v7796_v27 = vadd.f32 %v7795_v47, %v7788_v42  ;;  %v7847_v9 = vadd.f32 %v7846_v45, %v7835_v39 }
0x10c4   :  { %v7791_v4 = vpop.xlane.xlu1 %7790  ;;  %v7838_v54 = vpop.xlane.xlu0 %7837 }
0x10c5   :  { %v7797_v60 = vsel %vm1009_vm5, %v7791_v4, 0.0  ;;  %v7848_v49 = vadd.f32 %v7847_v9, %v7838_v54 }
0x10c6   :  { %v7798_v37 = vadd.f32 %v7797_v60, %v7796_v27 }
0x10c8   :  { %v7799_v15 = vrot.slane %v7798_v37, 4  ;;  %v7841_v28 = vpop.xlane.xlu0 %7840 }
0x10c9   :  { %v7849_v5 = vadd.f32 %v7848_v49, %v7841_v28 }
0x10ca   :  { %v7800_v8 = vadd.f32 %v7799_v15, %v7798_v37 }
0x10cc   :  { %v7801_v24 = vrot.slane %v7800_v8, 2  ;;  %v7844_v35 = vpop.xlane.xlu0 %7843 }
0x10cd   :  { %v7850_v40 = vsel %vm1009_vm5, %v7844_v35, 0.0 }
0x10ce   :  { %v7802_v3 = vadd.f32 %v7801_v24, %v7800_v8  ;;  %v7851_v16 = vadd.f32 %v7850_v40, %v7849_v5 }
0x10d0   :  { %v7803_v30 = vrot.slane %v7802_v3, 1  ;;  %v7852_v23 = vrot.slane %v7851_v16, 4 }
0x10d2   :  { %v7804_v53 = vadd.f32 %v7803_v30, %v7802_v3  ;;  %v7853_v57 = vadd.f32 %v7852_v23, %v7851_v16 }
0x10d4   :  { %v7806_v46 = vadd.f32 %v7805_v26, %v7804_v53  ;;  %v7854_v32 = vrot.slane %v7853_v57, 2 }
0x10d6   :  { %7808 = vst.msk [vmem:[%s15359_s10] sm:$0x1] %vm7807_vm1, %v7806_v46  ;;  %v7855_v18 = vadd.f32 %v7854_v32, %v7853_v57 }
0x10d8   :  { %v7856_v51 = vrot.slane %v7855_v18, 1 }
0x10da   :  { %v7857_v12 = vadd.f32 %v7856_v51, %v7855_v18 }
0x10dc   :  { %v7859_v55 = vadd.f32 %v7858_v25, %v7857_v12 }
0x10de   :  { %7860 = vst.msk [vmem:[%s15359_s10 + $0x1] sm:$0x1] %vm7807_vm1, %v7859_v55 }

</bundles_post_ra>
